<compile_context>
chip_gen: v7x
topology: tpu7x:2x2x1
jax: 0.10.0
libtpu: 0.0.40
codegen_flags: <defaults>
</compile_context>

<pallas_src>
from functools import partial

import numpy as np
import jax
import jax.numpy as jnp
from jax.experimental import pallas as pl
from jax.experimental.pallas import tpu as pltpu


def _round_up(x, m):
    return (x + m - 1) // m * m


def _pick_tile_h(H, max_th):
    """Largest divisor of H that is <= max_th (keeps row tiles exact)."""
    th = min(H, max_th)
    while H % th:
        th -= 1
    return th


def _itemsize(dt):
    return np.dtype(dt).itemsize


# ----------------------------------------------------------------------------
# Fused kernel: subpixel ConvTranspose2d + phase-space Conv2d (one row tile)
# ----------------------------------------------------------------------------
def _fused_upsample_kernel(x_ref, wa_ref, ba_ref, wb_ref, bb_ref, o_ref,
                           patch_ref, yp_ref, *, TH, W, Cin, C):
    f32 = jnp.float32
    C4 = 4 * C
    Hr = TH + 2                     # phase rows of this tile incl. 1-row halo each side
    i = pl.program_id(1)
    n_rt = pl.num_programs(1)
    row0 = i * TH
    if TH & (TH - 1) == 0:          # alignment hint only when TH is a power of two
        row0 = pl.multiple_of(row0, TH)

    # ---- Stage A: ConvTranspose2d(5, s=2, p=2, op=1) in subpixel form -----------------
    # Gather the 3x3 subpixel taps into one im2col buffer (K = 9*Cin), then a single MXU
    # matmul producing all 4 output phases; bias-add + downcast fused into the one store.
    for t in range(9):
        dh, dw = divmod(t, 3)
        patch_ref[:, :, t * Cin:(t + 1) * Cin] = (
            x_ref[pl.ds(row0 + dh, Hr), dw:dw + W, :])
    ya = jnp.dot(patch_ref[...].reshape(Hr * W, 9 * Cin), wa_ref[...],
                 preferred_element_type=f32)
    ya = (ya + ba_ref[...]).reshape(Hr, W, C4)
    yp_ref[:, 1:W + 1, :] = ya.astype(yp_ref.dtype)

    # Halo columns / boundary halo rows ARE the 3x3 conv's zero padding (no iota/where).
    zcol = jnp.zeros((Hr, 1, C4), yp_ref.dtype)
    yp_ref[:, 0:1, :] = zcol
    yp_ref[:, W + 1:W + 2, :] = zcol

    @pl.when(i == 0)
    def _():
        yp_ref[0:1, :, :] = jnp.zeros((1, W + 2, C4), yp_ref.dtype)

    @pl.when(i == n_rt - 1)
    def _():
        yp_ref[Hr - 1:Hr, :, :] = jnp.zeros((1, W + 2, C4), yp_ref.dtype)

    # ---- Stage B: Conv2d(3, s=1, p=1) evaluated in phase space --------------------------
    # One (TH*W, 9C) x (9C, C) matmul per output phase -> 36*H*W*C^2 MACs total.
    # The tap/phase selection lives in the patch gathering; the weight is phase-invariant.
    for q in range(4):
        qr, qc = divmod(q, 2)
        for t in range(9):
            kh, kw = divmod(t, 3)
            tr, tc = qr + kh - 1, qc + kw - 1
            ar, ac = tr // 2, tc // 2            # floor division (tr/tc may be -1)
            br, bc = tr - 2 * ar, tc - 2 * ac    # input phase parity
            p = br * 2 + bc
            patch_ref[0:TH, :, t * C:(t + 1) * C] = (
                yp_ref[ar + 1:ar + 1 + TH, ac + 1:ac + 1 + W, p * C:(p + 1) * C])
        oq = jnp.dot(patch_ref[0:TH].reshape(TH * W, 9 * C), wb_ref[...],
                     preferred_element_type=f32)
        oq = (oq + bb_ref[...]).reshape(TH, W, C)
        o_ref[:, :, q * C:(q + 1) * C] = oq.astype(o_ref.dtype)


def _fused_upsample_pallas(xpad, wa, ba, wb, bb, *, H, W, TH, out_dtype):
    N, Hx, Wx, Cin = xpad.shape
    C4 = ba.shape[-1]
    C = C4 // 4
    assert Cin == C, "UpSample uses in_ch == out_ch for both convs"
    assert H % TH == 0
    n_rt = H // TH
    Hr = TH + 2

    kernel = partial(_fused_upsample_kernel, TH=TH, W=W, Cin=Cin, C=C)

    # vmem limit derived from the actual (double-buffered) block + scratch sizes.
    act_b = _itemsize(xpad.dtype)
    io_bytes = 2 * (Hx * Wx * Cin * act_b
                    + TH * W * C4 * _itemsize(out_dtype)
                    + wa.size * _itemsize(wa.dtype)
                    + wb.size * _itemsize(wb.dtype)
                    + (ba.size + bb.size) * 4)
    scratch_bytes = (Hr * W * 9 * Cin + Hr * (W + 2) * C4) * act_b
    vmem_limit = int(min(max(2 * (io_bytes + scratch_bytes), 32 * 2**20), 100 * 2**20))

    return pl.pallas_call(
        kernel,
        out_shape=jax.ShapeDtypeStruct((N, H, W, C4), out_dtype),
        grid_spec=pltpu.PrefetchScalarGridSpec(
            num_scalar_prefetch=0,
            grid=(N, n_rt),
            in_specs=[
                # whole (compact, pre-padded) image per batch element; index is
                # i-invariant so it is fetched once per n and stays VMEM-resident.
                pl.BlockSpec((None, Hx, Wx, Cin), lambda n, i: (n, 0, 0, 0)),
                pl.BlockSpec(wa.shape, lambda n, i: (0, 0)),
                pl.BlockSpec(ba.shape, lambda n, i: (0, 0)),
                pl.BlockSpec(wb.shape, lambda n, i: (0, 0)),
                pl.BlockSpec(bb.shape, lambda n, i: (0, 0)),
            ],
            out_specs=pl.BlockSpec((None, TH, W, C4), lambda n, i: (n, i, 0, 0)),
            scratch_shapes=[
                pltpu.VMEM((Hr, W, 9 * Cin), xpad.dtype),   # shared im2col patch (A & B)
                pltpu.VMEM((Hr, W + 2, C4), xpad.dtype),    # stage-A output in phase space
            ],
        ),
        compiler_params=pltpu.CompilerParams(
            dimension_semantics=("parallel", "parallel"),
            vmem_limit_bytes=vmem_limit,
        ),
    )(xpad, wa, ba, wb, bb)


# ----------------------------------------------------------------------------
# Weight re-packing (pure JAX, tiny, once per forward)
# ----------------------------------------------------------------------------
def _build_fused_weights(params):
    w_t = params["w_t"].astype(jnp.float32)   # (Cin, C, 5, 5)  ConvTranspose2d
    w_c = params["w_c"].astype(jnp.float32)   # (C,   C, 3, 3)  Conv2d (O, I, kh, kw)
    Cin, C = w_t.shape[0], w_t.shape[1]

    # Stage A (subpixel):  y_phase[r, c, p*C+co] =
    #   b_t[co] + sum_{dh,dw,ci} x[r+dh-1, c+dw-1, ci] * w_t[ci, co, 4+pr-2dh, 4+pc-2dw]
    # packed so K index = (dh*3+dw)*Cin + ci and N index = (pr*2+pc)*C + co.
    wa = jnp.zeros((3, 3, Cin, 2, 2, C), jnp.float32)
    for dh in range(3):
        for pr in range(2):
            kh = 4 + pr - 2 * dh
            if not (0 <= kh <= 4):
                continue
            for dw in range(3):
                for pc in range(2):
                    kw = 4 + pc - 2 * dw
                    if not (0 <= kw <= 4):
                        continue
                    wa = wa.at[dh, dw, :, pr, pc, :].set(w_t[:, :, kh, kw])
    wa = wa.reshape(9 * Cin, 4 * C)

    # Stage B: phase-invariant (9C, C) weight; K index = (kh*3+kw)*C + ci.
    wb = jnp.transpose(w_c, (2, 3, 1, 0)).reshape(9 * C, C)

    ba = jnp.tile(params["b_t"].astype(jnp.float32), 4).reshape(1, 4 * C)
    bb = params["b_c"].astype(jnp.float32).reshape(1, C)
    return wa, ba, wb, bb


# ----------------------------------------------------------------------------
# Public module
# ----------------------------------------------------------------------------
def init_upsample_params(key, in_ch):
    """Deterministic param init matching the PyTorch module's shapes."""
    k1, k2, k3, k4 = jax.random.split(key, 4)
    bt = 1.0 / np.sqrt(in_ch * 5 * 5)
    w_t = jax.random.uniform(k1, (in_ch, in_ch, 5, 5), jnp.float32, -bt, bt)
    b_t = jax.random.uniform(k2, (in_ch,), jnp.float32, -bt, bt)
    bc = 1.0 / np.sqrt(in_ch * 3 * 3)
    w_c = jax.random.uniform(k3, (in_ch, in_ch, 3, 3), jnp.float32, -bc, bc)
    b_c = jax.random.uniform(k4, (in_ch,), jnp.float32, -bc, bc)
    return dict(w_t=w_t, b_t=b_t, w_c=w_c, b_c=b_c)


def upsample_forward(params, x_nchw, temb=None, cemb=None, *,
                     compute_dtype=jnp.float32, max_tile_h=8):
    """Forward of UpSample; temb/cemb accepted but unused (as in the PyTorch module)."""
    N, C, H, W = x_nchw.shape
    TH = _pick_tile_h(H, max_tile_h)
    Wx = _round_up(W + 2, 8)

    x_nhwc = jnp.transpose(x_nchw, (0, 2, 3, 1)).astype(compute_dtype)
    # Pad only the SMALL input: 2 rows top/bottom (row-tile halo), 1 col left,
    # >=1 col right (+ lane/sublane alignment).  Large intermediates never hit HBM.
    xpad = jnp.pad(x_nhwc, ((0, 0), (2, 2), (1, Wx - W - 1), (0, 0)))

    wa, ba, wb, bb = _build_fused_weights(params)
    wa = wa.astype(compute_dtype)
    wb = wb.astype(compute_dtype)

    out_phase = _fused_upsample_pallas(xpad, wa, ba, wb, bb, H=H, W=W, TH=TH,
                                       out_dtype=compute_dtype)   # (N, H, W, 4*C)

    # Depth-to-space folded into the mandatory NHWC->NCHW transpose.
    op = out_phase.reshape(N, H, W, 2, 2, C)                      # (n, R, C_, qr, qc, co)
    out = jnp.transpose(op, (0, 5, 1, 3, 2, 4)).reshape(N, C, 2 * H, 2 * W)
    return out


def upsample_ref(params, x_nchw):
    """Pure-XLA reference with identical semantics (for verification)."""
    w_t = params["w_t"]
    w_flip = jnp.transpose(w_t[:, :, ::-1, ::-1], (1, 0, 2, 3))   # (O, I, KH, KW)
    y = jax.lax.conv_general_dilated(
        x_nchw, w_flip, window_strides=(1, 1),
        padding=[(2, 3), (2, 3)], lhs_dilation=(2, 2),
        dimension_numbers=("NCHW", "OIHW", "NCHW"))
    y = y + params["b_t"][None, :, None, None]
    y = jax.lax.conv_general_dilated(
        y, params["w_c"], window_strides=(1, 1), padding=[(1, 1), (1, 1)],
        dimension_numbers=("NCHW", "OIHW", "NCHW"))
    y = y + params["b_c"][None, :, None, None]
    return y


if __name__ == "__main__":
    key = jax.random.PRNGKey(0)
    kx, kt, kc, kp = jax.random.split(key, 4)

    N, C, H, W = 2, 4, 16, 16
    x = jax.random.normal(kx, (N, C, H, W), jnp.float32)
    temb = jax.random.normal(kt, (N, 32), jnp.float32)   # unused by the module
    cemb = jax.random.normal(kc, (N, 32), jnp.float32)   # unused by the module
    params = init_upsample_params(kp, C)

    # f32 data path (exercises 2 row tiles: TH=8, H=16), checked against XLA reference.
    fwd = jax.jit(upsample_forward)
    out = jax.block_until_ready(fwd(params, x, temb, cemb))
    assert out.shape == (N, C, 2 * H, 2 * W), out.shape
    ref = jax.block_until_ready(upsample_ref(params, x))
    np.testing.assert_allclose(np.asarray(out), np.asarray(ref), rtol=1e-3, atol=1e-3)

    # bf16 activations/weights + bf16 output (f32 MXU accumulation), loose tolerance.
    fwd_bf16 = jax.jit(partial(upsample_forward, compute_dtype=jnp.bfloat16))
    out_bf16 = jax.block_until_ready(fwd_bf16(params, x, temb, cemb))
    np.testing.assert_allclose(np.asarray(out_bf16).astype(np.float32),
                               np.asarray(ref), rtol=1e-1, atol=1e-1)

    # Odd-shape coverage: H != W, W not a multiple of 8, non-power-of-two row tile (TH=6).
    N2, C2, H2, W2 = 1, 8, 12, 10
    x2 = jax.random.normal(kx, (N2, C2, H2, W2), jnp.float32)
    params2 = init_upsample_params(kp, C2)
    out2 = jax.block_until_ready(jax.jit(upsample_forward)(params2, x2))
    ref2 = jax.block_until_ready(upsample_ref(params2, x2))
    np.testing.assert_allclose(np.asarray(out2), np.asarray(ref2), rtol=1e-3, atol=1e-3)

    print("KERNEL_OK")
</pallas_src>

<mosaic_0001>
module attributes {stable_mosaic.version = 11 : i64} {
  func.func @_fused_upsample_kernel(%arg0: i32, %arg1: i32, %arg2: memref<1x20x24x4xf32, #tpu.memory_space<vmem>>, %arg3: memref<36x16xf32, #tpu.memory_space<vmem>>, %arg4: memref<1x16xf32, #tpu.memory_space<vmem>>, %arg5: memref<36x4xf32, #tpu.memory_space<vmem>>, %arg6: memref<1x4xf32, #tpu.memory_space<vmem>>, %arg7: memref<1x8x16x16xf32, #tpu.memory_space<vmem>>, %arg8: memref<10x16x36xf32, #tpu.memory_space<vmem>>, %arg9: memref<10x18x16xf32, #tpu.memory_space<vmem>>) attributes {dimension_semantics = [#tpu.dimension_semantics<parallel>, #tpu.dimension_semantics<parallel>], iteration_bounds = array<i64: 2, 2>, scalar_prefetch = 0 : i64, scratch_operands = 2 : i64, tpu.core_type = #tpu.core_type<tc>, window_params = [{transform_indices = @transform_0, window_bounds = array<i64: 1, 20, 24, 4>}, {pipeline_mode = #tpu.pipeline_mode<synchronous>, transform_indices = @transform_1, window_bounds = array<i64: 36, 16>}, {pipeline_mode = #tpu.pipeline_mode<synchronous>, transform_indices = @transform_2, window_bounds = array<i64: 1, 16>}, {pipeline_mode = #tpu.pipeline_mode<synchronous>, transform_indices = @transform_3, window_bounds = array<i64: 36, 4>}, {pipeline_mode = #tpu.pipeline_mode<synchronous>, transform_indices = @transform_4, window_bounds = array<i64: 1, 4>}, {transform_indices = @transform_5, window_bounds = array<i64: 1, 8, 16, 16>}]} {
    %c8_i32 = arith.constant 8 : i32
    %0 = arith.muli %arg1, %c8_i32 : i32
    %1 = tpu.assume_multiple %0, 8 : i32
    %c0_i32 = arith.constant 0 : i32
    %2 = arith.addi %1, %c0_i32 : i32
    %c0 = arith.constant 0 : index
    %3 = arith.index_cast %2 : i32 to index
    %c0_0 = arith.constant 0 : index
    %c0_1 = arith.constant 0 : index
    %4 = vector.load %arg2[%c0, %3, %c0_0, %c0_1] : memref<1x20x24x4xf32, #tpu.memory_space<vmem>>, vector<1x10x16x4xf32>
    %5 = vector.shape_cast %4 : vector<1x10x16x4xf32> to vector<10x16x4xf32>
    %c0_2 = arith.constant 0 : index
    %c0_3 = arith.constant 0 : index
    %c0_4 = arith.constant 0 : index
    %6 = vector.load %arg8[%c0_2, %c0_3, %c0_4] : memref<10x16x36xf32, #tpu.memory_space<vmem>>, vector<10x16x4xf32>
    tpu.vector_store %arg8[%c0_2, %c0_3, %c0_4], %5 {strides = array<i32>} : memref<10x16x36xf32, #tpu.memory_space<vmem>>, vector<10x16x4xf32>,
    %c0_i32_5 = arith.constant 0 : i32
    %7 = arith.addi %1, %c0_i32_5 : i32
    %c0_6 = arith.constant 0 : index
    %8 = arith.index_cast %7 : i32 to index
    %c1 = arith.constant 1 : index
    %c0_7 = arith.constant 0 : index
    %9 = vector.load %arg2[%c0_6, %8, %c1, %c0_7] : memref<1x20x24x4xf32, #tpu.memory_space<vmem>>, vector<1x10x16x4xf32>
    %10 = vector.shape_cast %9 : vector<1x10x16x4xf32> to vector<10x16x4xf32>
    %c0_8 = arith.constant 0 : index
    %c0_9 = arith.constant 0 : index
    %c4 = arith.constant 4 : index
    %11 = vector.load %arg8[%c0_8, %c0_9, %c4] : memref<10x16x36xf32, #tpu.memory_space<vmem>>, vector<10x16x4xf32>
    tpu.vector_store %arg8[%c0_8, %c0_9, %c4], %10 {strides = array<i32>} : memref<10x16x36xf32, #tpu.memory_space<vmem>>, vector<10x16x4xf32>,
    %c0_i32_10 = arith.constant 0 : i32
    %12 = arith.addi %1, %c0_i32_10 : i32
    %c0_11 = arith.constant 0 : index
    %13 = arith.index_cast %12 : i32 to index
    %c2 = arith.constant 2 : index
    %c0_12 = arith.constant 0 : index
    %14 = vector.load %arg2[%c0_11, %13, %c2, %c0_12] : memref<1x20x24x4xf32, #tpu.memory_space<vmem>>, vector<1x10x16x4xf32>
    %15 = vector.shape_cast %14 : vector<1x10x16x4xf32> to vector<10x16x4xf32>
    %c0_13 = arith.constant 0 : index
    %c0_14 = arith.constant 0 : index
    %c8 = arith.constant 8 : index
    %16 = vector.load %arg8[%c0_13, %c0_14, %c8] : memref<10x16x36xf32, #tpu.memory_space<vmem>>, vector<10x16x4xf32>
    tpu.vector_store %arg8[%c0_13, %c0_14, %c8], %15 {strides = array<i32>} : memref<10x16x36xf32, #tpu.memory_space<vmem>>, vector<10x16x4xf32>,
    %c1_i32 = arith.constant 1 : i32
    %17 = arith.addi %1, %c1_i32 : i32
    %c0_15 = arith.constant 0 : index
    %18 = arith.index_cast %17 : i32 to index
    %c0_16 = arith.constant 0 : index
    %c0_17 = arith.constant 0 : index
    %19 = vector.load %arg2[%c0_15, %18, %c0_16, %c0_17] : memref<1x20x24x4xf32, #tpu.memory_space<vmem>>, vector<1x10x16x4xf32>
    %20 = vector.shape_cast %19 : vector<1x10x16x4xf32> to vector<10x16x4xf32>
    %c0_18 = arith.constant 0 : index
    %c0_19 = arith.constant 0 : index
    %c12 = arith.constant 12 : index
    %21 = vector.load %arg8[%c0_18, %c0_19, %c12] : memref<10x16x36xf32, #tpu.memory_space<vmem>>, vector<10x16x4xf32>
    tpu.vector_store %arg8[%c0_18, %c0_19, %c12], %20 {strides = array<i32>} : memref<10x16x36xf32, #tpu.memory_space<vmem>>, vector<10x16x4xf32>,
    %c1_i32_20 = arith.constant 1 : i32
    %22 = arith.addi %1, %c1_i32_20 : i32
    %c0_21 = arith.constant 0 : index
    %23 = arith.index_cast %22 : i32 to index
    %c1_22 = arith.constant 1 : index
    %c0_23 = arith.constant 0 : index
    %24 = vector.load %arg2[%c0_21, %23, %c1_22, %c0_23] : memref<1x20x24x4xf32, #tpu.memory_space<vmem>>, vector<1x10x16x4xf32>
    %25 = vector.shape_cast %24 : vector<1x10x16x4xf32> to vector<10x16x4xf32>
    %c0_24 = arith.constant 0 : index
    %c0_25 = arith.constant 0 : index
    %c16 = arith.constant 16 : index
    %26 = vector.load %arg8[%c0_24, %c0_25, %c16] : memref<10x16x36xf32, #tpu.memory_space<vmem>>, vector<10x16x4xf32>
    tpu.vector_store %arg8[%c0_24, %c0_25, %c16], %25 {strides = array<i32>} : memref<10x16x36xf32, #tpu.memory_space<vmem>>, vector<10x16x4xf32>,
    %c1_i32_26 = arith.constant 1 : i32
    %27 = arith.addi %1, %c1_i32_26 : i32
    %c0_27 = arith.constant 0 : index
    %28 = arith.index_cast %27 : i32 to index
    %c2_28 = arith.constant 2 : index
    %c0_29 = arith.constant 0 : index
    %29 = vector.load %arg2[%c0_27, %28, %c2_28, %c0_29] : memref<1x20x24x4xf32, #tpu.memory_space<vmem>>, vector<1x10x16x4xf32>
    %30 = vector.shape_cast %29 : vector<1x10x16x4xf32> to vector<10x16x4xf32>
    %c0_30 = arith.constant 0 : index
    %c0_31 = arith.constant 0 : index
    %c20 = arith.constant 20 : index
    %31 = vector.load %arg8[%c0_30, %c0_31, %c20] : memref<10x16x36xf32, #tpu.memory_space<vmem>>, vector<10x16x4xf32>
    tpu.vector_store %arg8[%c0_30, %c0_31, %c20], %30 {strides = array<i32>} : memref<10x16x36xf32, #tpu.memory_space<vmem>>, vector<10x16x4xf32>,
    %c2_i32 = arith.constant 2 : i32
    %32 = arith.addi %1, %c2_i32 : i32
    %c0_32 = arith.constant 0 : index
    %33 = arith.index_cast %32 : i32 to index
    %c0_33 = arith.constant 0 : index
    %c0_34 = arith.constant 0 : index
    %34 = vector.load %arg2[%c0_32, %33, %c0_33, %c0_34] : memref<1x20x24x4xf32, #tpu.memory_space<vmem>>, vector<1x10x16x4xf32>
    %35 = vector.shape_cast %34 : vector<1x10x16x4xf32> to vector<10x16x4xf32>
    %c0_35 = arith.constant 0 : index
    %c0_36 = arith.constant 0 : index
    %c24 = arith.constant 24 : index
    %36 = vector.load %arg8[%c0_35, %c0_36, %c24] : memref<10x16x36xf32, #tpu.memory_space<vmem>>, vector<10x16x4xf32>
    tpu.vector_store %arg8[%c0_35, %c0_36, %c24], %35 {strides = array<i32>} : memref<10x16x36xf32, #tpu.memory_space<vmem>>, vector<10x16x4xf32>,
    %c2_i32_37 = arith.constant 2 : i32
    %37 = arith.addi %1, %c2_i32_37 : i32
    %c0_38 = arith.constant 0 : index
    %38 = arith.index_cast %37 : i32 to index
    %c1_39 = arith.constant 1 : index
    %c0_40 = arith.constant 0 : index
    %39 = vector.load %arg2[%c0_38, %38, %c1_39, %c0_40] : memref<1x20x24x4xf32, #tpu.memory_space<vmem>>, vector<1x10x16x4xf32>
    %40 = vector.shape_cast %39 : vector<1x10x16x4xf32> to vector<10x16x4xf32>
    %c0_41 = arith.constant 0 : index
    %c0_42 = arith.constant 0 : index
    %c28 = arith.constant 28 : index
    %41 = vector.load %arg8[%c0_41, %c0_42, %c28] : memref<10x16x36xf32, #tpu.memory_space<vmem>>, vector<10x16x4xf32>
    tpu.vector_store %arg8[%c0_41, %c0_42, %c28], %40 {strides = array<i32>} : memref<10x16x36xf32, #tpu.memory_space<vmem>>, vector<10x16x4xf32>,
    %c2_i32_43 = arith.constant 2 : i32
    %42 = arith.addi %1, %c2_i32_43 : i32
    %c0_44 = arith.constant 0 : index
    %43 = arith.index_cast %42 : i32 to index
    %c2_45 = arith.constant 2 : index
    %c0_46 = arith.constant 0 : index
    %44 = vector.load %arg2[%c0_44, %43, %c2_45, %c0_46] : memref<1x20x24x4xf32, #tpu.memory_space<vmem>>, vector<1x10x16x4xf32>
    %45 = vector.shape_cast %44 : vector<1x10x16x4xf32> to vector<10x16x4xf32>
    %c0_47 = arith.constant 0 : index
    %c0_48 = arith.constant 0 : index
    %c32 = arith.constant 32 : index
    %46 = vector.load %arg8[%c0_47, %c0_48, %c32] : memref<10x16x36xf32, #tpu.memory_space<vmem>>, vector<10x16x4xf32>
    tpu.vector_store %arg8[%c0_47, %c0_48, %c32], %45 {strides = array<i32>} : memref<10x16x36xf32, #tpu.memory_space<vmem>>, vector<10x16x4xf32>,
    %c0_49 = arith.constant 0 : index
    %c0_50 = arith.constant 0 : index
    %c0_51 = arith.constant 0 : index
    %47 = vector.load %arg8[%c0_49, %c0_50, %c0_51] : memref<10x16x36xf32, #tpu.memory_space<vmem>>, vector<10x16x36xf32>
    %48 = vector.shape_cast %47 : vector<10x16x36xf32> to vector<160x36xf32>
    %c0_52 = arith.constant 0 : index
    %c0_53 = arith.constant 0 : index
    %49 = vector.load %arg3[%c0_52, %c0_53] : memref<36x16xf32, #tpu.memory_space<vmem>>, vector<36x16xf32>
    %cst = arith.constant dense<0.000000e+00> : vector<160x16xf32>
    %50 = tpu.matmul %48, %49, %cst {dimension_numbers = #tpu.dot_dimension_numbers<[1], [0], [0], [1], [0, 0, 1, 1], [], []>} : vector<160x36xf32>, vector<36x16xf32>, vector<160x16xf32> -> vector<160x16xf32>
    %c0_54 = arith.constant 0 : index
    %c0_55 = arith.constant 0 : index
    %51 = vector.load %arg4[%c0_54, %c0_55] : memref<1x16xf32, #tpu.memory_space<vmem>>, vector<1x16xf32>
    %52 = vector.broadcast %51 : vector<1x16xf32> to vector<160x16xf32>
    %53 = arith.addf %50, %52 : vector<160x16xf32>
    %54 = vector.shape_cast %53 : vector<160x16xf32> to vector<10x16x16xf32>
    %c0_56 = arith.constant 0 : index
    %c1_57 = arith.constant 1 : index
    %c0_58 = arith.constant 0 : index
    %55 = vector.load %arg9[%c0_56, %c1_57, %c0_58] : memref<10x18x16xf32, #tpu.memory_space<vmem>>, vector<10x16x16xf32>
    tpu.vector_store %arg9[%c0_56, %c1_57, %c0_58], %54 {strides = array<i32>} : memref<10x18x16xf32, #tpu.memory_space<vmem>>, vector<10x16x16xf32>,
    %cst_59 = arith.constant 0.000000e+00 : f32
    %56 = vector.broadcast %cst_59 : f32 to vector<10x1x16xf32>
    %c0_60 = arith.constant 0 : index
    %c0_61 = arith.constant 0 : index
    %c0_62 = arith.constant 0 : index
    %57 = vector.load %arg9[%c0_60, %c0_61, %c0_62] : memref<10x18x16xf32, #tpu.memory_space<vmem>>, vector<10x1x16xf32>
    tpu.vector_store %arg9[%c0_60, %c0_61, %c0_62], %56 {strides = array<i32>} : memref<10x18x16xf32, #tpu.memory_space<vmem>>, vector<10x1x16xf32>,
    %c0_63 = arith.constant 0 : index
    %c17 = arith.constant 17 : index
    %c0_64 = arith.constant 0 : index
    %58 = vector.load %arg9[%c0_63, %c17, %c0_64] : memref<10x18x16xf32, #tpu.memory_space<vmem>>, vector<10x1x16xf32>
    tpu.vector_store %arg9[%c0_63, %c17, %c0_64], %56 {strides = array<i32>} : memref<10x18x16xf32, #tpu.memory_space<vmem>>, vector<10x1x16xf32>,
    %c0_i32_65 = arith.constant 0 : i32
    %59 = arith.cmpi eq, %arg1, %c0_i32_65 : i32
    %60 = arith.extui %59 : i1 to i32
    %c0_i32_66 = arith.constant 0 : i32
    %61 = arith.cmpi ne, %60, %c0_i32_66 : i32
    scf.if %61 {
      %cst_333 = arith.constant 0.000000e+00 : f32
      %181 = vector.broadcast %cst_333 : f32 to vector<1x18x16xf32>
      %c0_334 = arith.constant 0 : index
      %c0_335 = arith.constant 0 : index
      %c0_336 = arith.constant 0 : index
      %182 = vector.load %arg9[%c0_334, %c0_335, %c0_336] : memref<10x18x16xf32, #tpu.memory_space<vmem>>, vector<1x18x16xf32>
      tpu.vector_store %arg9[%c0_334, %c0_335, %c0_336], %181 {strides = array<i32>} : memref<10x18x16xf32, #tpu.memory_space<vmem>>, vector<1x18x16xf32>,
    } else {
    }
    %c1_i32_67 = arith.constant 1 : i32
    %62 = arith.cmpi eq, %arg1, %c1_i32_67 : i32
    %63 = arith.extui %62 : i1 to i32
    %c0_i32_68 = arith.constant 0 : i32
    %64 = arith.cmpi ne, %63, %c0_i32_68 : i32
    scf.if %64 {
      %cst_333 = arith.constant 0.000000e+00 : f32
      %181 = vector.broadcast %cst_333 : f32 to vector<1x18x16xf32>
      %c9 = arith.constant 9 : index
      %c0_334 = arith.constant 0 : index
      %c0_335 = arith.constant 0 : index
      %182 = vector.load %arg9[%c9, %c0_334, %c0_335] : memref<10x18x16xf32, #tpu.memory_space<vmem>>, vector<1x18x16xf32>
      tpu.vector_store %arg9[%c9, %c0_334, %c0_335], %181 {strides = array<i32>} : memref<10x18x16xf32, #tpu.memory_space<vmem>>, vector<1x18x16xf32>,
    } else {
    }
    %c0_69 = arith.constant 0 : index
    %c0_70 = arith.constant 0 : index
    %c12_71 = arith.constant 12 : index
    %65 = vector.load %arg9[%c0_69, %c0_70, %c12_71] : memref<10x18x16xf32, #tpu.memory_space<vmem>>, vector<8x16x4xf32>
    %c0_72 = arith.constant 0 : index
    %c0_73 = arith.constant 0 : index
    %c0_74 = arith.constant 0 : index
    %66 = vector.load %arg8[%c0_72, %c0_73, %c0_74] : memref<10x16x36xf32, #tpu.memory_space<vmem>>, vector<8x16x4xf32>
    tpu.vector_store %arg8[%c0_72, %c0_73, %c0_74], %65 {strides = array<i32>} : memref<10x16x36xf32, #tpu.memory_space<vmem>>, vector<8x16x4xf32>,
    %c0_75 = arith.constant 0 : index
    %c1_76 = arith.constant 1 : index
    %c8_77 = arith.constant 8 : index
    %67 = vector.load %arg9[%c0_75, %c1_76, %c8_77] : memref<10x18x16xf32, #tpu.memory_space<vmem>>, vector<8x16x4xf32>
    %c0_78 = arith.constant 0 : index
    %c0_79 = arith.constant 0 : index
    %c4_80 = arith.constant 4 : index
    %68 = vector.load %arg8[%c0_78, %c0_79, %c4_80] : memref<10x16x36xf32, #tpu.memory_space<vmem>>, vector<8x16x4xf32>
    tpu.vector_store %arg8[%c0_78, %c0_79, %c4_80], %67 {strides = array<i32>} : memref<10x16x36xf32, #tpu.memory_space<vmem>>, vector<8x16x4xf32>,
    %c0_81 = arith.constant 0 : index
    %c1_82 = arith.constant 1 : index
    %c12_83 = arith.constant 12 : index
    %69 = vector.load %arg9[%c0_81, %c1_82, %c12_83] : memref<10x18x16xf32, #tpu.memory_space<vmem>>, vector<8x16x4xf32>
    %c0_84 = arith.constant 0 : index
    %c0_85 = arith.constant 0 : index
    %c8_86 = arith.constant 8 : index
    %70 = vector.load %arg8[%c0_84, %c0_85, %c8_86] : memref<10x16x36xf32, #tpu.memory_space<vmem>>, vector<8x16x4xf32>
    tpu.vector_store %arg8[%c0_84, %c0_85, %c8_86], %69 {strides = array<i32>} : memref<10x16x36xf32, #tpu.memory_space<vmem>>, vector<8x16x4xf32>,
    %c1_87 = arith.constant 1 : index
    %c0_88 = arith.constant 0 : index
    %c4_89 = arith.constant 4 : index
    %71 = vector.load %arg9[%c1_87, %c0_88, %c4_89] : memref<10x18x16xf32, #tpu.memory_space<vmem>>, vector<8x16x4xf32>
    %c0_90 = arith.constant 0 : index
    %c0_91 = arith.constant 0 : index
    %c12_92 = arith.constant 12 : index
    %72 = vector.load %arg8[%c0_90, %c0_91, %c12_92] : memref<10x16x36xf32, #tpu.memory_space<vmem>>, vector<8x16x4xf32>
    tpu.vector_store %arg8[%c0_90, %c0_91, %c12_92], %71 {strides = array<i32>} : memref<10x16x36xf32, #tpu.memory_space<vmem>>, vector<8x16x4xf32>,
    %c1_93 = arith.constant 1 : index
    %c1_94 = arith.constant 1 : index
    %c0_95 = arith.constant 0 : index
    %73 = vector.load %arg9[%c1_93, %c1_94, %c0_95] : memref<10x18x16xf32, #tpu.memory_space<vmem>>, vector<8x16x4xf32>
    %c0_96 = arith.constant 0 : index
    %c0_97 = arith.constant 0 : index
    %c16_98 = arith.constant 16 : index
    %74 = vector.load %arg8[%c0_96, %c0_97, %c16_98] : memref<10x16x36xf32, #tpu.memory_space<vmem>>, vector<8x16x4xf32>
    tpu.vector_store %arg8[%c0_96, %c0_97, %c16_98], %73 {strides = array<i32>} : memref<10x16x36xf32, #tpu.memory_space<vmem>>, vector<8x16x4xf32>,
    %c1_99 = arith.constant 1 : index
    %c1_100 = arith.constant 1 : index
    %c4_101 = arith.constant 4 : index
    %75 = vector.load %arg9[%c1_99, %c1_100, %c4_101] : memref<10x18x16xf32, #tpu.memory_space<vmem>>, vector<8x16x4xf32>
    %c0_102 = arith.constant 0 : index
    %c0_103 = arith.constant 0 : index
    %c20_104 = arith.constant 20 : index
    %76 = vector.load %arg8[%c0_102, %c0_103, %c20_104] : memref<10x16x36xf32, #tpu.memory_space<vmem>>, vector<8x16x4xf32>
    tpu.vector_store %arg8[%c0_102, %c0_103, %c20_104], %75 {strides = array<i32>} : memref<10x16x36xf32, #tpu.memory_space<vmem>>, vector<8x16x4xf32>,
    %c1_105 = arith.constant 1 : index
    %c0_106 = arith.constant 0 : index
    %c12_107 = arith.constant 12 : index
    %77 = vector.load %arg9[%c1_105, %c0_106, %c12_107] : memref<10x18x16xf32, #tpu.memory_space<vmem>>, vector<8x16x4xf32>
    %c0_108 = arith.constant 0 : index
    %c0_109 = arith.constant 0 : index
    %c24_110 = arith.constant 24 : index
    %78 = vector.load %arg8[%c0_108, %c0_109, %c24_110] : memref<10x16x36xf32, #tpu.memory_space<vmem>>, vector<8x16x4xf32>
    tpu.vector_store %arg8[%c0_108, %c0_109, %c24_110], %77 {strides = array<i32>} : memref<10x16x36xf32, #tpu.memory_space<vmem>>, vector<8x16x4xf32>,
    %c1_111 = arith.constant 1 : index
    %c1_112 = arith.constant 1 : index
    %c8_113 = arith.constant 8 : index
    %79 = vector.load %arg9[%c1_111, %c1_112, %c8_113] : memref<10x18x16xf32, #tpu.memory_space<vmem>>, vector<8x16x4xf32>
    %c0_114 = arith.constant 0 : index
    %c0_115 = arith.constant 0 : index
    %c28_116 = arith.constant 28 : index
    %80 = vector.load %arg8[%c0_114, %c0_115, %c28_116] : memref<10x16x36xf32, #tpu.memory_space<vmem>>, vector<8x16x4xf32>
    tpu.vector_store %arg8[%c0_114, %c0_115, %c28_116], %79 {strides = array<i32>} : memref<10x16x36xf32, #tpu.memory_space<vmem>>, vector<8x16x4xf32>,
    %c1_117 = arith.constant 1 : index
    %c1_118 = arith.constant 1 : index
    %c12_119 = arith.constant 12 : index
    %81 = vector.load %arg9[%c1_117, %c1_118, %c12_119] : memref<10x18x16xf32, #tpu.memory_space<vmem>>, vector<8x16x4xf32>
    %c0_120 = arith.constant 0 : index
    %c0_121 = arith.constant 0 : index
    %c32_122 = arith.constant 32 : index
    %82 = vector.load %arg8[%c0_120, %c0_121, %c32_122] : memref<10x16x36xf32, #tpu.memory_space<vmem>>, vector<8x16x4xf32>
    tpu.vector_store %arg8[%c0_120, %c0_121, %c32_122], %81 {strides = array<i32>} : memref<10x16x36xf32, #tpu.memory_space<vmem>>, vector<8x16x4xf32>,
    %c0_123 = arith.constant 0 : index
    %c0_124 = arith.constant 0 : index
    %c0_125 = arith.constant 0 : index
    %83 = vector.load %arg8[%c0_123, %c0_124, %c0_125] : memref<10x16x36xf32, #tpu.memory_space<vmem>>, vector<8x16x36xf32>
    %84 = vector.shape_cast %83 : vector<8x16x36xf32> to vector<128x36xf32>
    %c0_126 = arith.constant 0 : index
    %c0_127 = arith.constant 0 : index
    %85 = vector.load %arg5[%c0_126, %c0_127] : memref<36x4xf32, #tpu.memory_space<vmem>>, vector<36x4xf32>
    %cst_128 = arith.constant dense<0.000000e+00> : vector<128x4xf32>
    %86 = tpu.matmul %84, %85, %cst_128 {dimension_numbers = #tpu.dot_dimension_numbers<[1], [0], [0], [1], [0, 0, 1, 1], [], []>} : vector<128x36xf32>, vector<36x4xf32>, vector<128x4xf32> -> vector<128x4xf32>
    %c0_129 = arith.constant 0 : index
    %c0_130 = arith.constant 0 : index
    %87 = vector.load %arg6[%c0_129, %c0_130] : memref<1x4xf32, #tpu.memory_space<vmem>>, vector<1x4xf32>
    %88 = vector.broadcast %87 : vector<1x4xf32> to vector<128x4xf32>
    %89 = arith.addf %86, %88 : vector<128x4xf32>
    %90 = vector.shape_cast %89 : vector<128x4xf32> to vector<8x16x4xf32>
    %c0_131 = arith.constant 0 : index
    %c0_132 = arith.constant 0 : index
    %c0_133 = arith.constant 0 : index
    %c0_134 = arith.constant 0 : index
    %91 = vector.load %arg7[%c0_131, %c0_132, %c0_133, %c0_134] : memref<1x8x16x16xf32, #tpu.memory_space<vmem>>, vector<1x8x16x4xf32>
    %92 = vector.shape_cast %91 : vector<1x8x16x4xf32> to vector<8x16x4xf32>
    %93 = vector.shape_cast %90 : vector<8x16x4xf32> to vector<1x8x16x4xf32>
    tpu.vector_store %arg7[%c0_131, %c0_132, %c0_133, %c0_134], %93 {strides = array<i32>} : memref<1x8x16x16xf32, #tpu.memory_space<vmem>>, vector<1x8x16x4xf32>,
    %c0_135 = arith.constant 0 : index
    %c1_136 = arith.constant 1 : index
    %c8_137 = arith.constant 8 : index
    %94 = vector.load %arg9[%c0_135, %c1_136, %c8_137] : memref<10x18x16xf32, #tpu.memory_space<vmem>>, vector<8x16x4xf32>
    %c0_138 = arith.constant 0 : index
    %c0_139 = arith.constant 0 : index
    %c0_140 = arith.constant 0 : index
    %95 = vector.load %arg8[%c0_138, %c0_139, %c0_140] : memref<10x16x36xf32, #tpu.memory_space<vmem>>, vector<8x16x4xf32>
    tpu.vector_store %arg8[%c0_138, %c0_139, %c0_140], %94 {strides = array<i32>} : memref<10x16x36xf32, #tpu.memory_space<vmem>>, vector<8x16x4xf32>,
    %c0_141 = arith.constant 0 : index
    %c1_142 = arith.constant 1 : index
    %c12_143 = arith.constant 12 : index
    %96 = vector.load %arg9[%c0_141, %c1_142, %c12_143] : memref<10x18x16xf32, #tpu.memory_space<vmem>>, vector<8x16x4xf32>
    %c0_144 = arith.constant 0 : index
    %c0_145 = arith.constant 0 : index
    %c4_146 = arith.constant 4 : index
    %97 = vector.load %arg8[%c0_144, %c0_145, %c4_146] : memref<10x16x36xf32, #tpu.memory_space<vmem>>, vector<8x16x4xf32>
    tpu.vector_store %arg8[%c0_144, %c0_145, %c4_146], %96 {strides = array<i32>} : memref<10x16x36xf32, #tpu.memory_space<vmem>>, vector<8x16x4xf32>,
    %c0_147 = arith.constant 0 : index
    %c2_148 = arith.constant 2 : index
    %c8_149 = arith.constant 8 : index
    %98 = vector.load %arg9[%c0_147, %c2_148, %c8_149] : memref<10x18x16xf32, #tpu.memory_space<vmem>>, vector<8x16x4xf32>
    %c0_150 = arith.constant 0 : index
    %c0_151 = arith.constant 0 : index
    %c8_152 = arith.constant 8 : index
    %99 = vector.load %arg8[%c0_150, %c0_151, %c8_152] : memref<10x16x36xf32, #tpu.memory_space<vmem>>, vector<8x16x4xf32>
    tpu.vector_store %arg8[%c0_150, %c0_151, %c8_152], %98 {strides = array<i32>} : memref<10x16x36xf32, #tpu.memory_space<vmem>>, vector<8x16x4xf32>,
    %c1_153 = arith.constant 1 : index
    %c1_154 = arith.constant 1 : index
    %c0_155 = arith.constant 0 : index
    %100 = vector.load %arg9[%c1_153, %c1_154, %c0_155] : memref<10x18x16xf32, #tpu.memory_space<vmem>>, vector<8x16x4xf32>
    %c0_156 = arith.constant 0 : index
    %c0_157 = arith.constant 0 : index
    %c12_158 = arith.constant 12 : index
    %101 = vector.load %arg8[%c0_156, %c0_157, %c12_158] : memref<10x16x36xf32, #tpu.memory_space<vmem>>, vector<8x16x4xf32>
    tpu.vector_store %arg8[%c0_156, %c0_157, %c12_158], %100 {strides = array<i32>} : memref<10x16x36xf32, #tpu.memory_space<vmem>>, vector<8x16x4xf32>,
    %c1_159 = arith.constant 1 : index
    %c1_160 = arith.constant 1 : index
    %c4_161 = arith.constant 4 : index
    %102 = vector.load %arg9[%c1_159, %c1_160, %c4_161] : memref<10x18x16xf32, #tpu.memory_space<vmem>>, vector<8x16x4xf32>
    %c0_162 = arith.constant 0 : index
    %c0_163 = arith.constant 0 : index
    %c16_164 = arith.constant 16 : index
    %103 = vector.load %arg8[%c0_162, %c0_163, %c16_164] : memref<10x16x36xf32, #tpu.memory_space<vmem>>, vector<8x16x4xf32>
    tpu.vector_store %arg8[%c0_162, %c0_163, %c16_164], %102 {strides = array<i32>} : memref<10x16x36xf32, #tpu.memory_space<vmem>>, vector<8x16x4xf32>,
    %c1_165 = arith.constant 1 : index
    %c2_166 = arith.constant 2 : index
    %c0_167 = arith.constant 0 : index
    %104 = vector.load %arg9[%c1_165, %c2_166, %c0_167] : memref<10x18x16xf32, #tpu.memory_space<vmem>>, vector<8x16x4xf32>
    %c0_168 = arith.constant 0 : index
    %c0_169 = arith.constant 0 : index
    %c20_170 = arith.constant 20 : index
    %105 = vector.load %arg8[%c0_168, %c0_169, %c20_170] : memref<10x16x36xf32, #tpu.memory_space<vmem>>, vector<8x16x4xf32>
    tpu.vector_store %arg8[%c0_168, %c0_169, %c20_170], %104 {strides = array<i32>} : memref<10x16x36xf32, #tpu.memory_space<vmem>>, vector<8x16x4xf32>,
    %c1_171 = arith.constant 1 : index
    %c1_172 = arith.constant 1 : index
    %c8_173 = arith.constant 8 : index
    %106 = vector.load %arg9[%c1_171, %c1_172, %c8_173] : memref<10x18x16xf32, #tpu.memory_space<vmem>>, vector<8x16x4xf32>
    %c0_174 = arith.constant 0 : index
    %c0_175 = arith.constant 0 : index
    %c24_176 = arith.constant 24 : index
    %107 = vector.load %arg8[%c0_174, %c0_175, %c24_176] : memref<10x16x36xf32, #tpu.memory_space<vmem>>, vector<8x16x4xf32>
    tpu.vector_store %arg8[%c0_174, %c0_175, %c24_176], %106 {strides = array<i32>} : memref<10x16x36xf32, #tpu.memory_space<vmem>>, vector<8x16x4xf32>,
    %c1_177 = arith.constant 1 : index
    %c1_178 = arith.constant 1 : index
    %c12_179 = arith.constant 12 : index
    %108 = vector.load %arg9[%c1_177, %c1_178, %c12_179] : memref<10x18x16xf32, #tpu.memory_space<vmem>>, vector<8x16x4xf32>
    %c0_180 = arith.constant 0 : index
    %c0_181 = arith.constant 0 : index
    %c28_182 = arith.constant 28 : index
    %109 = vector.load %arg8[%c0_180, %c0_181, %c28_182] : memref<10x16x36xf32, #tpu.memory_space<vmem>>, vector<8x16x4xf32>
    tpu.vector_store %arg8[%c0_180, %c0_181, %c28_182], %108 {strides = array<i32>} : memref<10x16x36xf32, #tpu.memory_space<vmem>>, vector<8x16x4xf32>,
    %c1_183 = arith.constant 1 : index
    %c2_184 = arith.constant 2 : index
    %c8_185 = arith.constant 8 : index
    %110 = vector.load %arg9[%c1_183, %c2_184, %c8_185] : memref<10x18x16xf32, #tpu.memory_space<vmem>>, vector<8x16x4xf32>
    %c0_186 = arith.constant 0 : index
    %c0_187 = arith.constant 0 : index
    %c32_188 = arith.constant 32 : index
    %111 = vector.load %arg8[%c0_186, %c0_187, %c32_188] : memref<10x16x36xf32, #tpu.memory_space<vmem>>, vector<8x16x4xf32>
    tpu.vector_store %arg8[%c0_186, %c0_187, %c32_188], %110 {strides = array<i32>} : memref<10x16x36xf32, #tpu.memory_space<vmem>>, vector<8x16x4xf32>,
    %c0_189 = arith.constant 0 : index
    %c0_190 = arith.constant 0 : index
    %c0_191 = arith.constant 0 : index
    %112 = vector.load %arg8[%c0_189, %c0_190, %c0_191] : memref<10x16x36xf32, #tpu.memory_space<vmem>>, vector<8x16x36xf32>
    %113 = vector.shape_cast %112 : vector<8x16x36xf32> to vector<128x36xf32>
    %c0_192 = arith.constant 0 : index
    %c0_193 = arith.constant 0 : index
    %114 = vector.load %arg5[%c0_192, %c0_193] : memref<36x4xf32, #tpu.memory_space<vmem>>, vector<36x4xf32>
    %cst_194 = arith.constant dense<0.000000e+00> : vector<128x4xf32>
    %115 = tpu.matmul %113, %114, %cst_194 {dimension_numbers = #tpu.dot_dimension_numbers<[1], [0], [0], [1], [0, 0, 1, 1], [], []>} : vector<128x36xf32>, vector<36x4xf32>, vector<128x4xf32> -> vector<128x4xf32>
    %c0_195 = arith.constant 0 : index
    %c0_196 = arith.constant 0 : index
    %116 = vector.load %arg6[%c0_195, %c0_196] : memref<1x4xf32, #tpu.memory_space<vmem>>, vector<1x4xf32>
    %117 = vector.broadcast %116 : vector<1x4xf32> to vector<128x4xf32>
    %118 = arith.addf %115, %117 : vector<128x4xf32>
    %119 = vector.shape_cast %118 : vector<128x4xf32> to vector<8x16x4xf32>
    %c0_197 = arith.constant 0 : index
    %c0_198 = arith.constant 0 : index
    %c0_199 = arith.constant 0 : index
    %c4_200 = arith.constant 4 : index
    %120 = vector.load %arg7[%c0_197, %c0_198, %c0_199, %c4_200] : memref<1x8x16x16xf32, #tpu.memory_space<vmem>>, vector<1x8x16x4xf32>
    %121 = vector.shape_cast %120 : vector<1x8x16x4xf32> to vector<8x16x4xf32>
    %122 = vector.shape_cast %119 : vector<8x16x4xf32> to vector<1x8x16x4xf32>
    tpu.vector_store %arg7[%c0_197, %c0_198, %c0_199, %c4_200], %122 {strides = array<i32>} : memref<1x8x16x16xf32, #tpu.memory_space<vmem>>, vector<1x8x16x4xf32>,
    %c1_201 = arith.constant 1 : index
    %c0_202 = arith.constant 0 : index
    %c4_203 = arith.constant 4 : index
    %123 = vector.load %arg9[%c1_201, %c0_202, %c4_203] : memref<10x18x16xf32, #tpu.memory_space<vmem>>, vector<8x16x4xf32>
    %c0_204 = arith.constant 0 : index
    %c0_205 = arith.constant 0 : index
    %c0_206 = arith.constant 0 : index
    %124 = vector.load %arg8[%c0_204, %c0_205, %c0_206] : memref<10x16x36xf32, #tpu.memory_space<vmem>>, vector<8x16x4xf32>
    tpu.vector_store %arg8[%c0_204, %c0_205, %c0_206], %123 {strides = array<i32>} : memref<10x16x36xf32, #tpu.memory_space<vmem>>, vector<8x16x4xf32>,
    %c1_207 = arith.constant 1 : index
    %c1_208 = arith.constant 1 : index
    %c0_209 = arith.constant 0 : index
    %125 = vector.load %arg9[%c1_207, %c1_208, %c0_209] : memref<10x18x16xf32, #tpu.memory_space<vmem>>, vector<8x16x4xf32>
    %c0_210 = arith.constant 0 : index
    %c0_211 = arith.constant 0 : index
    %c4_212 = arith.constant 4 : index
    %126 = vector.load %arg8[%c0_210, %c0_211, %c4_212] : memref<10x16x36xf32, #tpu.memory_space<vmem>>, vector<8x16x4xf32>
    tpu.vector_store %arg8[%c0_210, %c0_211, %c4_212], %125 {strides = array<i32>} : memref<10x16x36xf32, #tpu.memory_space<vmem>>, vector<8x16x4xf32>,
    %c1_213 = arith.constant 1 : index
    %c1_214 = arith.constant 1 : index
    %c4_215 = arith.constant 4 : index
    %127 = vector.load %arg9[%c1_213, %c1_214, %c4_215] : memref<10x18x16xf32, #tpu.memory_space<vmem>>, vector<8x16x4xf32>
    %c0_216 = arith.constant 0 : index
    %c0_217 = arith.constant 0 : index
    %c8_218 = arith.constant 8 : index
    %128 = vector.load %arg8[%c0_216, %c0_217, %c8_218] : memref<10x16x36xf32, #tpu.memory_space<vmem>>, vector<8x16x4xf32>
    tpu.vector_store %arg8[%c0_216, %c0_217, %c8_218], %127 {strides = array<i32>} : memref<10x16x36xf32, #tpu.memory_space<vmem>>, vector<8x16x4xf32>,
    %c1_219 = arith.constant 1 : index
    %c0_220 = arith.constant 0 : index
    %c12_221 = arith.constant 12 : index
    %129 = vector.load %arg9[%c1_219, %c0_220, %c12_221] : memref<10x18x16xf32, #tpu.memory_space<vmem>>, vector<8x16x4xf32>
    %c0_222 = arith.constant 0 : index
    %c0_223 = arith.constant 0 : index
    %c12_224 = arith.constant 12 : index
    %130 = vector.load %arg8[%c0_222, %c0_223, %c12_224] : memref<10x16x36xf32, #tpu.memory_space<vmem>>, vector<8x16x4xf32>
    tpu.vector_store %arg8[%c0_222, %c0_223, %c12_224], %129 {strides = array<i32>} : memref<10x16x36xf32, #tpu.memory_space<vmem>>, vector<8x16x4xf32>,
    %c1_225 = arith.constant 1 : index
    %c1_226 = arith.constant 1 : index
    %c8_227 = arith.constant 8 : index
    %131 = vector.load %arg9[%c1_225, %c1_226, %c8_227] : memref<10x18x16xf32, #tpu.memory_space<vmem>>, vector<8x16x4xf32>
    %c0_228 = arith.constant 0 : index
    %c0_229 = arith.constant 0 : index
    %c16_230 = arith.constant 16 : index
    %132 = vector.load %arg8[%c0_228, %c0_229, %c16_230] : memref<10x16x36xf32, #tpu.memory_space<vmem>>, vector<8x16x4xf32>
    tpu.vector_store %arg8[%c0_228, %c0_229, %c16_230], %131 {strides = array<i32>} : memref<10x16x36xf32, #tpu.memory_space<vmem>>, vector<8x16x4xf32>,
    %c1_231 = arith.constant 1 : index
    %c1_232 = arith.constant 1 : index
    %c12_233 = arith.constant 12 : index
    %133 = vector.load %arg9[%c1_231, %c1_232, %c12_233] : memref<10x18x16xf32, #tpu.memory_space<vmem>>, vector<8x16x4xf32>
    %c0_234 = arith.constant 0 : index
    %c0_235 = arith.constant 0 : index
    %c20_236 = arith.constant 20 : index
    %134 = vector.load %arg8[%c0_234, %c0_235, %c20_236] : memref<10x16x36xf32, #tpu.memory_space<vmem>>, vector<8x16x4xf32>
    tpu.vector_store %arg8[%c0_234, %c0_235, %c20_236], %133 {strides = array<i32>} : memref<10x16x36xf32, #tpu.memory_space<vmem>>, vector<8x16x4xf32>,
    %c2_237 = arith.constant 2 : index
    %c0_238 = arith.constant 0 : index
    %c4_239 = arith.constant 4 : index
    %135 = vector.load %arg9[%c2_237, %c0_238, %c4_239] : memref<10x18x16xf32, #tpu.memory_space<vmem>>, vector<8x16x4xf32>
    %c0_240 = arith.constant 0 : index
    %c0_241 = arith.constant 0 : index
    %c24_242 = arith.constant 24 : index
    %136 = vector.load %arg8[%c0_240, %c0_241, %c24_242] : memref<10x16x36xf32, #tpu.memory_space<vmem>>, vector<8x16x4xf32>
    tpu.vector_store %arg8[%c0_240, %c0_241, %c24_242], %135 {strides = array<i32>} : memref<10x16x36xf32, #tpu.memory_space<vmem>>, vector<8x16x4xf32>,
    %c2_243 = arith.constant 2 : index
    %c1_244 = arith.constant 1 : index
    %c0_245 = arith.constant 0 : index
    %137 = vector.load %arg9[%c2_243, %c1_244, %c0_245] : memref<10x18x16xf32, #tpu.memory_space<vmem>>, vector<8x16x4xf32>
    %c0_246 = arith.constant 0 : index
    %c0_247 = arith.constant 0 : index
    %c28_248 = arith.constant 28 : index
    %138 = vector.load %arg8[%c0_246, %c0_247, %c28_248] : memref<10x16x36xf32, #tpu.memory_space<vmem>>, vector<8x16x4xf32>
    tpu.vector_store %arg8[%c0_246, %c0_247, %c28_248], %137 {strides = array<i32>} : memref<10x16x36xf32, #tpu.memory_space<vmem>>, vector<8x16x4xf32>,
    %c2_249 = arith.constant 2 : index
    %c1_250 = arith.constant 1 : index
    %c4_251 = arith.constant 4 : index
    %139 = vector.load %arg9[%c2_249, %c1_250, %c4_251] : memref<10x18x16xf32, #tpu.memory_space<vmem>>, vector<8x16x4xf32>
    %c0_252 = arith.constant 0 : index
    %c0_253 = arith.constant 0 : index
    %c32_254 = arith.constant 32 : index
    %140 = vector.load %arg8[%c0_252, %c0_253, %c32_254] : memref<10x16x36xf32, #tpu.memory_space<vmem>>, vector<8x16x4xf32>
    tpu.vector_store %arg8[%c0_252, %c0_253, %c32_254], %139 {strides = array<i32>} : memref<10x16x36xf32, #tpu.memory_space<vmem>>, vector<8x16x4xf32>,
    %c0_255 = arith.constant 0 : index
    %c0_256 = arith.constant 0 : index
    %c0_257 = arith.constant 0 : index
    %141 = vector.load %arg8[%c0_255, %c0_256, %c0_257] : memref<10x16x36xf32, #tpu.memory_space<vmem>>, vector<8x16x36xf32>
    %142 = vector.shape_cast %141 : vector<8x16x36xf32> to vector<128x36xf32>
    %c0_258 = arith.constant 0 : index
    %c0_259 = arith.constant 0 : index
    %143 = vector.load %arg5[%c0_258, %c0_259] : memref<36x4xf32, #tpu.memory_space<vmem>>, vector<36x4xf32>
    %cst_260 = arith.constant dense<0.000000e+00> : vector<128x4xf32>
    %144 = tpu.matmul %142, %143, %cst_260 {dimension_numbers = #tpu.dot_dimension_numbers<[1], [0], [0], [1], [0, 0, 1, 1], [], []>} : vector<128x36xf32>, vector<36x4xf32>, vector<128x4xf32> -> vector<128x4xf32>
    %c0_261 = arith.constant 0 : index
    %c0_262 = arith.constant 0 : index
    %145 = vector.load %arg6[%c0_261, %c0_262] : memref<1x4xf32, #tpu.memory_space<vmem>>, vector<1x4xf32>
    %146 = vector.broadcast %145 : vector<1x4xf32> to vector<128x4xf32>
    %147 = arith.addf %144, %146 : vector<128x4xf32>
    %148 = vector.shape_cast %147 : vector<128x4xf32> to vector<8x16x4xf32>
    %c0_263 = arith.constant 0 : index
    %c0_264 = arith.constant 0 : index
    %c0_265 = arith.constant 0 : index
    %c8_266 = arith.constant 8 : index
    %149 = vector.load %arg7[%c0_263, %c0_264, %c0_265, %c8_266] : memref<1x8x16x16xf32, #tpu.memory_space<vmem>>, vector<1x8x16x4xf32>
    %150 = vector.shape_cast %149 : vector<1x8x16x4xf32> to vector<8x16x4xf32>
    %151 = vector.shape_cast %148 : vector<8x16x4xf32> to vector<1x8x16x4xf32>
    tpu.vector_store %arg7[%c0_263, %c0_264, %c0_265, %c8_266], %151 {strides = array<i32>} : memref<1x8x16x16xf32, #tpu.memory_space<vmem>>, vector<1x8x16x4xf32>,
    %c1_267 = arith.constant 1 : index
    %c1_268 = arith.constant 1 : index
    %c0_269 = arith.constant 0 : index
    %152 = vector.load %arg9[%c1_267, %c1_268, %c0_269] : memref<10x18x16xf32, #tpu.memory_space<vmem>>, vector<8x16x4xf32>
    %c0_270 = arith.constant 0 : index
    %c0_271 = arith.constant 0 : index
    %c0_272 = arith.constant 0 : index
    %153 = vector.load %arg8[%c0_270, %c0_271, %c0_272] : memref<10x16x36xf32, #tpu.memory_space<vmem>>, vector<8x16x4xf32>
    tpu.vector_store %arg8[%c0_270, %c0_271, %c0_272], %152 {strides = array<i32>} : memref<10x16x36xf32, #tpu.memory_space<vmem>>, vector<8x16x4xf32>,
    %c1_273 = arith.constant 1 : index
    %c1_274 = arith.constant 1 : index
    %c4_275 = arith.constant 4 : index
    %154 = vector.load %arg9[%c1_273, %c1_274, %c4_275] : memref<10x18x16xf32, #tpu.memory_space<vmem>>, vector<8x16x4xf32>
    %c0_276 = arith.constant 0 : index
    %c0_277 = arith.constant 0 : index
    %c4_278 = arith.constant 4 : index
    %155 = vector.load %arg8[%c0_276, %c0_277, %c4_278] : memref<10x16x36xf32, #tpu.memory_space<vmem>>, vector<8x16x4xf32>
    tpu.vector_store %arg8[%c0_276, %c0_277, %c4_278], %154 {strides = array<i32>} : memref<10x16x36xf32, #tpu.memory_space<vmem>>, vector<8x16x4xf32>,
    %c1_279 = arith.constant 1 : index
    %c2_280 = arith.constant 2 : index
    %c0_281 = arith.constant 0 : index
    %156 = vector.load %arg9[%c1_279, %c2_280, %c0_281] : memref<10x18x16xf32, #tpu.memory_space<vmem>>, vector<8x16x4xf32>
    %c0_282 = arith.constant 0 : index
    %c0_283 = arith.constant 0 : index
    %c8_284 = arith.constant 8 : index
    %157 = vector.load %arg8[%c0_282, %c0_283, %c8_284] : memref<10x16x36xf32, #tpu.memory_space<vmem>>, vector<8x16x4xf32>
    tpu.vector_store %arg8[%c0_282, %c0_283, %c8_284], %156 {strides = array<i32>} : memref<10x16x36xf32, #tpu.memory_space<vmem>>, vector<8x16x4xf32>,
    %c1_285 = arith.constant 1 : index
    %c1_286 = arith.constant 1 : index
    %c8_287 = arith.constant 8 : index
    %158 = vector.load %arg9[%c1_285, %c1_286, %c8_287] : memref<10x18x16xf32, #tpu.memory_space<vmem>>, vector<8x16x4xf32>
    %c0_288 = arith.constant 0 : index
    %c0_289 = arith.constant 0 : index
    %c12_290 = arith.constant 12 : index
    %159 = vector.load %arg8[%c0_288, %c0_289, %c12_290] : memref<10x16x36xf32, #tpu.memory_space<vmem>>, vector<8x16x4xf32>
    tpu.vector_store %arg8[%c0_288, %c0_289, %c12_290], %158 {strides = array<i32>} : memref<10x16x36xf32, #tpu.memory_space<vmem>>, vector<8x16x4xf32>,
    %c1_291 = arith.constant 1 : index
    %c1_292 = arith.constant 1 : index
    %c12_293 = arith.constant 12 : index
    %160 = vector.load %arg9[%c1_291, %c1_292, %c12_293] : memref<10x18x16xf32, #tpu.memory_space<vmem>>, vector<8x16x4xf32>
    %c0_294 = arith.constant 0 : index
    %c0_295 = arith.constant 0 : index
    %c16_296 = arith.constant 16 : index
    %161 = vector.load %arg8[%c0_294, %c0_295, %c16_296] : memref<10x16x36xf32, #tpu.memory_space<vmem>>, vector<8x16x4xf32>
    tpu.vector_store %arg8[%c0_294, %c0_295, %c16_296], %160 {strides = array<i32>} : memref<10x16x36xf32, #tpu.memory_space<vmem>>, vector<8x16x4xf32>,
    %c1_297 = arith.constant 1 : index
    %c2_298 = arith.constant 2 : index
    %c8_299 = arith.constant 8 : index
    %162 = vector.load %arg9[%c1_297, %c2_298, %c8_299] : memref<10x18x16xf32, #tpu.memory_space<vmem>>, vector<8x16x4xf32>
    %c0_300 = arith.constant 0 : index
    %c0_301 = arith.constant 0 : index
    %c20_302 = arith.constant 20 : index
    %163 = vector.load %arg8[%c0_300, %c0_301, %c20_302] : memref<10x16x36xf32, #tpu.memory_space<vmem>>, vector<8x16x4xf32>
    tpu.vector_store %arg8[%c0_300, %c0_301, %c20_302], %162 {strides = array<i32>} : memref<10x16x36xf32, #tpu.memory_space<vmem>>, vector<8x16x4xf32>,
    %c2_303 = arith.constant 2 : index
    %c1_304 = arith.constant 1 : index
    %c0_305 = arith.constant 0 : index
    %164 = vector.load %arg9[%c2_303, %c1_304, %c0_305] : memref<10x18x16xf32, #tpu.memory_space<vmem>>, vector<8x16x4xf32>
    %c0_306 = arith.constant 0 : index
    %c0_307 = arith.constant 0 : index
    %c24_308 = arith.constant 24 : index
    %165 = vector.load %arg8[%c0_306, %c0_307, %c24_308] : memref<10x16x36xf32, #tpu.memory_space<vmem>>, vector<8x16x4xf32>
    tpu.vector_store %arg8[%c0_306, %c0_307, %c24_308], %164 {strides = array<i32>} : memref<10x16x36xf32, #tpu.memory_space<vmem>>, vector<8x16x4xf32>,
    %c2_309 = arith.constant 2 : index
    %c1_310 = arith.constant 1 : index
    %c4_311 = arith.constant 4 : index
    %166 = vector.load %arg9[%c2_309, %c1_310, %c4_311] : memref<10x18x16xf32, #tpu.memory_space<vmem>>, vector<8x16x4xf32>
    %c0_312 = arith.constant 0 : index
    %c0_313 = arith.constant 0 : index
    %c28_314 = arith.constant 28 : index
    %167 = vector.load %arg8[%c0_312, %c0_313, %c28_314] : memref<10x16x36xf32, #tpu.memory_space<vmem>>, vector<8x16x4xf32>
    tpu.vector_store %arg8[%c0_312, %c0_313, %c28_314], %166 {strides = array<i32>} : memref<10x16x36xf32, #tpu.memory_space<vmem>>, vector<8x16x4xf32>,
    %c2_315 = arith.constant 2 : index
    %c2_316 = arith.constant 2 : index
    %c0_317 = arith.constant 0 : index
    %168 = vector.load %arg9[%c2_315, %c2_316, %c0_317] : memref<10x18x16xf32, #tpu.memory_space<vmem>>, vector<8x16x4xf32>
    %c0_318 = arith.constant 0 : index
    %c0_319 = arith.constant 0 : index
    %c32_320 = arith.constant 32 : index
    %169 = vector.load %arg8[%c0_318, %c0_319, %c32_320] : memref<10x16x36xf32, #tpu.memory_space<vmem>>, vector<8x16x4xf32>
    tpu.vector_store %arg8[%c0_318, %c0_319, %c32_320], %168 {strides = array<i32>} : memref<10x16x36xf32, #tpu.memory_space<vmem>>, vector<8x16x4xf32>,
    %c0_321 = arith.constant 0 : index
    %c0_322 = arith.constant 0 : index
    %c0_323 = arith.constant 0 : index
    %170 = vector.load %arg8[%c0_321, %c0_322, %c0_323] : memref<10x16x36xf32, #tpu.memory_space<vmem>>, vector<8x16x36xf32>
    %171 = vector.shape_cast %170 : vector<8x16x36xf32> to vector<128x36xf32>
    %c0_324 = arith.constant 0 : index
    %c0_325 = arith.constant 0 : index
    %172 = vector.load %arg5[%c0_324, %c0_325] : memref<36x4xf32, #tpu.memory_space<vmem>>, vector<36x4xf32>
    %cst_326 = arith.constant dense<0.000000e+00> : vector<128x4xf32>
    %173 = tpu.matmul %171, %172, %cst_326 {dimension_numbers = #tpu.dot_dimension_numbers<[1], [0], [0], [1], [0, 0, 1, 1], [], []>} : vector<128x36xf32>, vector<36x4xf32>, vector<128x4xf32> -> vector<128x4xf32>
    %c0_327 = arith.constant 0 : index
    %c0_328 = arith.constant 0 : index
    %174 = vector.load %arg6[%c0_327, %c0_328] : memref<1x4xf32, #tpu.memory_space<vmem>>, vector<1x4xf32>
    %175 = vector.broadcast %174 : vector<1x4xf32> to vector<128x4xf32>
    %176 = arith.addf %173, %175 : vector<128x4xf32>
    %177 = vector.shape_cast %176 : vector<128x4xf32> to vector<8x16x4xf32>
    %c0_329 = arith.constant 0 : index
    %c0_330 = arith.constant 0 : index
    %c0_331 = arith.constant 0 : index
    %c12_332 = arith.constant 12 : index
    %178 = vector.load %arg7[%c0_329, %c0_330, %c0_331, %c12_332] : memref<1x8x16x16xf32, #tpu.memory_space<vmem>>, vector<1x8x16x4xf32>
    %179 = vector.shape_cast %178 : vector<1x8x16x4xf32> to vector<8x16x4xf32>
    %180 = vector.shape_cast %177 : vector<8x16x4xf32> to vector<1x8x16x4xf32>
    tpu.vector_store %arg7[%c0_329, %c0_330, %c0_331, %c12_332], %180 {strides = array<i32>} : memref<1x8x16x16xf32, #tpu.memory_space<vmem>>, vector<1x8x16x4xf32>,
    return
  }
  func.func @transform_0(%arg0: i32, %arg1: i32) -> (i32, i32, i32, i32) {
    %c0_i32 = arith.constant 0 : i32
    %c0_i32_0 = arith.constant 0 : i32
    %c0_i32_1 = arith.constant 0 : i32
    %c0_i32_2 = arith.constant 0 : i32
    return %arg0, %c0_i32, %c0_i32_0, %c0_i32_1 : i32, i32, i32, i32
  }
  func.func @transform_1(%arg0: i32, %arg1: i32) -> (i32, i32) {
    %c0_i32 = arith.constant 0 : i32
    %c0_i32_0 = arith.constant 0 : i32
    %c0_i32_1 = arith.constant 0 : i32
    return %c0_i32, %c0_i32_0 : i32, i32
  }
  func.func @transform_2(%arg0: i32, %arg1: i32) -> (i32, i32) {
    %c0_i32 = arith.constant 0 : i32
    %c0_i32_0 = arith.constant 0 : i32
    %c0_i32_1 = arith.constant 0 : i32
    return %c0_i32, %c0_i32_0 : i32, i32
  }
  func.func @transform_3(%arg0: i32, %arg1: i32) -> (i32, i32) {
    %c0_i32 = arith.constant 0 : i32
    %c0_i32_0 = arith.constant 0 : i32
    %c0_i32_1 = arith.constant 0 : i32
    return %c0_i32, %c0_i32_0 : i32, i32
  }
  func.func @transform_4(%arg0: i32, %arg1: i32) -> (i32, i32) {
    %c0_i32 = arith.constant 0 : i32
    %c0_i32_0 = arith.constant 0 : i32
    %c0_i32_1 = arith.constant 0 : i32
    return %c0_i32, %c0_i32_0 : i32, i32
  }
  func.func @transform_5(%arg0: i32, %arg1: i32) -> (i32, i32, i32, i32) {
    %c0_i32 = arith.constant 0 : i32
    %c0_i32_0 = arith.constant 0 : i32
    %c0_i32_1 = arith.constant 0 : i32
    return %arg0, %arg1, %c0_i32, %c0_i32_0 : i32, i32, i32, i32
  }
}

</mosaic_0001>

<bundles_post_ra>
// kernel: tile.9
= control target key start
LH: loop header
LB: loop body
LE: loop exit
PB: predicated region body
PF: predicated region fallthrough
CT: control target
= control target key end

     0   :  { %vm7_vm0 = vcmask 31744   ;;  %s37_s8 = smov 4   ;;  %s38_s9 = smov 8   ;;  %vm13_vm1 = vcmask 130144   ;;  %vm19_vm2 = vcmask 97344   ;;  %vm25_vm3 = vcmask 64544   ;;  %s55_s0 = inlined_call_operand.vmem [shape: f32[4,4], index: 0, kind: input, shape index: {}]   ;;  %s56_s1 = inlined_call_operand.vmem [shape: f32[1,16], index: 1, kind: output, shape index: {}]  }
   0x1   :  { %v4_v0 = vld [vmem:[%s55_s0] sm:$0xf]  ;;  %s36_s0 = smov 12  }
   0x2   :  { %5 = vst [vmem:[#allocation1] sm:$0xf] %v4_v0 }
   0x9   :  { %v10_v1 = vld [vmem:[#allocation1 + $0x3] sm:$0x1]   ;;  %v22_v2 = vld [vmem:[#allocation1 + $0x1] sm:$0x1]   ;;  %v6_v3 = vld [vmem:[#allocation1] sm:$0x1]  }
   0xa   :  { %11 = vrot.lane.b32.xlu0 %v10_v1, %s36_s0  ;;  %23 = vrot.lane.b32.xlu1 %v22_v2, %s37_s8  ;;  %v16_v4 = vld [vmem:[#allocation1 + $0x2] sm:$0x1]   ;;  %8 = vst.msk [vmem:[#allocation0] sm:$0x1] %vm7_vm0, %v6_v3  }
   0xe   :  { %17 = vrot.lane.b32.xlu0 %v16_v4, %s38_s9 }
  0x7c   :  { %v12_v5 = vpop.permute.xlu0 %11   ;;  %v24_v6 = vpop.permute.xlu1 %23  }
  0x7d   :  { %14 = vst.msk [vmem:[#allocation0] sm:$0x1] %vm13_vm1, %v12_v5  }
  0x80   :  { %v18_v7 = vpop.permute.xlu0 %17  }
  0x81   :  { %20 = vst.msk [vmem:[#allocation0] sm:$0x1] %vm19_vm2, %v18_v7  }
  0x82   :  { %26 = vst.msk [vmem:[#allocation0] sm:$0x1] %vm25_vm3, %v24_v6  }
  0x89   :  { %v30_v8 = vld [vmem:[#allocation0] sm:$0x1] }
  0x8a   :  { %32 = vst [vmem:[%s56_s1] sm:$0x1] %v30_v8 }

// kernel: tile.8
= control target key start
LH: loop header
LB: loop body
LE: loop exit
PB: predicated region body
PF: predicated region fallthrough
CT: control target
= control target key end

     0   :  { %s22_s0 = inlined_call_operand.vmem [shape: f32[4], index: 0, kind: input, shape index: {}]   ;;  %s23_s1 = inlined_call_operand.vmem [shape: f32[4,4], index: 1, kind: output, shape index: {}]  }
   0x1   :  { %v4_v0 = vld [vmem:[%s22_s0] ss:$0 sm:$0xff] }
   0x2   :  { %5 = vst [vmem:[%s23_s1] sm:$0xf] %v4_v0 }

// kernel: upsample_forward.1
= control target key start
LH: loop header
LB: loop body
LE: loop exit
PB: predicated region body
PF: predicated region fallthrough
CT: control target
= control target key end

     0   :  { %s6747_s18 = smov 0   ;;  %s6749_s19 = smov 0   ;;  %s9559_s0 = inlined_call_operand.vmem [shape: f32[2,20,24,4], index: 0, kind: input, shape index: {}]   ;;  %s9560_s1 = inlined_call_operand.vmem [shape: f32[36,16], index: 1, kind: input, shape index: {}]   ;;  %s9561_s2 = inlined_call_operand.vmem [shape: f32[1,16], index: 2, kind: input, shape index: {}]   ;;  %s9562_s3 = inlined_call_operand.vmem [shape: f32[36,4], index: 3, kind: input, shape index: {}]   ;;  %s9563_s4 = inlined_call_operand.vmem [shape: f32[1,4], index: 4, kind: input, shape index: {}]   ;;  %s9564_s5 = inlined_call_operand.vmem [shape: f32[2,16,16,16], index: 5, kind: output, shape index: {}]  }
   0x1   :  { %s6751_s20 = smov 0   ;;  %s6753_s21 = smov 0  }
   0x2   :  { %s6755_s22 = smov 0  }
   0x3 LB: > { %s24_s23 = sadd.s32 1, %s6693_s20  ;;  %s27_s24 = sadd.s32 1, %s6697_s21  ;;  %s6701_s22 = sphi %s6755_s22, %s15_s22   ;;  %s6697_s21 = sphi %s6753_s21, %s9568_s21   ;;  %s6693_s20 = sphi %s6751_s20, %s9567_s20   ;;  %s6689_s19 = sphi %s6749_s19, %s9566_s19   ;;  %s6685_s18 = sphi %s6747_s18, %s9565_s18  }
   0x4   : > { %p25_p0 = scmp.ge.s32.totalorder %s24_s23, 2  ;;  %p6047_p1 = scmp.ge.s32.totalorder %s6701_s22, 1 }
   0x5   : > { %p201_p2 = scmp.lt.s32.totalorder %s6701_s22, 5 }
   0x6   : > { %s9570_s23 = smov (%p25_p0, %s24_s23), 0  ;;  %s9572_s24 = smov (!%p25_p0, %s27_s24), %s6697_s21 }
   0x7   : > { %p202_p3 = pnand %p6047_p1, %p201_p2  ;;  %p29_p4 = scmp.ge.s32.totalorder %s9572_s24, 2 }
   0x8   : > { %p234_p5 = scmp.lt.s32.totalorder (!%p202_p3), %s6689_s19, 1  ;;  %s6049_s25 = sshll.u32 (!%p202_p3), %s6685_s18, 3  ;;  %vm273_vm0 = vcmask (!%p202_p3), 31744   ;;  %v1288_v22 = vld [vmem:[%s9560_s1] sm:$0xff] (!%p202_p3)  ;;  %v1289_v23 = vld [vmem:[%s9560_s1 + $0x8] sm:$0xff] (!%p202_p3)  ;;  %v1290_v26 = vld [vmem:[%s9560_s1 + $0x10] sm:$0xff] (!%p202_p3) }
   0x9   : > { %s9574_s24 = smov (%p29_p4, %s9572_s24), 0  ;;  %205 = sbr.rel (%p202_p3) target bundleno = 2503 (0x9c7), region = 40 }
   0xa   : > { %p242_p6 = scmp.lt.s32.totalorder (!%p202_p3), %s6049_s25, 15  ;;  %s6054_s26 = smul.u32 (!%p202_p3), 192, %s6685_s18  ;;  %v6562_v25 = vpack.c.bf16 (!%p202_p3), %v1289_v23, %v1288_v22  ;;  %v1291_v27 = vld [vmem:[%s9560_s1 + $0x18] sm:$0xff] (!%p202_p3)  ;;  %v1292_v31 = vld [vmem:[%s9560_s1 + $0x20] sm:$0xf] (!%p202_p3)  ;;  %vm1361_vm1 = vcmask (!%p202_p3), 1043456  }
   0xb   : > { %s6703_s14 = smov (!%p202_p3), 8   ;;  %s6704_s15 = smov (!%p202_p3), 4   ;;  %v6566_v28 = vpack.c.bf16 (!%p202_p3), %v1291_v27, %v1290_v26  ;;  %vm394_vm2 = vcmask (!%p202_p3), 64544   ;;  %vm515_vm3 = vcmask (!%p202_p3), 97344   ;;  %vm639_vm4 = vcmask (!%p202_p3), 130144  }
   0xc   : > { %s6705_s16 = smov (!%p202_p3), 12   ;;  %s6706_s17 = smov (!%p202_p3), 16   ;;  %6563 = vmatprep.subr.bf16.mxu0 (!%p202_p3), %v6562_v25  ;;  %vm760_vm5 = vcmask (!%p202_p3), 162944   ;;  %vm881_vm6 = vcmask (!%p202_p3), 195744   ;;  %vm1005_vm7 = vcmask (!%p202_p3), 228544   ;;  %vm1126_vm8 = vcmask (!%p202_p3), 261344  }
   0xd   : > { %s6709_s30 = smov (!%p202_p3), 28   ;;  %6565 = vmatpush3.bf16.msra.mxu0 (!%p202_p3), %v6562_v25  ;;  %s6710_s11 = smov (!%p202_p3), 32   ;;  %vm1247_vm9 = vcmask (!%p202_p3), 294144   ;;  %vm1300_vm10 = vcmask (!%p202_p3), 293888   ;;  %vm1530_vm11 = vcmask (!%p202_p3), 130048   ;;  %vm1551_vm12 = vcmask (!%p202_p3), 122880  }
   0xe   : > { %6567 = vmatprep.subr.bf16.mxu0 (!%p202_p3), %v6566_v28  ;;  %p6201_p7 = scmp.ne.s32.totalorder (!%p202_p3), %s6685_s18, 0 }
  0x10   : > { %s9576_s19 = smov (!%p234_p5, %s6689_s19), 1  ;;  %s9578_s25 = smov (!%p242_p6, %s6049_s25), 15 }
  0x11   : > { %s6608_s27 = smul.u32 480, %s9576_s19  ;;  %s6051_s28 = sshll.u32 %s9576_s19, 5  ;;  %6569 = vmatpush3.bf16.msra.mxu0 %v6566_v28  ;;  %vm1578_vm13 = vcmask (!%p6201_p7), 123904  }
  0x12   : > { %s6050_s29 = sshll.u32 %s9578_s25, 1  ;;  %s6707_s19 = smov 20   ;;  %6394 = vmatprep.subr.msk.mxu0 %vm1361_vm1, %v1292_v31 }
  0x13   : > { %s238_s7 = scalar_lea.vmem %s9559_s0, %s6608_s27  ;;  %s246_s8 = sadd.s32 %s6051_s28, %s6050_s29 }
  0x14   : > { %s6052_s9 = sshll.u32 %s246_s8, 3  ;;  %s6784_s10 = scalar_lea.vmem %s238_s7, %s6054_s26 }
  0x15   : > { %s6789_s13 = scalar_lea.vmem %s9564_s5, %s6052_s9  ;;  %v415_v0 = vld [vmem:[%s6784_s10 + $0x2] sm:$0xff]  ;;  %v416_v3 = vld [vmem:[%s6784_s10 + $0xa] sm:$0xff]  ;;  %v6057_v5 = vld [vmem:[%s6784_s10 + $0x18] sm:$0xff]  ;;  %s6708_s25 = smov 24   ;;  %6395 = vmatpush3.msk.msra.mxu0 %vm1361_vm1, %v1292_v31 }
  0x16   : > { %v294_v1 = vld [vmem:[%s6784_s10 + $0x1] sm:$0xff]  ;;  %455 = vrot.lane.b32.xlu1 %v415_v0, %s6703_s14  ;;  %v295_v4 = vld [vmem:[%s6784_s10 + $0x9] sm:$0xff]  ;;  %276 = vst.msk [vmem:[#allocation2 + $0x10] sm:$0xff] %vm273_vm0, %v6057_v5  ;;  %v6120_v7 = vld [vmem:[%s6784_s10 + $0x38] sm:$0xff] }
  0x17   : > { %334 = vrot.lane.b32.xlu0 %v294_v1, %s6704_s15  ;;  %v6058_v2 = vld [vmem:[%s6784_s10 + $0x20] sm:$0xff]  ;;  %v6119_v6 = vld [vmem:[%s6784_s10 + $0x30] sm:$0xff]  ;;  %279 = vst.msk [vmem:[#allocation2 + $0x28] sm:$0xff] %vm273_vm0, %v6120_v7  ;;  %v6808_v8 = vld [vmem:[%s6784_s10 + $0x48] sm:$0xff] }
  0x18   : > { %277 = vst.msk [vmem:[#allocation2 + $0x18] sm:$0xff] %vm273_vm0, %v6058_v2  ;;  %278 = vst.msk [vmem:[#allocation2 + $0x20] sm:$0xff] %vm273_vm0, %v6119_v6  ;;  %v6811_v9 = vld [vmem:[%s6784_s10 + $0x50] sm:$0xff]  ;;  %v6818_v10 = vld [vmem:[%s6784_s10 + $0x60] sm:$0xff] }
  0x19   : > { %280 = vst.msk [vmem:[#allocation2 + $0x30] sm:$0xff] %vm273_vm0, %v6808_v8  ;;  %281 = vst.msk [vmem:[#allocation2 + $0x38] sm:$0xff] %vm273_vm0, %v6811_v9  ;;  %v6821_v11 = vld [vmem:[%s6784_s10 + $0x68] sm:$0xff]  ;;  %v296_v12 = vld [vmem:[%s6784_s10 + $0x19] sm:$0xff] }
  0x1a   : > { %457 = vrot.lane.b32.xlu1 %v416_v3, %s6703_s14  ;;  %282 = vst.msk [vmem:[#allocation2 + $0x40] sm:$0xff] %vm273_vm0, %v6818_v10  ;;  %283 = vst.msk [vmem:[#allocation2 + $0x48] sm:$0xff] %vm273_vm0, %v6821_v11  ;;  %v253_v13 = vld [vmem:[%s6784_s10] sm:$0xff]  ;;  %v254_v14 = vld [vmem:[%s6784_s10 + $0x8] sm:$0xff] }
  0x1b   : > { %336 = vrot.lane.b32.xlu0 %v295_v4, %s6704_s15  ;;  %274 = vst.msk [vmem:[#allocation2] sm:$0xff] %vm273_vm0, %v253_v13  ;;  %275 = vst.msk [vmem:[#allocation2 + $0x8] sm:$0xff] %vm273_vm0, %v254_v14  ;;  %v6835_v15 = vld [vmem:[%s6784_s10 + $0x78] sm:$0xff]  ;;  %v6838_v16 = vld [vmem:[%s6784_s10 + $0x80] sm:$0xff] }
  0x1c   : > { %284 = vst.msk [vmem:[#allocation2 + $0x50] sm:$0xff] %vm273_vm0, %v6835_v15  ;;  %285 = vst.msk [vmem:[#allocation2 + $0x58] sm:$0xff] %vm273_vm0, %v6838_v16  ;;  %v6097_v17 = vld [vmem:[%s6784_s10 + $0x1a] sm:$0xff]  ;;  %v6098_v19 = vld [vmem:[%s6784_s10 + $0x22] sm:$0xff] }
  0x1d   : > { %v6078_v18 = vld [vmem:[%s6784_s10 + $0x21] sm:$0xff]  ;;  %v6854_v20 = vld [vmem:[%s6784_s10 + $0x90] sm:$0xff]  ;;  %v6870_v24 = vld [vmem:[%s6784_s10 + $0x98] sm:$0xff] }
  0x1e   : > { %581 = vrot.lane.b32.xlu1 %v6058_v2, %s6705_s16  ;;  %286 = vst.msk [vmem:[#allocation2 + $0x60] sm:$0xff] %vm273_vm0, %v6854_v20  ;;  %v6139_v21 = vld [vmem:[%s6784_s10 + $0x31] sm:$0xff]  ;;  %287 = vst.msk [vmem:[#allocation2 + $0x68] sm:$0xff] %vm273_vm0, %v6870_v24  ;;  %v6140_v30 = vld [vmem:[%s6784_s10 + $0x39] sm:$0xff] }
  0x1f   : > { %579 = vrot.lane.b32.xlu0 %v6057_v5, %s6705_s16  ;;  %v6159_v29 = vld [vmem:[%s6784_s10 + $0x32] sm:$0xff]  ;;  %v6160_v32 = vld [vmem:[%s6784_s10 + $0x3a] sm:$0xff]  ;;  %v6901_v33 = vld [vmem:[%s6784_s10 + $0xa8] sm:$0xff] }
  0x20   : > { %288 = vst.msk [vmem:[#allocation2 + $0x70] sm:$0xff] %vm273_vm0, %v6901_v33  ;;  %v6141_v34 = vld [vmem:[%s6784_s10 + $0x49] sm:$0xff]  ;;  %v6142_v37 = vld [vmem:[%s6784_s10 + $0x51] sm:$0xff]  ;;  %v6935_v39 = vld [vmem:[%s6784_s10 + $0xc0] sm:$0xff] }
  0x21   : > { %v6913_v35 = vld [vmem:[%s6784_s10 + $0xb0] sm:$0xff]  ;;  %290 = vst.msk [vmem:[#allocation2 + $0x80] sm:$0xff] %vm273_vm0, %v6935_v39  ;;  %v6143_v40 = vld [vmem:[%s6784_s10 + $0x61] sm:$0xff]  ;;  %v6972_v49 = vld [vmem:[%s6784_s10 + $0xd8] sm:$0xff] }
  0x22   : > { %338 = vrot.lane.b32.xlu1 %v296_v12, %s6704_s15  ;;  %289 = vst.msk [vmem:[#allocation2 + $0x78] sm:$0xff] %vm273_vm0, %v6913_v35  ;;  %v6161_v36 = vld [vmem:[%s6784_s10 + $0x4a] sm:$0xff]  ;;  %v6162_v38 = vld [vmem:[%s6784_s10 + $0x52] sm:$0xff]  ;;  %v6163_v42 = vld [vmem:[%s6784_s10 + $0x62] sm:$0xff] }
  0x23   : > { %700 = vrot.lane.b32.xlu0 %v296_v12, %s6706_s17  ;;  %v6947_v41 = vld [vmem:[%s6784_s10 + $0xc8] sm:$0xff]  ;;  %292 = vst.msk [vmem:[#allocation2 + $0x90] sm:$0xff] %vm273_vm0, %v6972_v49  ;;  %v6145_v52 = vld [vmem:[%s6784_s10 + $0x79] sm:$0xff] }
  0x24   : > { %291 = vst.msk [vmem:[#allocation2 + $0x88] sm:$0xff] %vm273_vm0, %v6947_v41  ;;  %v6144_v43 = vld [vmem:[%s6784_s10 + $0x69] sm:$0xff]  ;;  %v6989_v55 = vld [vmem:[%s6784_s10 + $0xe0] sm:$0xff] }
  0x25   : > { %v6164_v44 = vld [vmem:[%s6784_s10 + $0x6a] sm:$0xff]  ;;  %293 = vst.msk [vmem:[#allocation2 + $0x98] sm:$0xff] %vm273_vm0, %v6989_v55  ;;  %v6165_v58 = vld [vmem:[%s6784_s10 + $0x7a] sm:$0xff]  ;;  %v6166_v0 = vld [vmem:[%s6784_s10 + $0x82] sm:$0xff] }
  0x26   : > { %821 = vrot.lane.b32.xlu1 %v6097_v17, %s6707_s19  ;;  %v6146_v59 = vld [vmem:[%s6784_s10 + $0x81] sm:$0xff]  ;;  %v6149_v31 = vld [vmem:[%s6784_s10 + $0xa9] sm:$0xff] }
  0x27   : > { %702 = vrot.lane.b32.xlu0 %v6078_v18, %s6706_s17  ;;  %v6168_v22 = vld [vmem:[%s6784_s10 + $0x9a] sm:$0xff] }
  0x2a   : > { %459 = vrot.lane.b32.xlu1 %v6097_v17, %s6703_s14 }
  0x2b   : > { %340 = vrot.lane.b32.xlu0 %v6078_v18, %s6704_s15 }
  0x2e   : > { %945 = vrot.lane.b32.xlu1 %v6119_v6, %s6708_s25 }
  0x2f   : > { %823 = vrot.lane.b32.xlu0 %v6098_v19, %s6707_s19 }
  0x32   : > { %583 = vrot.lane.b32.xlu1 %v6119_v6, %s6705_s16 }
  0x33   : > { %461 = vrot.lane.b32.xlu0 %v6098_v19, %s6703_s14 }
  0x36   : > { %1066 = vrot.lane.b32.xlu1 %v6139_v21, %s6709_s30 }
  0x37   : > { %947 = vrot.lane.b32.xlu0 %v6120_v7, %s6708_s25 }
  0x3a   : > { %704 = vrot.lane.b32.xlu1 %v6139_v21, %s6706_s17 }
  0x3b   : > { %585 = vrot.lane.b32.xlu0 %v6120_v7, %s6705_s16 }
  0x3e   : > { %1187 = vrot.lane.b32.xlu1 %v6159_v29, %s6710_s11 }
  0x3f   : > { %1068 = vrot.lane.b32.xlu0 %v6140_v30, %s6709_s30 }
  0x42   : > { %706 = vrot.lane.b32.xlu1 %v6140_v30, %s6706_s17 }
  0x43   : > { %342 = vrot.lane.b32.xlu0 %v6139_v21, %s6704_s15 }
  0x46   : > { %1189 = vrot.lane.b32.xlu1 %v6160_v32, %s6710_s11 }
  0x47   : > { %825 = vrot.lane.b32.xlu0 %v6159_v29, %s6707_s19 }
  0x4a   : > { %463 = vrot.lane.b32.xlu1 %v6159_v29, %s6703_s14 }
  0x4b   : > { %344 = vrot.lane.b32.xlu0 %v6140_v30, %s6704_s15 }
  0x4e   : > { %949 = vrot.lane.b32.xlu1 %v6808_v8, %s6708_s25 }
  0x4f   : > { %827 = vrot.lane.b32.xlu0 %v6160_v32, %s6707_s19 }
  0x52   : > { %587 = vrot.lane.b32.xlu1 %v6808_v8, %s6705_s16 }
  0x53   : > { %465 = vrot.lane.b32.xlu0 %v6160_v32, %s6703_s14 }
  0x56   : > { %1070 = vrot.lane.b32.xlu1 %v6141_v34, %s6709_s30 }
  0x57   : > { %951 = vrot.lane.b32.xlu0 %v6811_v9, %s6708_s25 }
  0x5a   : > { %708 = vrot.lane.b32.xlu1 %v6141_v34, %s6706_s17 }
  0x5b   : > { %589 = vrot.lane.b32.xlu0 %v6811_v9, %s6705_s16  ;;  %v6147_v9 = vld [vmem:[%s6784_s10 + $0x91] sm:$0xff] }
  0x5e   : > { %1191 = vrot.lane.b32.xlu1 %v6161_v36, %s6710_s11 }
  0x5f   : > { %1072 = vrot.lane.b32.xlu0 %v6142_v37, %s6709_s30 }
  0x62   : > { %710 = vrot.lane.b32.xlu1 %v6142_v37, %s6706_s17 }
  0x63   : > { %346 = vrot.lane.b32.xlu0 %v6141_v34, %s6704_s15 }
  0x66   : > { %1193 = vrot.lane.b32.xlu1 %v6162_v38, %s6710_s11 }
  0x67   : > { %829 = vrot.lane.b32.xlu0 %v6161_v36, %s6707_s19 }
  0x6a   : > { %467 = vrot.lane.b32.xlu1 %v6161_v36, %s6703_s14 }
  0x6b   : > { %348 = vrot.lane.b32.xlu0 %v6142_v37, %s6704_s15 }
  0x6e   : > { %953 = vrot.lane.b32.xlu1 %v6818_v10, %s6708_s25 }
  0x6f   : > { %831 = vrot.lane.b32.xlu0 %v6162_v38, %s6707_s19 }
  0x72   : > { %591 = vrot.lane.b32.xlu1 %v6818_v10, %s6705_s16 }
  0x73   : > { %469 = vrot.lane.b32.xlu0 %v6162_v38, %s6703_s14 }
  0x76   : > { %1074 = vrot.lane.b32.xlu1 %v6143_v40, %s6709_s30 }
  0x77   : > { %955 = vrot.lane.b32.xlu0 %v6821_v11, %s6708_s25 }
  0x7a   : > { %712 = vrot.lane.b32.xlu1 %v6143_v40, %s6706_s17 }
  0x7b   : > { %593 = vrot.lane.b32.xlu0 %v6821_v11, %s6705_s16 }
  0x7e   : > { %1195 = vrot.lane.b32.xlu1 %v6163_v42, %s6710_s11 }
  0x7f   : > { %1076 = vrot.lane.b32.xlu0 %v6144_v43, %s6709_s30 }
  0x82   : > { %714 = vrot.lane.b32.xlu1 %v6144_v43, %s6706_s17 }
  0x83   : > { %350 = vrot.lane.b32.xlu0 %v6143_v40, %s6704_s15  ;;  %v6150_v40 = vld [vmem:[%s6784_s10 + $0xb1] sm:$0xff] }
  0x86   : > { %1197 = vrot.lane.b32.xlu1 %v6164_v44, %s6710_s11 }
  0x87   : > { %833 = vrot.lane.b32.xlu0 %v6163_v42, %s6707_s19 }
  0x88   : > { %v456_v45 = vpop.permute.xlu1 %455 }
  0x89   : > { %v335_v46 = vpop.permute.xlu0 %334 }
  0x8a   : > { %395 = vst.msk [vmem:[#allocation2] sm:$0xff] %vm394_vm2, %v335_v46  ;;  %471 = vrot.lane.b32.xlu1 %v6163_v42, %s6703_s14 }
  0x8b   : > { %352 = vrot.lane.b32.xlu0 %v6144_v43, %s6704_s15  ;;  %516 = vst.msk [vmem:[#allocation2] sm:$0xff] %vm515_vm3, %v456_v45 }
  0x8c   : > { %v458_v47 = vpop.permute.xlu1 %457 }
  0x8d   : > { %v337_v48 = vpop.permute.xlu0 %336 }
  0x8e   : > { %396 = vst.msk [vmem:[#allocation2 + $0x8] sm:$0xff] %vm394_vm2, %v337_v48  ;;  %957 = vrot.lane.b32.xlu1 %v6835_v15, %s6708_s25 }
  0x8f   : > { %835 = vrot.lane.b32.xlu0 %v6164_v44, %s6707_s19  ;;  %517 = vst.msk [vmem:[#allocation2 + $0x8] sm:$0xff] %vm515_vm3, %v458_v47 }
  0x90   : > { %v582_v50 = vpop.permute.xlu1 %581 }
  0x91   : > { %v580_v51 = vpop.permute.xlu0 %579  ;;  %641 = vst.msk [vmem:[#allocation2 + $0x8] sm:$0xff] %vm639_vm4, %v582_v50 }
  0x92   : > { %640 = vst.msk [vmem:[#allocation2] sm:$0xff] %vm639_vm4, %v580_v51  ;;  %595 = vrot.lane.b32.xlu1 %v6835_v15, %s6705_s16  ;;  %v6167_v15 = vld [vmem:[%s6784_s10 + $0x92] sm:$0xff] }
  0x93   : > { %473 = vrot.lane.b32.xlu0 %v6164_v44, %s6703_s14 }
  0x94   : > { %v339_v53 = vpop.permute.xlu1 %338 }
  0x95   : > { %v701_v54 = vpop.permute.xlu0 %700  ;;  %397 = vst.msk [vmem:[#allocation2 + $0x10] sm:$0xff] %vm394_vm2, %v339_v53 }
  0x96   : > { %761 = vst.msk [vmem:[#allocation2] sm:$0xff] %vm760_vm5, %v701_v54  ;;  %1078 = vrot.lane.b32.xlu1 %v6145_v52, %s6709_s30 }
  0x97   : > { %959 = vrot.lane.b32.xlu0 %v6838_v16, %s6708_s25 }
  0x98   : > { %v822_v56 = vpop.permute.xlu1 %821 }
  0x99   : > { %v703_v57 = vpop.permute.xlu0 %702  ;;  %882 = vst.msk [vmem:[#allocation2] sm:$0xff] %vm881_vm6, %v822_v56 }
  0x9a   : > { %762 = vst.msk [vmem:[#allocation2 + $0x8] sm:$0xff] %vm760_vm5, %v703_v57  ;;  %716 = vrot.lane.b32.xlu1 %v6145_v52, %s6706_s17  ;;  %v6151_v57 = vld [vmem:[%s6784_s10 + $0xc1] sm:$0xff] }
  0x9b   : > { %597 = vrot.lane.b32.xlu0 %v6838_v16, %s6705_s16  ;;  %v6148_v16 = vld [vmem:[%s6784_s10 + $0x99] sm:$0xff] }
  0x9c   : > { %v460_v60 = vpop.permute.xlu1 %459 }
  0x9d   : > { %v341_v61 = vpop.permute.xlu0 %340  ;;  %518 = vst.msk [vmem:[#allocation2 + $0x10] sm:$0xff] %vm515_vm3, %v460_v60 }
  0x9e   : > { %398 = vst.msk [vmem:[#allocation2 + $0x18] sm:$0xff] %vm394_vm2, %v341_v61  ;;  %1199 = vrot.lane.b32.xlu1 %v6165_v58, %s6710_s11 }
  0x9f   : > { %1080 = vrot.lane.b32.xlu0 %v6146_v59, %s6709_s30 }
  0xa0   : > { %v946_v62 = vpop.permute.xlu1 %945 }
  0xa1   : > { %v824_v63 = vpop.permute.xlu0 %823  ;;  %1006 = vst.msk [vmem:[#allocation2] sm:$0xff] %vm1005_vm7, %v946_v62 }
  0xa2   : > { %883 = vst.msk [vmem:[#allocation2 + $0x8] sm:$0xff] %vm881_vm6, %v824_v63  ;;  %718 = vrot.lane.b32.xlu1 %v6146_v59, %s6706_s17  ;;  %v6152_v63 = vld [vmem:[%s6784_s10 + $0xc9] sm:$0xff] }
  0xa3   : > { %354 = vrot.lane.b32.xlu0 %v6145_v52, %s6704_s15 }
  0xa4   : > { %v584_v1 = vpop.permute.xlu1 %583 }
  0xa5   : > { %v462_v2 = vpop.permute.xlu0 %461  ;;  %642 = vst.msk [vmem:[#allocation2 + $0x10] sm:$0xff] %vm639_vm4, %v584_v1 }
  0xa6   : > { %519 = vst.msk [vmem:[#allocation2 + $0x18] sm:$0xff] %vm515_vm3, %v462_v2  ;;  %1201 = vrot.lane.b32.xlu1 %v6166_v0, %s6710_s11 }
  0xa7   : > { %837 = vrot.lane.b32.xlu0 %v6165_v58, %s6707_s19 }
  0xa8   : > { %v1067_v3 = vpop.permute.xlu1 %1066 }
  0xa9   : > { %v948_v4 = vpop.permute.xlu0 %947  ;;  %1127 = vst.msk [vmem:[#allocation2] sm:$0xff] %vm1126_vm8, %v1067_v3 }
  0xaa   : > { %1007 = vst.msk [vmem:[#allocation2 + $0x8] sm:$0xff] %vm1005_vm7, %v948_v4  ;;  %475 = vrot.lane.b32.xlu1 %v6165_v58, %s6703_s14 }
  0xab   : > { %356 = vrot.lane.b32.xlu0 %v6146_v59, %s6704_s15 }
  0xac   : > { %v705_v5 = vpop.permute.xlu1 %704 }
  0xad   : > { %v586_v6 = vpop.permute.xlu0 %585  ;;  %763 = vst.msk [vmem:[#allocation2 + $0x10] sm:$0xff] %vm760_vm5, %v705_v5 }
  0xae   : > { %643 = vst.msk [vmem:[#allocation2 + $0x18] sm:$0xff] %vm639_vm4, %v586_v6  ;;  %961 = vrot.lane.b32.xlu1 %v6854_v20, %s6708_s25 }
  0xaf   : > { %839 = vrot.lane.b32.xlu0 %v6166_v0, %s6707_s19 }
  0xb0   : > { %v1188_v7 = vpop.permute.xlu1 %1187 }
  0xb1   : > { %v1069_v8 = vpop.permute.xlu0 %1068  ;;  %1248 = vst.msk [vmem:[#allocation2] sm:$0xff] %vm1247_vm9, %v1188_v7 }
  0xb2   : > { %1128 = vst.msk [vmem:[#allocation2 + $0x8] sm:$0xff] %vm1126_vm8, %v1069_v8  ;;  %599 = vrot.lane.b32.xlu1 %v6854_v20, %s6705_s16 }
  0xb3   : > { %477 = vrot.lane.b32.xlu0 %v6166_v0, %s6703_s14 }
  0xb4   : > { %v707_v10 = vpop.permute.xlu1 %706 }
  0xb5   : > { %v343_v11 = vpop.permute.xlu0 %342  ;;  %764 = vst.msk [vmem:[#allocation2 + $0x18] sm:$0xff] %vm760_vm5, %v707_v10 }
  0xb6   : > { %399 = vst.msk [vmem:[#allocation2 + $0x20] sm:$0xff] %vm394_vm2, %v343_v11  ;;  %1082 = vrot.lane.b32.xlu1 %v6147_v9, %s6709_s30 }
  0xb7   : > { %963 = vrot.lane.b32.xlu0 %v6870_v24, %s6708_s25 }
  0xb8   : > { %v1190_v12 = vpop.permute.xlu1 %1189  ;;  %v1268_v14 = vld [vmem:[#allocation2] sm:$0xff] }
  0xb9   : > { %v826_v13 = vpop.permute.xlu0 %825  ;;  %1249 = vst.msk [vmem:[#allocation2 + $0x8] sm:$0xff] %vm1247_vm9, %v1190_v12  ;;  %6396 = vmatprep.mubr.msk.f32.mxu0 %vm1300_vm10, %v1268_v14 }
  0xba   : > { %884 = vst.msk [vmem:[#allocation2 + $0x10] sm:$0xff] %vm881_vm6, %v826_v13  ;;  %720 = vrot.lane.b32.xlu1 %v6147_v9, %s6706_s17  ;;  %v6153_v13 = vld [vmem:[%s6784_s10 + $0xd9] sm:$0xff] }
  0xbb   : > { %601 = vrot.lane.b32.xlu0 %v6870_v24, %s6705_s16 }
  0xbc   : > { %v464_v17 = vpop.permute.xlu1 %463 }
  0xbd   : > { %v345_v18 = vpop.permute.xlu0 %344  ;;  %520 = vst.msk [vmem:[#allocation2 + $0x20] sm:$0xff] %vm515_vm3, %v464_v17 }
  0xbe   : > { %400 = vst.msk [vmem:[#allocation2 + $0x28] sm:$0xff] %vm394_vm2, %v345_v18  ;;  %1203 = vrot.lane.b32.xlu1 %v6167_v15, %s6710_s11 }
  0xbf   : > { %1084 = vrot.lane.b32.xlu0 %v6148_v16, %s6709_s30 }
  0xc0   : > { %v950_v19 = vpop.permute.xlu1 %949  ;;  %v1269_v21 = vld [vmem:[#allocation2 + $0x8] sm:$0xff] }
  0xc1   : > { %v828_v20 = vpop.permute.xlu0 %827  ;;  %1008 = vst.msk [vmem:[#allocation2 + $0x10] sm:$0xff] %vm1005_vm7, %v950_v19  ;;  %6397 = vmatmul.mubr.msk.f32.vlgmr.msra.gmra.mrb[0].mxu0 %vm1300_vm10, %v1269_v21  ;;  %v6154_v19 = vld [vmem:[%s6784_s10 + $0xe1] sm:$0xff] }
  0xc2   : > { %885 = vst.msk [vmem:[#allocation2 + $0x18] sm:$0xff] %vm881_vm6, %v828_v20  ;;  %722 = vrot.lane.b32.xlu1 %v6148_v16, %s6706_s17 }
  0xc3   : > { %358 = vrot.lane.b32.xlu0 %v6147_v9, %s6704_s15 }
  0xc4   : > { %v588_v23 = vpop.permute.xlu1 %587 }
  0xc5   : > { %v466_v24 = vpop.permute.xlu0 %465  ;;  %644 = vst.msk [vmem:[#allocation2 + $0x20] sm:$0xff] %vm639_vm4, %v588_v23 }
  0xc6   : > { %521 = vst.msk [vmem:[#allocation2 + $0x28] sm:$0xff] %vm515_vm3, %v466_v24  ;;  %1205 = vrot.lane.b32.xlu1 %v6168_v22, %s6710_s11 }
  0xc7   : > { %841 = vrot.lane.b32.xlu0 %v6167_v15, %s6707_s19 }
  0xc8   : > { %v1071_v25 = vpop.permute.xlu1 %1070 }
  0xc9   : > { %v952_v26 = vpop.permute.xlu0 %951  ;;  %1129 = vst.msk [vmem:[#allocation2 + $0x10] sm:$0xff] %vm1126_vm8, %v1071_v25 }
  0xca   : > { %1009 = vst.msk [vmem:[#allocation2 + $0x18] sm:$0xff] %vm1005_vm7, %v952_v26  ;;  %479 = vrot.lane.b32.xlu1 %v6167_v15, %s6703_s14 }
  0xcb   : > { %360 = vrot.lane.b32.xlu0 %v6148_v16, %s6704_s15 }
  0xcc   : > { %v709_v27 = vpop.permute.xlu1 %708 }
  0xcd   : > { %v590_v28 = vpop.permute.xlu0 %589  ;;  %765 = vst.msk [vmem:[#allocation2 + $0x20] sm:$0xff] %vm760_vm5, %v709_v27 }
  0xce   : > { %645 = vst.msk [vmem:[#allocation2 + $0x28] sm:$0xff] %vm639_vm4, %v590_v28  ;;  %965 = vrot.lane.b32.xlu1 %v6901_v33, %s6708_s25 }
  0xcf   : > { %843 = vrot.lane.b32.xlu0 %v6168_v22, %s6707_s19 }
  0xd0   : > { %v1192_v29 = vpop.permute.xlu1 %1191 }
  0xd1   : > { %v1073_v30 = vpop.permute.xlu0 %1072  ;;  %1250 = vst.msk [vmem:[#allocation2 + $0x10] sm:$0xff] %vm1247_vm9, %v1192_v29  ;;  %v6135_v29 = vld [vmem:[%s6784_s10 + $0xf0] sm:$0xff] }
  0xd2   : > { %1130 = vst.msk [vmem:[#allocation2 + $0x18] sm:$0xff] %vm1126_vm8, %v1073_v30  ;;  %603 = vrot.lane.b32.xlu1 %v6901_v33, %s6705_s16  ;;  %v6169_v33 = vld [vmem:[%s6784_s10 + $0xaa] sm:$0xff] }
  0xd3   : > { %481 = vrot.lane.b32.xlu0 %v6168_v22, %s6703_s14 }
  0xd4   : > { %v711_v32 = vpop.permute.xlu1 %710 }
  0xd5   : > { %v347_v34 = vpop.permute.xlu0 %346  ;;  %766 = vst.msk [vmem:[#allocation2 + $0x28] sm:$0xff] %vm760_vm5, %v711_v32 }
  0xd6   : > { %401 = vst.msk [vmem:[#allocation2 + $0x30] sm:$0xff] %vm394_vm2, %v347_v34  ;;  %1086 = vrot.lane.b32.xlu1 %v6149_v31, %s6709_s30 }
  0xd7   : > { %967 = vrot.lane.b32.xlu0 %v6913_v35, %s6708_s25 }
  0xd8   : > { %v1194_v36 = vpop.permute.xlu1 %1193  ;;  %v1270_v38 = vld [vmem:[#allocation2 + $0x10] sm:$0xff] }
  0xd9   : > { %v830_v37 = vpop.permute.xlu0 %829  ;;  %1251 = vst.msk [vmem:[#allocation2 + $0x18] sm:$0xff] %vm1247_vm9, %v1194_v36  ;;  %6399 = vmatprep.mubr.msk.f32.mxu0 %vm1300_vm10, %v1270_v38  ;;  %v6136_v36 = vld [vmem:[%s6784_s10 + $0xf8] sm:$0xff] }
  0xda   : > { %886 = vst.msk [vmem:[#allocation2 + $0x20] sm:$0xff] %vm881_vm6, %v830_v37  ;;  %724 = vrot.lane.b32.xlu1 %v6149_v31, %s6706_s17  ;;  %v6155_v37 = vld [vmem:[%s6784_s10 + $0xf1] sm:$0xff] }
  0xdb   : > { %605 = vrot.lane.b32.xlu0 %v6913_v35, %s6705_s16  ;;  %v6170_v35 = vld [vmem:[%s6784_s10 + $0xb2] sm:$0xff] }
  0xdc   : > { %v468_v42 = vpop.permute.xlu1 %467 }
  0xdd   : > { %v349_v43 = vpop.permute.xlu0 %348  ;;  %522 = vst.msk [vmem:[#allocation2 + $0x30] sm:$0xff] %vm515_vm3, %v468_v42 }
  0xde   : > { %402 = vst.msk [vmem:[#allocation2 + $0x38] sm:$0xff] %vm394_vm2, %v349_v43  ;;  %1207 = vrot.lane.b32.xlu1 %v6169_v33, %s6710_s11 }
  0xdf   : > { %1088 = vrot.lane.b32.xlu0 %v6150_v40, %s6709_s30 }
  0xe0   : > { %v954_v44 = vpop.permute.xlu1 %953  ;;  %v1271_v46 = vld [vmem:[#allocation2 + $0x18] sm:$0xff] }
  0xe1   : > { %v832_v45 = vpop.permute.xlu0 %831  ;;  %1010 = vst.msk [vmem:[#allocation2 + $0x20] sm:$0xff] %vm1005_vm7, %v954_v44  ;;  %6400 = vmatmul.mubr.msk.f32.gmra.mrb[2].mxu0 %vm1300_vm10, %v1271_v46  ;;  %v6156_v44 = vld [vmem:[%s6784_s10 + $0xf9] sm:$0xff] }
  0xe2   : > { %887 = vst.msk [vmem:[#allocation2 + $0x28] sm:$0xff] %vm881_vm6, %v832_v45  ;;  %726 = vrot.lane.b32.xlu1 %v6150_v40, %s6706_s17  ;;  %v6175_v45 = vld [vmem:[%s6784_s10 + $0xf2] sm:$0xff] }
  0xe3   : > { %362 = vrot.lane.b32.xlu0 %v6149_v31, %s6704_s15 }
  0xe4   : > { %v592_v47 = vpop.permute.xlu1 %591 }
  0xe5   : > { %v470_v48 = vpop.permute.xlu0 %469  ;;  %646 = vst.msk [vmem:[#allocation2 + $0x30] sm:$0xff] %vm639_vm4, %v592_v47 }
  0xe6   : > { %523 = vst.msk [vmem:[#allocation2 + $0x38] sm:$0xff] %vm515_vm3, %v470_v48  ;;  %1209 = vrot.lane.b32.xlu1 %v6170_v35, %s6710_s11 }
  0xe7   : > { %845 = vrot.lane.b32.xlu0 %v6169_v33, %s6707_s19 }
  0xe8   : > { %v1075_v50 = vpop.permute.xlu1 %1074 }
  0xe9   : > { %v956_v51 = vpop.permute.xlu0 %955  ;;  %1131 = vst.msk [vmem:[#allocation2 + $0x20] sm:$0xff] %vm1126_vm8, %v1075_v50 }
  0xea   : > { %1011 = vst.msk [vmem:[#allocation2 + $0x28] sm:$0xff] %vm1005_vm7, %v956_v51  ;;  %483 = vrot.lane.b32.xlu1 %v6169_v33, %s6703_s14  ;;  %v6176_v51 = vld [vmem:[%s6784_s10 + $0xfa] sm:$0xff] }
  0xeb   : > { %364 = vrot.lane.b32.xlu0 %v6150_v40, %s6704_s15 }
  0xec   : > { %v713_v52 = vpop.permute.xlu1 %712 }
  0xed   : > { %v594_v53 = vpop.permute.xlu0 %593  ;;  %767 = vst.msk [vmem:[#allocation2 + $0x30] sm:$0xff] %vm760_vm5, %v713_v52 }
  0xee   : > { %647 = vst.msk [vmem:[#allocation2 + $0x38] sm:$0xff] %vm639_vm4, %v594_v53  ;;  %969 = vrot.lane.b32.xlu1 %v6935_v39, %s6708_s25 }
  0xef   : > { %847 = vrot.lane.b32.xlu0 %v6170_v35, %s6707_s19 }
  0xf0   : > { %v1196_v54 = vpop.permute.xlu1 %1195 }
  0xf1   : > { %v1077_v56 = vpop.permute.xlu0 %1076  ;;  %1252 = vst.msk [vmem:[#allocation2 + $0x20] sm:$0xff] %vm1247_vm9, %v1196_v54  ;;  %v6137_v54 = vld [vmem:[%s6784_s10 + $0x108] sm:$0xff] }
  0xf2   : > { %1132 = vst.msk [vmem:[#allocation2 + $0x28] sm:$0xff] %vm1126_vm8, %v1077_v56  ;;  %607 = vrot.lane.b32.xlu1 %v6935_v39, %s6705_s16  ;;  %v6171_v39 = vld [vmem:[%s6784_s10 + $0xc2] sm:$0xff]  ;;  %v6138_v56 = vld [vmem:[%s6784_s10 + $0x110] sm:$0xff] }
  0xf3   : > { %485 = vrot.lane.b32.xlu0 %v6170_v35, %s6703_s14 }
  0xf4   : > { %v715_v58 = vpop.permute.xlu1 %714 }
  0xf5   : > { %v351_v59 = vpop.permute.xlu0 %350  ;;  %768 = vst.msk [vmem:[#allocation2 + $0x38] sm:$0xff] %vm760_vm5, %v715_v58 }
  0xf6   : > { %403 = vst.msk [vmem:[#allocation2 + $0x40] sm:$0xff] %vm394_vm2, %v351_v59  ;;  %1090 = vrot.lane.b32.xlu1 %v6151_v57, %s6709_s30  ;;  %v6157_v59 = vld [vmem:[%s6784_s10 + $0x109] sm:$0xff] }
  0xf7   : > { %971 = vrot.lane.b32.xlu0 %v6947_v41, %s6708_s25 }
  0xf8   : > { %v1198_v60 = vpop.permute.xlu1 %1197  ;;  %v1272_v62 = vld [vmem:[#allocation2 + $0x20] sm:$0xff] }
  0xf9   : > { %v834_v61 = vpop.permute.xlu0 %833  ;;  %1253 = vst.msk [vmem:[#allocation2 + $0x28] sm:$0xff] %vm1247_vm9, %v1198_v60  ;;  %6402 = vmatprep.mubr.msk.f32.mxu0 %vm1300_vm10, %v1272_v62  ;;  %v6158_v60 = vld [vmem:[%s6784_s10 + $0x111] sm:$0xff] }
  0xfa   : > { %888 = vst.msk [vmem:[#allocation2 + $0x30] sm:$0xff] %vm881_vm6, %v834_v61  ;;  %728 = vrot.lane.b32.xlu1 %v6151_v57, %s6706_s17 }
  0xfb   : > { %609 = vrot.lane.b32.xlu0 %v6947_v41, %s6705_s16  ;;  %v6172_v41 = vld [vmem:[%s6784_s10 + $0xca] sm:$0xff] }
  0xfc   : > { %v472_v0 = vpop.permute.xlu1 %471 }
  0xfd   : > { %v353_v1 = vpop.permute.xlu0 %352  ;;  %524 = vst.msk [vmem:[#allocation2 + $0x40] sm:$0xff] %vm515_vm3, %v472_v0 }
  0xfe   : > { %404 = vst.msk [vmem:[#allocation2 + $0x48] sm:$0xff] %vm394_vm2, %v353_v1  ;;  %1211 = vrot.lane.b32.xlu1 %v6171_v39, %s6710_s11 }
  0xff   : > { %1092 = vrot.lane.b32.xlu0 %v6152_v63, %s6709_s30 }
 0x100   : > { %v958_v2 = vpop.permute.xlu1 %957  ;;  %v1273_v4 = vld [vmem:[#allocation2 + $0x28] sm:$0xff] }
 0x101   : > { %v836_v3 = vpop.permute.xlu0 %835  ;;  %1012 = vst.msk [vmem:[#allocation2 + $0x30] sm:$0xff] %vm1005_vm7, %v958_v2  ;;  %6403 = vmatmul.mubr.msk.f32.gmra.mrb[4].mxu0 %vm1300_vm10, %v1273_v4 }
 0x102   : > { %889 = vst.msk [vmem:[#allocation2 + $0x38] sm:$0xff] %vm881_vm6, %v836_v3  ;;  %730 = vrot.lane.b32.xlu1 %v6152_v63, %s6706_s17 }
 0x103   : > { %366 = vrot.lane.b32.xlu0 %v6151_v57, %s6704_s15 }
 0x104   : > { %v596_v5 = vpop.permute.xlu1 %595 }
 0x105   : > { %v474_v6 = vpop.permute.xlu0 %473  ;;  %648 = vst.msk [vmem:[#allocation2 + $0x40] sm:$0xff] %vm639_vm4, %v596_v5 }
 0x106   : > { %525 = vst.msk [vmem:[#allocation2 + $0x48] sm:$0xff] %vm515_vm3, %v474_v6  ;;  %1213 = vrot.lane.b32.xlu1 %v6172_v41, %s6710_s11 }
 0x107   : > { %849 = vrot.lane.b32.xlu0 %v6171_v39, %s6707_s19 }
 0x108   : > { %v1079_v7 = vpop.permute.xlu1 %1078 }
 0x109   : > { %v960_v8 = vpop.permute.xlu0 %959  ;;  %1133 = vst.msk [vmem:[#allocation2 + $0x30] sm:$0xff] %vm1126_vm8, %v1079_v7 }
 0x10a   : > { %1013 = vst.msk [vmem:[#allocation2 + $0x38] sm:$0xff] %vm1005_vm7, %v960_v8  ;;  %487 = vrot.lane.b32.xlu1 %v6171_v39, %s6703_s14  ;;  %v6177_v39 = vld [vmem:[%s6784_s10 + $0x10a] sm:$0xff] }
 0x10b   : > { %368 = vrot.lane.b32.xlu0 %v6152_v63, %s6704_s15  ;;  %v6178_v63 = vld [vmem:[%s6784_s10 + $0x112] sm:$0xff] }
 0x10c   : > { %v717_v9 = vpop.permute.xlu1 %716 }
 0x10d   : > { %v598_v10 = vpop.permute.xlu0 %597  ;;  %769 = vst.msk [vmem:[#allocation2 + $0x40] sm:$0xff] %vm760_vm5, %v717_v9 }
 0x10e   : > { %649 = vst.msk [vmem:[#allocation2 + $0x48] sm:$0xff] %vm639_vm4, %v598_v10  ;;  %973 = vrot.lane.b32.xlu1 %v6972_v49, %s6708_s25 }
 0x10f   : > { %851 = vrot.lane.b32.xlu0 %v6172_v41, %s6707_s19 }
 0x110   : > { %v1200_v11 = vpop.permute.xlu1 %1199 }
 0x111   : > { %v1081_v12 = vpop.permute.xlu0 %1080  ;;  %1254 = vst.msk [vmem:[#allocation2 + $0x30] sm:$0xff] %vm1247_vm9, %v1200_v11 }
 0x112   : > { %1134 = vst.msk [vmem:[#allocation2 + $0x38] sm:$0xff] %vm1126_vm8, %v1081_v12  ;;  %611 = vrot.lane.b32.xlu1 %v6972_v49, %s6705_s16  ;;  %v6173_v49 = vld [vmem:[%s6784_s10 + $0xda] sm:$0xff] }
 0x113   : > { %489 = vrot.lane.b32.xlu0 %v6172_v41, %s6703_s14 }
 0x114   : > { %v719_v14 = vpop.permute.xlu1 %718 }
 0x115   : > { %v355_v15 = vpop.permute.xlu0 %354  ;;  %770 = vst.msk [vmem:[#allocation2 + $0x48] sm:$0xff] %vm760_vm5, %v719_v14 }
 0x116   : > { %405 = vst.msk [vmem:[#allocation2 + $0x50] sm:$0xff] %vm394_vm2, %v355_v15  ;;  %1094 = vrot.lane.b32.xlu1 %v6153_v13, %s6709_s30 }
 0x117   : > { %975 = vrot.lane.b32.xlu0 %v6989_v55, %s6708_s25 }
 0x118   : > { %v1202_v16 = vpop.permute.xlu1 %1201  ;;  %v1274_v18 = vld [vmem:[#allocation2 + $0x30] sm:$0xff] }
 0x119   : > { %v838_v17 = vpop.permute.xlu0 %837  ;;  %1255 = vst.msk [vmem:[#allocation2 + $0x38] sm:$0xff] %vm1247_vm9, %v1202_v16  ;;  %6405 = vmatprep.mubr.msk.f32.mxu0 %vm1300_vm10, %v1274_v18 }
 0x11a   : > { %890 = vst.msk [vmem:[#allocation2 + $0x40] sm:$0xff] %vm881_vm6, %v838_v17  ;;  %732 = vrot.lane.b32.xlu1 %v6153_v13, %s6706_s17 }
 0x11b   : > { %613 = vrot.lane.b32.xlu0 %v6989_v55, %s6705_s16  ;;  %v6174_v55 = vld [vmem:[%s6784_s10 + $0xe2] sm:$0xff] }
 0x11c   : > { %v476_v20 = vpop.permute.xlu1 %475 }
 0x11d   : > { %v357_v21 = vpop.permute.xlu0 %356  ;;  %526 = vst.msk [vmem:[#allocation2 + $0x50] sm:$0xff] %vm515_vm3, %v476_v20 }
 0x11e   : > { %406 = vst.msk [vmem:[#allocation2 + $0x58] sm:$0xff] %vm394_vm2, %v357_v21  ;;  %1215 = vrot.lane.b32.xlu1 %v6173_v49, %s6710_s11 }
 0x11f   : > { %1096 = vrot.lane.b32.xlu0 %v6154_v19, %s6709_s30 }
 0x120   : > { %v962_v22 = vpop.permute.xlu1 %961  ;;  %v1275_v24 = vld [vmem:[#allocation2 + $0x38] sm:$0xff] }
 0x121   : > { %v840_v23 = vpop.permute.xlu0 %839  ;;  %1014 = vst.msk [vmem:[#allocation2 + $0x40] sm:$0xff] %vm1005_vm7, %v962_v22  ;;  %6406 = vmatmul.mubr.msk.f32.gmra.mrb[6].mxu0 %vm1300_vm10, %v1275_v24 }
 0x122   : > { %891 = vst.msk [vmem:[#allocation2 + $0x48] sm:$0xff] %vm881_vm6, %v840_v23  ;;  %734 = vrot.lane.b32.xlu1 %v6154_v19, %s6706_s17 }
 0x123   : > { %370 = vrot.lane.b32.xlu0 %v6153_v13, %s6704_s15 }
 0x124   : > { %v600_v25 = vpop.permute.xlu1 %599 }
 0x125   : > { %v478_v26 = vpop.permute.xlu0 %477  ;;  %650 = vst.msk [vmem:[#allocation2 + $0x50] sm:$0xff] %vm639_vm4, %v600_v25 }
 0x126   : > { %527 = vst.msk [vmem:[#allocation2 + $0x58] sm:$0xff] %vm515_vm3, %v478_v26  ;;  %1217 = vrot.lane.b32.xlu1 %v6174_v55, %s6710_s11 }
 0x127   : > { %853 = vrot.lane.b32.xlu0 %v6173_v49, %s6707_s19 }
 0x128   : > { %v1083_v27 = vpop.permute.xlu1 %1082 }
 0x129   : > { %v964_v28 = vpop.permute.xlu0 %963  ;;  %1135 = vst.msk [vmem:[#allocation2 + $0x40] sm:$0xff] %vm1126_vm8, %v1083_v27 }
 0x12a   : > { %1015 = vst.msk [vmem:[#allocation2 + $0x48] sm:$0xff] %vm1005_vm7, %v964_v28  ;;  %491 = vrot.lane.b32.xlu1 %v6173_v49, %s6703_s14 }
 0x12b   : > { %372 = vrot.lane.b32.xlu0 %v6154_v19, %s6704_s15 }
 0x12c   : > { %v721_v30 = vpop.permute.xlu1 %720 }
 0x12d   : > { %v602_v31 = vpop.permute.xlu0 %601  ;;  %771 = vst.msk [vmem:[#allocation2 + $0x50] sm:$0xff] %vm760_vm5, %v721_v30 }
 0x12e   : > { %651 = vst.msk [vmem:[#allocation2 + $0x58] sm:$0xff] %vm639_vm4, %v602_v31  ;;  %977 = vrot.lane.b32.xlu1 %v6135_v29, %s6708_s25 }
 0x12f   : > { %855 = vrot.lane.b32.xlu0 %v6174_v55, %s6707_s19 }
 0x130   : > { %v1204_v32 = vpop.permute.xlu1 %1203 }
 0x131   : > { %v1085_v34 = vpop.permute.xlu0 %1084  ;;  %1256 = vst.msk [vmem:[#allocation2 + $0x40] sm:$0xff] %vm1247_vm9, %v1204_v32 }
 0x132   : > { %1136 = vst.msk [vmem:[#allocation2 + $0x48] sm:$0xff] %vm1126_vm8, %v1085_v34  ;;  %615 = vrot.lane.b32.xlu1 %v6135_v29, %s6705_s16 }
 0x133   : > { %493 = vrot.lane.b32.xlu0 %v6174_v55, %s6703_s14 }
 0x134   : > { %v723_v38 = vpop.permute.xlu1 %722 }
 0x135   : > { %v359_v33 = vpop.permute.xlu0 %358  ;;  %772 = vst.msk [vmem:[#allocation2 + $0x58] sm:$0xff] %vm760_vm5, %v723_v38 }
 0x136   : > { %407 = vst.msk [vmem:[#allocation2 + $0x60] sm:$0xff] %vm394_vm2, %v359_v33  ;;  %1098 = vrot.lane.b32.xlu1 %v6155_v37, %s6709_s30 }
 0x137   : > { %979 = vrot.lane.b32.xlu0 %v6136_v36, %s6708_s25 }
 0x138   : > { %v1206_v40 = vpop.permute.xlu1 %1205  ;;  %v1276_v43 = vld [vmem:[#allocation2 + $0x40] sm:$0xff] }
 0x139   : > { %v842_v42 = vpop.permute.xlu0 %841  ;;  %1257 = vst.msk [vmem:[#allocation2 + $0x48] sm:$0xff] %vm1247_vm9, %v1206_v40  ;;  %6408 = vmatprep.mubr.msk.f32.mxu0 %vm1300_vm10, %v1276_v43 }
 0x13a   : > { %892 = vst.msk [vmem:[#allocation2 + $0x50] sm:$0xff] %vm881_vm6, %v842_v42  ;;  %736 = vrot.lane.b32.xlu1 %v6155_v37, %s6706_s17  ;;  %v7281_v37 = vld [vmem:[%s9561_s2] ss:$0 sm:$0xff] }
 0x13b   : > { %617 = vrot.lane.b32.xlu0 %v6136_v36, %s6705_s16 }
 0x13c   : > { %v480_v46 = vpop.permute.xlu1 %479 }
 0x13d   : > { %v361_v35 = vpop.permute.xlu0 %360  ;;  %528 = vst.msk [vmem:[#allocation2 + $0x60] sm:$0xff] %vm515_vm3, %v480_v46 }
 0x13e   : > { %408 = vst.msk [vmem:[#allocation2 + $0x68] sm:$0xff] %vm394_vm2, %v361_v35  ;;  %1219 = vrot.lane.b32.xlu1 %v6175_v45, %s6710_s11 }
 0x13f   : > { %1100 = vrot.lane.b32.xlu0 %v6156_v44, %s6709_s30 }
 0x140   : > { %v966_v47 = vpop.permute.xlu1 %965  ;;  %v1277_v50 = vld [vmem:[#allocation2 + $0x48] sm:$0xff] }
 0x141   : > { %v844_v48 = vpop.permute.xlu0 %843  ;;  %1016 = vst.msk [vmem:[#allocation2 + $0x50] sm:$0xff] %vm1005_vm7, %v966_v47  ;;  %6409 = vmatmul.mubr.msk.f32.gmra.mrb[8].mxu0 %vm1300_vm10, %v1277_v50 }
 0x142   : > { %893 = vst.msk [vmem:[#allocation2 + $0x58] sm:$0xff] %vm881_vm6, %v844_v48  ;;  %857 = vrot.lane.b32.xlu1 %v6175_v45, %s6707_s19 }
 0x143   : > { %738 = vrot.lane.b32.xlu0 %v6156_v44, %s6706_s17 }
 0x144   : > { %v604_v52 = vpop.permute.xlu1 %603 }
 0x145   : > { %v482_v53 = vpop.permute.xlu0 %481  ;;  %652 = vst.msk [vmem:[#allocation2 + $0x60] sm:$0xff] %vm639_vm4, %v604_v52 }
 0x146   : > { %529 = vst.msk [vmem:[#allocation2 + $0x68] sm:$0xff] %vm515_vm3, %v482_v53  ;;  %859 = vrot.lane.b32.xlu1 %v6176_v51, %s6707_s19 }
 0x147   : > { %1221 = vrot.lane.b32.xlu0 %v6176_v51, %s6710_s11 }
 0x148   : > { %v1087_v57 = vpop.permute.xlu1 %1086 }
 0x149   : > { %v968_v58 = vpop.permute.xlu0 %967  ;;  %1137 = vst.msk [vmem:[#allocation2 + $0x50] sm:$0xff] %vm1126_vm8, %v1087_v57 }
 0x14a   : > { %1017 = vst.msk [vmem:[#allocation2 + $0x58] sm:$0xff] %vm1005_vm7, %v968_v58  ;;  %983 = vrot.lane.b32.xlu1 %v6138_v56, %s6708_s25 }
 0x14b   : > { %981 = vrot.lane.b32.xlu0 %v6137_v54, %s6708_s25 }
 0x14c   : > { %v725_v61 = vpop.permute.xlu1 %724 }
 0x14d   : > { %v606_v62 = vpop.permute.xlu0 %605  ;;  %773 = vst.msk [vmem:[#allocation2 + $0x60] sm:$0xff] %vm760_vm5, %v725_v61 }
 0x14e   : > { %653 = vst.msk [vmem:[#allocation2 + $0x68] sm:$0xff] %vm639_vm4, %v606_v62  ;;  %1104 = vrot.lane.b32.xlu1 %v6158_v60, %s6709_s30 }
 0x14f   : > { %1102 = vrot.lane.b32.xlu0 %v6157_v59, %s6709_s30 }
 0x150   : > { %v1208_v0 = vpop.permute.xlu1 %1207 }
 0x151   : > { %v1089_v1 = vpop.permute.xlu0 %1088  ;;  %1258 = vst.msk [vmem:[#allocation2 + $0x50] sm:$0xff] %vm1247_vm9, %v1208_v0 }
 0x152   : > { %1138 = vst.msk [vmem:[#allocation2 + $0x58] sm:$0xff] %vm1126_vm8, %v1089_v1  ;;  %1225 = vrot.lane.b32.xlu1 %v6178_v63, %s6710_s11 }
 0x153   : > { %1223 = vrot.lane.b32.xlu0 %v6177_v39, %s6710_s11 }
 0x154   : > { %v727_v2 = vpop.permute.xlu1 %726 }
 0x155   : > { %v363_v3 = vpop.permute.xlu0 %362  ;;  %774 = vst.msk [vmem:[#allocation2 + $0x68] sm:$0xff] %vm760_vm5, %v727_v2 }
 0x156   : > { %409 = vst.msk [vmem:[#allocation2 + $0x70] sm:$0xff] %vm394_vm2, %v363_v3 }
 0x158   : > { %v1210_v4 = vpop.permute.xlu1 %1209  ;;  %v1278_v5 = vld [vmem:[#allocation2 + $0x50] sm:$0xff] }
 0x159   : > { %v846_v41 = vpop.permute.xlu0 %845  ;;  %1259 = vst.msk [vmem:[#allocation2 + $0x58] sm:$0xff] %vm1247_vm9, %v1210_v4  ;;  %6411 = vmatprep.mubr.msk.f32.mxu0 %vm1300_vm10, %v1278_v5 }
 0x15a   : > { %894 = vst.msk [vmem:[#allocation2 + $0x60] sm:$0xff] %vm881_vm6, %v846_v41 }
 0x15c   : > { %v484_v6 = vpop.permute.xlu1 %483 }
 0x15d   : > { %v365_v7 = vpop.permute.xlu0 %364  ;;  %530 = vst.msk [vmem:[#allocation2 + $0x70] sm:$0xff] %vm515_vm3, %v484_v6 }
 0x15e   : > { %410 = vst.msk [vmem:[#allocation2 + $0x78] sm:$0xff] %vm394_vm2, %v365_v7 }
 0x160   : > { %v970_v8 = vpop.permute.xlu1 %969  ;;  %v1279_v10 = vld [vmem:[#allocation2 + $0x58] sm:$0xff] }
 0x161   : > { %v848_v9 = vpop.permute.xlu0 %847  ;;  %1018 = vst.msk [vmem:[#allocation2 + $0x60] sm:$0xff] %vm1005_vm7, %v970_v8  ;;  %6412 = vmatmul.mubr.msk.f32.gmra.mrb[10].mxu0 %vm1300_vm10, %v1279_v10 }
 0x162   : > { %895 = vst.msk [vmem:[#allocation2 + $0x68] sm:$0xff] %vm881_vm6, %v848_v9 }
 0x164   : > { %v608_v11 = vpop.permute.xlu1 %607 }
 0x165   : > { %v486_v12 = vpop.permute.xlu0 %485  ;;  %654 = vst.msk [vmem:[#allocation2 + $0x70] sm:$0xff] %vm639_vm4, %v608_v11 }
 0x166   : > { %531 = vst.msk [vmem:[#allocation2 + $0x78] sm:$0xff] %vm515_vm3, %v486_v12 }
 0x168   : > { %v1091_v13 = vpop.permute.xlu1 %1090 }
 0x169   : > { %v972_v14 = vpop.permute.xlu0 %971  ;;  %1139 = vst.msk [vmem:[#allocation2 + $0x60] sm:$0xff] %vm1126_vm8, %v1091_v13 }
 0x16a   : > { %1019 = vst.msk [vmem:[#allocation2 + $0x68] sm:$0xff] %vm1005_vm7, %v972_v14 }
 0x16c   : > { %v729_v15 = vpop.permute.xlu1 %728 }
 0x16d   : > { %v610_v16 = vpop.permute.xlu0 %609  ;;  %775 = vst.msk [vmem:[#allocation2 + $0x70] sm:$0xff] %vm760_vm5, %v729_v15 }
 0x16e   : > { %655 = vst.msk [vmem:[#allocation2 + $0x78] sm:$0xff] %vm639_vm4, %v610_v16 }
 0x170   : > { %v1212_v17 = vpop.permute.xlu1 %1211 }
 0x171   : > { %v1093_v18 = vpop.permute.xlu0 %1092  ;;  %1260 = vst.msk [vmem:[#allocation2 + $0x60] sm:$0xff] %vm1247_vm9, %v1212_v17 }
 0x172   : > { %1140 = vst.msk [vmem:[#allocation2 + $0x68] sm:$0xff] %vm1126_vm8, %v1093_v18 }
 0x174   : > { %v731_v49 = vpop.permute.xlu1 %730 }
 0x175   : > { %v367_v19 = vpop.permute.xlu0 %366  ;;  %776 = vst.msk [vmem:[#allocation2 + $0x78] sm:$0xff] %vm760_vm5, %v731_v49 }
 0x176   : > { %411 = vst.msk [vmem:[#allocation2 + $0x80] sm:$0xff] %vm394_vm2, %v367_v19 }
 0x178   : > { %v1214_v20 = vpop.permute.xlu1 %1213  ;;  %v1280_v22 = vld [vmem:[#allocation2 + $0x60] sm:$0xff] }
 0x179   : > { %v850_v21 = vpop.permute.xlu0 %849  ;;  %1261 = vst.msk [vmem:[#allocation2 + $0x68] sm:$0xff] %vm1247_vm9, %v1214_v20  ;;  %6414 = vmatprep.mubr.msk.f32.mxu0 %vm1300_vm10, %v1280_v22 }
 0x17a   : > { %896 = vst.msk [vmem:[#allocation2 + $0x70] sm:$0xff] %vm881_vm6, %v850_v21 }
 0x17c   : > { %v488_v23 = vpop.permute.xlu1 %487 }
 0x17d   : > { %v369_v24 = vpop.permute.xlu0 %368  ;;  %532 = vst.msk [vmem:[#allocation2 + $0x80] sm:$0xff] %vm515_vm3, %v488_v23 }
 0x17e   : > { %412 = vst.msk [vmem:[#allocation2 + $0x88] sm:$0xff] %vm394_vm2, %v369_v24 }
 0x180   : > { %v974_v55 = vpop.permute.xlu1 %973  ;;  %v1281_v26 = vld [vmem:[#allocation2 + $0x68] sm:$0xff] }
 0x181   : > { %v852_v25 = vpop.permute.xlu0 %851  ;;  %1020 = vst.msk [vmem:[#allocation2 + $0x70] sm:$0xff] %vm1005_vm7, %v974_v55  ;;  %6415 = vmatmul.mubr.msk.f32.gmra.mrb[12].mxu0 %vm1300_vm10, %v1281_v26  ;;  %v6711_v55 = vmov 0.0  }
 0x182   : > { %897 = vst.msk [vmem:[#allocation2 + $0x78] sm:$0xff] %vm881_vm6, %v852_v25 }
 0x183   : > { %1552 = vst.msk [vmem:[#allocation3] sm:$0x1] %vm1551_vm12, %v6711_v55  ;;  %1553 = vst.msk [vmem:[#allocation3 + $0x18] sm:$0x1] %vm1551_vm12, %v6711_v55 }
 0x184   : > { %v612_v27 = vpop.permute.xlu1 %611  ;;  %1554 = vst.msk [vmem:[#allocation3 + $0x30] sm:$0x1] %vm1551_vm12, %v6711_v55  ;;  %1555 = vst.msk [vmem:[#allocation3 + $0x48] sm:$0x1] %vm1551_vm12, %v6711_v55 }
 0x185   : > { %v490_v28 = vpop.permute.xlu0 %489  ;;  %656 = vst.msk [vmem:[#allocation2 + $0x80] sm:$0xff] %vm639_vm4, %v612_v27 }
 0x186   : > { %533 = vst.msk [vmem:[#allocation2 + $0x88] sm:$0xff] %vm515_vm3, %v490_v28 }
 0x187   : > { %1556 = vst.msk [vmem:[#allocation3 + $0x60] sm:$0x1] %vm1551_vm12, %v6711_v55  ;;  %1557 = vst.msk [vmem:[#allocation3 + $0x78] sm:$0x1] %vm1551_vm12, %v6711_v55 }
 0x188   : > { %v1095_v29 = vpop.permute.xlu1 %1094  ;;  %1558 = vst.msk [vmem:[#allocation3 + $0x90] sm:$0x1] %vm1551_vm12, %v6711_v55  ;;  %1559 = vst.msk [vmem:[#allocation3 + $0xa8] sm:$0x1] %vm1551_vm12, %v6711_v55 }
 0x189   : > { %v976_v30 = vpop.permute.xlu0 %975  ;;  %1141 = vst.msk [vmem:[#allocation2 + $0x70] sm:$0xff] %vm1126_vm8, %v1095_v29 }
 0x18a   : > { %1021 = vst.msk [vmem:[#allocation2 + $0x78] sm:$0xff] %vm1005_vm7, %v976_v30 }
 0x18b   : > { %1560 = vst.msk [vmem:[#allocation3 + $0xc0] sm:$0x1] %vm1551_vm12, %v6711_v55  ;;  %1561 = vst.msk [vmem:[#allocation3 + $0xd8] sm:$0x1] %vm1551_vm12, %v6711_v55 }
 0x18c   : > { %v733_v31 = vpop.permute.xlu1 %732  ;;  %1562 = vst.msk [vmem:[#allocation3 + $0x11] sm:$0x1] %vm1551_vm12, %v6711_v55  ;;  %1563 = vst.msk [vmem:[#allocation3 + $0x29] sm:$0x1] %vm1551_vm12, %v6711_v55 }
 0x18d   : > { %v614_v32 = vpop.permute.xlu0 %613  ;;  %777 = vst.msk [vmem:[#allocation2 + $0x80] sm:$0xff] %vm760_vm5, %v733_v31 }
 0x18e   : > { %657 = vst.msk [vmem:[#allocation2 + $0x88] sm:$0xff] %vm639_vm4, %v614_v32 }
 0x18f   : > { %1564 = vst.msk [vmem:[#allocation3 + $0x41] sm:$0x1] %vm1551_vm12, %v6711_v55  ;;  %1565 = vst.msk [vmem:[#allocation3 + $0x59] sm:$0x1] %vm1551_vm12, %v6711_v55 }
 0x190   : > { %v1216_v34 = vpop.permute.xlu1 %1215  ;;  %1566 = vst.msk [vmem:[#allocation3 + $0x71] sm:$0x1] %vm1551_vm12, %v6711_v55  ;;  %1567 = vst.msk [vmem:[#allocation3 + $0x89] sm:$0x1] %vm1551_vm12, %v6711_v55 }
 0x191   : > { %v1097_v36 = vpop.permute.xlu0 %1096  ;;  %1262 = vst.msk [vmem:[#allocation2 + $0x70] sm:$0xff] %vm1247_vm9, %v1216_v34 }
 0x192   : > { %1142 = vst.msk [vmem:[#allocation2 + $0x78] sm:$0xff] %vm1126_vm8, %v1097_v36 }
 0x193   : > { %1568 = vst.msk [vmem:[#allocation3 + $0xa1] sm:$0x1] %vm1551_vm12, %v6711_v55  ;;  %1569 = vst.msk [vmem:[#allocation3 + $0xb9] sm:$0x1] %vm1551_vm12, %v6711_v55 }
 0x194   : > { %v735_v38 = vpop.permute.xlu1 %734  ;;  %v6398_v40 = vpop.f32.mrb[0].mxu0  ;;  %1570 = vst.msk [vmem:[#allocation3 + $0xd1] sm:$0x1] %vm1551_vm12, %v6711_v55  ;;  %1571 = vst.msk [vmem:[#allocation3 + $0xe9] sm:$0x1] %vm1551_vm12, %v6711_v55 }
 0x195   : > { %v371_v33 = vpop.permute.xlu0 %370  ;;  %778 = vst.msk [vmem:[#allocation2 + $0x88] sm:$0xff] %vm760_vm5, %v735_v38  ;;  %v1437_v42 = vadd.f32 %v6398_v40, %v7281_v37  ;;  %v1431_v43 = vpop.f32.mrb[1].mxu0 }
 0x196   : > { %413 = vst.msk [vmem:[#allocation2 + $0x90] sm:$0xff] %vm394_vm2, %v371_v33  ;;  %v1432_v44 = vadd.f32 %v7281_v37, %v1431_v43 }
 0x197   : > { %1532 = vst.msk [vmem:[#allocation3 + $0x9] sm:$0xff] %vm1530_vm11, %v1437_v42 }
 0x198   : > { %v1218_v45 = vpop.permute.xlu1 %1217  ;;  %v1282_v35 = vld [vmem:[#allocation2 + $0x70] sm:$0xff]  ;;  %1531 = vst.msk [vmem:[#allocation3 + $0x1] sm:$0xff] %vm1530_vm11, %v1432_v44 }
 0x199   : > { %v854_v46 = vpop.permute.xlu0 %853  ;;  %1263 = vst.msk [vmem:[#allocation2 + $0x78] sm:$0xff] %vm1247_vm9, %v1218_v45  ;;  %6417 = vmatprep.mubr.msk.f32.mxu0 %vm1300_vm10, %v1282_v35 }
 0x19a   : > { %898 = vst.msk [vmem:[#allocation2 + $0x80] sm:$0xff] %vm881_vm6, %v854_v46 }
 0x19c   : > { %v492_v48 = vpop.permute.xlu1 %491 }
 0x19d   : > { %v373_v47 = vpop.permute.xlu0 %372  ;;  %534 = vst.msk [vmem:[#allocation2 + $0x90] sm:$0xff] %vm515_vm3, %v492_v48  ;;  %v6712_v48 = vmov (!%p6201_p7), 0.0  }
 0x19e   : > { %414 = vst.msk [vmem:[#allocation2 + $0x98] sm:$0xff] %vm394_vm2, %v373_v47 }
 0x19f   : > { %1576 = vst.msk [vmem:[#allocation3] sm:$0xff] (!%p6201_p7), %vm1530_vm11, %v6712_v48  ;;  %1577 = vst.msk [vmem:[#allocation3 + $0x8] sm:$0xff] (!%p6201_p7), %vm1530_vm11, %v6712_v48 }
 0x1a0   : > { %v978_v51 = vpop.permute.xlu1 %977  ;;  %v1283_v52 = vld [vmem:[#allocation2 + $0x78] sm:$0xff]  ;;  %1579 = vst.msk [vmem:[#allocation3 + $0x10] sm:$0x3] (!%p6201_p7), %vm1578_vm13, %v6712_v48 }
 0x1a1   : > { %v856_v50 = vpop.permute.xlu0 %855  ;;  %1022 = vst.msk [vmem:[#allocation2 + $0x80] sm:$0xff] %vm1005_vm7, %v978_v51  ;;  %6418 = vmatmul.mubr.msk.f32.gmra.mrb[14].mxu0 %vm1300_vm10, %v1283_v52 }
 0x1a2   : > { %899 = vst.msk [vmem:[#allocation2 + $0x88] sm:$0xff] %vm881_vm6, %v856_v50 }
 0x1a4   : > { %v616_v54 = vpop.permute.xlu1 %615 }
 0x1a5   : > { %v494_v53 = vpop.permute.xlu0 %493  ;;  %658 = vst.msk [vmem:[#allocation2 + $0x90] sm:$0xff] %vm639_vm4, %v616_v54 }
 0x1a6   : > { %535 = vst.msk [vmem:[#allocation2 + $0x98] sm:$0xff] %vm515_vm3, %v494_v53 }
 0x1a8   : > { %v1099_v57 = vpop.permute.xlu1 %1098 }
 0x1a9   : > { %v980_v56 = vpop.permute.xlu0 %979  ;;  %1143 = vst.msk [vmem:[#allocation2 + $0x80] sm:$0xff] %vm1126_vm8, %v1099_v57 }
 0x1aa   : > { %1023 = vst.msk [vmem:[#allocation2 + $0x88] sm:$0xff] %vm1005_vm7, %v980_v56 }
 0x1ac   : > { %v737_v59 = vpop.permute.xlu1 %736 }
 0x1ad   : > { %v618_v58 = vpop.permute.xlu0 %617  ;;  %779 = vst.msk [vmem:[#allocation2 + $0x90] sm:$0xff] %vm760_vm5, %v737_v59 }
 0x1ae   : > { %659 = vst.msk [vmem:[#allocation2 + $0x98] sm:$0xff] %vm639_vm4, %v618_v58 }
 0x1b0   : > { %v1220_v61 = vpop.permute.xlu1 %1219 }
 0x1b1   : > { %v1101_v60 = vpop.permute.xlu0 %1100  ;;  %1264 = vst.msk [vmem:[#allocation2 + $0x80] sm:$0xff] %vm1247_vm9, %v1220_v61 }
 0x1b2   : > { %1144 = vst.msk [vmem:[#allocation2 + $0x88] sm:$0xff] %vm1126_vm8, %v1101_v60 }
 0x1b4   : > { %v6401_v39 = vpop.f32.mrb[2].mxu0  ;;  %v858_v0 = vpop.permute.xlu1 %857 }
 0x1b5   : > { %v739_v62 = vpop.permute.xlu0 %738  ;;  %v1447_v63 = vadd.f32 %v6401_v39, %v7281_v37  ;;  %v1441_v1 = vpop.f32.mrb[3].mxu0  ;;  %900 = vst.msk [vmem:[#allocation2 + $0x90] sm:$0xff] %vm881_vm6, %v858_v0 }
 0x1b6   : > { %780 = vst.msk [vmem:[#allocation2 + $0x98] sm:$0xff] %vm760_vm5, %v739_v62  ;;  %v1442_v2 = vadd.f32 %v7281_v37, %v1441_v1 }
 0x1b7   : > { %1534 = vst.msk [vmem:[#allocation3 + $0x21] sm:$0xff] %vm1530_vm11, %v1447_v63 }
 0x1b8   : > { %1533 = vst.msk [vmem:[#allocation3 + $0x19] sm:$0xff] %vm1530_vm11, %v1442_v2  ;;  %v1284_v4 = vld [vmem:[#allocation2 + $0x80] sm:$0xff]  ;;  %v860_v41 = vpop.permute.xlu1 %859 }
 0x1b9   : > { %v1222_v3 = vpop.permute.xlu0 %1221  ;;  %6420 = vmatprep.mubr.msk.f32.mxu0 %vm1300_vm10, %v1284_v4  ;;  %901 = vst.msk [vmem:[#allocation2 + $0x98] sm:$0xff] %vm881_vm6, %v860_v41 }
 0x1ba   : > { %1265 = vst.msk [vmem:[#allocation2 + $0x88] sm:$0xff] %vm1247_vm9, %v1222_v3 }
 0x1bc   : > { %v984_v6 = vpop.permute.xlu1 %983 }
 0x1bd   : > { %v982_v5 = vpop.permute.xlu0 %981  ;;  %1025 = vst.msk [vmem:[#allocation2 + $0x98] sm:$0xff] %vm1005_vm7, %v984_v6 }
 0x1be   : > { %1024 = vst.msk [vmem:[#allocation2 + $0x90] sm:$0xff] %vm1005_vm7, %v982_v5 }
 0x1c0   : > { %v1105_v9 = vpop.permute.xlu1 %1104 }
 0x1c1   : > { %v1103_v7 = vpop.permute.xlu0 %1102  ;;  %v1285_v8 = vld [vmem:[#allocation2 + $0x88] sm:$0xff]  ;;  %1146 = vst.msk [vmem:[#allocation2 + $0x98] sm:$0xff] %vm1126_vm8, %v1105_v9 }
 0x1c2   : > { %1145 = vst.msk [vmem:[#allocation2 + $0x90] sm:$0xff] %vm1126_vm8, %v1103_v7  ;;  %6421 = vmatmul.mubr.msk.f32.gmra.mrb[16].mxu0 %vm1300_vm10, %v1285_v8 }
 0x1c4   : > { %v1226_v11 = vpop.permute.xlu1 %1225 }
 0x1c5   : > { %v1224_v10 = vpop.permute.xlu0 %1223  ;;  %1267 = vst.msk [vmem:[#allocation2 + $0x98] sm:$0xff] %vm1247_vm9, %v1226_v11 }
 0x1c6   : > { %1266 = vst.msk [vmem:[#allocation2 + $0x90] sm:$0xff] %vm1247_vm9, %v1224_v10 }
 0x1cc   : > { %v1287_v13 = vld [vmem:[#allocation2 + $0x98] sm:$0xff] }
 0x1cd   : > { %v1286_v12 = vld [vmem:[#allocation2 + $0x90] sm:$0xff] }
 0x1ce   : > { %6423 = vmatprep.mubr.msk.f32.mxu0 %vm1300_vm10, %v1286_v12 }
 0x1cf   : > { %6424 = vmatmul.mubr.msk.f32.gmra.mrb[18].mxu0 %vm1300_vm10, %v1287_v13 }
 0x1d4   : > { %v6404_v14 = vpop.f32.mrb[4].mxu0 }
 0x1d5   : > { %v1457_v15 = vadd.f32 %v6404_v14, %v7281_v37  ;;  %v1451_v16 = vpop.f32.mrb[5].mxu0 }
 0x1d6   : > { %v1452_v17 = vadd.f32 %v7281_v37, %v1451_v16 }
 0x1d7   : > { %1536 = vst.msk [vmem:[#allocation3 + $0x39] sm:$0xff] %vm1530_vm11, %v1457_v15 }
 0x1d8   : > { %1535 = vst.msk [vmem:[#allocation3 + $0x31] sm:$0xff] %vm1530_vm11, %v1452_v17 }
 0x1f4   : > { %v6407_v18 = vpop.f32.mrb[6].mxu0 }
 0x1f5   : > { %v1467_v49 = vadd.f32 %v6407_v18, %v7281_v37  ;;  %v1461_v19 = vpop.f32.mrb[7].mxu0 }
 0x1f6   : > { %v1462_v20 = vadd.f32 %v7281_v37, %v1461_v19 }
 0x1f7   : > { %1538 = vst.msk [vmem:[#allocation3 + $0x51] sm:$0xff] %vm1530_vm11, %v1467_v49 }
 0x1f8   : > { %1537 = vst.msk [vmem:[#allocation3 + $0x49] sm:$0xff] %vm1530_vm11, %v1462_v20 }
 0x214   : > { %v6410_v21 = vpop.f32.mrb[8].mxu0 }
 0x215   : > { %v1477_v22 = vadd.f32 %v6410_v21, %v7281_v37  ;;  %v1471_v23 = vpop.f32.mrb[9].mxu0 }
 0x216   : > { %v1472_v24 = vadd.f32 %v7281_v37, %v1471_v23 }
 0x217   : > { %1540 = vst.msk [vmem:[#allocation3 + $0x69] sm:$0xff] %vm1530_vm11, %v1477_v22 }
 0x218   : > { %1539 = vst.msk [vmem:[#allocation3 + $0x61] sm:$0xff] %vm1530_vm11, %v1472_v24 }
 0x234   : > { %v6413_v25 = vpop.f32.mrb[10].mxu0 }
 0x235   : > { %v1487_v26 = vadd.f32 %v6413_v25, %v7281_v37  ;;  %v1481_v27 = vpop.f32.mrb[11].mxu0 }
 0x236   : > { %v1482_v28 = vadd.f32 %v7281_v37, %v1481_v27 }
 0x237   : > { %1542 = vst.msk [vmem:[#allocation3 + $0x81] sm:$0xff] %vm1530_vm11, %v1487_v26 }
 0x238   : > { %1541 = vst.msk [vmem:[#allocation3 + $0x79] sm:$0xff] %vm1530_vm11, %v1482_v28 }
 0x254   : > { %v6416_v29 = vpop.f32.mrb[12].mxu0 }
 0x255   : > { %v1497_v30 = vadd.f32 %v6416_v29, %v7281_v37  ;;  %v1491_v31 = vpop.f32.mrb[13].mxu0 }
 0x256   : > { %v1492_v32 = vadd.f32 %v7281_v37, %v1491_v31 }
 0x257   : > { %1544 = vst.msk [vmem:[#allocation3 + $0x99] sm:$0xff] %vm1530_vm11, %v1497_v30 }
 0x258   : > { %1543 = vst.msk [vmem:[#allocation3 + $0x91] sm:$0xff] %vm1530_vm11, %v1492_v32 }
 0x274   : > { %v6419_v34 = vpop.f32.mrb[14].mxu0 }
 0x275   : > { %v1507_v36 = vadd.f32 %v6419_v34, %v7281_v37  ;;  %v1501_v38 = vpop.f32.mrb[15].mxu0 }
 0x276   : > { %v1502_v33 = vadd.f32 %v7281_v37, %v1501_v38 }
 0x277   : > { %1546 = vst.msk [vmem:[#allocation3 + $0xb1] sm:$0xff] %vm1530_vm11, %v1507_v36 }
 0x278   : > { %1545 = vst.msk [vmem:[#allocation3 + $0xa9] sm:$0xff] %vm1530_vm11, %v1502_v33 }
 0x295   : > { %v6422_v40 = vpop.f32.mrb[16].mxu0 }
 0x296   : > { %v1517_v42 = vadd.f32 %v6422_v40, %v7281_v37  ;;  %v1511_v43 = vpop.f32.mrb[17].mxu0 }
 0x297   : > { %v1512_v44 = vadd.f32 %v7281_v37, %v1511_v43 }
 0x298   : > { %1548 = vst.msk [vmem:[#allocation3 + $0xc9] sm:$0xff] %vm1530_vm11, %v1517_v42 }
 0x299   : > { %1547 = vst.msk [vmem:[#allocation3 + $0xc1] sm:$0xff] %vm1530_vm11, %v1512_v44 }
 0x2a0   : > { %1575 = sbr.rel (%p6201_p7) target bundleno = 679 (0x2a7), region = 44 }
 0x2a2   : > { %v6425_v45 = vpop.f32.mrb[18].mxu0 }
 0x2a3   : > { %v1527_v46 = vadd.f32 %v6425_v45, %v7281_v37  ;;  %v1521_v35 = vpop.f32.mrb[19].mxu0 }
 0x2a4   : > { %v1522_v47 = vadd.f32 %v7281_v37, %v1521_v35 }
 0x2a5   : > { %1550 = vst.msk [vmem:[#allocation3 + $0xe1] sm:$0xff] %vm1530_vm11, %v1527_v46 }
 0x2a6   : > { %1549 = vst.msk [vmem:[#allocation3 + $0xd9] sm:$0xff] %vm1530_vm11, %v1522_v47 }
 0x2a7 PF: > { %p6202_p8 = scmp.ne.s32.totalorder %s6685_s18, 1 }
 0x2a8   : > { %vm1587_vm14 = vcmask (!%p6202_p8), 123904   ;;  %v6713_v37 = vmov (!%p6202_p8), 0.0  }
 0x2a9   : > { %1583 = sbr.rel (%p6202_p8) target bundleno = 688 (0x2b0), region = 48  ;;  %1585 = vst.msk [vmem:[#allocation3 + $0xd8] sm:$0xff] (!%p6202_p8), %vm1530_vm11, %v6713_v37  ;;  %1586 = vst.msk [vmem:[#allocation3 + $0xe0] sm:$0xff] (!%p6202_p8), %vm1530_vm11, %v6713_v37 }
 0x2aa   : > { %1588 = vst.msk [vmem:[#allocation3 + $0xe8] sm:$0x3] (!%p6202_p8), %vm1587_vm14, %v6713_v37 }
 0x2b0 PF: > { %v1589_v50 = vld [vmem:[#allocation3] sm:$0xff]  ;;  %v7381_v51 = vld [vmem:[#allocation3 + $0x18] sm:$0xff]  ;;  %s6714_s28 = smov 116   ;;  %v1590_v52 = vld [vmem:[#allocation3 + $0x8] sm:$0xff]  ;;  %s6715_s18 = smov 124  }
 0x2b1   : > { %1621 = vrot.lane.b32.xlu0 %v1589_v50, %s6714_s28  ;;  %1625 = vrot.lane.b32.xlu1 %v7381_v51, %s6714_s28  ;;  %v7384_v53 = vld [vmem:[#allocation3 + $0x20] sm:$0xff]  ;;  %v7387_v54 = vld [vmem:[#allocation3 + $0x30] sm:$0xff]  ;;  %v7389_v56 = vld [vmem:[#allocation3 + $0x38] sm:$0xff]  ;;  %s6716_s29 = smov 120  }
 0x2b2   : > { %v7393_v57 = vld [vmem:[#allocation3 + $0x48] sm:$0xff]  ;;  %v7395_v58 = vld [vmem:[#allocation3 + $0x50] sm:$0xff]  ;;  %v7399_v59 = vld [vmem:[#allocation3 + $0x60] sm:$0xff] }
 0x2b3   : > { %v7401_v60 = vld [vmem:[#allocation3 + $0x68] sm:$0xff]  ;;  %v7405_v61 = vld [vmem:[#allocation3 + $0x78] sm:$0xff]  ;;  %v7407_v62 = vld [vmem:[#allocation3 + $0x80] sm:$0xff] }
 0x2b4   : > { %v7411_v39 = vld [vmem:[#allocation3 + $0x90] sm:$0xff]  ;;  %v7413_v63 = vld [vmem:[#allocation3 + $0x98] sm:$0xff]  ;;  %v7417_v0 = vld [vmem:[#allocation3 + $0xa8] sm:$0xff] }
 0x2b5   : > { %1623 = vrot.lane.b32.xlu0 %v1590_v52, %s6714_s28  ;;  %1627 = vrot.lane.b32.xlu1 %v7384_v53, %s6714_s28  ;;  %v7419_v1 = vld [vmem:[#allocation3 + $0xb0] sm:$0xff]  ;;  %v7423_v2 = vld [vmem:[#allocation3 + $0x1] sm:$0xff]  ;;  %v7431_v4 = vld [vmem:[#allocation3 + $0x19] sm:$0xff] }
 0x2b6   : > { %v7425_v3 = vld [vmem:[#allocation3 + $0x9] sm:$0xff]  ;;  %v7433_v41 = vld [vmem:[#allocation3 + $0x21] sm:$0xff]  ;;  %v7439_v5 = vld [vmem:[#allocation3 + $0x31] sm:$0xff] }
 0x2b7   : > { %v7441_v6 = vld [vmem:[#allocation3 + $0x39] sm:$0xff]  ;;  %v7447_v7 = vld [vmem:[#allocation3 + $0x49] sm:$0xff]  ;;  %v7449_v8 = vld [vmem:[#allocation3 + $0x51] sm:$0xff] }
 0x2b8   : > { %v7455_v9 = vld [vmem:[#allocation3 + $0x61] sm:$0xff]  ;;  %v7457_v10 = vld [vmem:[#allocation3 + $0x69] sm:$0xff]  ;;  %v7463_v11 = vld [vmem:[#allocation3 + $0x79] sm:$0xff] }
 0x2b9   : > { %1629 = vrot.lane.b32.xlu0 %v7387_v54, %s6714_s28  ;;  %1631 = vrot.lane.b32.xlu1 %v7389_v56, %s6714_s28  ;;  %v7465_v12 = vld [vmem:[#allocation3 + $0x81] sm:$0xff]  ;;  %v7471_v13 = vld [vmem:[#allocation3 + $0x91] sm:$0xff]  ;;  %v7473_v14 = vld [vmem:[#allocation3 + $0x99] sm:$0xff] }
 0x2ba   : > { %v7479_v15 = vld [vmem:[#allocation3 + $0xa9] sm:$0xff]  ;;  %v7481_v16 = vld [vmem:[#allocation3 + $0xb1] sm:$0xff]  ;;  %v7551_v20 = vld [vmem:[#allocation3 + $0xc0] sm:$0xff] }
 0x2bb   : > { %v7553_v21 = vld [vmem:[#allocation3 + $0xc8] sm:$0xff] }
 0x2bc   : > { %v7603_v40 = vld [vmem:[#allocation3 + $0xc1] sm:$0xff]  ;;  %v7605_v42 = vld [vmem:[#allocation3 + $0xc9] sm:$0xff] }
 0x2bd   : > { %1633 = vrot.lane.b32.xlu0 %v7393_v57, %s6714_s28  ;;  %1635 = vrot.lane.b32.xlu1 %v7395_v58, %s6714_s28 }
 0x2c1   : > { %1637 = vrot.lane.b32.xlu0 %v7399_v59, %s6714_s28  ;;  %1639 = vrot.lane.b32.xlu1 %v7401_v60, %s6714_s28 }
 0x2c5   : > { %1641 = vrot.lane.b32.xlu0 %v7405_v61, %s6714_s28  ;;  %1643 = vrot.lane.b32.xlu1 %v7407_v62, %s6714_s28 }
 0x2c9   : > { %1645 = vrot.lane.b32.xlu0 %v7411_v39, %s6714_s28  ;;  %1647 = vrot.lane.b32.xlu1 %v7413_v63, %s6714_s28 }
 0x2cd   : > { %1649 = vrot.lane.b32.xlu0 %v7417_v0, %s6714_s28  ;;  %1651 = vrot.lane.b32.xlu1 %v7419_v1, %s6714_s28 }
 0x2d1   : > { %1717 = vrot.lane.b32.xlu0 %v7423_v2, %s6715_s18  ;;  %1719 = vrot.lane.b32.xlu1 %v7425_v3, %s6715_s18 }
 0x2d5   : > { %1721 = vrot.lane.b32.xlu0 %v7431_v4, %s6715_s18  ;;  %1723 = vrot.lane.b32.xlu1 %v7433_v41, %s6715_s18 }
 0x2d9   : > { %1725 = vrot.lane.b32.xlu0 %v7439_v5, %s6715_s18  ;;  %1727 = vrot.lane.b32.xlu1 %v7441_v6, %s6715_s18 }
 0x2dd   : > { %1729 = vrot.lane.b32.xlu0 %v7447_v7, %s6715_s18  ;;  %1731 = vrot.lane.b32.xlu1 %v7449_v8, %s6715_s18 }
 0x2e1   : > { %1733 = vrot.lane.b32.xlu0 %v7455_v9, %s6715_s18  ;;  %1735 = vrot.lane.b32.xlu1 %v7457_v10, %s6715_s18 }
 0x2e5   : > { %1737 = vrot.lane.b32.xlu0 %v7463_v11, %s6715_s18  ;;  %1739 = vrot.lane.b32.xlu1 %v7465_v12, %s6715_s18 }
 0x2e9   : > { %1741 = vrot.lane.b32.xlu0 %v7471_v13, %s6715_s18  ;;  %1743 = vrot.lane.b32.xlu1 %v7473_v14, %s6715_s18 }
 0x2ed   : > { %1745 = vrot.lane.b32.xlu0 %v7479_v15, %s6715_s18  ;;  %1747 = vrot.lane.b32.xlu1 %v7481_v16, %s6715_s18 }
 0x2f1   : > { %1813 = vrot.lane.b32.xlu0 %v7423_v2, %s6715_s18  ;;  %1815 = vrot.lane.b32.xlu1 %v7425_v3, %s6715_s18 }
 0x2f5   : > { %1817 = vrot.lane.b32.xlu0 %v7431_v4, %s6715_s18  ;;  %1819 = vrot.lane.b32.xlu1 %v7433_v41, %s6715_s18 }
 0x2f9   : > { %1821 = vrot.lane.b32.xlu0 %v7439_v5, %s6715_s18  ;;  %1823 = vrot.lane.b32.xlu1 %v7441_v6, %s6715_s18 }
 0x2fd   : > { %1825 = vrot.lane.b32.xlu0 %v7447_v7, %s6715_s18  ;;  %1827 = vrot.lane.b32.xlu1 %v7449_v8, %s6715_s18 }
 0x301   : > { %1829 = vrot.lane.b32.xlu0 %v7455_v9, %s6715_s18  ;;  %1831 = vrot.lane.b32.xlu1 %v7457_v10, %s6715_s18 }
 0x305   : > { %1833 = vrot.lane.b32.xlu0 %v7463_v11, %s6715_s18  ;;  %1835 = vrot.lane.b32.xlu1 %v7465_v12, %s6715_s18 }
 0x309   : > { %1837 = vrot.lane.b32.xlu0 %v7471_v13, %s6715_s18  ;;  %1839 = vrot.lane.b32.xlu1 %v7473_v14, %s6715_s18 }
 0x30d   : > { %1841 = vrot.lane.b32.xlu0 %v7479_v15, %s6715_s18  ;;  %1843 = vrot.lane.b32.xlu1 %v7481_v16, %s6715_s18 }
 0x311   : > { %1910 = vrot.lane.b32.xlu0 %v7381_v51, %s6703_s14  ;;  %1912 = vrot.lane.b32.xlu1 %v7384_v53, %s6703_s14 }
 0x315   : > { %1914 = vrot.lane.b32.xlu0 %v7387_v54, %s6703_s14  ;;  %1916 = vrot.lane.b32.xlu1 %v7389_v56, %s6703_s14 }
 0x319   : > { %1918 = vrot.lane.b32.xlu0 %v7393_v57, %s6703_s14  ;;  %1920 = vrot.lane.b32.xlu1 %v7395_v58, %s6703_s14 }
 0x31d   : > { %1922 = vrot.lane.b32.xlu0 %v7399_v59, %s6703_s14  ;;  %1924 = vrot.lane.b32.xlu1 %v7401_v60, %s6703_s14 }
 0x321   : > { %1926 = vrot.lane.b32.xlu0 %v7405_v61, %s6703_s14  ;;  %1928 = vrot.lane.b32.xlu1 %v7407_v62, %s6703_s14 }
 0x323   : > { %v1622_v17 = vpop.permute.xlu0 %1621  ;;  %v1626_v18 = vpop.permute.xlu1 %1625 }
 0x324   : > { %1669 = vst.msk [vmem:[#allocation2] sm:$0xff] %vm273_vm0, %v1622_v17  ;;  %1671 = vst.msk [vmem:[#allocation2 + $0x10] sm:$0xff] %vm273_vm0, %v1626_v18 }
 0x325   : > { %1930 = vrot.lane.b32.xlu0 %v7411_v39, %s6703_s14  ;;  %1932 = vrot.lane.b32.xlu1 %v7413_v63, %s6703_s14 }
 0x327   : > { %v1624_v49 = vpop.permute.xlu0 %1623  ;;  %v1628_v19 = vpop.permute.xlu1 %1627 }
 0x328   : > { %1670 = vst.msk [vmem:[#allocation2 + $0x8] sm:$0xff] %vm273_vm0, %v1624_v49  ;;  %1672 = vst.msk [vmem:[#allocation2 + $0x18] sm:$0xff] %vm273_vm0, %v1628_v19 }
 0x329   : > { %1934 = vrot.lane.b32.xlu0 %v7417_v0, %s6703_s14  ;;  %1936 = vrot.lane.b32.xlu1 %v7419_v1, %s6703_s14 }
 0x32b   : > { %v1630_v22 = vpop.permute.xlu0 %1629  ;;  %v1632_v23 = vpop.permute.xlu1 %1631 }
 0x32c   : > { %1673 = vst.msk [vmem:[#allocation2 + $0x20] sm:$0xff] %vm273_vm0, %v1630_v22  ;;  %1674 = vst.msk [vmem:[#allocation2 + $0x28] sm:$0xff] %vm273_vm0, %v1632_v23 }
 0x32d   : > { %1938 = vrot.lane.b32.xlu0 %v7551_v20, %s6703_s14  ;;  %1940 = vrot.lane.b32.xlu1 %v7553_v21, %s6703_s14 }
 0x32f   : > { %v1634_v24 = vpop.permute.xlu0 %1633  ;;  %v1636_v55 = vpop.permute.xlu1 %1635 }
 0x330   : > { %1675 = vst.msk [vmem:[#allocation2 + $0x30] sm:$0xff] %vm273_vm0, %v1634_v24  ;;  %1676 = vst.msk [vmem:[#allocation2 + $0x38] sm:$0xff] %vm273_vm0, %v1636_v55 }
 0x331   : > { %2006 = vrot.lane.b32.xlu0 %v7431_v4, %s6706_s17  ;;  %2008 = vrot.lane.b32.xlu1 %v7433_v41, %s6706_s17 }
 0x333   : > { %v1638_v25 = vpop.permute.xlu0 %1637  ;;  %v1640_v26 = vpop.permute.xlu1 %1639 }
 0x334   : > { %1677 = vst.msk [vmem:[#allocation2 + $0x40] sm:$0xff] %vm273_vm0, %v1638_v25  ;;  %1678 = vst.msk [vmem:[#allocation2 + $0x48] sm:$0xff] %vm273_vm0, %v1640_v26 }
 0x335   : > { %2010 = vrot.lane.b32.xlu0 %v7439_v5, %s6706_s17  ;;  %2012 = vrot.lane.b32.xlu1 %v7441_v6, %s6706_s17 }
 0x337   : > { %v1642_v27 = vpop.permute.xlu0 %1641  ;;  %v1644_v28 = vpop.permute.xlu1 %1643 }
 0x338   : > { %1679 = vst.msk [vmem:[#allocation2 + $0x50] sm:$0xff] %vm273_vm0, %v1642_v27  ;;  %1680 = vst.msk [vmem:[#allocation2 + $0x58] sm:$0xff] %vm273_vm0, %v1644_v28 }
 0x339   : > { %2014 = vrot.lane.b32.xlu0 %v7447_v7, %s6706_s17  ;;  %2016 = vrot.lane.b32.xlu1 %v7449_v8, %s6706_s17 }
 0x33b   : > { %v1646_v29 = vpop.permute.xlu0 %1645  ;;  %v1648_v30 = vpop.permute.xlu1 %1647 }
 0x33c   : > { %1681 = vst.msk [vmem:[#allocation2 + $0x60] sm:$0xff] %vm273_vm0, %v1646_v29  ;;  %1682 = vst.msk [vmem:[#allocation2 + $0x68] sm:$0xff] %vm273_vm0, %v1648_v30 }
 0x33d   : > { %2018 = vrot.lane.b32.xlu0 %v7455_v9, %s6706_s17  ;;  %2020 = vrot.lane.b32.xlu1 %v7457_v10, %s6706_s17 }
 0x33f   : > { %v1650_v31 = vpop.permute.xlu0 %1649  ;;  %v1652_v32 = vpop.permute.xlu1 %1651 }
 0x340   : > { %1683 = vst.msk [vmem:[#allocation2 + $0x70] sm:$0xff] %vm273_vm0, %v1650_v31  ;;  %1684 = vst.msk [vmem:[#allocation2 + $0x78] sm:$0xff] %vm273_vm0, %v1652_v32 }
 0x341   : > { %2022 = vrot.lane.b32.xlu0 %v7463_v11, %s6706_s17  ;;  %2024 = vrot.lane.b32.xlu1 %v7465_v12, %s6706_s17 }
 0x343   : > { %v1718_v34 = vpop.permute.xlu0 %1717  ;;  %v1720_v36 = vpop.permute.xlu1 %1719 }
 0x344   : > { %1765 = vst.msk [vmem:[#allocation2] sm:$0xff] %vm394_vm2, %v1718_v34  ;;  %1766 = vst.msk [vmem:[#allocation2 + $0x8] sm:$0xff] %vm394_vm2, %v1720_v36 }
 0x345   : > { %2026 = vrot.lane.b32.xlu0 %v7471_v13, %s6706_s17  ;;  %2028 = vrot.lane.b32.xlu1 %v7473_v14, %s6706_s17 }
 0x347   : > { %v1722_v38 = vpop.permute.xlu0 %1721  ;;  %v1724_v33 = vpop.permute.xlu1 %1723 }
 0x348   : > { %1767 = vst.msk [vmem:[#allocation2 + $0x10] sm:$0xff] %vm394_vm2, %v1722_v38  ;;  %1768 = vst.msk [vmem:[#allocation2 + $0x18] sm:$0xff] %vm394_vm2, %v1724_v33  ;;  %v2470_v38 = vld [vmem:[%s9562_s3] sm:$0xff]  ;;  %v2471_v33 = vld [vmem:[%s9562_s3 + $0x8] sm:$0xff] }
 0x349   : > { %2030 = vrot.lane.b32.xlu0 %v7479_v15, %s6706_s17  ;;  %2032 = vrot.lane.b32.xlu1 %v7481_v16, %s6706_s17 }
 0x34b   : > { %v1726_v43 = vpop.permute.xlu0 %1725  ;;  %v1728_v44 = vpop.permute.xlu1 %1727 }
 0x34c   : > { %1769 = vst.msk [vmem:[#allocation2 + $0x20] sm:$0xff] %vm394_vm2, %v1726_v43  ;;  %1770 = vst.msk [vmem:[#allocation2 + $0x28] sm:$0xff] %vm394_vm2, %v1728_v44  ;;  %v6570_v43 = vpack.c.bf16 %v2471_v33, %v2470_v38  ;;  %v7918_v38 = vld [vmem:[#allocation3 + $0x99] sm:$0xff] }
 0x34d   : > { %2034 = vrot.lane.b32.xlu0 %v7603_v40, %s6706_s17  ;;  %2036 = vrot.lane.b32.xlu1 %v7605_v42, %s6706_s17 }
 0x34e   : > { %6571 = vmatprep.subr.bf16.mxu0 %v6570_v43  ;;  %6602 = vmatprep.subr.bf16.mxu1 %v6570_v43 }
 0x34f   : > { %v1730_v45 = vpop.permute.xlu0 %1729  ;;  %v1732_v46 = vpop.permute.xlu1 %1731  ;;  %6573 = vmatpush3.bf16.msra.mxu0 %v6570_v43  ;;  %6605 = vmatpush3.bf16.msra.mxu1 %v6570_v43 }
 0x350   : > { %1771 = vst.msk [vmem:[#allocation2 + $0x30] sm:$0xff] %vm394_vm2, %v1730_v45  ;;  %1772 = vst.msk [vmem:[#allocation2 + $0x38] sm:$0xff] %vm394_vm2, %v1732_v46  ;;  %v2472_v46 = vld [vmem:[%s9562_s3 + $0x10] sm:$0xff] }
 0x351   : > { %2102 = vrot.lane.b32.xlu0 %v7431_v4, %s6706_s17  ;;  %2104 = vrot.lane.b32.xlu1 %v7433_v41, %s6706_s17 }
 0x353   : > { %v1734_v35 = vpop.permute.xlu0 %1733  ;;  %v1736_v47 = vpop.permute.xlu1 %1735 }
 0x354   : > { %1773 = vst.msk [vmem:[#allocation2 + $0x40] sm:$0xff] %vm394_vm2, %v1734_v35  ;;  %1774 = vst.msk [vmem:[#allocation2 + $0x48] sm:$0xff] %vm394_vm2, %v1736_v47  ;;  %v2473_v35 = vld [vmem:[%s9562_s3 + $0x18] sm:$0xff] }
 0x355   : > { %2106 = vrot.lane.b32.xlu0 %v7439_v5, %s6706_s17  ;;  %2108 = vrot.lane.b32.xlu1 %v7441_v6, %s6706_s17  ;;  %v6574_v47 = vpack.c.bf16 %v2473_v35, %v2472_v46 }
 0x357   : > { %v1738_v48 = vpop.permute.xlu0 %1737  ;;  %v1740_v37 = vpop.permute.xlu1 %1739  ;;  %6575 = vmatprep.subr.bf16.mxu0 %v6574_v47  ;;  %6603 = vmatprep.subr.bf16.mxu1 %v6574_v47 }
 0x358   : > { %1775 = vst.msk [vmem:[#allocation2 + $0x50] sm:$0xff] %vm394_vm2, %v1738_v48  ;;  %1776 = vst.msk [vmem:[#allocation2 + $0x58] sm:$0xff] %vm394_vm2, %v1740_v37  ;;  %6577 = vmatpush3.bf16.msra.mxu0 %v6574_v47  ;;  %6606 = vmatpush3.bf16.msra.mxu1 %v6574_v47  ;;  %v7936_v47 = vld [vmem:[#allocation3 + $0x19] sm:$0xff] }
 0x359   : > { %2110 = vrot.lane.b32.xlu0 %v7447_v7, %s6706_s17  ;;  %2112 = vrot.lane.b32.xlu1 %v7449_v8, %s6706_s17 }
 0x35b   : > { %v1742_v50 = vpop.permute.xlu0 %1741  ;;  %v1744_v52 = vpop.permute.xlu1 %1743 }
 0x35c   : > { %1777 = vst.msk [vmem:[#allocation2 + $0x60] sm:$0xff] %vm394_vm2, %v1742_v50  ;;  %1778 = vst.msk [vmem:[#allocation2 + $0x68] sm:$0xff] %vm394_vm2, %v1744_v52  ;;  %v2474_v50 = vld [vmem:[%s9562_s3 + $0x20] sm:$0xf] }
 0x35d   : > { %2114 = vrot.lane.b32.xlu0 %v7455_v9, %s6706_s17  ;;  %2116 = vrot.lane.b32.xlu1 %v7457_v10, %s6706_s17 }
 0x35e   : > { %6434 = vmatprep.subr.msk.mxu0 %vm1361_vm1, %v2474_v50  ;;  %6604 = vmatprep.subr.msk.mxu1 %vm1361_vm1, %v2474_v50 }
 0x35f   : > { %v1746_v17 = vpop.permute.xlu0 %1745  ;;  %v1748_v18 = vpop.permute.xlu1 %1747  ;;  %6435 = vmatpush3.msk.msra.mxu0 %vm1361_vm1, %v2474_v50  ;;  %6607 = vmatpush3.msk.msra.mxu1 %vm1361_vm1, %v2474_v50 }
 0x360   : > { %1779 = vst.msk [vmem:[#allocation2 + $0x70] sm:$0xff] %vm394_vm2, %v1746_v17  ;;  %1780 = vst.msk [vmem:[#allocation2 + $0x78] sm:$0xff] %vm394_vm2, %v1748_v18 }
 0x361   : > { %2118 = vrot.lane.b32.xlu0 %v7463_v11, %s6706_s17  ;;  %2120 = vrot.lane.b32.xlu1 %v7465_v12, %s6706_s17 }
 0x363   : > { %v1814_v49 = vpop.permute.xlu0 %1813  ;;  %v1816_v19 = vpop.permute.xlu1 %1815 }
 0x364   : > { %1861 = vst.msk [vmem:[#allocation2] sm:$0xff] %vm515_vm3, %v1814_v49  ;;  %1862 = vst.msk [vmem:[#allocation2 + $0x8] sm:$0xff] %vm515_vm3, %v1816_v19 }
 0x365   : > { %2122 = vrot.lane.b32.xlu0 %v7471_v13, %s6706_s17  ;;  %2124 = vrot.lane.b32.xlu1 %v7473_v14, %s6706_s17 }
 0x367   : > { %v1818_v22 = vpop.permute.xlu0 %1817  ;;  %v1820_v23 = vpop.permute.xlu1 %1819 }
 0x368   : > { %1863 = vst.msk [vmem:[#allocation2 + $0x10] sm:$0xff] %vm515_vm3, %v1818_v22  ;;  %1864 = vst.msk [vmem:[#allocation2 + $0x18] sm:$0xff] %vm515_vm3, %v1820_v23 }
 0x369   : > { %2126 = vrot.lane.b32.xlu0 %v7479_v15, %s6706_s17  ;;  %2128 = vrot.lane.b32.xlu1 %v7481_v16, %s6706_s17 }
 0x36b   : > { %v1822_v24 = vpop.permute.xlu0 %1821  ;;  %v1824_v55 = vpop.permute.xlu1 %1823 }
 0x36c   : > { %1865 = vst.msk [vmem:[#allocation2 + $0x20] sm:$0xff] %vm515_vm3, %v1822_v24  ;;  %1866 = vst.msk [vmem:[#allocation2 + $0x28] sm:$0xff] %vm515_vm3, %v1824_v55 }
 0x36d   : > { %2130 = vrot.lane.b32.xlu0 %v7603_v40, %s6706_s17  ;;  %2132 = vrot.lane.b32.xlu1 %v7605_v42, %s6706_s17 }
 0x36f   : > { %v1826_v25 = vpop.permute.xlu0 %1825  ;;  %v1828_v26 = vpop.permute.xlu1 %1827 }
 0x370   : > { %1867 = vst.msk [vmem:[#allocation2 + $0x30] sm:$0xff] %vm515_vm3, %v1826_v25  ;;  %1868 = vst.msk [vmem:[#allocation2 + $0x38] sm:$0xff] %vm515_vm3, %v1828_v26 }
 0x371   : > { %2198 = vrot.lane.b32.xlu0 %v7381_v51, %s6705_s16  ;;  %2200 = vrot.lane.b32.xlu1 %v7384_v53, %s6705_s16 }
 0x373   : > { %v1830_v27 = vpop.permute.xlu0 %1829  ;;  %v1832_v28 = vpop.permute.xlu1 %1831 }
 0x374   : > { %1869 = vst.msk [vmem:[#allocation2 + $0x40] sm:$0xff] %vm515_vm3, %v1830_v27  ;;  %1870 = vst.msk [vmem:[#allocation2 + $0x48] sm:$0xff] %vm515_vm3, %v1832_v28 }
 0x375   : > { %2202 = vrot.lane.b32.xlu0 %v7387_v54, %s6705_s16  ;;  %2204 = vrot.lane.b32.xlu1 %v7389_v56, %s6705_s16 }
 0x377   : > { %v1834_v29 = vpop.permute.xlu0 %1833  ;;  %v1836_v30 = vpop.permute.xlu1 %1835 }
 0x378   : > { %1871 = vst.msk [vmem:[#allocation2 + $0x50] sm:$0xff] %vm515_vm3, %v1834_v29  ;;  %1872 = vst.msk [vmem:[#allocation2 + $0x58] sm:$0xff] %vm515_vm3, %v1836_v30 }
 0x379   : > { %2206 = vrot.lane.b32.xlu0 %v7393_v57, %s6705_s16  ;;  %2208 = vrot.lane.b32.xlu1 %v7395_v58, %s6705_s16 }
 0x37b   : > { %v1838_v51 = vpop.permute.xlu0 %1837  ;;  %v1840_v53 = vpop.permute.xlu1 %1839 }
 0x37c   : > { %1873 = vst.msk [vmem:[#allocation2 + $0x60] sm:$0xff] %vm515_vm3, %v1838_v51  ;;  %1874 = vst.msk [vmem:[#allocation2 + $0x68] sm:$0xff] %vm515_vm3, %v1840_v53 }
 0x37d   : > { %2210 = vrot.lane.b32.xlu0 %v7399_v59, %s6705_s16  ;;  %2212 = vrot.lane.b32.xlu1 %v7401_v60, %s6705_s16 }
 0x37f   : > { %v1842_v54 = vpop.permute.xlu0 %1841  ;;  %v1844_v56 = vpop.permute.xlu1 %1843 }
 0x380   : > { %1875 = vst.msk [vmem:[#allocation2 + $0x70] sm:$0xff] %vm515_vm3, %v1842_v54  ;;  %1876 = vst.msk [vmem:[#allocation2 + $0x78] sm:$0xff] %vm515_vm3, %v1844_v56 }
 0x381   : > { %2214 = vrot.lane.b32.xlu0 %v7405_v61, %s6705_s16  ;;  %2216 = vrot.lane.b32.xlu1 %v7407_v62, %s6705_s16 }
 0x383   : > { %v1911_v57 = vpop.permute.xlu0 %1910  ;;  %v1913_v58 = vpop.permute.xlu1 %1912 }
 0x384   : > { %1958 = vst.msk [vmem:[#allocation2] sm:$0xff] %vm639_vm4, %v1911_v57  ;;  %1959 = vst.msk [vmem:[#allocation2 + $0x8] sm:$0xff] %vm639_vm4, %v1913_v58 }
 0x385   : > { %2218 = vrot.lane.b32.xlu0 %v7411_v39, %s6705_s16  ;;  %2220 = vrot.lane.b32.xlu1 %v7413_v63, %s6705_s16 }
 0x387   : > { %v1915_v59 = vpop.permute.xlu0 %1914  ;;  %v1917_v60 = vpop.permute.xlu1 %1916 }
 0x388   : > { %1960 = vst.msk [vmem:[#allocation2 + $0x10] sm:$0xff] %vm639_vm4, %v1915_v59  ;;  %1961 = vst.msk [vmem:[#allocation2 + $0x18] sm:$0xff] %vm639_vm4, %v1917_v60 }
 0x389   : > { %2222 = vrot.lane.b32.xlu0 %v7417_v0, %s6705_s16  ;;  %2224 = vrot.lane.b32.xlu1 %v7419_v1, %s6705_s16 }
 0x38b   : > { %v1919_v61 = vpop.permute.xlu0 %1918  ;;  %v1921_v62 = vpop.permute.xlu1 %1920 }
 0x38c   : > { %1962 = vst.msk [vmem:[#allocation2 + $0x20] sm:$0xff] %vm639_vm4, %v1919_v61  ;;  %1963 = vst.msk [vmem:[#allocation2 + $0x28] sm:$0xff] %vm639_vm4, %v1921_v62 }
 0x38d   : > { %2226 = vrot.lane.b32.xlu0 %v7551_v20, %s6705_s16  ;;  %2228 = vrot.lane.b32.xlu1 %v7553_v21, %s6705_s16 }
 0x38f   : > { %v1923_v39 = vpop.permute.xlu0 %1922  ;;  %v1925_v63 = vpop.permute.xlu1 %1924 }
 0x390   : > { %1964 = vst.msk [vmem:[#allocation2 + $0x30] sm:$0xff] %vm639_vm4, %v1923_v39  ;;  %1965 = vst.msk [vmem:[#allocation2 + $0x38] sm:$0xff] %vm639_vm4, %v1925_v63 }
 0x391   : > { %2294 = vrot.lane.b32.xlu0 %v7431_v4, %s6707_s19  ;;  %2296 = vrot.lane.b32.xlu1 %v7433_v41, %s6707_s19 }
 0x393   : > { %v1927_v0 = vpop.permute.xlu0 %1926  ;;  %v1929_v1 = vpop.permute.xlu1 %1928 }
 0x394   : > { %1966 = vst.msk [vmem:[#allocation2 + $0x40] sm:$0xff] %vm639_vm4, %v1927_v0  ;;  %1967 = vst.msk [vmem:[#allocation2 + $0x48] sm:$0xff] %vm639_vm4, %v1929_v1 }
 0x395   : > { %2298 = vrot.lane.b32.xlu0 %v7439_v5, %s6707_s19  ;;  %2300 = vrot.lane.b32.xlu1 %v7441_v6, %s6707_s19 }
 0x397   : > { %v1931_v20 = vpop.permute.xlu0 %1930  ;;  %v1933_v21 = vpop.permute.xlu1 %1932 }
 0x398   : > { %1968 = vst.msk [vmem:[#allocation2 + $0x50] sm:$0xff] %vm639_vm4, %v1931_v20  ;;  %1969 = vst.msk [vmem:[#allocation2 + $0x58] sm:$0xff] %vm639_vm4, %v1933_v21 }
 0x399   : > { %2302 = vrot.lane.b32.xlu0 %v7447_v7, %s6707_s19  ;;  %2304 = vrot.lane.b32.xlu1 %v7449_v8, %s6707_s19 }
 0x39b   : > { %v1935_v31 = vpop.permute.xlu0 %1934  ;;  %v1937_v32 = vpop.permute.xlu1 %1936 }
 0x39c   : > { %1970 = vst.msk [vmem:[#allocation2 + $0x60] sm:$0xff] %vm639_vm4, %v1935_v31  ;;  %1971 = vst.msk [vmem:[#allocation2 + $0x68] sm:$0xff] %vm639_vm4, %v1937_v32 }
 0x39d   : > { %2306 = vrot.lane.b32.xlu0 %v7455_v9, %s6707_s19  ;;  %2308 = vrot.lane.b32.xlu1 %v7457_v10, %s6707_s19 }
 0x39f   : > { %v1939_v34 = vpop.permute.xlu0 %1938  ;;  %v1941_v36 = vpop.permute.xlu1 %1940 }
 0x3a0   : > { %1972 = vst.msk [vmem:[#allocation2 + $0x70] sm:$0xff] %vm639_vm4, %v1939_v34  ;;  %1973 = vst.msk [vmem:[#allocation2 + $0x78] sm:$0xff] %vm639_vm4, %v1941_v36  ;;  %v7916_v36 = vld [vmem:[#allocation3 + $0x91] sm:$0xff] }
 0x3a1   : > { %2310 = vrot.lane.b32.xlu0 %v7463_v11, %s6707_s19  ;;  %2312 = vrot.lane.b32.xlu1 %v7465_v12, %s6707_s19 }
 0x3a3   : > { %v2007_v44 = vpop.permute.xlu0 %2006  ;;  %v2009_v45 = vpop.permute.xlu1 %2008 }
 0x3a4   : > { %2054 = vst.msk [vmem:[#allocation2] sm:$0xff] %vm760_vm5, %v2007_v44  ;;  %2055 = vst.msk [vmem:[#allocation2 + $0x8] sm:$0xff] %vm760_vm5, %v2009_v45  ;;  %v7926_v44 = vld [vmem:[#allocation3 + $0xa9] sm:$0xff]  ;;  %v7928_v45 = vld [vmem:[#allocation3 + $0xb1] sm:$0xff] }
 0x3a5   : > { %2314 = vrot.lane.b32.xlu0 %v7471_v13, %s6707_s19  ;;  %2316 = vrot.lane.b32.xlu1 %v7473_v14, %s6707_s19 }
 0x3a7   : > { %v2011_v48 = vpop.permute.xlu0 %2010  ;;  %v2013_v37 = vpop.permute.xlu1 %2012 }
 0x3a8   : > { %2056 = vst.msk [vmem:[#allocation2 + $0x10] sm:$0xff] %vm760_vm5, %v2011_v48  ;;  %2057 = vst.msk [vmem:[#allocation2 + $0x18] sm:$0xff] %vm760_vm5, %v2013_v37  ;;  %v7938_v48 = vld [vmem:[#allocation3 + $0x21] sm:$0xff] }
 0x3a9   : > { %2318 = vrot.lane.b32.xlu0 %v7479_v15, %s6707_s19  ;;  %2320 = vrot.lane.b32.xlu1 %v7481_v16, %s6707_s19 }
 0x3ab   : > { %v2015_v52 = vpop.permute.xlu0 %2014  ;;  %v2017_v17 = vpop.permute.xlu1 %2016 }
 0x3ac   : > { %2058 = vst.msk [vmem:[#allocation2 + $0x20] sm:$0xff] %vm760_vm5, %v2015_v52  ;;  %2059 = vst.msk [vmem:[#allocation2 + $0x28] sm:$0xff] %vm760_vm5, %v2017_v17  ;;  %v7946_v52 = vld [vmem:[#allocation3 + $0x31] sm:$0xff]  ;;  %v7948_v17 = vld [vmem:[#allocation3 + $0x39] sm:$0xff] }
 0x3ad   : > { %2322 = vrot.lane.b32.xlu0 %v7603_v40, %s6707_s19  ;;  %2324 = vrot.lane.b32.xlu1 %v7605_v42, %s6707_s19 }
 0x3af   : > { %v2019_v18 = vpop.permute.xlu0 %2018  ;;  %v2021_v49 = vpop.permute.xlu1 %2020 }
 0x3b0   : > { %2060 = vst.msk [vmem:[#allocation2 + $0x30] sm:$0xff] %vm760_vm5, %v2019_v18  ;;  %2061 = vst.msk [vmem:[#allocation2 + $0x38] sm:$0xff] %vm760_vm5, %v2021_v49 }
 0x3b1   : > { %2390 = vrot.lane.b32.xlu0 %v7431_v4, %s6707_s19  ;;  %2392 = vrot.lane.b32.xlu1 %v7433_v41, %s6707_s19 }
 0x3b3   : > { %v2023_v19 = vpop.permute.xlu0 %2022  ;;  %v2025_v22 = vpop.permute.xlu1 %2024 }
 0x3b4   : > { %2062 = vst.msk [vmem:[#allocation2 + $0x40] sm:$0xff] %vm760_vm5, %v2023_v19  ;;  %2063 = vst.msk [vmem:[#allocation2 + $0x48] sm:$0xff] %vm760_vm5, %v2025_v22  ;;  %v7956_v19 = vld [vmem:[#allocation3 + $0x49] sm:$0xff]  ;;  %v7958_v22 = vld [vmem:[#allocation3 + $0x51] sm:$0xff] }
 0x3b5   : > { %2394 = vrot.lane.b32.xlu0 %v7439_v5, %s6707_s19  ;;  %2396 = vrot.lane.b32.xlu1 %v7441_v6, %s6707_s19 }
 0x3b7   : > { %v2027_v23 = vpop.permute.xlu0 %2026  ;;  %v2029_v24 = vpop.permute.xlu1 %2028 }
 0x3b8   : > { %2064 = vst.msk [vmem:[#allocation2 + $0x50] sm:$0xff] %vm760_vm5, %v2027_v23  ;;  %2065 = vst.msk [vmem:[#allocation2 + $0x58] sm:$0xff] %vm760_vm5, %v2029_v24 }
 0x3b9   : > { %2398 = vrot.lane.b32.xlu0 %v7447_v7, %s6707_s19  ;;  %2400 = vrot.lane.b32.xlu1 %v7449_v8, %s6707_s19 }
 0x3bb   : > { %v2031_v55 = vpop.permute.xlu0 %2030  ;;  %v2033_v25 = vpop.permute.xlu1 %2032 }
 0x3bc   : > { %2066 = vst.msk [vmem:[#allocation2 + $0x60] sm:$0xff] %vm760_vm5, %v2031_v55  ;;  %2067 = vst.msk [vmem:[#allocation2 + $0x68] sm:$0xff] %vm760_vm5, %v2033_v25 }
 0x3bd   : > { %2402 = vrot.lane.b32.xlu0 %v7455_v9, %s6707_s19  ;;  %2404 = vrot.lane.b32.xlu1 %v7457_v10, %s6707_s19 }
 0x3bf   : > { %v2035_v26 = vpop.permute.xlu0 %2034  ;;  %v2037_v27 = vpop.permute.xlu1 %2036 }
 0x3c0   : > { %2068 = vst.msk [vmem:[#allocation2 + $0x70] sm:$0xff] %vm760_vm5, %v2035_v26  ;;  %2069 = vst.msk [vmem:[#allocation2 + $0x78] sm:$0xff] %vm760_vm5, %v2037_v27 }
 0x3c1   : > { %2406 = vrot.lane.b32.xlu0 %v7463_v11, %s6707_s19  ;;  %2408 = vrot.lane.b32.xlu1 %v7465_v12, %s6707_s19 }
 0x3c3   : > { %v2103_v28 = vpop.permute.xlu0 %2102  ;;  %v2105_v29 = vpop.permute.xlu1 %2104 }
 0x3c4   : > { %2150 = vst.msk [vmem:[#allocation2] sm:$0xff] %vm881_vm6, %v2103_v28  ;;  %2151 = vst.msk [vmem:[#allocation2 + $0x8] sm:$0xff] %vm881_vm6, %v2105_v29 }
 0x3c5   : > { %2410 = vrot.lane.b32.xlu0 %v7471_v13, %s6707_s19  ;;  %2412 = vrot.lane.b32.xlu1 %v7473_v14, %s6707_s19 }
 0x3c7   : > { %v2107_v30 = vpop.permute.xlu0 %2106  ;;  %v2109_v51 = vpop.permute.xlu1 %2108 }
 0x3c8   : > { %2152 = vst.msk [vmem:[#allocation2 + $0x10] sm:$0xff] %vm881_vm6, %v2107_v30  ;;  %2153 = vst.msk [vmem:[#allocation2 + $0x18] sm:$0xff] %vm881_vm6, %v2109_v51 }
 0x3c9   : > { %2414 = vrot.lane.b32.xlu0 %v7479_v15, %s6707_s19  ;;  %2416 = vrot.lane.b32.xlu1 %v7481_v16, %s6707_s19 }
 0x3cb   : > { %v2111_v53 = vpop.permute.xlu0 %2110  ;;  %v2113_v54 = vpop.permute.xlu1 %2112 }
 0x3cc   : > { %2154 = vst.msk [vmem:[#allocation2 + $0x20] sm:$0xff] %vm881_vm6, %v2111_v53  ;;  %2155 = vst.msk [vmem:[#allocation2 + $0x28] sm:$0xff] %vm881_vm6, %v2113_v54 }
 0x3cd   : > { %2418 = vrot.lane.b32.xlu0 %v7603_v40, %s6707_s19  ;;  %2420 = vrot.lane.b32.xlu1 %v7605_v42, %s6707_s19 }
 0x3cf   : > { %v2115_v56 = vpop.permute.xlu0 %2114  ;;  %v2117_v57 = vpop.permute.xlu1 %2116 }
 0x3d0   : > { %2156 = vst.msk [vmem:[#allocation2 + $0x30] sm:$0xff] %vm881_vm6, %v2115_v56  ;;  %2157 = vst.msk [vmem:[#allocation2 + $0x38] sm:$0xff] %vm881_vm6, %v2117_v57 }
 0x3d1   : > { %2726 = vrot.lane.b32.xlu0 %v7423_v2, %s6716_s29  ;;  %2728 = vrot.lane.b32.xlu1 %v7425_v3, %s6716_s29 }
 0x3d3   : > { %v2119_v58 = vpop.permute.xlu0 %2118  ;;  %v2121_v59 = vpop.permute.xlu1 %2120 }
 0x3d4   : > { %2158 = vst.msk [vmem:[#allocation2 + $0x40] sm:$0xff] %vm881_vm6, %v2119_v58  ;;  %2159 = vst.msk [vmem:[#allocation2 + $0x48] sm:$0xff] %vm881_vm6, %v2121_v59 }
 0x3d5   : > { %2730 = vrot.lane.b32.xlu0 %v7431_v4, %s6716_s29  ;;  %2732 = vrot.lane.b32.xlu1 %v7433_v41, %s6716_s29 }
 0x3d7   : > { %v2123_v60 = vpop.permute.xlu0 %2122  ;;  %v2125_v61 = vpop.permute.xlu1 %2124 }
 0x3d8   : > { %2160 = vst.msk [vmem:[#allocation2 + $0x50] sm:$0xff] %vm881_vm6, %v2123_v60  ;;  %2161 = vst.msk [vmem:[#allocation2 + $0x58] sm:$0xff] %vm881_vm6, %v2125_v61 }
 0x3d9   : > { %2734 = vrot.lane.b32.xlu0 %v7439_v5, %s6716_s29  ;;  %2736 = vrot.lane.b32.xlu1 %v7441_v6, %s6716_s29 }
 0x3db   : > { %v2127_v62 = vpop.permute.xlu0 %2126  ;;  %v2129_v39 = vpop.permute.xlu1 %2128 }
 0x3dc   : > { %2162 = vst.msk [vmem:[#allocation2 + $0x60] sm:$0xff] %vm881_vm6, %v2127_v62  ;;  %2163 = vst.msk [vmem:[#allocation2 + $0x68] sm:$0xff] %vm881_vm6, %v2129_v39 }
 0x3dd   : > { %2738 = vrot.lane.b32.xlu0 %v7447_v7, %s6716_s29  ;;  %2740 = vrot.lane.b32.xlu1 %v7449_v8, %s6716_s29 }
 0x3df   : > { %v2131_v63 = vpop.permute.xlu0 %2130  ;;  %v2133_v0 = vpop.permute.xlu1 %2132 }
 0x3e0   : > { %2164 = vst.msk [vmem:[#allocation2 + $0x70] sm:$0xff] %vm881_vm6, %v2131_v63  ;;  %2165 = vst.msk [vmem:[#allocation2 + $0x78] sm:$0xff] %vm881_vm6, %v2133_v0 }
 0x3e1   : > { %2742 = vrot.lane.b32.xlu0 %v7455_v9, %s6716_s29  ;;  %2744 = vrot.lane.b32.xlu1 %v7457_v10, %s6716_s29 }
 0x3e3   : > { %v2199_v1 = vpop.permute.xlu0 %2198  ;;  %v2201_v20 = vpop.permute.xlu1 %2200 }
 0x3e4   : > { %2246 = vst.msk [vmem:[#allocation2] sm:$0xff] %vm1005_vm7, %v2199_v1  ;;  %2247 = vst.msk [vmem:[#allocation2 + $0x8] sm:$0xff] %vm1005_vm7, %v2201_v20 }
 0x3e5   : > { %2746 = vrot.lane.b32.xlu0 %v7463_v11, %s6716_s29  ;;  %2748 = vrot.lane.b32.xlu1 %v7465_v12, %s6716_s29 }
 0x3e7   : > { %v2203_v21 = vpop.permute.xlu0 %2202  ;;  %v2205_v31 = vpop.permute.xlu1 %2204 }
 0x3e8   : > { %2248 = vst.msk [vmem:[#allocation2 + $0x10] sm:$0xff] %vm1005_vm7, %v2203_v21  ;;  %2249 = vst.msk [vmem:[#allocation2 + $0x18] sm:$0xff] %vm1005_vm7, %v2205_v31 }
 0x3e9   : > { %2750 = vrot.lane.b32.xlu0 %v7471_v13, %s6716_s29  ;;  %2752 = vrot.lane.b32.xlu1 %v7473_v14, %s6716_s29 }
 0x3eb   : > { %v2207_v9 = vpop.permute.xlu0 %2206  ;;  %v2209_v10 = vpop.permute.xlu1 %2208 }
 0x3ec   : > { %2250 = vst.msk [vmem:[#allocation2 + $0x20] sm:$0xff] %vm1005_vm7, %v2207_v9  ;;  %2251 = vst.msk [vmem:[#allocation2 + $0x28] sm:$0xff] %vm1005_vm7, %v2209_v10 }
 0x3ed   : > { %2754 = vrot.lane.b32.xlu0 %v7479_v15, %s6716_s29  ;;  %2756 = vrot.lane.b32.xlu1 %v7481_v16, %s6716_s29 }
 0x3ef   : > { %v2211_v11 = vpop.permute.xlu0 %2210  ;;  %v2213_v12 = vpop.permute.xlu1 %2212 }
 0x3f0   : > { %2252 = vst.msk [vmem:[#allocation2 + $0x30] sm:$0xff] %vm1005_vm7, %v2211_v11  ;;  %2253 = vst.msk [vmem:[#allocation2 + $0x38] sm:$0xff] %vm1005_vm7, %v2213_v12 }
 0x3f1   : > { %2822 = vrot.lane.b32.xlu0 %v7423_v2, %s6716_s29  ;;  %2824 = vrot.lane.b32.xlu1 %v7425_v3, %s6716_s29 }
 0x3f3   : > { %v2215_v13 = vpop.permute.xlu0 %2214  ;;  %v2217_v14 = vpop.permute.xlu1 %2216 }
 0x3f4   : > { %2254 = vst.msk [vmem:[#allocation2 + $0x40] sm:$0xff] %vm1005_vm7, %v2215_v13  ;;  %2255 = vst.msk [vmem:[#allocation2 + $0x48] sm:$0xff] %vm1005_vm7, %v2217_v14 }
 0x3f5   : > { %2826 = vrot.lane.b32.xlu0 %v7431_v4, %s6716_s29  ;;  %2828 = vrot.lane.b32.xlu1 %v7433_v41, %s6716_s29  ;;  %v7896_v4 = vld [vmem:[#allocation3 + $0x61] sm:$0xff]  ;;  %v7898_v41 = vld [vmem:[#allocation3 + $0x69] sm:$0xff] }
 0x3f7   : > { %v2219_v15 = vpop.permute.xlu0 %2218  ;;  %v2221_v16 = vpop.permute.xlu1 %2220 }
 0x3f8   : > { %2256 = vst.msk [vmem:[#allocation2 + $0x50] sm:$0xff] %vm1005_vm7, %v2219_v15  ;;  %2257 = vst.msk [vmem:[#allocation2 + $0x58] sm:$0xff] %vm1005_vm7, %v2221_v16 }
 0x3f9   : > { %2830 = vrot.lane.b32.xlu0 %v7439_v5, %s6716_s29  ;;  %2832 = vrot.lane.b32.xlu1 %v7441_v6, %s6716_s29  ;;  %v7906_v6 = vld [vmem:[#allocation3 + $0x79] sm:$0xff] }
 0x3fb   : > { %v2223_v2 = vpop.permute.xlu0 %2222  ;;  %v2225_v3 = vpop.permute.xlu1 %2224 }
 0x3fc   : > { %2258 = vst.msk [vmem:[#allocation2 + $0x60] sm:$0xff] %vm1005_vm7, %v2223_v2  ;;  %2259 = vst.msk [vmem:[#allocation2 + $0x68] sm:$0xff] %vm1005_vm7, %v2225_v3 }
 0x3fd   : > { %2834 = vrot.lane.b32.xlu0 %v7447_v7, %s6716_s29  ;;  %2836 = vrot.lane.b32.xlu1 %v7449_v8, %s6716_s29  ;;  %v7908_v7 = vld [vmem:[#allocation3 + $0x81] sm:$0xff] }
 0x3ff   : > { %v2227_v5 = vpop.permute.xlu0 %2226  ;;  %v2229_v32 = vpop.permute.xlu1 %2228 }
 0x400   : > { %2260 = vst.msk [vmem:[#allocation2 + $0x70] sm:$0xff] %vm1005_vm7, %v2227_v5  ;;  %2261 = vst.msk [vmem:[#allocation2 + $0x78] sm:$0xff] %vm1005_vm7, %v2229_v32 }
 0x401   : > { %2838 = vrot.lane.b32.xlu0 %v7896_v4, %s6716_s29  ;;  %2840 = vrot.lane.b32.xlu1 %v7898_v41, %s6716_s29 }
 0x403   : > { %v2295_v8 = vpop.permute.xlu0 %2294  ;;  %v2297_v34 = vpop.permute.xlu1 %2296 }
 0x404   : > { %2342 = vst.msk [vmem:[#allocation2] sm:$0xff] %vm1126_vm8, %v2295_v8  ;;  %2343 = vst.msk [vmem:[#allocation2 + $0x8] sm:$0xff] %vm1126_vm8, %v2297_v34 }
 0x405   : > { %2842 = vrot.lane.b32.xlu0 %v7906_v6, %s6716_s29  ;;  %2844 = vrot.lane.b32.xlu1 %v7908_v7, %s6716_s29 }
 0x407   : > { %v2299_v33 = vpop.permute.xlu0 %2298  ;;  %v2301_v43 = vpop.permute.xlu1 %2300 }
 0x408   : > { %2344 = vst.msk [vmem:[#allocation2 + $0x10] sm:$0xff] %vm1126_vm8, %v2299_v33  ;;  %2345 = vst.msk [vmem:[#allocation2 + $0x18] sm:$0xff] %vm1126_vm8, %v2301_v43  ;;  %v8054_v33 = vld [vmem:[#allocation3 + $0xc1] sm:$0xff] }
 0x409   : > { %2846 = vrot.lane.b32.xlu0 %v7916_v36, %s6716_s29  ;;  %2848 = vrot.lane.b32.xlu1 %v7918_v38, %s6716_s29 }
 0x40b   : > { %v2303_v46 = vpop.permute.xlu0 %2302  ;;  %v2305_v35 = vpop.permute.xlu1 %2304 }
 0x40c   : > { %2346 = vst.msk [vmem:[#allocation2 + $0x20] sm:$0xff] %vm1126_vm8, %v2303_v46  ;;  %2347 = vst.msk [vmem:[#allocation2 + $0x28] sm:$0xff] %vm1126_vm8, %v2305_v35  ;;  %v8056_v35 = vld [vmem:[#allocation3 + $0xc9] sm:$0xff] }
 0x40d   : > { %2850 = vrot.lane.b32.xlu0 %v7926_v44, %s6716_s29  ;;  %2852 = vrot.lane.b32.xlu1 %v7928_v45, %s6716_s29 }
 0x40f   : > { %v2307_v37 = vpop.permute.xlu0 %2306  ;;  %v2309_v50 = vpop.permute.xlu1 %2308 }
 0x410   : > { %2348 = vst.msk [vmem:[#allocation2 + $0x30] sm:$0xff] %vm1126_vm8, %v2307_v37  ;;  %2349 = vst.msk [vmem:[#allocation2 + $0x38] sm:$0xff] %vm1126_vm8, %v2309_v50  ;;  %v8064_v37 = vld [vmem:[#allocation3 + $0x1a] sm:$0xff] }
 0x411   : > { %2950 = vrot.lane.b32.xlu0 %v7936_v47, %s6705_s16  ;;  %2952 = vrot.lane.b32.xlu1 %v7938_v48, %s6705_s16 }
 0x413   : > { %v2311_v18 = vpop.permute.xlu0 %2310  ;;  %v2313_v49 = vpop.permute.xlu1 %2312 }
 0x414   : > { %2350 = vst.msk [vmem:[#allocation2 + $0x40] sm:$0xff] %vm1126_vm8, %v2311_v18  ;;  %2351 = vst.msk [vmem:[#allocation2 + $0x48] sm:$0xff] %vm1126_vm8, %v2313_v49  ;;  %v8066_v49 = vld [vmem:[#allocation3 + $0x22] sm:$0xff] }
 0x415   : > { %2954 = vrot.lane.b32.xlu0 %v7946_v52, %s6705_s16  ;;  %2956 = vrot.lane.b32.xlu1 %v7948_v17, %s6705_s16 }
 0x417   : > { %v2315_v23 = vpop.permute.xlu0 %2314  ;;  %v2317_v24 = vpop.permute.xlu1 %2316 }
 0x418   : > { %2352 = vst.msk [vmem:[#allocation2 + $0x50] sm:$0xff] %vm1126_vm8, %v2315_v23  ;;  %2353 = vst.msk [vmem:[#allocation2 + $0x58] sm:$0xff] %vm1126_vm8, %v2317_v24  ;;  %v8074_v23 = vld [vmem:[#allocation3 + $0x32] sm:$0xff] }
 0x419   : > { %2958 = vrot.lane.b32.xlu0 %v7956_v19, %s6705_s16  ;;  %2960 = vrot.lane.b32.xlu1 %v7958_v22, %s6705_s16 }
 0x41b   : > { %v2319_v55 = vpop.permute.xlu0 %2318  ;;  %v2321_v25 = vpop.permute.xlu1 %2320 }
 0x41c   : > { %2354 = vst.msk [vmem:[#allocation2 + $0x60] sm:$0xff] %vm1126_vm8, %v2319_v55  ;;  %2355 = vst.msk [vmem:[#allocation2 + $0x68] sm:$0xff] %vm1126_vm8, %v2321_v25  ;;  %v8076_v25 = vld [vmem:[#allocation3 + $0x3a] sm:$0xff] }
 0x41d   : > { %2962 = vrot.lane.b32.xlu0 %v7896_v4, %s6705_s16  ;;  %2964 = vrot.lane.b32.xlu1 %v7898_v41, %s6705_s16 }
 0x41f   : > { %v2323_v26 = vpop.permute.xlu0 %2322  ;;  %v2325_v27 = vpop.permute.xlu1 %2324 }
 0x420   : > { %2356 = vst.msk [vmem:[#allocation2 + $0x70] sm:$0xff] %vm1126_vm8, %v2323_v26  ;;  %2357 = vst.msk [vmem:[#allocation2 + $0x78] sm:$0xff] %vm1126_vm8, %v2325_v27  ;;  %v8084_v26 = vld [vmem:[#allocation3 + $0x4a] sm:$0xff] }
 0x421   : > { %2966 = vrot.lane.b32.xlu0 %v7906_v6, %s6705_s16  ;;  %2968 = vrot.lane.b32.xlu1 %v7908_v7, %s6705_s16 }
 0x423   : > { %v2391_v28 = vpop.permute.xlu0 %2390  ;;  %v2393_v29 = vpop.permute.xlu1 %2392 }
 0x424   : > { %2438 = vst.msk [vmem:[#allocation2] sm:$0xff] %vm1247_vm9, %v2391_v28  ;;  %2439 = vst.msk [vmem:[#allocation2 + $0x8] sm:$0xff] %vm1247_vm9, %v2393_v29  ;;  %v8086_v29 = vld [vmem:[#allocation3 + $0x52] sm:$0xff] }
 0x425   : > { %2970 = vrot.lane.b32.xlu0 %v7916_v36, %s6705_s16  ;;  %2972 = vrot.lane.b32.xlu1 %v7918_v38, %s6705_s16 }
 0x427   : > { %v2395_v30 = vpop.permute.xlu0 %2394  ;;  %v2397_v51 = vpop.permute.xlu1 %2396 }
 0x428   : > { %2440 = vst.msk [vmem:[#allocation2 + $0x10] sm:$0xff] %vm1247_vm9, %v2395_v30  ;;  %2441 = vst.msk [vmem:[#allocation2 + $0x18] sm:$0xff] %vm1247_vm9, %v2397_v51  ;;  %v8094_v30 = vld [vmem:[#allocation3 + $0x62] sm:$0xff] }
 0x429   : > { %2974 = vrot.lane.b32.xlu0 %v7926_v44, %s6705_s16  ;;  %2976 = vrot.lane.b32.xlu1 %v7928_v45, %s6705_s16 }
 0x42b   : > { %v2399_v53 = vpop.permute.xlu0 %2398  ;;  %v2401_v54 = vpop.permute.xlu1 %2400  ;;  %v2454_v56 = vld [vmem:[#allocation2] sm:$0xff]  ;;  %v2455_v57 = vld [vmem:[#allocation2 + $0x8] sm:$0xff] }
 0x42c   : > { %2442 = vst.msk [vmem:[#allocation2 + $0x20] sm:$0xff] %vm1247_vm9, %v2399_v53  ;;  %2443 = vst.msk [vmem:[#allocation2 + $0x28] sm:$0xff] %vm1247_vm9, %v2401_v54  ;;  %6436 = vmatprep.mubr.msk.f32.mxu0 %vm1300_vm10, %v2454_v56  ;;  %v8096_v54 = vld [vmem:[#allocation3 + $0x6a] sm:$0xff]  ;;  %v8104_v56 = vld [vmem:[#allocation3 + $0x7a] sm:$0xff] }
 0x42d   : > { %2978 = vrot.lane.b32.xlu0 %v7603_v40, %s6705_s16  ;;  %6437 = vmatmul.mubr.msk.f32.vlgmr.msra.gmra.mrb[20].mxu0 %vm1300_vm10, %v2455_v57 }
 0x42e   : > { %2980 = vrot.lane.b32.xlu1 %v7605_v42, %s6705_s16 }
 0x42f   : > { %v2403_v58 = vpop.permute.xlu0 %2402  ;;  %v2405_v59 = vpop.permute.xlu1 %2404  ;;  %v2456_v60 = vld [vmem:[#allocation2 + $0x10] sm:$0xff]  ;;  %v2457_v61 = vld [vmem:[#allocation2 + $0x18] sm:$0xff] }
 0x430   : > { %2444 = vst.msk [vmem:[#allocation2 + $0x30] sm:$0xff] %vm1247_vm9, %v2403_v58  ;;  %2445 = vst.msk [vmem:[#allocation2 + $0x38] sm:$0xff] %vm1247_vm9, %v2405_v59  ;;  %6439 = vmatprep.mubr.msk.f32.mxu0 %vm1300_vm10, %v2456_v60  ;;  %v8106_v59 = vld [vmem:[#allocation3 + $0x82] sm:$0xff]  ;;  %v8114_v60 = vld [vmem:[#allocation3 + $0x92] sm:$0xff] }
 0x431   : > { %3046 = vrot.lane.b32.xlu0 %v7936_v47, %s6705_s16  ;;  %6440 = vmatmul.mubr.msk.f32.gmra.mrb[22].mxu0 %vm1300_vm10, %v2457_v61  ;;  %v2886_v61 = vld [vmem:[#allocation3 + $0x2] sm:$0xff] }
 0x432   : > { %3048 = vrot.lane.b32.xlu1 %v7938_v48, %s6705_s16 }
 0x433   : > { %v2407_v40 = vpop.permute.xlu0 %2406  ;;  %v2409_v42 = vpop.permute.xlu1 %2408  ;;  %v2458_v62 = vld [vmem:[#allocation2 + $0x20] sm:$0xff]  ;;  %v2459_v39 = vld [vmem:[#allocation2 + $0x28] sm:$0xff] }
 0x434   : > { %2446 = vst.msk [vmem:[#allocation2 + $0x40] sm:$0xff] %vm1247_vm9, %v2407_v40  ;;  %2447 = vst.msk [vmem:[#allocation2 + $0x48] sm:$0xff] %vm1247_vm9, %v2409_v42  ;;  %6442 = vmatprep.mubr.msk.f32.mxu0 %vm1300_vm10, %v2458_v62  ;;  %v2887_v40 = vld [vmem:[#allocation3 + $0xa] sm:$0xff] }
 0x435   : > { %3050 = vrot.lane.b32.xlu0 %v7946_v52, %s6705_s16  ;;  %6443 = vmatmul.mubr.msk.f32.gmra.mrb[24].mxu0 %vm1300_vm10, %v2459_v39  ;;  %v8116_v39 = vld [vmem:[#allocation3 + $0x9a] sm:$0xff] }
 0x436   : > { %3052 = vrot.lane.b32.xlu1 %v7948_v17, %s6705_s16 }
 0x437   : > { %v2411_v63 = vpop.permute.xlu0 %2410  ;;  %v2413_v0 = vpop.permute.xlu1 %2412  ;;  %v2460_v1 = vld [vmem:[#allocation2 + $0x30] sm:$0xff]  ;;  %v2461_v20 = vld [vmem:[#allocation2 + $0x38] sm:$0xff] }
 0x438   : > { %2448 = vst.msk [vmem:[#allocation2 + $0x50] sm:$0xff] %vm1247_vm9, %v2411_v63  ;;  %2449 = vst.msk [vmem:[#allocation2 + $0x58] sm:$0xff] %vm1247_vm9, %v2413_v0  ;;  %6445 = vmatprep.mubr.msk.f32.mxu1 %vm1300_vm10, %v2460_v1  ;;  %v8126_v63 = vld [vmem:[#allocation3 + $0xaa] sm:$0xff] }
 0x439   : > { %3054 = vrot.lane.b32.xlu0 %v7956_v19, %s6705_s16  ;;  %6446 = vmatmul.mubr.msk.f32.vlgmr.msra.gmra.mrb[0].mxu1 %vm1300_vm10, %v2461_v20  ;;  %v8128_v20 = vld [vmem:[#allocation3 + $0xb2] sm:$0xff] }
 0x43a   : > { %3056 = vrot.lane.b32.xlu1 %v7958_v22, %s6705_s16 }
 0x43b   : > { %v2415_v21 = vpop.permute.xlu0 %2414  ;;  %v2417_v31 = vpop.permute.xlu1 %2416  ;;  %v2462_v9 = vld [vmem:[#allocation2 + $0x40] sm:$0xff]  ;;  %v2463_v10 = vld [vmem:[#allocation2 + $0x48] sm:$0xff] }
 0x43c   : > { %2450 = vst.msk [vmem:[#allocation2 + $0x60] sm:$0xff] %vm1247_vm9, %v2415_v21  ;;  %2451 = vst.msk [vmem:[#allocation2 + $0x68] sm:$0xff] %vm1247_vm9, %v2417_v31  ;;  %6448 = vmatprep.mubr.msk.f32.mxu1 %vm1300_vm10, %v2462_v9  ;;  %v8140_v21 = vld [vmem:[#allocation3 + $0xc2] sm:$0xff] }
 0x43d   : > { %3058 = vrot.lane.b32.xlu0 %v7896_v4, %s6705_s16  ;;  %6449 = vmatmul.mubr.msk.f32.gmra.mrb[2].mxu1 %vm1300_vm10, %v2463_v10  ;;  %v8142_v10 = vld [vmem:[#allocation3 + $0xca] sm:$0xff] }
 0x43e   : > { %3060 = vrot.lane.b32.xlu1 %v7898_v41, %s6705_s16 }
 0x43f   : > { %v2419_v11 = vpop.permute.xlu0 %2418  ;;  %v2421_v12 = vpop.permute.xlu1 %2420  ;;  %v2464_v13 = vld [vmem:[#allocation2 + $0x50] sm:$0xff]  ;;  %v2465_v14 = vld [vmem:[#allocation2 + $0x58] sm:$0xff] }
 0x440   : > { %2452 = vst.msk [vmem:[#allocation2 + $0x70] sm:$0xff] %vm1247_vm9, %v2419_v11  ;;  %2453 = vst.msk [vmem:[#allocation2 + $0x78] sm:$0xff] %vm1247_vm9, %v2421_v12  ;;  %6451 = vmatprep.mubr.msk.f32.mxu1 %vm1300_vm10, %v2464_v13 }
 0x441   : > { %3062 = vrot.lane.b32.xlu0 %v7906_v6, %s6705_s16  ;;  %6452 = vmatmul.mubr.msk.f32.gmra.mrb[4].mxu1 %vm1300_vm10, %v2465_v14 }
 0x442   : > { %3064 = vrot.lane.b32.xlu1 %v7908_v7, %s6705_s16 }
 0x443   : > { %v2727_v15 = vpop.permute.xlu0 %2726  ;;  %v2729_v16 = vpop.permute.xlu1 %2728  ;;  %v2466_v2 = vld [vmem:[#allocation2 + $0x60] sm:$0xff]  ;;  %v2467_v3 = vld [vmem:[#allocation2 + $0x68] sm:$0xff] }
 0x444   : > { %2774 = vst.msk [vmem:[#allocation2] sm:$0xff] %vm273_vm0, %v2727_v15  ;;  %2775 = vst.msk [vmem:[#allocation2 + $0x8] sm:$0xff] %vm273_vm0, %v2729_v16  ;;  %6454 = vmatprep.mubr.msk.f32.mxu1 %vm1300_vm10, %v2466_v2 }
 0x445   : > { %3066 = vrot.lane.b32.xlu0 %v7916_v36, %s6705_s16  ;;  %6455 = vmatmul.mubr.msk.f32.gmra.mrb[6].mxu1 %vm1300_vm10, %v2467_v3 }
 0x446   : > { %3068 = vrot.lane.b32.xlu1 %v7918_v38, %s6705_s16 }
 0x447   : > { %v2731_v5 = vpop.permute.xlu0 %2730  ;;  %v2733_v32 = vpop.permute.xlu1 %2732  ;;  %v2468_v8 = vld [vmem:[#allocation2 + $0x70] sm:$0xff]  ;;  %v2469_v34 = vld [vmem:[#allocation2 + $0x78] sm:$0xff] }
 0x448   : > { %2776 = vst.msk [vmem:[#allocation2 + $0x10] sm:$0xff] %vm273_vm0, %v2731_v5  ;;  %2777 = vst.msk [vmem:[#allocation2 + $0x18] sm:$0xff] %vm273_vm0, %v2733_v32  ;;  %6457 = vmatprep.mubr.msk.f32.mxu1 %vm1300_vm10, %v2468_v8 }
 0x449   : > { %3070 = vrot.lane.b32.xlu0 %v7926_v44, %s6705_s16  ;;  %6458 = vmatmul.mubr.msk.f32.gmra.mrb[8].mxu1 %vm1300_vm10, %v2469_v34 }
 0x44a   : > { %3072 = vrot.lane.b32.xlu1 %v7928_v45, %s6705_s16 }
 0x44b   : > { %v2735_v43 = vpop.permute.xlu0 %2734  ;;  %v2737_v46 = vpop.permute.xlu1 %2736 }
 0x44c   : > { %2778 = vst.msk [vmem:[#allocation2 + $0x20] sm:$0xff] %vm273_vm0, %v2735_v43  ;;  %2779 = vst.msk [vmem:[#allocation2 + $0x28] sm:$0xff] %vm273_vm0, %v2737_v46 }
 0x44d   : > { %3074 = vrot.lane.b32.xlu0 %v8054_v33, %s6705_s16 }
 0x44e   : > { %3076 = vrot.lane.b32.xlu1 %v8056_v35, %s6705_s16 }
 0x44f   : > { %v2739_v50 = vpop.permute.xlu0 %2738  ;;  %v2741_v18 = vpop.permute.xlu1 %2740 }
 0x450   : > { %2780 = vst.msk [vmem:[#allocation2 + $0x30] sm:$0xff] %vm273_vm0, %v2739_v50  ;;  %2781 = vst.msk [vmem:[#allocation2 + $0x38] sm:$0xff] %vm273_vm0, %v2741_v18 }
 0x451   : > { %3142 = vrot.lane.b32.xlu0 %v8064_v37, %s6707_s19 }
 0x452   : > { %3144 = vrot.lane.b32.xlu1 %v8066_v49, %s6707_s19 }
 0x453   : > { %v2743_v24 = vpop.permute.xlu0 %2742  ;;  %v2745_v55 = vpop.permute.xlu1 %2744 }
 0x454   : > { %2782 = vst.msk [vmem:[#allocation2 + $0x40] sm:$0xff] %vm273_vm0, %v2743_v24  ;;  %2783 = vst.msk [vmem:[#allocation2 + $0x48] sm:$0xff] %vm273_vm0, %v2745_v55 }
 0x455   : > { %3146 = vrot.lane.b32.xlu0 %v8074_v23, %s6707_s19 }
 0x456   : > { %3148 = vrot.lane.b32.xlu1 %v8076_v25, %s6707_s19 }
 0x457   : > { %v2747_v27 = vpop.permute.xlu0 %2746  ;;  %v2749_v28 = vpop.permute.xlu1 %2748 }
 0x458   : > { %2784 = vst.msk [vmem:[#allocation2 + $0x50] sm:$0xff] %vm273_vm0, %v2747_v27  ;;  %2785 = vst.msk [vmem:[#allocation2 + $0x58] sm:$0xff] %vm273_vm0, %v2749_v28 }
 0x459   : > { %3150 = vrot.lane.b32.xlu0 %v8084_v26, %s6707_s19 }
 0x45a   : > { %3152 = vrot.lane.b32.xlu1 %v8086_v29, %s6707_s19 }
 0x45b   : > { %v2751_v51 = vpop.permute.xlu0 %2750  ;;  %v2753_v53 = vpop.permute.xlu1 %2752 }
 0x45c   : > { %2786 = vst.msk [vmem:[#allocation2 + $0x60] sm:$0xff] %vm273_vm0, %v2751_v51  ;;  %2787 = vst.msk [vmem:[#allocation2 + $0x68] sm:$0xff] %vm273_vm0, %v2753_v53 }
 0x45d   : > { %3154 = vrot.lane.b32.xlu0 %v8094_v30, %s6707_s19 }
 0x45e   : > { %3156 = vrot.lane.b32.xlu1 %v8096_v54, %s6707_s19 }
 0x45f   : > { %v2755_v57 = vpop.permute.xlu0 %2754  ;;  %v2757_v58 = vpop.permute.xlu1 %2756 }
 0x460   : > { %2788 = vst.msk [vmem:[#allocation2 + $0x70] sm:$0xff] %vm273_vm0, %v2755_v57  ;;  %2789 = vst.msk [vmem:[#allocation2 + $0x78] sm:$0xff] %vm273_vm0, %v2757_v58 }
 0x461   : > { %3158 = vrot.lane.b32.xlu0 %v8104_v56, %s6707_s19 }
 0x462   : > { %3160 = vrot.lane.b32.xlu1 %v8106_v59, %s6707_s19 }
 0x463   : > { %v2823_v42 = vpop.permute.xlu0 %2822  ;;  %v2825_v62 = vpop.permute.xlu1 %2824 }
 0x464   : > { %2870 = vst.msk [vmem:[#allocation2] sm:$0xff] %vm394_vm2, %v2823_v42  ;;  %2871 = vst.msk [vmem:[#allocation2 + $0x8] sm:$0xff] %vm394_vm2, %v2825_v62  ;;  %v3514_v42 = vld [vmem:[%s9562_s3 + $0x20] sm:$0xf] }
 0x465   : > { %3162 = vrot.lane.b32.xlu0 %v8114_v60, %s6707_s19  ;;  %2902 = vst.msk [vmem:[#allocation2] sm:$0xff] %vm515_vm3, %v2886_v61  ;;  %2903 = vst.msk [vmem:[#allocation2 + $0x8] sm:$0xff] %vm515_vm3, %v2887_v40  ;;  %v3513_v61 = vld [vmem:[%s9562_s3 + $0x18] sm:$0xff] }
 0x466   : > { %3164 = vrot.lane.b32.xlu1 %v8116_v39, %s6707_s19 }
 0x467   : > { %v2827_v0 = vpop.permute.xlu0 %2826  ;;  %v2829_v1 = vpop.permute.xlu1 %2828 }
 0x468   : > { %2872 = vst.msk [vmem:[#allocation2 + $0x10] sm:$0xff] %vm394_vm2, %v2827_v0  ;;  %2873 = vst.msk [vmem:[#allocation2 + $0x18] sm:$0xff] %vm394_vm2, %v2829_v1 }
 0x469   : > { %3166 = vrot.lane.b32.xlu0 %v8126_v63, %s6707_s19  ;;  %2904 = vst.msk [vmem:[#allocation2 + $0x10] sm:$0xff] %vm515_vm3, %v8064_v37  ;;  %2905 = vst.msk [vmem:[#allocation2 + $0x18] sm:$0xff] %vm515_vm3, %v8066_v49 }
 0x46a   : > { %3168 = vrot.lane.b32.xlu1 %v8128_v20, %s6707_s19 }
 0x46b   : > { %v2831_v31 = vpop.permute.xlu0 %2830  ;;  %v2833_v9 = vpop.permute.xlu1 %2832 }
 0x46c   : > { %2874 = vst.msk [vmem:[#allocation2 + $0x20] sm:$0xff] %vm394_vm2, %v2831_v31  ;;  %2875 = vst.msk [vmem:[#allocation2 + $0x28] sm:$0xff] %vm394_vm2, %v2833_v9 }
 0x46d   : > { %3170 = vrot.lane.b32.xlu0 %v8140_v21, %s6707_s19  ;;  %2906 = vst.msk [vmem:[#allocation2 + $0x20] sm:$0xff] %vm515_vm3, %v8074_v23  ;;  %2907 = vst.msk [vmem:[#allocation2 + $0x28] sm:$0xff] %vm515_vm3, %v8076_v25 }
 0x46e   : > { %3172 = vrot.lane.b32.xlu1 %v8142_v10, %s6707_s19 }
 0x46f   : > { %v2835_v11 = vpop.permute.xlu0 %2834  ;;  %v2837_v12 = vpop.permute.xlu1 %2836 }
 0x470   : > { %2876 = vst.msk [vmem:[#allocation2 + $0x30] sm:$0xff] %vm394_vm2, %v2835_v11  ;;  %2877 = vst.msk [vmem:[#allocation2 + $0x38] sm:$0xff] %vm394_vm2, %v2837_v12 }
 0x471   : > { %3238 = vrot.lane.b32.xlu0 %v7936_v47, %s6706_s17  ;;  %2908 = vst.msk [vmem:[#allocation2 + $0x30] sm:$0xff] %vm515_vm3, %v8084_v26  ;;  %2909 = vst.msk [vmem:[#allocation2 + $0x38] sm:$0xff] %vm515_vm3, %v8086_v29 }
 0x472   : > { %3240 = vrot.lane.b32.xlu1 %v7938_v48, %s6706_s17 }
 0x473   : > { %v2839_v13 = vpop.permute.xlu0 %2838  ;;  %v2841_v14 = vpop.permute.xlu1 %2840 }
 0x474   : > { %2878 = vst.msk [vmem:[#allocation2 + $0x40] sm:$0xff] %vm394_vm2, %v2839_v13  ;;  %2879 = vst.msk [vmem:[#allocation2 + $0x48] sm:$0xff] %vm394_vm2, %v2841_v14 }
 0x475   : > { %3242 = vrot.lane.b32.xlu0 %v7946_v52, %s6706_s17  ;;  %2910 = vst.msk [vmem:[#allocation2 + $0x40] sm:$0xff] %vm515_vm3, %v8094_v30  ;;  %2911 = vst.msk [vmem:[#allocation2 + $0x48] sm:$0xff] %vm515_vm3, %v8096_v54 }
 0x476   : > { %3244 = vrot.lane.b32.xlu1 %v7948_v17, %s6706_s17 }
 0x477   : > { %v2843_v15 = vpop.permute.xlu0 %2842  ;;  %v2845_v16 = vpop.permute.xlu1 %2844 }
 0x478   : > { %2880 = vst.msk [vmem:[#allocation2 + $0x50] sm:$0xff] %vm394_vm2, %v2843_v15  ;;  %2881 = vst.msk [vmem:[#allocation2 + $0x58] sm:$0xff] %vm394_vm2, %v2845_v16 }
 0x479   : > { %3246 = vrot.lane.b32.xlu0 %v7956_v19, %s6706_s17  ;;  %2912 = vst.msk [vmem:[#allocation2 + $0x50] sm:$0xff] %vm515_vm3, %v8104_v56  ;;  %2913 = vst.msk [vmem:[#allocation2 + $0x58] sm:$0xff] %vm515_vm3, %v8106_v59 }
 0x47a   : > { %3248 = vrot.lane.b32.xlu1 %v7958_v22, %s6706_s17 }
 0x47b   : > { %v2847_v2 = vpop.permute.xlu0 %2846  ;;  %v2849_v3 = vpop.permute.xlu1 %2848 }
 0x47c   : > { %2882 = vst.msk [vmem:[#allocation2 + $0x60] sm:$0xff] %vm394_vm2, %v2847_v2  ;;  %2883 = vst.msk [vmem:[#allocation2 + $0x68] sm:$0xff] %vm394_vm2, %v2849_v3 }
 0x47d   : > { %3250 = vrot.lane.b32.xlu0 %v7896_v4, %s6706_s17  ;;  %2914 = vst.msk [vmem:[#allocation2 + $0x60] sm:$0xff] %vm515_vm3, %v8114_v60  ;;  %2915 = vst.msk [vmem:[#allocation2 + $0x68] sm:$0xff] %vm515_vm3, %v8116_v39 }
 0x47e   : > { %3252 = vrot.lane.b32.xlu1 %v7898_v41, %s6706_s17 }
 0x47f   : > { %v2851_v5 = vpop.permute.xlu0 %2850  ;;  %v2853_v32 = vpop.permute.xlu1 %2852 }
 0x480   : > { %2884 = vst.msk [vmem:[#allocation2 + $0x70] sm:$0xff] %vm394_vm2, %v2851_v5  ;;  %2885 = vst.msk [vmem:[#allocation2 + $0x78] sm:$0xff] %vm394_vm2, %v2853_v32 }
 0x481   : > { %3254 = vrot.lane.b32.xlu0 %v7906_v6, %s6706_s17  ;;  %2916 = vst.msk [vmem:[#allocation2 + $0x70] sm:$0xff] %vm515_vm3, %v8126_v63  ;;  %2917 = vst.msk [vmem:[#allocation2 + $0x78] sm:$0xff] %vm515_vm3, %v8128_v20 }
 0x482   : > { %3256 = vrot.lane.b32.xlu1 %v7908_v7, %s6706_s17 }
 0x483   : > { %v2951_v8 = vpop.permute.xlu0 %2950  ;;  %v2953_v34 = vpop.permute.xlu1 %2952 }
 0x484   : > { %2998 = vst.msk [vmem:[#allocation2] sm:$0xff] %vm639_vm4, %v2951_v8  ;;  %2999 = vst.msk [vmem:[#allocation2 + $0x8] sm:$0xff] %vm639_vm4, %v2953_v34 }
 0x485   : > { %3258 = vrot.lane.b32.xlu0 %v7916_v36, %s6706_s17 }
 0x486   : > { %3260 = vrot.lane.b32.xlu1 %v7918_v38, %s6706_s17 }
 0x487   : > { %v2955_v43 = vpop.permute.xlu0 %2954  ;;  %v2957_v46 = vpop.permute.xlu1 %2956 }
 0x488   : > { %3000 = vst.msk [vmem:[#allocation2 + $0x10] sm:$0xff] %vm639_vm4, %v2955_v43  ;;  %3001 = vst.msk [vmem:[#allocation2 + $0x18] sm:$0xff] %vm639_vm4, %v2957_v46 }
 0x489   : > { %3262 = vrot.lane.b32.xlu0 %v7926_v44, %s6706_s17 }
 0x48a   : > { %3264 = vrot.lane.b32.xlu1 %v7928_v45, %s6706_s17 }
 0x48b   : > { %v2959_v50 = vpop.permute.xlu0 %2958  ;;  %v2961_v18 = vpop.permute.xlu1 %2960 }
 0x48c   : > { %3002 = vst.msk [vmem:[#allocation2 + $0x20] sm:$0xff] %vm639_vm4, %v2959_v50  ;;  %3003 = vst.msk [vmem:[#allocation2 + $0x28] sm:$0xff] %vm639_vm4, %v2961_v18  ;;  %v8362_v18 = vld [vmem:[%s9563_s4] ss:$0 sm:$0xff] }
 0x48d   : > { %3266 = vrot.lane.b32.xlu0 %v8054_v33, %s6706_s17 }
 0x48e   : > { %3268 = vrot.lane.b32.xlu1 %v8056_v35, %s6706_s17 }
 0x48f   : > { %v2963_v24 = vpop.permute.xlu0 %2962  ;;  %v2965_v55 = vpop.permute.xlu1 %2964 }
 0x490   : > { %3004 = vst.msk [vmem:[#allocation2 + $0x30] sm:$0xff] %vm639_vm4, %v2963_v24  ;;  %3005 = vst.msk [vmem:[#allocation2 + $0x38] sm:$0xff] %vm639_vm4, %v2965_v55 }
 0x491   : > { %3334 = vrot.lane.b32.xlu0 %v7936_v47, %s6706_s17  ;;  %v3510_v47 = vld [vmem:[%s9562_s3] sm:$0xff] }
 0x492   : > { %3336 = vrot.lane.b32.xlu1 %v7938_v48, %s6706_s17  ;;  %v3511_v48 = vld [vmem:[%s9562_s3 + $0x8] sm:$0xff] }
 0x493   : > { %v2967_v27 = vpop.permute.xlu0 %2966  ;;  %v2969_v28 = vpop.permute.xlu1 %2968 }
 0x494   : > { %3006 = vst.msk [vmem:[#allocation2 + $0x40] sm:$0xff] %vm639_vm4, %v2967_v27  ;;  %3007 = vst.msk [vmem:[#allocation2 + $0x48] sm:$0xff] %vm639_vm4, %v2969_v28 }
 0x495   : > { %3338 = vrot.lane.b32.xlu0 %v7946_v52, %s6706_s17  ;;  %v6578_v52 = vpack.c.bf16 %v3511_v48, %v3510_v47 }
 0x496   : > { %3340 = vrot.lane.b32.xlu1 %v7948_v17, %s6706_s17 }
 0x497   : > { %v2971_v51 = vpop.permute.xlu0 %2970  ;;  %v2973_v53 = vpop.permute.xlu1 %2972  ;;  %6579 = vmatprep.subr.bf16.mxu1 %v6578_v52 }
 0x498   : > { %3008 = vst.msk [vmem:[#allocation2 + $0x50] sm:$0xff] %vm639_vm4, %v2971_v51  ;;  %3009 = vst.msk [vmem:[#allocation2 + $0x58] sm:$0xff] %vm639_vm4, %v2973_v53  ;;  %6581 = vmatpush3.bf16.msra.mxu1 %v6578_v52 }
 0x499   : > { %3342 = vrot.lane.b32.xlu0 %v7956_v19, %s6706_s17 }
 0x49a   : > { %3344 = vrot.lane.b32.xlu1 %v7958_v22, %s6706_s17  ;;  %v3512_v22 = vld [vmem:[%s9562_s3 + $0x10] sm:$0xff] }
 0x49b   : > { %v2975_v17 = vpop.permute.xlu0 %2974  ;;  %v2977_v57 = vpop.permute.xlu1 %2976 }
 0x49c   : > { %3010 = vst.msk [vmem:[#allocation2 + $0x60] sm:$0xff] %vm639_vm4, %v2975_v17  ;;  %3011 = vst.msk [vmem:[#allocation2 + $0x68] sm:$0xff] %vm639_vm4, %v2977_v57 }
 0x49d   : > { %3346 = vrot.lane.b32.xlu0 %v7896_v4, %s6706_s17  ;;  %v6582_v4 = vpack.c.bf16 %v3513_v61, %v3512_v22 }
 0x49e   : > { %3348 = vrot.lane.b32.xlu1 %v7898_v41, %s6706_s17 }
 0x49f   : > { %v2979_v58 = vpop.permute.xlu0 %2978  ;;  %6583 = vmatprep.subr.bf16.mxu1 %v6582_v4 }
 0x4a0   : > { %3012 = vst.msk [vmem:[#allocation2 + $0x70] sm:$0xff] %vm639_vm4, %v2979_v58  ;;  %v2981_v19 = vpop.permute.xlu1 %2980  ;;  %6585 = vmatpush3.bf16.msra.mxu1 %v6582_v4 }
 0x4a1   : > { %3013 = vst.msk [vmem:[#allocation2 + $0x78] sm:$0xff] %vm639_vm4, %v2981_v19  ;;  %3350 = vrot.lane.b32.xlu0 %v7906_v6, %s6706_s17  ;;  %6468 = vmatprep.subr.msk.mxu1 %vm1361_vm1, %v3514_v42 }
 0x4a2   : > { %3352 = vrot.lane.b32.xlu1 %v7908_v7, %s6706_s17 }
 0x4a3   : > { %v3047_v41 = vpop.permute.xlu0 %3046 }
 0x4a4   : > { %3094 = vst.msk [vmem:[#allocation2] sm:$0xff] %vm760_vm5, %v3047_v41  ;;  %v3049_v40 = vpop.permute.xlu1 %3048  ;;  %6469 = vmatpush3.msk.msra.mxu1 %vm1361_vm1, %v3514_v42 }
 0x4a5   : > { %3095 = vst.msk [vmem:[#allocation2 + $0x8] sm:$0xff] %vm760_vm5, %v3049_v40  ;;  %3354 = vrot.lane.b32.xlu0 %v7916_v36, %s6706_s17 }
 0x4a6   : > { %3356 = vrot.lane.b32.xlu1 %v7918_v38, %s6706_s17 }
 0x4a7   : > { %v3051_v6 = vpop.permute.xlu0 %3050 }
 0x4a8   : > { %3096 = vst.msk [vmem:[#allocation2 + $0x10] sm:$0xff] %vm760_vm5, %v3051_v6  ;;  %v3053_v7 = vpop.permute.xlu1 %3052 }
 0x4a9   : > { %3097 = vst.msk [vmem:[#allocation2 + $0x18] sm:$0xff] %vm760_vm5, %v3053_v7  ;;  %3358 = vrot.lane.b32.xlu0 %v7926_v44, %s6706_s17 }
 0x4aa   : > { %3360 = vrot.lane.b32.xlu1 %v7928_v45, %s6706_s17 }
 0x4ab   : > { %v3055_v36 = vpop.permute.xlu0 %3054 }
 0x4ac   : > { %3098 = vst.msk [vmem:[#allocation2 + $0x20] sm:$0xff] %vm760_vm5, %v3055_v36  ;;  %v3057_v38 = vpop.permute.xlu1 %3056 }
 0x4ad   : > { %3099 = vst.msk [vmem:[#allocation2 + $0x28] sm:$0xff] %vm760_vm5, %v3057_v38  ;;  %3362 = vrot.lane.b32.xlu0 %v8054_v33, %s6706_s17 }
 0x4ae   : > { %3364 = vrot.lane.b32.xlu1 %v8056_v35, %s6706_s17 }
 0x4af   : > { %v3059_v62 = vpop.permute.xlu0 %3058 }
 0x4b0   : > { %3100 = vst.msk [vmem:[#allocation2 + $0x30] sm:$0xff] %vm760_vm5, %v3059_v62  ;;  %v3061_v0 = vpop.permute.xlu1 %3060 }
 0x4b1   : > { %3101 = vst.msk [vmem:[#allocation2 + $0x38] sm:$0xff] %vm760_vm5, %v3061_v0  ;;  %3430 = vrot.lane.b32.xlu0 %v8064_v37, %s6708_s25 }
 0x4b2   : > { %3432 = vrot.lane.b32.xlu1 %v8066_v49, %s6708_s25 }
 0x4b3   : > { %v3063_v44 = vpop.permute.xlu0 %3062 }
 0x4b4   : > { %3102 = vst.msk [vmem:[#allocation2 + $0x40] sm:$0xff] %vm760_vm5, %v3063_v44  ;;  %v3065_v45 = vpop.permute.xlu1 %3064 }
 0x4b5   : > { %3103 = vst.msk [vmem:[#allocation2 + $0x48] sm:$0xff] %vm760_vm5, %v3065_v45  ;;  %3434 = vrot.lane.b32.xlu0 %v8074_v23, %s6708_s25 }
 0x4b6   : > { %3436 = vrot.lane.b32.xlu1 %v8076_v25, %s6708_s25 }
 0x4b7   : > { %v3067_v33 = vpop.permute.xlu0 %3066 }
 0x4b8   : > { %3104 = vst.msk [vmem:[#allocation2 + $0x50] sm:$0xff] %vm760_vm5, %v3067_v33  ;;  %v3069_v35 = vpop.permute.xlu1 %3068 }
 0x4b9   : > { %3105 = vst.msk [vmem:[#allocation2 + $0x58] sm:$0xff] %vm760_vm5, %v3069_v35  ;;  %3438 = vrot.lane.b32.xlu0 %v8084_v26, %s6708_s25 }
 0x4ba   : > { %3440 = vrot.lane.b32.xlu1 %v8086_v29, %s6708_s25 }
 0x4bb   : > { %v3071_v37 = vpop.permute.xlu0 %3070 }
 0x4bc   : > { %3106 = vst.msk [vmem:[#allocation2 + $0x60] sm:$0xff] %vm760_vm5, %v3071_v37  ;;  %v3073_v49 = vpop.permute.xlu1 %3072 }
 0x4bd   : > { %3107 = vst.msk [vmem:[#allocation2 + $0x68] sm:$0xff] %vm760_vm5, %v3073_v49  ;;  %3442 = vrot.lane.b32.xlu0 %v8094_v30, %s6708_s25 }
 0x4be   : > { %3444 = vrot.lane.b32.xlu1 %v8096_v54, %s6708_s25 }
 0x4bf   : > { %v3075_v23 = vpop.permute.xlu0 %3074 }
 0x4c0   : > { %3108 = vst.msk [vmem:[#allocation2 + $0x70] sm:$0xff] %vm760_vm5, %v3075_v23  ;;  %v3077_v25 = vpop.permute.xlu1 %3076 }
 0x4c1   : > { %3109 = vst.msk [vmem:[#allocation2 + $0x78] sm:$0xff] %vm760_vm5, %v3077_v25  ;;  %3446 = vrot.lane.b32.xlu0 %v8104_v56, %s6708_s25 }
 0x4c2   : > { %3448 = vrot.lane.b32.xlu1 %v8106_v59, %s6708_s25 }
 0x4c3   : > { %v3143_v26 = vpop.permute.xlu0 %3142 }
 0x4c4   : > { %3190 = vst.msk [vmem:[#allocation2] sm:$0xff] %vm881_vm6, %v3143_v26  ;;  %v3145_v29 = vpop.permute.xlu1 %3144 }
 0x4c5   : > { %3191 = vst.msk [vmem:[#allocation2 + $0x8] sm:$0xff] %vm881_vm6, %v3145_v29  ;;  %3450 = vrot.lane.b32.xlu0 %v8114_v60, %s6708_s25 }
 0x4c6   : > { %3452 = vrot.lane.b32.xlu1 %v8116_v39, %s6708_s25 }
 0x4c7   : > { %v3147_v30 = vpop.permute.xlu0 %3146 }
 0x4c8   : > { %3192 = vst.msk [vmem:[#allocation2 + $0x10] sm:$0xff] %vm881_vm6, %v3147_v30  ;;  %v3149_v54 = vpop.permute.xlu1 %3148 }
 0x4c9   : > { %3193 = vst.msk [vmem:[#allocation2 + $0x18] sm:$0xff] %vm881_vm6, %v3149_v54  ;;  %3454 = vrot.lane.b32.xlu0 %v8126_v63, %s6708_s25 }
 0x4ca   : > { %3456 = vrot.lane.b32.xlu1 %v8128_v20, %s6708_s25 }
 0x4cb   : > { %v3151_v56 = vpop.permute.xlu0 %3150 }
 0x4cc   : > { %3194 = vst.msk [vmem:[#allocation2 + $0x20] sm:$0xff] %vm881_vm6, %v3151_v56  ;;  %v3153_v59 = vpop.permute.xlu1 %3152 }
 0x4cd   : > { %3195 = vst.msk [vmem:[#allocation2 + $0x28] sm:$0xff] %vm881_vm6, %v3153_v59  ;;  %3458 = vrot.lane.b32.xlu0 %v8140_v21, %s6708_s25 }
 0x4ce   : > { %3460 = vrot.lane.b32.xlu1 %v8142_v10, %s6708_s25 }
 0x4cf   : > { %v3155_v60 = vpop.permute.xlu0 %3154 }
 0x4d0   : > { %3196 = vst.msk [vmem:[#allocation2 + $0x30] sm:$0xff] %vm881_vm6, %v3155_v60  ;;  %v3157_v39 = vpop.permute.xlu1 %3156 }
 0x4d1   : > { %3197 = vst.msk [vmem:[#allocation2 + $0x38] sm:$0xff] %vm881_vm6, %v3157_v39 }
 0x4d3   : > { %v3159_v63 = vpop.permute.xlu0 %3158 }
 0x4d4   : > { %3198 = vst.msk [vmem:[#allocation2 + $0x40] sm:$0xff] %vm881_vm6, %v3159_v63  ;;  %v3161_v1 = vpop.permute.xlu1 %3160 }
 0x4d5   : > { %3199 = vst.msk [vmem:[#allocation2 + $0x48] sm:$0xff] %vm881_vm6, %v3161_v1 }
 0x4d7   : > { %v3163_v20 = vpop.permute.xlu0 %3162 }
 0x4d8   : > { %3200 = vst.msk [vmem:[#allocation2 + $0x50] sm:$0xff] %vm881_vm6, %v3163_v20  ;;  %v3165_v31 = vpop.permute.xlu1 %3164 }
 0x4d9   : > { %3201 = vst.msk [vmem:[#allocation2 + $0x58] sm:$0xff] %vm881_vm6, %v3165_v31 }
 0x4db   : > { %v3167_v21 = vpop.permute.xlu0 %3166 }
 0x4dc   : > { %3202 = vst.msk [vmem:[#allocation2 + $0x60] sm:$0xff] %vm881_vm6, %v3167_v21  ;;  %v3169_v9 = vpop.permute.xlu1 %3168 }
 0x4dd   : > { %3203 = vst.msk [vmem:[#allocation2 + $0x68] sm:$0xff] %vm881_vm6, %v3169_v9 }
 0x4df   : > { %v3171_v10 = vpop.permute.xlu0 %3170 }
 0x4e0   : > { %3204 = vst.msk [vmem:[#allocation2 + $0x70] sm:$0xff] %vm881_vm6, %v3171_v10  ;;  %v3173_v11 = vpop.permute.xlu1 %3172 }
 0x4e1   : > { %3205 = vst.msk [vmem:[#allocation2 + $0x78] sm:$0xff] %vm881_vm6, %v3173_v11 }
 0x4e3   : > { %v3239_v12 = vpop.permute.xlu0 %3238 }
 0x4e4   : > { %3286 = vst.msk [vmem:[#allocation2] sm:$0xff] %vm1005_vm7, %v3239_v12  ;;  %v3241_v13 = vpop.permute.xlu1 %3240 }
 0x4e5   : > { %3287 = vst.msk [vmem:[#allocation2 + $0x8] sm:$0xff] %vm1005_vm7, %v3241_v13 }
 0x4e7   : > { %v3243_v14 = vpop.permute.xlu0 %3242 }
 0x4e8   : > { %3288 = vst.msk [vmem:[#allocation2 + $0x10] sm:$0xff] %vm1005_vm7, %v3243_v14  ;;  %v3245_v15 = vpop.permute.xlu1 %3244 }
 0x4e9   : > { %3289 = vst.msk [vmem:[#allocation2 + $0x18] sm:$0xff] %vm1005_vm7, %v3245_v15 }
 0x4eb   : > { %v3247_v16 = vpop.permute.xlu0 %3246 }
 0x4ec   : > { %3290 = vst.msk [vmem:[#allocation2 + $0x20] sm:$0xff] %vm1005_vm7, %v3247_v16  ;;  %v3249_v2 = vpop.permute.xlu1 %3248 }
 0x4ed   : > { %3291 = vst.msk [vmem:[#allocation2 + $0x28] sm:$0xff] %vm1005_vm7, %v3249_v2 }
 0x4ef   : > { %v3251_v3 = vpop.permute.xlu0 %3250 }
 0x4f0   : > { %3292 = vst.msk [vmem:[#allocation2 + $0x30] sm:$0xff] %vm1005_vm7, %v3251_v3  ;;  %v3253_v5 = vpop.permute.xlu1 %3252 }
 0x4f1   : > { %3293 = vst.msk [vmem:[#allocation2 + $0x38] sm:$0xff] %vm1005_vm7, %v3253_v5 }
 0x4f3   : > { %v3255_v32 = vpop.permute.xlu0 %3254 }
 0x4f4   : > { %3294 = vst.msk [vmem:[#allocation2 + $0x40] sm:$0xff] %vm1005_vm7, %v3255_v32  ;;  %v3257_v8 = vpop.permute.xlu1 %3256 }
 0x4f5   : > { %3295 = vst.msk [vmem:[#allocation2 + $0x48] sm:$0xff] %vm1005_vm7, %v3257_v8 }
 0x4f7   : > { %v3259_v34 = vpop.permute.xlu0 %3258 }
 0x4f8   : > { %3296 = vst.msk [vmem:[#allocation2 + $0x50] sm:$0xff] %vm1005_vm7, %v3259_v34  ;;  %v3261_v43 = vpop.permute.xlu1 %3260 }
 0x4f9   : > { %3297 = vst.msk [vmem:[#allocation2 + $0x58] sm:$0xff] %vm1005_vm7, %v3261_v43 }
 0x4fb   : > { %v3263_v46 = vpop.permute.xlu0 %3262 }
 0x4fc   : > { %3298 = vst.msk [vmem:[#allocation2 + $0x60] sm:$0xff] %vm1005_vm7, %v3263_v46  ;;  %v3265_v50 = vpop.permute.xlu1 %3264 }
 0x4fd   : > { %3299 = vst.msk [vmem:[#allocation2 + $0x68] sm:$0xff] %vm1005_vm7, %v3265_v50 }
 0x4ff   : > { %v3267_v24 = vpop.permute.xlu0 %3266 }
 0x500   : > { %3300 = vst.msk [vmem:[#allocation2 + $0x70] sm:$0xff] %vm1005_vm7, %v3267_v24  ;;  %v3269_v55 = vpop.permute.xlu1 %3268  ;;  %v6438_v27 = vpop.f32.mrb[20].mxu0 }
 0x501   : > { %3301 = vst.msk [vmem:[#allocation2 + $0x78] sm:$0xff] %vm1005_vm7, %v3269_v55  ;;  %v2605_v28 = vadd.f32 %v6438_v27, %v8362_v18  ;;  %v2599_v51 = vpop.f32.mrb[21].mxu0 }
 0x502   : > { %v2600_v53 = vadd.f32 %v8362_v18, %v2599_v51 }
 0x503   : > { %2679 = vst.msk [vmem:[%s6789_s13 + $0x8] sm:$0xff] %vm273_vm0, %v2605_v28  ;;  %v3335_v47 = vpop.permute.xlu0 %3334 }
 0x504   : > { %2678 = vst.msk [vmem:[%s6789_s13] sm:$0xff] %vm273_vm0, %v2600_v53  ;;  %v3337_v48 = vpop.permute.xlu1 %3336  ;;  %v6441_v52 = vpop.f32.mrb[22].mxu0 }
 0x505   : > { %3382 = vst.msk [vmem:[#allocation2] sm:$0xff] %vm1126_vm8, %v3335_v47  ;;  %3383 = vst.msk [vmem:[#allocation2 + $0x8] sm:$0xff] %vm1126_vm8, %v3337_v48  ;;  %v2615_v17 = vadd.f32 %v6441_v52, %v8362_v18  ;;  %v2609_v57 = vpop.f32.mrb[23].mxu0 }
 0x506   : > { %v2610_v58 = vadd.f32 %v8362_v18, %v2609_v57 }
 0x507   : > { %2681 = vst.msk [vmem:[%s6789_s13 + $0x18] sm:$0xff] %vm273_vm0, %v2615_v17  ;;  %v3339_v19 = vpop.permute.xlu0 %3338 }
 0x508   : > { %2680 = vst.msk [vmem:[%s6789_s13 + $0x10] sm:$0xff] %vm273_vm0, %v2610_v58  ;;  %v3341_v22 = vpop.permute.xlu1 %3340  ;;  %v6444_v61 = vpop.f32.mrb[24].mxu0 }
 0x509   : > { %3384 = vst.msk [vmem:[#allocation2 + $0x10] sm:$0xff] %vm1126_vm8, %v3339_v19  ;;  %3385 = vst.msk [vmem:[#allocation2 + $0x18] sm:$0xff] %vm1126_vm8, %v3341_v22  ;;  %v2625_v4 = vadd.f32 %v6444_v61, %v8362_v18  ;;  %v2619_v41 = vpop.f32.mrb[25].mxu0 }
 0x50a   : > { %v2620_v40 = vadd.f32 %v8362_v18, %v2619_v41 }
 0x50b   : > { %2683 = vst.msk [vmem:[%s6789_s13 + $0x28] sm:$0xff] %vm273_vm0, %v2625_v4  ;;  %v3343_v42 = vpop.permute.xlu0 %3342 }
 0x50c   : > { %2682 = vst.msk [vmem:[%s6789_s13 + $0x20] sm:$0xff] %vm273_vm0, %v2620_v40  ;;  %v3345_v6 = vpop.permute.xlu1 %3344  ;;  %v6447_v7 = vpop.f32.mrb[0].mxu1 }
 0x50d   : > { %3386 = vst.msk [vmem:[#allocation2 + $0x20] sm:$0xff] %vm1126_vm8, %v3343_v42  ;;  %3387 = vst.msk [vmem:[#allocation2 + $0x28] sm:$0xff] %vm1126_vm8, %v3345_v6  ;;  %v2635_v36 = vadd.f32 %v6447_v7, %v8362_v18  ;;  %v2629_v38 = vpop.f32.mrb[1].mxu1 }
 0x50e   : > { %v2630_v62 = vadd.f32 %v8362_v18, %v2629_v38 }
 0x50f   : > { %2685 = vst.msk [vmem:[%s6789_s13 + $0x38] sm:$0xff] %vm273_vm0, %v2635_v36  ;;  %v3347_v0 = vpop.permute.xlu0 %3346 }
 0x510   : > { %2684 = vst.msk [vmem:[%s6789_s13 + $0x30] sm:$0xff] %vm273_vm0, %v2630_v62  ;;  %v3349_v44 = vpop.permute.xlu1 %3348  ;;  %v6450_v45 = vpop.f32.mrb[2].mxu1 }
 0x511   : > { %3388 = vst.msk [vmem:[#allocation2 + $0x30] sm:$0xff] %vm1126_vm8, %v3347_v0  ;;  %3389 = vst.msk [vmem:[#allocation2 + $0x38] sm:$0xff] %vm1126_vm8, %v3349_v44  ;;  %v2645_v33 = vadd.f32 %v6450_v45, %v8362_v18  ;;  %v2639_v35 = vpop.f32.mrb[3].mxu1 }
 0x512   : > { %v2640_v37 = vadd.f32 %v8362_v18, %v2639_v35 }
 0x513   : > { %2687 = vst.msk [vmem:[%s6789_s13 + $0x48] sm:$0xff] %vm273_vm0, %v2645_v33  ;;  %v3351_v49 = vpop.permute.xlu0 %3350 }
 0x514   : > { %2686 = vst.msk [vmem:[%s6789_s13 + $0x40] sm:$0xff] %vm273_vm0, %v2640_v37  ;;  %v3353_v23 = vpop.permute.xlu1 %3352  ;;  %v6453_v25 = vpop.f32.mrb[4].mxu1 }
 0x515   : > { %3390 = vst.msk [vmem:[#allocation2 + $0x40] sm:$0xff] %vm1126_vm8, %v3351_v49  ;;  %3391 = vst.msk [vmem:[#allocation2 + $0x48] sm:$0xff] %vm1126_vm8, %v3353_v23  ;;  %v2655_v26 = vadd.f32 %v6453_v25, %v8362_v18  ;;  %v2649_v29 = vpop.f32.mrb[5].mxu1 }
 0x516   : > { %v2650_v30 = vadd.f32 %v8362_v18, %v2649_v29 }
 0x517   : > { %2689 = vst.msk [vmem:[%s6789_s13 + $0x58] sm:$0xff] %vm273_vm0, %v2655_v26  ;;  %v3355_v54 = vpop.permute.xlu0 %3354 }
 0x518   : > { %2688 = vst.msk [vmem:[%s6789_s13 + $0x50] sm:$0xff] %vm273_vm0, %v2650_v30  ;;  %v3357_v56 = vpop.permute.xlu1 %3356  ;;  %v6456_v59 = vpop.f32.mrb[6].mxu1 }
 0x519   : > { %3392 = vst.msk [vmem:[#allocation2 + $0x50] sm:$0xff] %vm1126_vm8, %v3355_v54  ;;  %3393 = vst.msk [vmem:[#allocation2 + $0x58] sm:$0xff] %vm1126_vm8, %v3357_v56  ;;  %v2665_v60 = vadd.f32 %v6456_v59, %v8362_v18  ;;  %v2659_v39 = vpop.f32.mrb[7].mxu1 }
 0x51a   : > { %v2660_v63 = vadd.f32 %v8362_v18, %v2659_v39 }
 0x51b   : > { %2691 = vst.msk [vmem:[%s6789_s13 + $0x68] sm:$0xff] %vm273_vm0, %v2665_v60  ;;  %v3359_v1 = vpop.permute.xlu0 %3358 }
 0x51c   : > { %2690 = vst.msk [vmem:[%s6789_s13 + $0x60] sm:$0xff] %vm273_vm0, %v2660_v63  ;;  %v3361_v20 = vpop.permute.xlu1 %3360  ;;  %v6459_v31 = vpop.f32.mrb[8].mxu1 }
 0x51d   : > { %3394 = vst.msk [vmem:[#allocation2 + $0x60] sm:$0xff] %vm1126_vm8, %v3359_v1  ;;  %3395 = vst.msk [vmem:[#allocation2 + $0x68] sm:$0xff] %vm1126_vm8, %v3361_v20  ;;  %v2675_v21 = vadd.f32 %v6459_v31, %v8362_v18  ;;  %v2669_v9 = vpop.f32.mrb[9].mxu1 }
 0x51e   : > { %v2670_v10 = vadd.f32 %v8362_v18, %v2669_v9 }
 0x51f   : > { %2693 = vst.msk [vmem:[%s6789_s13 + $0x78] sm:$0xff] %vm273_vm0, %v2675_v21  ;;  %v3363_v11 = vpop.permute.xlu0 %3362 }
 0x520   : > { %2692 = vst.msk [vmem:[%s6789_s13 + $0x70] sm:$0xff] %vm273_vm0, %v2670_v10  ;;  %v3365_v12 = vpop.permute.xlu1 %3364 }
 0x521   : > { %3396 = vst.msk [vmem:[#allocation2 + $0x70] sm:$0xff] %vm1126_vm8, %v3363_v11  ;;  %3397 = vst.msk [vmem:[#allocation2 + $0x78] sm:$0xff] %vm1126_vm8, %v3365_v12 }
 0x523   : > { %v3431_v13 = vpop.permute.xlu0 %3430 }
 0x524   : > { %3478 = vst.msk [vmem:[#allocation2] sm:$0xff] %vm1247_vm9, %v3431_v13  ;;  %v3433_v14 = vpop.permute.xlu1 %3432 }
 0x525   : > { %3479 = vst.msk [vmem:[#allocation2 + $0x8] sm:$0xff] %vm1247_vm9, %v3433_v14  ;;  %v8494_v14 = vld [vmem:[#allocation3 + $0x20] sm:$0xff] }
 0x527   : > { %v3435_v15 = vpop.permute.xlu0 %3434 }
 0x528   : > { %3480 = vst.msk [vmem:[#allocation2 + $0x10] sm:$0xff] %vm1247_vm9, %v3435_v15  ;;  %v3437_v16 = vpop.permute.xlu1 %3436  ;;  %v8496_v15 = vld [vmem:[#allocation3 + $0x18] sm:$0xff] }
 0x529   : > { %3481 = vst.msk [vmem:[#allocation2 + $0x18] sm:$0xff] %vm1247_vm9, %v3437_v16  ;;  %v8502_v16 = vld [vmem:[#allocation3 + $0x38] sm:$0xff] }
 0x52b   : > { %v3439_v2 = vpop.permute.xlu0 %3438  ;;  %v3494_v3 = vld [vmem:[#allocation2] sm:$0xff] }
 0x52c   : > { %3482 = vst.msk [vmem:[#allocation2 + $0x20] sm:$0xff] %vm1247_vm9, %v3439_v2  ;;  %v3441_v5 = vpop.permute.xlu1 %3440  ;;  %6470 = vmatprep.mubr.msk.f32.mxu1 %vm1300_vm10, %v3494_v3  ;;  %v3495_v32 = vld [vmem:[#allocation2 + $0x8] sm:$0xff]  ;;  %v8504_v2 = vld [vmem:[#allocation3 + $0x30] sm:$0xff] }
 0x52d   : > { %3483 = vst.msk [vmem:[#allocation2 + $0x28] sm:$0xff] %vm1247_vm9, %v3441_v5  ;;  %6471 = vmatmul.mubr.msk.f32.vlgmr.msra.gmra.mrb[10].mxu1 %vm1300_vm10, %v3495_v32  ;;  %v8512_v3 = vld [vmem:[#allocation3 + $0x48] sm:$0xff]  ;;  %v8520_v32 = vld [vmem:[#allocation3 + $0x60] sm:$0xff] }
 0x52e   : > { %v8518_v5 = vld [vmem:[#allocation3 + $0x68] sm:$0xff] }
 0x52f   : > { %v3443_v8 = vpop.permute.xlu0 %3442  ;;  %v3496_v34 = vld [vmem:[#allocation2 + $0x10] sm:$0xff] }
 0x530   : > { %3484 = vst.msk [vmem:[#allocation2 + $0x30] sm:$0xff] %vm1247_vm9, %v3443_v8  ;;  %v3445_v43 = vpop.permute.xlu1 %3444  ;;  %6473 = vmatprep.mubr.msk.f32.mxu1 %vm1300_vm10, %v3496_v34  ;;  %v3497_v46 = vld [vmem:[#allocation2 + $0x18] sm:$0xff]  ;;  %v8526_v8 = vld [vmem:[#allocation3 + $0x80] sm:$0xff] }
 0x531   : > { %3485 = vst.msk [vmem:[#allocation2 + $0x38] sm:$0xff] %vm1247_vm9, %v3445_v43  ;;  %6474 = vmatmul.mubr.msk.f32.gmra.mrb[12].mxu1 %vm1300_vm10, %v3497_v46  ;;  %v8528_v34 = vld [vmem:[#allocation3 + $0x78] sm:$0xff]  ;;  %v8536_v46 = vld [vmem:[#allocation3 + $0x90] sm:$0xff] }
 0x532   : > { %v8534_v43 = vld [vmem:[#allocation3 + $0x98] sm:$0xff] }
 0x533   : > { %v3447_v50 = vpop.permute.xlu0 %3446  ;;  %v3498_v24 = vld [vmem:[#allocation2 + $0x20] sm:$0xff] }
 0x534   : > { %3486 = vst.msk [vmem:[#allocation2 + $0x40] sm:$0xff] %vm1247_vm9, %v3447_v50  ;;  %v3449_v55 = vpop.permute.xlu1 %3448  ;;  %6476 = vmatprep.mubr.msk.f32.mxu1 %vm1300_vm10, %v3498_v24  ;;  %v3499_v27 = vld [vmem:[#allocation2 + $0x28] sm:$0xff]  ;;  %v8542_v50 = vld [vmem:[#allocation3 + $0xb0] sm:$0xff] }
 0x535   : > { %3487 = vst.msk [vmem:[#allocation2 + $0x48] sm:$0xff] %vm1247_vm9, %v3449_v55  ;;  %6477 = vmatmul.mubr.msk.f32.gmra.mrb[14].mxu1 %vm1300_vm10, %v3499_v27  ;;  %v8544_v24 = vld [vmem:[#allocation3 + $0xa8] sm:$0xff]  ;;  %v8552_v27 = vld [vmem:[#allocation3 + $0xc0] sm:$0xff] }
 0x536   : > { %v8550_v55 = vld [vmem:[#allocation3 + $0xc8] sm:$0xff] }
 0x537   : > { %v3451_v28 = vpop.permute.xlu0 %3450  ;;  %v3500_v51 = vld [vmem:[#allocation2 + $0x30] sm:$0xff] }
 0x538   : > { %3488 = vst.msk [vmem:[#allocation2 + $0x50] sm:$0xff] %vm1247_vm9, %v3451_v28  ;;  %v3453_v53 = vpop.permute.xlu1 %3452  ;;  %6479 = vmatprep.mubr.msk.f32.mxu1 %vm1300_vm10, %v3500_v51  ;;  %v3501_v47 = vld [vmem:[#allocation2 + $0x38] sm:$0xff]  ;;  %v8558_v28 = vld [vmem:[#allocation3 + $0x21] sm:$0xff] }
 0x539   : > { %3489 = vst.msk [vmem:[#allocation2 + $0x58] sm:$0xff] %vm1247_vm9, %v3453_v53  ;;  %6480 = vmatmul.mubr.msk.f32.gmra.mrb[16].mxu1 %vm1300_vm10, %v3501_v47  ;;  %v8560_v51 = vld [vmem:[#allocation3 + $0x19] sm:$0xff]  ;;  %v8568_v47 = vld [vmem:[#allocation3 + $0x31] sm:$0xff] }
 0x53a   : > { %v8566_v53 = vld [vmem:[#allocation3 + $0x39] sm:$0xff] }
 0x53b   : > { %v3455_v48 = vpop.permute.xlu0 %3454  ;;  %v3502_v52 = vld [vmem:[#allocation2 + $0x40] sm:$0xff] }
 0x53c   : > { %3490 = vst.msk [vmem:[#allocation2 + $0x60] sm:$0xff] %vm1247_vm9, %v3455_v48  ;;  %v3457_v17 = vpop.permute.xlu1 %3456  ;;  %6482 = vmatprep.mubr.msk.f32.mxu1 %vm1300_vm10, %v3502_v52  ;;  %v3503_v57 = vld [vmem:[#allocation2 + $0x48] sm:$0xff]  ;;  %v8574_v48 = vld [vmem:[#allocation3 + $0x51] sm:$0xff] }
 0x53d   : > { %3491 = vst.msk [vmem:[#allocation2 + $0x68] sm:$0xff] %vm1247_vm9, %v3457_v17  ;;  %6483 = vmatmul.mubr.msk.f32.gmra.mrb[18].mxu1 %vm1300_vm10, %v3503_v57  ;;  %v8576_v52 = vld [vmem:[#allocation3 + $0x49] sm:$0xff]  ;;  %v8584_v57 = vld [vmem:[#allocation3 + $0x61] sm:$0xff] }
 0x53e   : > { %v8582_v17 = vld [vmem:[#allocation3 + $0x69] sm:$0xff] }
 0x53f   : > { %v3459_v58 = vpop.permute.xlu0 %3458  ;;  %v3504_v19 = vld [vmem:[#allocation2 + $0x50] sm:$0xff] }
 0x540   : > { %3492 = vst.msk [vmem:[#allocation2 + $0x70] sm:$0xff] %vm1247_vm9, %v3459_v58  ;;  %v3461_v22 = vpop.permute.xlu1 %3460  ;;  %6485 = vmatprep.mubr.msk.f32.mxu1 %vm1300_vm10, %v3504_v19  ;;  %v3505_v61 = vld [vmem:[#allocation2 + $0x58] sm:$0xff]  ;;  %v8590_v58 = vld [vmem:[#allocation3 + $0x81] sm:$0xff] }
 0x541   : > { %3493 = vst.msk [vmem:[#allocation2 + $0x78] sm:$0xff] %vm1247_vm9, %v3461_v22  ;;  %6486 = vmatmul.mubr.msk.f32.gmra.mrb[20].mxu1 %vm1300_vm10, %v3505_v61  ;;  %v8592_v19 = vld [vmem:[#allocation3 + $0x79] sm:$0xff]  ;;  %v8600_v61 = vld [vmem:[#allocation3 + $0x91] sm:$0xff] }
 0x542   : > { %v8598_v22 = vld [vmem:[#allocation3 + $0x99] sm:$0xff] }
 0x543   : > { %v3506_v4 = vld [vmem:[#allocation2 + $0x60] sm:$0xff] }
 0x544   : > { %6488 = vmatprep.mubr.msk.f32.mxu1 %vm1300_vm10, %v3506_v4  ;;  %v3507_v41 = vld [vmem:[#allocation2 + $0x68] sm:$0xff]  ;;  %v8606_v4 = vld [vmem:[#allocation3 + $0xb1] sm:$0xff] }
 0x545   : > { %6489 = vmatmul.mubr.msk.f32.gmra.mrb[22].mxu1 %vm1300_vm10, %v3507_v41  ;;  %v8608_v41 = vld [vmem:[#allocation3 + $0xa9] sm:$0xff] }
 0x547   : > { %v3508_v40 = vld [vmem:[#allocation2 + $0x70] sm:$0xff] }
 0x548   : > { %6491 = vmatprep.mubr.msk.f32.mxu1 %vm1300_vm10, %v3508_v40  ;;  %v3509_v42 = vld [vmem:[#allocation2 + $0x78] sm:$0xff]  ;;  %v8614_v40 = vld [vmem:[#allocation3 + $0xc9] sm:$0xff] }
 0x549   : > { %6492 = vmatmul.mubr.msk.f32.gmra.mrb[24].mxu1 %vm1300_vm10, %v3509_v42  ;;  %v8616_v42 = vld [vmem:[#allocation3 + $0xc1] sm:$0xff] }
 0x600   : > { %v6472_v6 = vpop.f32.mrb[10].mxu1 }
 0x601   : > { %v3645_v7 = vadd.f32 %v6472_v6, %v8362_v18  ;;  %v3639_v36 = vpop.f32.mrb[11].mxu1 }
 0x602   : > { %v3640_v38 = vadd.f32 %v8362_v18, %v3639_v36 }
 0x603   : > { %3736 = vrot.lane.b32.xlu1 %v3645_v7, %s6704_s15 }
 0x604   : > { %3734 = vrot.lane.b32.xlu0 %v3640_v38, %s6704_s15  ;;  %v6475_v62 = vpop.f32.mrb[12].mxu1 }
 0x605   : > { %v3655_v0 = vadd.f32 %v6475_v62, %v8362_v18  ;;  %v3649_v44 = vpop.f32.mrb[13].mxu1 }
 0x606   : > { %v3650_v45 = vadd.f32 %v8362_v18, %v3649_v44 }
 0x607   : > { %3740 = vrot.lane.b32.xlu1 %v3655_v0, %s6704_s15 }
 0x608   : > { %3738 = vrot.lane.b32.xlu0 %v3650_v45, %s6704_s15  ;;  %v6478_v33 = vpop.f32.mrb[14].mxu1 }
 0x609   : > { %v3665_v35 = vadd.f32 %v6478_v33, %v8362_v18  ;;  %v3659_v37 = vpop.f32.mrb[15].mxu1 }
 0x60a   : > { %v3660_v49 = vadd.f32 %v8362_v18, %v3659_v37 }
 0x60b   : > { %3744 = vrot.lane.b32.xlu1 %v3665_v35, %s6704_s15 }
 0x60c   : > { %3742 = vrot.lane.b32.xlu0 %v3660_v49, %s6704_s15  ;;  %v6481_v23 = vpop.f32.mrb[16].mxu1 }
 0x60d   : > { %v3675_v25 = vadd.f32 %v6481_v23, %v8362_v18  ;;  %v3669_v26 = vpop.f32.mrb[17].mxu1 }
 0x60e   : > { %v3670_v29 = vadd.f32 %v8362_v18, %v3669_v26 }
 0x60f   : > { %3748 = vrot.lane.b32.xlu1 %v3675_v25, %s6704_s15 }
 0x610   : > { %3746 = vrot.lane.b32.xlu0 %v3670_v29, %s6704_s15  ;;  %v6484_v30 = vpop.f32.mrb[18].mxu1 }
 0x611   : > { %v3685_v54 = vadd.f32 %v6484_v30, %v8362_v18  ;;  %v3679_v56 = vpop.f32.mrb[19].mxu1 }
 0x612   : > { %v3680_v59 = vadd.f32 %v8362_v18, %v3679_v56 }
 0x613   : > { %3752 = vrot.lane.b32.xlu1 %v3685_v54, %s6704_s15 }
 0x614   : > { %3750 = vrot.lane.b32.xlu0 %v3680_v59, %s6704_s15  ;;  %v6487_v60 = vpop.f32.mrb[20].mxu1 }
 0x615   : > { %v3695_v39 = vadd.f32 %v6487_v60, %v8362_v18  ;;  %v3689_v63 = vpop.f32.mrb[21].mxu1 }
 0x616   : > { %v3690_v1 = vadd.f32 %v8362_v18, %v3689_v63 }
 0x617   : > { %3756 = vrot.lane.b32.xlu1 %v3695_v39, %s6704_s15 }
 0x618   : > { %3754 = vrot.lane.b32.xlu0 %v3690_v1, %s6704_s15  ;;  %v6490_v20 = vpop.f32.mrb[22].mxu1 }
 0x619   : > { %v3705_v31 = vadd.f32 %v6490_v20, %v8362_v18  ;;  %v3699_v21 = vpop.f32.mrb[23].mxu1 }
 0x61a   : > { %v3700_v9 = vadd.f32 %v8362_v18, %v3699_v21 }
 0x61b   : > { %3760 = vrot.lane.b32.xlu1 %v3705_v31, %s6704_s15 }
 0x61c   : > { %3758 = vrot.lane.b32.xlu0 %v3700_v9, %s6704_s15  ;;  %v6493_v10 = vpop.f32.mrb[24].mxu1 }
 0x61d   : > { %v3715_v11 = vadd.f32 %v6493_v10, %v8362_v18  ;;  %v3709_v12 = vpop.f32.mrb[25].mxu1 }
 0x61e   : > { %v3710_v13 = vadd.f32 %v8362_v18, %v3709_v12  ;;  %v8510_v18 = vld [vmem:[#allocation3 + $0x50] sm:$0xff] }
 0x61f   : > { %3764 = vrot.lane.b32.xlu1 %v3715_v11, %s6704_s15 }
 0x620   : > { %3762 = vrot.lane.b32.xlu0 %v3710_v13, %s6704_s15 }
 0x623   : > { %3832 = vrot.lane.b32.xlu1 %v8494_v14, %s6715_s18 }
 0x624   : > { %3830 = vrot.lane.b32.xlu0 %v8496_v15, %s6715_s18 }
 0x627   : > { %3836 = vrot.lane.b32.xlu1 %v8502_v16, %s6715_s18 }
 0x628   : > { %3834 = vrot.lane.b32.xlu0 %v8504_v2, %s6715_s18 }
 0x62b   : > { %3840 = vrot.lane.b32.xlu1 %v8510_v18, %s6715_s18 }
 0x62c   : > { %3838 = vrot.lane.b32.xlu0 %v8512_v3, %s6715_s18 }
 0x62f   : > { %3844 = vrot.lane.b32.xlu1 %v8518_v5, %s6715_s18 }
 0x630   : > { %3842 = vrot.lane.b32.xlu0 %v8520_v32, %s6715_s18 }
 0x633   : > { %3848 = vrot.lane.b32.xlu1 %v8526_v8, %s6715_s18 }
 0x634   : > { %3846 = vrot.lane.b32.xlu0 %v8528_v34, %s6715_s18 }
 0x637   : > { %3852 = vrot.lane.b32.xlu1 %v8534_v43, %s6715_s18 }
 0x638   : > { %3850 = vrot.lane.b32.xlu0 %v8536_v46, %s6715_s18 }
 0x63b   : > { %3856 = vrot.lane.b32.xlu1 %v8542_v50, %s6715_s18 }
 0x63c   : > { %3854 = vrot.lane.b32.xlu0 %v8544_v24, %s6715_s18 }
 0x63f   : > { %3860 = vrot.lane.b32.xlu1 %v8550_v55, %s6715_s18 }
 0x640   : > { %3858 = vrot.lane.b32.xlu0 %v8552_v27, %s6715_s18 }
 0x643   : > { %3928 = vrot.lane.b32.xlu1 %v8558_v28, %s6704_s15 }
 0x644   : > { %3926 = vrot.lane.b32.xlu0 %v8560_v51, %s6704_s15 }
 0x647   : > { %3932 = vrot.lane.b32.xlu1 %v8566_v53, %s6704_s15 }
 0x648   : > { %3930 = vrot.lane.b32.xlu0 %v8568_v47, %s6704_s15 }
 0x64b   : > { %3936 = vrot.lane.b32.xlu1 %v8574_v48, %s6704_s15 }
 0x64c   : > { %3934 = vrot.lane.b32.xlu0 %v8576_v52, %s6704_s15 }
 0x64f   : > { %3940 = vrot.lane.b32.xlu1 %v8582_v17, %s6704_s15 }
 0x650   : > { %3938 = vrot.lane.b32.xlu0 %v8584_v57, %s6704_s15 }
 0x653   : > { %3944 = vrot.lane.b32.xlu1 %v8590_v58, %s6704_s15 }
 0x654   : > { %3942 = vrot.lane.b32.xlu0 %v8592_v19, %s6704_s15 }
 0x657   : > { %3948 = vrot.lane.b32.xlu1 %v8598_v22, %s6704_s15 }
 0x658   : > { %3946 = vrot.lane.b32.xlu0 %v8600_v61, %s6704_s15 }
 0x65b   : > { %3952 = vrot.lane.b32.xlu1 %v8606_v4, %s6704_s15 }
 0x65c   : > { %3950 = vrot.lane.b32.xlu0 %v8608_v41, %s6704_s15 }
 0x65f   : > { %3956 = vrot.lane.b32.xlu1 %v8614_v40, %s6704_s15 }
 0x660   : > { %3954 = vrot.lane.b32.xlu0 %v8616_v42, %s6704_s15 }
 0x663   : > { %4024 = vrot.lane.b32.xlu1 %v8558_v28, %s6704_s15 }
 0x664   : > { %4022 = vrot.lane.b32.xlu0 %v8560_v51, %s6704_s15 }
 0x667   : > { %4028 = vrot.lane.b32.xlu1 %v8566_v53, %s6704_s15 }
 0x668   : > { %4026 = vrot.lane.b32.xlu0 %v8568_v47, %s6704_s15 }
 0x66b   : > { %4032 = vrot.lane.b32.xlu1 %v8574_v48, %s6704_s15 }
 0x66c   : > { %4030 = vrot.lane.b32.xlu0 %v8576_v52, %s6704_s15 }
 0x66f   : > { %4036 = vrot.lane.b32.xlu1 %v8582_v17, %s6704_s15 }
 0x670   : > { %4034 = vrot.lane.b32.xlu0 %v8584_v57, %s6704_s15 }
 0x673   : > { %4040 = vrot.lane.b32.xlu1 %v8590_v58, %s6704_s15 }
 0x674   : > { %4038 = vrot.lane.b32.xlu0 %v8592_v19, %s6704_s15 }
 0x675   : > { %v3737_v6 = vpop.permute.xlu1 %3736 }
 0x676   : > { %3783 = vst.msk [vmem:[%s6789_s13 + $0x8] sm:$0xff] %vm394_vm2, %v3737_v6  ;;  %v3735_v7 = vpop.permute.xlu0 %3734 }
 0x677   : > { %3782 = vst.msk [vmem:[%s6789_s13] sm:$0xff] %vm394_vm2, %v3735_v7  ;;  %4044 = vrot.lane.b32.xlu1 %v8598_v22, %s6704_s15 }
 0x678   : > { %4042 = vrot.lane.b32.xlu0 %v8600_v61, %s6704_s15 }
 0x679   : > { %v3741_v36 = vpop.permute.xlu1 %3740 }
 0x67a   : > { %3785 = vst.msk [vmem:[%s6789_s13 + $0x18] sm:$0xff] %vm394_vm2, %v3741_v36  ;;  %v3739_v38 = vpop.permute.xlu0 %3738 }
 0x67b   : > { %3784 = vst.msk [vmem:[%s6789_s13 + $0x10] sm:$0xff] %vm394_vm2, %v3739_v38  ;;  %4048 = vrot.lane.b32.xlu1 %v8606_v4, %s6704_s15  ;;  %v4615_v38 = vld [vmem:[%s9562_s3] sm:$0xff] }
 0x67c   : > { %4046 = vrot.lane.b32.xlu0 %v8608_v41, %s6704_s15 }
 0x67d   : > { %v3745_v62 = vpop.permute.xlu1 %3744 }
 0x67e   : > { %3787 = vst.msk [vmem:[%s6789_s13 + $0x28] sm:$0xff] %vm394_vm2, %v3745_v62  ;;  %v3743_v0 = vpop.permute.xlu0 %3742  ;;  %v4616_v62 = vld [vmem:[%s9562_s3 + $0x8] sm:$0xff] }
 0x67f   : > { %3786 = vst.msk [vmem:[%s6789_s13 + $0x20] sm:$0xff] %vm394_vm2, %v3743_v0  ;;  %4052 = vrot.lane.b32.xlu1 %v8614_v40, %s6704_s15  ;;  %v6586_v0 = vpack.c.bf16 %v4616_v62, %v4615_v38 }
 0x680   : > { %4050 = vrot.lane.b32.xlu0 %v8616_v42, %s6704_s15 }
 0x681   : > { %v3749_v44 = vpop.permute.xlu1 %3748  ;;  %6587 = vmatprep.subr.bf16.mxu0 %v6586_v0  ;;  %6595 = vmatprep.subr.bf16.mxu1 %v6586_v0 }
 0x682   : > { %3789 = vst.msk [vmem:[%s6789_s13 + $0x38] sm:$0xff] %vm394_vm2, %v3749_v44  ;;  %v3747_v45 = vpop.permute.xlu0 %3746  ;;  %6589 = vmatpush3.bf16.msra.mxu0 %v6586_v0  ;;  %6597 = vmatpush3.bf16.msra.mxu1 %v6586_v0 }
 0x683   : > { %3788 = vst.msk [vmem:[%s6789_s13 + $0x30] sm:$0xff] %vm394_vm2, %v3747_v45  ;;  %4152 = vrot.lane.b32.xlu1 %v8558_v28, %s6703_s14 }
 0x684   : > { %4150 = vrot.lane.b32.xlu0 %v8560_v51, %s6703_s14 }
 0x685   : > { %v3753_v33 = vpop.permute.xlu1 %3752 }
 0x686   : > { %3791 = vst.msk [vmem:[%s6789_s13 + $0x48] sm:$0xff] %vm394_vm2, %v3753_v33  ;;  %v3751_v35 = vpop.permute.xlu0 %3750  ;;  %v4617_v33 = vld [vmem:[%s9562_s3 + $0x10] sm:$0xff] }
 0x687   : > { %3790 = vst.msk [vmem:[%s6789_s13 + $0x40] sm:$0xff] %vm394_vm2, %v3751_v35  ;;  %4156 = vrot.lane.b32.xlu1 %v8566_v53, %s6703_s14  ;;  %v4618_v35 = vld [vmem:[%s9562_s3 + $0x18] sm:$0xff] }
 0x688   : > { %4154 = vrot.lane.b32.xlu0 %v8568_v47, %s6703_s14 }
 0x689   : > { %v3757_v37 = vpop.permute.xlu1 %3756 }
 0x68a   : > { %3793 = vst.msk [vmem:[%s6789_s13 + $0x58] sm:$0xff] %vm394_vm2, %v3757_v37  ;;  %v3755_v49 = vpop.permute.xlu0 %3754  ;;  %v6590_v37 = vpack.c.bf16 %v4618_v35, %v4617_v33 }
 0x68b   : > { %3792 = vst.msk [vmem:[%s6789_s13 + $0x50] sm:$0xff] %vm394_vm2, %v3755_v49  ;;  %4160 = vrot.lane.b32.xlu1 %v8574_v48, %s6703_s14 }
 0x68c   : > { %4158 = vrot.lane.b32.xlu0 %v8576_v52, %s6703_s14  ;;  %6591 = vmatprep.subr.bf16.mxu0 %v6590_v37 }
 0x68d   : > { %v3761_v23 = vpop.permute.xlu1 %3760  ;;  %6599 = vmatprep.subr.bf16.mxu1 %v6590_v37  ;;  %6593 = vmatpush3.bf16.msra.mxu0 %v6590_v37 }
 0x68e   : > { %3795 = vst.msk [vmem:[%s6789_s13 + $0x68] sm:$0xff] %vm394_vm2, %v3761_v23  ;;  %v3759_v25 = vpop.permute.xlu0 %3758  ;;  %6601 = vmatpush3.bf16.msra.mxu1 %v6590_v37 }
 0x68f   : > { %3794 = vst.msk [vmem:[%s6789_s13 + $0x60] sm:$0xff] %vm394_vm2, %v3759_v25  ;;  %4164 = vrot.lane.b32.xlu1 %v8582_v17, %s6703_s14 }
 0x690   : > { %4162 = vrot.lane.b32.xlu0 %v8584_v57, %s6703_s14 }
 0x691   : > { %v3765_v26 = vpop.permute.xlu1 %3764 }
 0x692   : > { %3797 = vst.msk [vmem:[%s6789_s13 + $0x78] sm:$0xff] %vm394_vm2, %v3765_v26  ;;  %v3763_v29 = vpop.permute.xlu0 %3762 }
 0x693   : > { %3796 = vst.msk [vmem:[%s6789_s13 + $0x70] sm:$0xff] %vm394_vm2, %v3763_v29  ;;  %4168 = vrot.lane.b32.xlu1 %v8590_v58, %s6703_s14 }
 0x694   : > { %4166 = vrot.lane.b32.xlu0 %v8592_v19, %s6703_s14 }
 0x695   : > { %v3833_v30 = vpop.permute.xlu1 %3832 }
 0x696   : > { %3879 = vst.msk [vmem:[#allocation2 + $0x8] sm:$0xff] %vm273_vm0, %v3833_v30  ;;  %v3831_v54 = vpop.permute.xlu0 %3830 }
 0x697   : > { %3878 = vst.msk [vmem:[#allocation2] sm:$0xff] %vm273_vm0, %v3831_v54  ;;  %4172 = vrot.lane.b32.xlu1 %v8598_v22, %s6703_s14 }
 0x698   : > { %4170 = vrot.lane.b32.xlu0 %v8600_v61, %s6703_s14 }
 0x699   : > { %v3837_v56 = vpop.permute.xlu1 %3836 }
 0x69a   : > { %3881 = vst.msk [vmem:[#allocation2 + $0x18] sm:$0xff] %vm273_vm0, %v3837_v56  ;;  %v3835_v59 = vpop.permute.xlu0 %3834 }
 0x69b   : > { %3880 = vst.msk [vmem:[#allocation2 + $0x10] sm:$0xff] %vm273_vm0, %v3835_v59  ;;  %4176 = vrot.lane.b32.xlu1 %v8606_v4, %s6703_s14 }
 0x69c   : > { %4174 = vrot.lane.b32.xlu0 %v8608_v41, %s6703_s14 }
 0x69d   : > { %v3841_v60 = vpop.permute.xlu1 %3840 }
 0x69e   : > { %3883 = vst.msk [vmem:[#allocation2 + $0x28] sm:$0xff] %vm273_vm0, %v3841_v60  ;;  %v3839_v39 = vpop.permute.xlu0 %3838 }
 0x69f   : > { %3882 = vst.msk [vmem:[#allocation2 + $0x20] sm:$0xff] %vm273_vm0, %v3839_v39  ;;  %4180 = vrot.lane.b32.xlu1 %v8614_v40, %s6703_s14 }
 0x6a0   : > { %4178 = vrot.lane.b32.xlu0 %v8616_v42, %s6703_s14 }
 0x6a1   : > { %v3845_v63 = vpop.permute.xlu1 %3844 }
 0x6a2   : > { %3885 = vst.msk [vmem:[#allocation2 + $0x38] sm:$0xff] %vm273_vm0, %v3845_v63  ;;  %v3843_v1 = vpop.permute.xlu0 %3842 }
 0x6a3   : > { %3884 = vst.msk [vmem:[#allocation2 + $0x30] sm:$0xff] %vm273_vm0, %v3843_v1  ;;  %4248 = vrot.lane.b32.xlu1 %v8558_v28, %s6703_s14 }
 0x6a4   : > { %4246 = vrot.lane.b32.xlu0 %v8560_v51, %s6703_s14 }
 0x6a5   : > { %v3849_v20 = vpop.permute.xlu1 %3848 }
 0x6a6   : > { %3887 = vst.msk [vmem:[#allocation2 + $0x48] sm:$0xff] %vm273_vm0, %v3849_v20  ;;  %v3847_v31 = vpop.permute.xlu0 %3846 }
 0x6a7   : > { %3886 = vst.msk [vmem:[#allocation2 + $0x40] sm:$0xff] %vm273_vm0, %v3847_v31  ;;  %4252 = vrot.lane.b32.xlu1 %v8566_v53, %s6703_s14 }
 0x6a8   : > { %4250 = vrot.lane.b32.xlu0 %v8568_v47, %s6703_s14 }
 0x6a9   : > { %v3853_v21 = vpop.permute.xlu1 %3852 }
 0x6aa   : > { %3889 = vst.msk [vmem:[#allocation2 + $0x58] sm:$0xff] %vm273_vm0, %v3853_v21  ;;  %v3851_v9 = vpop.permute.xlu0 %3850 }
 0x6ab   : > { %3888 = vst.msk [vmem:[#allocation2 + $0x50] sm:$0xff] %vm273_vm0, %v3851_v9  ;;  %4256 = vrot.lane.b32.xlu1 %v8574_v48, %s6703_s14 }
 0x6ac   : > { %4254 = vrot.lane.b32.xlu0 %v8576_v52, %s6703_s14 }
 0x6ad   : > { %v3857_v10 = vpop.permute.xlu1 %3856 }
 0x6ae   : > { %3891 = vst.msk [vmem:[#allocation2 + $0x68] sm:$0xff] %vm273_vm0, %v3857_v10  ;;  %v3855_v11 = vpop.permute.xlu0 %3854 }
 0x6af   : > { %3890 = vst.msk [vmem:[#allocation2 + $0x60] sm:$0xff] %vm273_vm0, %v3855_v11  ;;  %4260 = vrot.lane.b32.xlu1 %v8582_v17, %s6703_s14 }
 0x6b0   : > { %4258 = vrot.lane.b32.xlu0 %v8584_v57, %s6703_s14 }
 0x6b1   : > { %v3861_v12 = vpop.permute.xlu1 %3860 }
 0x6b2   : > { %3893 = vst.msk [vmem:[#allocation2 + $0x78] sm:$0xff] %vm273_vm0, %v3861_v12  ;;  %v3859_v13 = vpop.permute.xlu0 %3858 }
 0x6b3   : > { %3892 = vst.msk [vmem:[#allocation2 + $0x70] sm:$0xff] %vm273_vm0, %v3859_v13  ;;  %4264 = vrot.lane.b32.xlu1 %v8590_v58, %s6703_s14 }
 0x6b4   : > { %4262 = vrot.lane.b32.xlu0 %v8592_v19, %s6703_s14 }
 0x6b5   : > { %v3929_v40 = vpop.permute.xlu1 %3928 }
 0x6b6   : > { %3975 = vst.msk [vmem:[#allocation2 + $0x8] sm:$0xff] %vm394_vm2, %v3929_v40  ;;  %v3927_v6 = vpop.permute.xlu0 %3926  ;;  %v4970_v40 = vld [vmem:[#allocation3 + $0x3a] sm:$0xff] }
 0x6b7   : > { %3974 = vst.msk [vmem:[#allocation2] sm:$0xff] %vm394_vm2, %v3927_v6  ;;  %4268 = vrot.lane.b32.xlu1 %v8598_v22, %s6703_s14 }
 0x6b8   : > { %4266 = vrot.lane.b32.xlu0 %v8600_v61, %s6703_s14 }
 0x6b9   : > { %v3933_v7 = vpop.permute.xlu1 %3932 }
 0x6ba   : > { %3977 = vst.msk [vmem:[#allocation2 + $0x18] sm:$0xff] %vm394_vm2, %v3933_v7  ;;  %v3931_v36 = vpop.permute.xlu0 %3930 }
 0x6bb   : > { %3976 = vst.msk [vmem:[#allocation2 + $0x10] sm:$0xff] %vm394_vm2, %v3931_v36  ;;  %4272 = vrot.lane.b32.xlu1 %v8606_v4, %s6703_s14 }
 0x6bc   : > { %4270 = vrot.lane.b32.xlu0 %v8608_v41, %s6703_s14 }
 0x6bd   : > { %v3937_v44 = vpop.permute.xlu1 %3936 }
 0x6be   : > { %3979 = vst.msk [vmem:[#allocation2 + $0x28] sm:$0xff] %vm394_vm2, %v3937_v44  ;;  %v3935_v45 = vpop.permute.xlu0 %3934 }
 0x6bf   : > { %3978 = vst.msk [vmem:[#allocation2 + $0x20] sm:$0xff] %vm394_vm2, %v3935_v45  ;;  %4343 = vrot.lane.b32.xlu1 %v8504_v2, %s6707_s19 }
 0x6c0   : > { %4274 = vrot.lane.b32.xlu0 %v8616_v42, %s6703_s14  ;;  %v4619_v42 = vld [vmem:[%s9562_s3 + $0x20] sm:$0xf] }
 0x6c1   : > { %v3941_v49 = vpop.permute.xlu1 %3940  ;;  %6502 = vmatprep.subr.msk.mxu0 %vm1361_vm1, %v4619_v42 }
 0x6c2   : > { %3981 = vst.msk [vmem:[#allocation2 + $0x38] sm:$0xff] %vm394_vm2, %v3941_v49  ;;  %v3939_v23 = vpop.permute.xlu0 %3938  ;;  %6503 = vmatpush3.msk.msra.mxu0 %vm1361_vm1, %v4619_v42  ;;  %v8972_v49 = vld [vmem:[#allocation3 + $0x4a] sm:$0xff] }
 0x6c3   : > { %3980 = vst.msk [vmem:[#allocation2 + $0x30] sm:$0xff] %vm394_vm2, %v3939_v23  ;;  %4439 = vrot.lane.b32.xlu1 %v8568_v47, %s6709_s30 }
 0x6c4   : > { %4345 = vrot.lane.b32.xlu0 %v8502_v16, %s6707_s19 }
 0x6c5   : > { %v3945_v25 = vpop.permute.xlu1 %3944 }
 0x6c6   : > { %3983 = vst.msk [vmem:[#allocation2 + $0x48] sm:$0xff] %vm394_vm2, %v3945_v25  ;;  %v3943_v26 = vpop.permute.xlu0 %3942 }
 0x6c7   : > { %3982 = vst.msk [vmem:[#allocation2 + $0x40] sm:$0xff] %vm394_vm2, %v3943_v26  ;;  %4535 = vrot.lane.b32.xlu1 %v8568_v47, %s6709_s30 }
 0x6c8   : > { %4441 = vrot.lane.b32.xlu0 %v8566_v53, %s6709_s30 }
 0x6c9   : > { %v3949_v29 = vpop.permute.xlu1 %3948 }
 0x6ca   : > { %3985 = vst.msk [vmem:[#allocation2 + $0x58] sm:$0xff] %vm394_vm2, %v3949_v29  ;;  %v3947_v30 = vpop.permute.xlu0 %3946  ;;  %v8991_v29 = vld [vmem:[#allocation3 + $0x52] sm:$0xff] }
 0x6cb   : > { %3984 = vst.msk [vmem:[#allocation2 + $0x50] sm:$0xff] %vm394_vm2, %v3947_v30  ;;  %4347 = vrot.lane.b32.xlu1 %v8512_v3, %s6707_s19 }
 0x6cc   : > { %4537 = vrot.lane.b32.xlu0 %v8566_v53, %s6709_s30 }
 0x6cd   : > { %v3953_v54 = vpop.permute.xlu1 %3952 }
 0x6ce   : > { %3987 = vst.msk [vmem:[#allocation2 + $0x68] sm:$0xff] %vm394_vm2, %v3953_v54  ;;  %v3951_v56 = vpop.permute.xlu0 %3950 }
 0x6cf   : > { %3986 = vst.msk [vmem:[#allocation2 + $0x60] sm:$0xff] %vm394_vm2, %v3951_v56  ;;  %4443 = vrot.lane.b32.xlu1 %v8576_v52, %s6709_s30 }
 0x6d0   : > { %4349 = vrot.lane.b32.xlu0 %v8510_v18, %s6707_s19 }
 0x6d1   : > { %v3957_v59 = vpop.permute.xlu1 %3956 }
 0x6d2   : > { %3989 = vst.msk [vmem:[#allocation2 + $0x78] sm:$0xff] %vm394_vm2, %v3957_v59  ;;  %v3955_v60 = vpop.permute.xlu0 %3954 }
 0x6d3   : > { %3988 = vst.msk [vmem:[#allocation2 + $0x70] sm:$0xff] %vm394_vm2, %v3955_v60  ;;  %4539 = vrot.lane.b32.xlu1 %v8576_v52, %s6709_s30 }
 0x6d4   : > { %4445 = vrot.lane.b32.xlu0 %v8574_v48, %s6709_s30 }
 0x6d5   : > { %v4025_v39 = vpop.permute.xlu1 %4024 }
 0x6d6   : > { %4071 = vst.msk [vmem:[#allocation2 + $0x8] sm:$0xff] %vm515_vm3, %v4025_v39  ;;  %v4023_v63 = vpop.permute.xlu0 %4022 }
 0x6d7   : > { %4070 = vst.msk [vmem:[#allocation2] sm:$0xff] %vm515_vm3, %v4023_v63  ;;  %4351 = vrot.lane.b32.xlu1 %v8520_v32, %s6707_s19  ;;  %v4903_v63 = vld [vmem:[#allocation3 + $0x19] sm:$0xff] }
 0x6d8   : > { %4103 = vst.msk [vmem:[#allocation2 + $0x8] sm:$0xff] %vm639_vm4, %v8494_v14  ;;  %4541 = vrot.lane.b32.xlu0 %v8574_v48, %s6709_s30  ;;  %4102 = vst.msk [vmem:[#allocation2] sm:$0xff] %vm639_vm4, %v8496_v15 }
 0x6d9   : > { %v4029_v1 = vpop.permute.xlu1 %4028 }
 0x6da   : > { %4073 = vst.msk [vmem:[#allocation2 + $0x18] sm:$0xff] %vm515_vm3, %v4029_v1  ;;  %v4027_v20 = vpop.permute.xlu0 %4026 }
 0x6db   : > { %4072 = vst.msk [vmem:[#allocation2 + $0x10] sm:$0xff] %vm515_vm3, %v4027_v20  ;;  %4447 = vrot.lane.b32.xlu1 %v8584_v57, %s6709_s30 }
 0x6dc   : > { %4105 = vst.msk [vmem:[#allocation2 + $0x18] sm:$0xff] %vm639_vm4, %v8502_v16  ;;  %4353 = vrot.lane.b32.xlu0 %v8518_v5, %s6707_s19  ;;  %4104 = vst.msk [vmem:[#allocation2 + $0x10] sm:$0xff] %vm639_vm4, %v8504_v2 }
 0x6dd   : > { %v4033_v14 = vpop.permute.xlu1 %4032 }
 0x6de   : > { %4075 = vst.msk [vmem:[#allocation2 + $0x28] sm:$0xff] %vm515_vm3, %v4033_v14  ;;  %v4031_v15 = vpop.permute.xlu0 %4030 }
 0x6df   : > { %4074 = vst.msk [vmem:[#allocation2 + $0x20] sm:$0xff] %vm515_vm3, %v4031_v15  ;;  %4543 = vrot.lane.b32.xlu1 %v8584_v57, %s6709_s30 }
 0x6e0   : > { %4107 = vst.msk [vmem:[#allocation2 + $0x28] sm:$0xff] %vm639_vm4, %v8510_v18  ;;  %4449 = vrot.lane.b32.xlu0 %v8582_v17, %s6709_s30  ;;  %4106 = vst.msk [vmem:[#allocation2 + $0x20] sm:$0xff] %vm639_vm4, %v8512_v3  ;;  %v4967_v3 = vld [vmem:[#allocation3 + $0x1a] sm:$0xff] }
 0x6e1   : > { %v4037_v16 = vpop.permute.xlu1 %4036 }
 0x6e2   : > { %4077 = vst.msk [vmem:[#allocation2 + $0x38] sm:$0xff] %vm515_vm3, %v4037_v16  ;;  %v4035_v2 = vpop.permute.xlu0 %4034 }
 0x6e3   : > { %4076 = vst.msk [vmem:[#allocation2 + $0x30] sm:$0xff] %vm515_vm3, %v4035_v2  ;;  %4355 = vrot.lane.b32.xlu1 %v8528_v34, %s6707_s19 }
 0x6e4   : > { %4109 = vst.msk [vmem:[#allocation2 + $0x38] sm:$0xff] %vm639_vm4, %v8518_v5  ;;  %4545 = vrot.lane.b32.xlu0 %v8582_v17, %s6709_s30  ;;  %4108 = vst.msk [vmem:[#allocation2 + $0x30] sm:$0xff] %vm639_vm4, %v8520_v32  ;;  %v4968_v5 = vld [vmem:[#allocation3 + $0x22] sm:$0xff] }
 0x6e5   : > { %v4041_v18 = vpop.permute.xlu1 %4040 }
 0x6e6   : > { %4079 = vst.msk [vmem:[#allocation2 + $0x48] sm:$0xff] %vm515_vm3, %v4041_v18  ;;  %v4039_v57 = vpop.permute.xlu0 %4038 }
 0x6e7   : > { %4078 = vst.msk [vmem:[#allocation2 + $0x40] sm:$0xff] %vm515_vm3, %v4039_v57  ;;  %4357 = vrot.lane.b32.xlu1 %v8526_v8, %s6707_s19 }
 0x6e8   : > { %4111 = vst.msk [vmem:[#allocation2 + $0x48] sm:$0xff] %vm639_vm4, %v8526_v8  ;;  %4999 = vrot.lane.b32.xlu0 %v4967_v3, %s6703_s14  ;;  %4110 = vst.msk [vmem:[#allocation2 + $0x40] sm:$0xff] %vm639_vm4, %v8528_v34 }
 0x6e9   : > { %v4045_v32 = vpop.permute.xlu1 %4044 }
 0x6ea   : > { %4081 = vst.msk [vmem:[#allocation2 + $0x58] sm:$0xff] %vm515_vm3, %v4045_v32  ;;  %v4043_v17 = vpop.permute.xlu0 %4042 }
 0x6eb   : > { %4080 = vst.msk [vmem:[#allocation2 + $0x50] sm:$0xff] %vm515_vm3, %v4043_v17  ;;  %5001 = vrot.lane.b32.xlu1 %v4968_v5, %s6703_s14  ;;  %v9051_v17 = vld [vmem:[#allocation3 + $0x61] sm:$0xff] }
 0x6ec   : > { %4113 = vst.msk [vmem:[#allocation2 + $0x58] sm:$0xff] %vm639_vm4, %v8534_v43  ;;  %4451 = vrot.lane.b32.xlu0 %v8592_v19, %s6709_s30  ;;  %4112 = vst.msk [vmem:[#allocation2 + $0x50] sm:$0xff] %vm639_vm4, %v8536_v46 }
 0x6ed   : > { %v4049_v8 = vpop.permute.xlu1 %4048 }
 0x6ee   : > { %4083 = vst.msk [vmem:[#allocation2 + $0x68] sm:$0xff] %vm515_vm3, %v4049_v8  ;;  %v4047_v34 = vpop.permute.xlu0 %4046  ;;  %v4906_v8 = vld [vmem:[#allocation3 + $0x39] sm:$0xff] }
 0x6ef   : > { %4082 = vst.msk [vmem:[#allocation2 + $0x60] sm:$0xff] %vm515_vm3, %v4047_v34  ;;  %4453 = vrot.lane.b32.xlu1 %v8590_v58, %s6709_s30 }
 0x6f0   : > { %4115 = vst.msk [vmem:[#allocation2 + $0x68] sm:$0xff] %vm639_vm4, %v8542_v50  ;;  %5095 = vrot.lane.b32.xlu0 %v8560_v51, %s6704_s15  ;;  %4114 = vst.msk [vmem:[#allocation2 + $0x60] sm:$0xff] %vm639_vm4, %v8544_v24 }
 0x6f1   : > { %v4053_v31 = vpop.permute.xlu1 %4052 }
 0x6f2   : > { %4085 = vst.msk [vmem:[#allocation2 + $0x78] sm:$0xff] %vm515_vm3, %v4053_v31  ;;  %v4051_v21 = vpop.permute.xlu0 %4050 }
 0x6f3   : > { %4084 = vst.msk [vmem:[#allocation2 + $0x70] sm:$0xff] %vm515_vm3, %v4051_v21  ;;  %5097 = vrot.lane.b32.xlu1 %v8558_v28, %s6704_s15 }
 0x6f4   : > { %4117 = vst.msk [vmem:[#allocation2 + $0x78] sm:$0xff] %vm639_vm4, %v8550_v55  ;;  %4547 = vrot.lane.b32.xlu0 %v8592_v19, %s6709_s30  ;;  %4116 = vst.msk [vmem:[#allocation2 + $0x70] sm:$0xff] %vm639_vm4, %v8552_v27  ;;  %v8908_v27 = vld [vmem:[#allocation3 + $0x32] sm:$0xff] }
 0x6f5   : > { %v4153_v9 = vpop.permute.xlu1 %4152 }
 0x6f6   : > { %4199 = vst.msk [vmem:[#allocation2 + $0x8] sm:$0xff] %vm760_vm5, %v4153_v9  ;;  %v4151_v10 = vpop.permute.xlu0 %4150  ;;  %v9061_v9 = vld [vmem:[#allocation3 + $0xc1] sm:$0xff] }
 0x6f7   : > { %4198 = vst.msk [vmem:[#allocation2] sm:$0xff] %vm760_vm5, %v4151_v10  ;;  %4549 = vrot.lane.b32.xlu1 %v8590_v58, %s6709_s30 }
 0x6f8   : > { %5191 = vrot.lane.b32.xlu0 %v8560_v51, %s6704_s15 }
 0x6f9   : > { %v4157_v11 = vpop.permute.xlu1 %4156 }
 0x6fa   : > { %4201 = vst.msk [vmem:[#allocation2 + $0x18] sm:$0xff] %vm760_vm5, %v4157_v11  ;;  %v4155_v55 = vpop.permute.xlu0 %4154  ;;  %v4324_v11 = vld [vmem:[#allocation3 + $0xc8] sm:$0xff] }
 0x6fb   : > { %4200 = vst.msk [vmem:[#allocation2 + $0x10] sm:$0xff] %vm760_vm5, %v4155_v55  ;;  %5287 = vrot.lane.b32.xlu1 %v4967_v3, %s6705_s16  ;;  %v4905_v3 = vld [vmem:[#allocation3 + $0x31] sm:$0xff] }
 0x6fc   : > { %5193 = vrot.lane.b32.xlu0 %v8558_v28, %s6704_s15 }
 0x6fd   : > { %v4161_v19 = vpop.permute.xlu1 %4160 }
 0x6fe   : > { %4203 = vst.msk [vmem:[#allocation2 + $0x28] sm:$0xff] %vm760_vm5, %v4161_v19  ;;  %v4159_v58 = vpop.permute.xlu0 %4158 }
 0x6ff   : > { %4202 = vst.msk [vmem:[#allocation2 + $0x20] sm:$0xff] %vm760_vm5, %v4159_v58  ;;  %5003 = vrot.lane.b32.xlu1 %v8908_v27, %s6703_s14  ;;  %v9069_v58 = vld [vmem:[#allocation3 + $0x6a] sm:$0xff] }
 0x700   : > { %4359 = vrot.lane.b32.xlu0 %v8536_v46, %s6707_s19 }
 0x701   : > { %v4165_v51 = vpop.permute.xlu1 %4164 }
 0x702   : > { %4205 = vst.msk [vmem:[#allocation2 + $0x38] sm:$0xff] %vm760_vm5, %v4165_v51  ;;  %v4163_v12 = vpop.permute.xlu0 %4162 }
 0x703   : > { %4204 = vst.msk [vmem:[#allocation2 + $0x30] sm:$0xff] %vm760_vm5, %v4163_v12  ;;  %5383 = vrot.lane.b32.xlu1 %v8568_v47, %s6708_s25 }
 0x704   : > { %5289 = vrot.lane.b32.xlu0 %v4968_v5, %s6705_s16  ;;  %v4323_v5 = vld [vmem:[#allocation3 + $0xc0] sm:$0xff] }
 0x705   : > { %v4169_v28 = vpop.permute.xlu1 %4168 }
 0x706   : > { %4207 = vst.msk [vmem:[#allocation2 + $0x48] sm:$0xff] %vm760_vm5, %v4169_v28  ;;  %v4167_v13 = vpop.permute.xlu0 %4166  ;;  %v4908_v28 = vld [vmem:[#allocation3 + $0x51] sm:$0xff] }
 0x707   : > { %4206 = vst.msk [vmem:[#allocation2 + $0x40] sm:$0xff] %vm760_vm5, %v4167_v13  ;;  %4455 = vrot.lane.b32.xlu1 %v8600_v61, %s6709_s30 }
 0x708   : > { %4361 = vrot.lane.b32.xlu0 %v8534_v43, %s6707_s19 }
 0x709   : > { %v4173_v46 = vpop.permute.xlu1 %4172 }
 0x70a   : > { %4209 = vst.msk [vmem:[#allocation2 + $0x58] sm:$0xff] %vm760_vm5, %v4173_v46  ;;  %v4171_v6 = vpop.permute.xlu0 %4170  ;;  %v5356_v46 = vld [vmem:[#allocation3 + $0x69] sm:$0xff] }
 0x70b   : > { %4208 = vst.msk [vmem:[#allocation2 + $0x50] sm:$0xff] %vm760_vm5, %v4171_v6  ;;  %5099 = vrot.lane.b32.xlu1 %v8568_v47, %s6704_s15 }
 0x70c   : > { %5005 = vrot.lane.b32.xlu0 %v4970_v40, %s6703_s14 }
 0x70d   : > { %v4177_v7 = vpop.permute.xlu1 %4176 }
 0x70e   : > { %4211 = vst.msk [vmem:[#allocation2 + $0x68] sm:$0xff] %vm760_vm5, %v4177_v7  ;;  %v4175_v36 = vpop.permute.xlu0 %4174 }
 0x70f   : > { %4210 = vst.msk [vmem:[#allocation2 + $0x60] sm:$0xff] %vm760_vm5, %v4175_v36  ;;  %5479 = vrot.lane.b32.xlu1 %v8568_v47, %s6708_s25  ;;  %v9088_v36 = vld [vmem:[#allocation3 + $0xc9] sm:$0xff] }
 0x710   : > { %5385 = vrot.lane.b32.xlu0 %v8566_v53, %s6708_s25 }
 0x711   : > { %v4181_v43 = vpop.permute.xlu1 %4180 }
 0x712   : > { %4213 = vst.msk [vmem:[#allocation2 + $0x78] sm:$0xff] %vm760_vm5, %v4181_v43  ;;  %v4179_v38 = vpop.permute.xlu0 %4178 }
 0x713   : > { %4212 = vst.msk [vmem:[#allocation2 + $0x70] sm:$0xff] %vm760_vm5, %v4179_v38  ;;  %4551 = vrot.lane.b32.xlu1 %v8600_v61, %s6709_s30  ;;  %v5659_v61 = vld [vmem:[%s9562_s3 + $0x20] sm:$0xf] }
 0x714   : > { %4457 = vrot.lane.b32.xlu0 %v8598_v22, %s6709_s30  ;;  %6536 = vmatprep.subr.msk.mxu1 %vm1361_vm1, %v5659_v61 }
 0x715   : > { %v4249_v62 = vpop.permute.xlu1 %4248  ;;  %6537 = vmatpush3.msk.msra.mxu1 %vm1361_vm1, %v5659_v61 }
 0x716   : > { %4295 = vst.msk [vmem:[#allocation2 + $0x8] sm:$0xff] %vm881_vm6, %v4249_v62  ;;  %v4247_v0 = vpop.permute.xlu0 %4246 }
 0x717   : > { %4294 = vst.msk [vmem:[#allocation2] sm:$0xff] %vm881_vm6, %v4247_v0  ;;  %5195 = vrot.lane.b32.xlu1 %v8568_v47, %s6704_s15 }
 0x718   : > { %5101 = vrot.lane.b32.xlu0 %v8566_v53, %s6704_s15 }
 0x719   : > { %v4253_v44 = vpop.permute.xlu1 %4252 }
 0x71a   : > { %4297 = vst.msk [vmem:[#allocation2 + $0x18] sm:$0xff] %vm881_vm6, %v4253_v44  ;;  %v4251_v45 = vpop.permute.xlu0 %4250 }
 0x71b   : > { %4296 = vst.msk [vmem:[#allocation2 + $0x10] sm:$0xff] %vm881_vm6, %v4251_v45  ;;  %5575 = vrot.lane.b32.xlu1 %v8908_v27, %s6710_s11 }
 0x71c   : > { %5481 = vrot.lane.b32.xlu0 %v8566_v53, %s6708_s25 }
 0x71d   : > { %v4257_v47 = vpop.permute.xlu1 %4256 }
 0x71e   : > { %4299 = vst.msk [vmem:[#allocation2 + $0x28] sm:$0xff] %vm881_vm6, %v4257_v47  ;;  %v4255_v33 = vpop.permute.xlu0 %4254 }
 0x71f   : > { %4298 = vst.msk [vmem:[#allocation2 + $0x20] sm:$0xff] %vm881_vm6, %v4255_v33  ;;  %5197 = vrot.lane.b32.xlu1 %v8566_v53, %s6704_s15 }
 0x720   : > { %4553 = vrot.lane.b32.xlu0 %v8598_v22, %s6709_s30 }
 0x721   : > { %v4261_v35 = vpop.permute.xlu1 %4260 }
 0x722   : > { %4301 = vst.msk [vmem:[#allocation2 + $0x38] sm:$0xff] %vm881_vm6, %v4261_v35  ;;  %v4259_v37 = vpop.permute.xlu0 %4258 }
 0x723   : > { %4300 = vst.msk [vmem:[#allocation2 + $0x30] sm:$0xff] %vm881_vm6, %v4259_v37  ;;  %5577 = vrot.lane.b32.xlu1 %v4970_v40, %s6710_s11 }
 0x724   : > { %5291 = vrot.lane.b32.xlu0 %v8908_v27, %s6705_s16  ;;  %v4907_v27 = vld [vmem:[#allocation3 + $0x49] sm:$0xff] }
 0x725   : > { %v4265_v23 = vpop.permute.xlu1 %4264 }
 0x726   : > { %4303 = vst.msk [vmem:[#allocation2 + $0x48] sm:$0xff] %vm881_vm6, %v4265_v23  ;;  %v4263_v53 = vpop.permute.xlu0 %4262 }
 0x727   : > { %4302 = vst.msk [vmem:[#allocation2 + $0x40] sm:$0xff] %vm881_vm6, %v4263_v53  ;;  %5007 = vrot.lane.b32.xlu1 %v8972_v49, %s6703_s14 }
 0x728   : > { %4363 = vrot.lane.b32.xlu0 %v8544_v24, %s6707_s19 }
 0x729   : > { %v4269_v22 = vpop.permute.xlu1 %4268 }
 0x72a   : > { %4305 = vst.msk [vmem:[#allocation2 + $0x58] sm:$0xff] %vm881_vm6, %v4269_v22  ;;  %v4267_v42 = vpop.permute.xlu0 %4266 }
 0x72b   : > { %4304 = vst.msk [vmem:[#allocation2 + $0x50] sm:$0xff] %vm881_vm6, %v4267_v42  ;;  %5387 = vrot.lane.b32.xlu1 %v8576_v52, %s6708_s25  ;;  %v9130_v42 = vld [vmem:[#allocation3 + $0x7a] sm:$0xff] }
 0x72c   : > { %5293 = vrot.lane.b32.xlu0 %v4970_v40, %s6705_s16 }
 0x72d   : > { %v4273_v25 = vpop.permute.xlu1 %4272 }
 0x72e   : > { %4307 = vst.msk [vmem:[#allocation2 + $0x68] sm:$0xff] %vm881_vm6, %v4273_v25  ;;  %v4271_v26 = vpop.permute.xlu0 %4270 }
 0x72f   : > { %4306 = vst.msk [vmem:[#allocation2 + $0x60] sm:$0xff] %vm881_vm6, %v4271_v26  ;;  %4459 = vrot.lane.b32.xlu1 %v8608_v41, %s6709_s30  ;;  %v4326_v26 = vld [vmem:[#allocation3 + $0xe0] sm:$0xff] }
 0x730   : > { %4365 = vrot.lane.b32.xlu0 %v8542_v50, %s6707_s19 }
 0x731   : > { %v4344_v24 = vpop.permute.xlu1 %4343 }
 0x732   : > { %4391 = vst.msk [vmem:[#allocation2] sm:$0xff] %vm1005_vm7, %v4344_v24  ;;  %v4275_v30 = vpop.permute.xlu0 %4274 }
 0x733   : > { %4308 = vst.msk [vmem:[#allocation2 + $0x70] sm:$0xff] %vm881_vm6, %v4275_v30  ;;  %5103 = vrot.lane.b32.xlu1 %v8576_v52, %s6704_s15 }
 0x734   : > { %5009 = vrot.lane.b32.xlu0 %v8991_v29, %s6703_s14 }
 0x735   : > { %v4440_v54 = vpop.permute.xlu1 %4439 }
 0x736   : > { %4487 = vst.msk [vmem:[#allocation2] sm:$0xff] %vm1126_vm8, %v4440_v54  ;;  %v4346_v56 = vpop.permute.xlu0 %4345  ;;  %v9142_v54 = vld [vmem:[#allocation3 + $0x82] sm:$0xff] }
 0x737   : > { %4392 = vst.msk [vmem:[#allocation2 + $0x8] sm:$0xff] %vm1005_vm7, %v4346_v56  ;;  %5483 = vrot.lane.b32.xlu1 %v8576_v52, %s6708_s25 }
 0x738   : > { %5389 = vrot.lane.b32.xlu0 %v8574_v48, %s6708_s25 }
 0x739   : > { %v4536_v50 = vpop.permute.xlu1 %4535 }
 0x73a   : > { %4583 = vst.msk [vmem:[#allocation2] sm:$0xff] %vm1247_vm9, %v4536_v50  ;;  %v4442_v59 = vpop.permute.xlu0 %4441  ;;  %v9144_v50 = vld [vmem:[#allocation3 + $0xd9] sm:$0xff] }
 0x73b   : > { %4488 = vst.msk [vmem:[#allocation2 + $0x8] sm:$0xff] %vm1126_vm8, %v4442_v59  ;;  %4555 = vrot.lane.b32.xlu1 %v8608_v41, %s6709_s30 }
 0x73c   : > { %4461 = vrot.lane.b32.xlu0 %v8606_v4, %s6709_s30 }
 0x73d   : > { %v4348_v60 = vpop.permute.xlu1 %4347 }
 0x73e   : > { %4393 = vst.msk [vmem:[#allocation2 + $0x10] sm:$0xff] %vm1005_vm7, %v4348_v60  ;;  %v4538_v39 = vpop.permute.xlu0 %4537  ;;  %v5358_v60 = vld [vmem:[#allocation3 + $0x81] sm:$0xff] }
 0x73f   : > { %4584 = vst.msk [vmem:[#allocation2 + $0x8] sm:$0xff] %vm1247_vm9, %v4538_v39  ;;  %5199 = vrot.lane.b32.xlu1 %v8576_v52, %s6704_s15  ;;  %v4904_v52 = vld [vmem:[#allocation3 + $0x21] sm:$0xff] }
 0x740   : > { %5105 = vrot.lane.b32.xlu0 %v8574_v48, %s6704_s15 }
 0x741   : > { %v4444_v1 = vpop.permute.xlu1 %4443  ;;  %v4599_v20 = vld [vmem:[#allocation2] sm:$0xff] }
 0x742   : > { %4489 = vst.msk [vmem:[#allocation2 + $0x10] sm:$0xff] %vm1126_vm8, %v4444_v1  ;;  %v4350_v41 = vpop.permute.xlu0 %4349  ;;  %6504 = vmatprep.mubr.msk.f32.mxu0 %vm1300_vm10, %v4599_v20  ;;  %v9156_v1 = vld [vmem:[#allocation3 + $0xe1] sm:$0xff] }
 0x743   : > { %4919 = vst.msk [vmem:[#allocation2] sm:$0xff] %vm273_vm0, %v4903_v63  ;;  %5579 = vrot.lane.b32.xlu1 %v8972_v49, %s6710_s11 }
 0x744   : > { %4394 = vst.msk [vmem:[#allocation2 + $0x18] sm:$0xff] %vm1005_vm7, %v4350_v41  ;;  %5485 = vrot.lane.b32.xlu0 %v8574_v48, %s6708_s25 }
 0x745   : > { %4951 = vst.msk [vmem:[#allocation2] sm:$0xff] %vm394_vm2, %v4903_v63  ;;  %v4540_v14 = vpop.permute.xlu1 %4539 }
 0x746   : > { %4585 = vst.msk [vmem:[#allocation2 + $0x10] sm:$0xff] %vm1247_vm9, %v4540_v14  ;;  %v4446_v15 = vpop.permute.xlu0 %4445  ;;  %v4600_v16 = vld [vmem:[#allocation2 + $0x8] sm:$0xff] }
 0x747   : > { %4490 = vst.msk [vmem:[#allocation2 + $0x18] sm:$0xff] %vm1126_vm8, %v4446_v15  ;;  %5201 = vrot.lane.b32.xlu1 %v8574_v48, %s6704_s15  ;;  %6505 = vmatmul.mubr.msk.f32.vlgmr.msra.gmra.mrb[26].mxu0 %vm1300_vm10, %v4600_v16  ;;  %v9041_v48 = vld [vmem:[#allocation3 + $0x62] sm:$0xff] }
 0x748   : > { %4920 = vst.msk [vmem:[#allocation2 + $0x8] sm:$0xff] %vm273_vm0, %v4904_v52  ;;  %4557 = vrot.lane.b32.xlu0 %v8606_v4, %s6709_s30 }
 0x749   : > { %4952 = vst.msk [vmem:[#allocation2 + $0x8] sm:$0xff] %vm394_vm2, %v4904_v52  ;;  %v4352_v2 = vpop.permute.xlu1 %4351 }
 0x74a   : > { %4395 = vst.msk [vmem:[#allocation2 + $0x20] sm:$0xff] %vm1005_vm7, %v4352_v2  ;;  %v4542_v18 = vpop.permute.xlu0 %4541 }
 0x74b   : > { %4586 = vst.msk [vmem:[#allocation2 + $0x18] sm:$0xff] %vm1247_vm9, %v4542_v18  ;;  %5581 = vrot.lane.b32.xlu1 %v8991_v29, %s6710_s11 }
 0x74c   : > { %5295 = vrot.lane.b32.xlu0 %v8972_v49, %s6705_s16  ;;  %v4325_v49 = vld [vmem:[#allocation3 + $0xd8] sm:$0xff] }
 0x74d   : > { %v4448_v57 = vpop.permute.xlu1 %4447  ;;  %v4601_v4 = vld [vmem:[#allocation2 + $0x10] sm:$0xff] }
 0x74e   : > { %4491 = vst.msk [vmem:[#allocation2 + $0x20] sm:$0xff] %vm1126_vm8, %v4448_v57  ;;  %v4354_v32 = vpop.permute.xlu0 %4353  ;;  %6507 = vmatprep.mubr.msk.f32.mxu0 %vm1300_vm10, %v4601_v4 }
 0x74f   : > { %4921 = vst.msk [vmem:[#allocation2 + $0x10] sm:$0xff] %vm273_vm0, %v4905_v3  ;;  %5011 = vrot.lane.b32.xlu1 %v9041_v48, %s6703_s14 }
 0x750   : > { %4396 = vst.msk [vmem:[#allocation2 + $0x28] sm:$0xff] %vm1005_vm7, %v4354_v32  ;;  %4367 = vrot.lane.b32.xlu0 %v4323_v5, %s6707_s19  ;;  %v4977_v32 = vld [vmem:[#allocation3 + $0x92] sm:$0xff] }
 0x751   : > { %4953 = vst.msk [vmem:[#allocation2 + $0x10] sm:$0xff] %vm394_vm2, %v4905_v3  ;;  %v4544_v34 = vpop.permute.xlu1 %4543 }
 0x752   : > { %4587 = vst.msk [vmem:[#allocation2 + $0x20] sm:$0xff] %vm1247_vm9, %v4544_v34  ;;  %v4450_v31 = vpop.permute.xlu0 %4449  ;;  %v4602_v21 = vld [vmem:[#allocation2 + $0x18] sm:$0xff] }
 0x753   : > { %4492 = vst.msk [vmem:[#allocation2 + $0x28] sm:$0xff] %vm1126_vm8, %v4450_v31  ;;  %5391 = vrot.lane.b32.xlu1 %v9051_v17, %s6708_s25  ;;  %6508 = vmatmul.mubr.msk.f32.gmra.mrb[28].mxu0 %vm1300_vm10, %v4602_v21  ;;  %v5359_v31 = vld [vmem:[#allocation3 + $0x91] sm:$0xff] }
 0x754   : > { %4922 = vst.msk [vmem:[#allocation2 + $0x18] sm:$0xff] %vm273_vm0, %v4906_v8  ;;  %5297 = vrot.lane.b32.xlu0 %v8991_v29, %s6705_s16  ;;  %v5357_v29 = vld [vmem:[#allocation3 + $0x79] sm:$0xff] }
 0x755   : > { %4954 = vst.msk [vmem:[#allocation2 + $0x18] sm:$0xff] %vm394_vm2, %v4906_v8  ;;  %v4356_v10 = vpop.permute.xlu1 %4355 }
 0x756   : > { %4397 = vst.msk [vmem:[#allocation2 + $0x30] sm:$0xff] %vm1005_vm7, %v4356_v10  ;;  %v4546_v55 = vpop.permute.xlu0 %4545 }
 0x757   : > { %4588 = vst.msk [vmem:[#allocation2 + $0x28] sm:$0xff] %vm1247_vm9, %v4546_v55  ;;  %4463 = vrot.lane.b32.xlu1 %v9061_v9, %s6709_s30  ;;  %v4978_v55 = vld [vmem:[#allocation3 + $0x9a] sm:$0xff] }
 0x758   : > { %4369 = vrot.lane.b32.xlu0 %v4324_v11, %s6707_s19 }
 0x759   : > { %v4358_v19 = vpop.permute.xlu1 %4357  ;;  %v4603_v51 = vld [vmem:[#allocation2 + $0x20] sm:$0xff] }
 0x75a   : > { %4398 = vst.msk [vmem:[#allocation2 + $0x38] sm:$0xff] %vm1005_vm7, %v4358_v19  ;;  %v5000_v12 = vpop.permute.xlu0 %4999  ;;  %6510 = vmatprep.mubr.msk.f32.mxu0 %vm1300_vm10, %v4603_v51 }
 0x75b   : > { %4923 = vst.msk [vmem:[#allocation2 + $0x20] sm:$0xff] %vm273_vm0, %v4907_v27  ;;  %5107 = vrot.lane.b32.xlu1 %v9051_v17, %s6704_s15 }
 0x75c   : > { %5047 = vst.msk [vmem:[#allocation2] sm:$0xff] %vm515_vm3, %v5000_v12  ;;  %5013 = vrot.lane.b32.xlu0 %v9069_v58, %s6703_s14 }
 0x75d   : > { %4955 = vst.msk [vmem:[#allocation2 + $0x20] sm:$0xff] %vm394_vm2, %v4907_v27  ;;  %v5002_v13 = vpop.permute.xlu1 %5001 }
 0x75e   : > { %5048 = vst.msk [vmem:[#allocation2 + $0x8] sm:$0xff] %vm515_vm3, %v5002_v13  ;;  %v4452_v40 = vpop.permute.xlu0 %4451  ;;  %v4604_v6 = vld [vmem:[#allocation2 + $0x28] sm:$0xff] }
 0x75f   : > { %4493 = vst.msk [vmem:[#allocation2 + $0x30] sm:$0xff] %vm1126_vm8, %v4452_v40  ;;  %5487 = vrot.lane.b32.xlu1 %v9051_v17, %s6708_s25  ;;  %6511 = vmatmul.mubr.msk.f32.gmra.mrb[30].mxu0 %vm1300_vm10, %v4604_v6 }
 0x760   : > { %4924 = vst.msk [vmem:[#allocation2 + $0x28] sm:$0xff] %vm273_vm0, %v4908_v28  ;;  %5393 = vrot.lane.b32.xlu0 %v5356_v46, %s6708_s25 }
 0x761   : > { %4956 = vst.msk [vmem:[#allocation2 + $0x28] sm:$0xff] %vm394_vm2, %v4908_v28  ;;  %v4454_v7 = vpop.permute.xlu1 %4453 }
 0x762   : > { %4494 = vst.msk [vmem:[#allocation2 + $0x38] sm:$0xff] %vm1126_vm8, %v4454_v7  ;;  %v5096_v43 = vpop.permute.xlu0 %5095 }
 0x763   : > { %5143 = vst.msk [vmem:[#allocation2] sm:$0xff] %vm639_vm4, %v5096_v43  ;;  %4559 = vrot.lane.b32.xlu1 %v9061_v9, %s6709_s30  ;;  %v4979_v43 = vld [vmem:[#allocation3 + $0xaa] sm:$0xff] }
 0x764   : > { %4465 = vrot.lane.b32.xlu0 %v9088_v36, %s6709_s30 }
 0x765   : > { %v5098_v38 = vpop.permute.xlu1 %5097 }
 0x766   : > { %5144 = vst.msk [vmem:[#allocation2 + $0x8] sm:$0xff] %vm639_vm4, %v5098_v38  ;;  %v4548_v62 = vpop.permute.xlu0 %4547 }
 0x767   : > { %4589 = vst.msk [vmem:[#allocation2 + $0x30] sm:$0xff] %vm1247_vm9, %v4548_v62  ;;  %5203 = vrot.lane.b32.xlu1 %v9051_v17, %s6704_s15 }
 0x768   : > { %5109 = vrot.lane.b32.xlu0 %v5356_v46, %s6704_s15 }
 0x769   : > { %v4550_v0 = vpop.permute.xlu1 %4549 }
 0x76a   : > { %4590 = vst.msk [vmem:[#allocation2 + $0x38] sm:$0xff] %vm1247_vm9, %v4550_v0  ;;  %v5192_v44 = vpop.permute.xlu0 %5191  ;;  %v9228_v0 = vld [vmem:[#allocation3 + $0xa9] sm:$0xff] }
 0x76b   : > { %5239 = vst.msk [vmem:[#allocation2] sm:$0xff] %vm760_vm5, %v5192_v44  ;;  %5583 = vrot.lane.b32.xlu1 %v9041_v48, %s6710_s11 }
 0x76c   : > { %5489 = vrot.lane.b32.xlu0 %v5356_v46, %s6708_s25 }
 0x76d   : > { %v5288_v45 = vpop.permute.xlu1 %5287 }
 0x76e   : > { %5335 = vst.msk [vmem:[#allocation2] sm:$0xff] %vm881_vm6, %v5288_v45  ;;  %v5194_v61 = vpop.permute.xlu0 %5193  ;;  %v4605_v47 = vld [vmem:[#allocation2 + $0x30] sm:$0xff] }
 0x76f   : > { %5240 = vst.msk [vmem:[#allocation2 + $0x8] sm:$0xff] %vm760_vm5, %v5194_v61  ;;  %5205 = vrot.lane.b32.xlu1 %v5356_v46, %s6704_s15  ;;  %6513 = vmatprep.mubr.msk.f32.mxu0 %vm1300_vm10, %v4605_v47 }
 0x770   : > { %4925 = vst.msk [vmem:[#allocation2 + $0x30] sm:$0xff] %vm273_vm0, %v9051_v17  ;;  %4561 = vrot.lane.b32.xlu0 %v9088_v36, %s6709_s30 }
 0x771   : > { %4957 = vst.msk [vmem:[#allocation2 + $0x30] sm:$0xff] %vm394_vm2, %v9051_v17  ;;  %v5004_v33 = vpop.permute.xlu1 %5003  ;;  %v4606_v35 = vld [vmem:[#allocation2 + $0x38] sm:$0xff] }
 0x772   : > { %5049 = vst.msk [vmem:[#allocation2 + $0x10] sm:$0xff] %vm515_vm3, %v5004_v33  ;;  %v4360_v37 = vpop.permute.xlu0 %4359  ;;  %6514 = vmatmul.mubr.msk.f32.gmra.mrb[32].mxu0 %vm1300_vm10, %v4606_v35  ;;  %v4980_v33 = vld [vmem:[#allocation3 + $0xb2] sm:$0xff] }
 0x773   : > { %4926 = vst.msk [vmem:[#allocation2 + $0x38] sm:$0xff] %vm273_vm0, %v5356_v46  ;;  %5585 = vrot.lane.b32.xlu1 %v9069_v58, %s6710_s11 }
 0x774   : > { %4399 = vst.msk [vmem:[#allocation2 + $0x40] sm:$0xff] %vm1005_vm7, %v4360_v37  ;;  %5299 = vrot.lane.b32.xlu0 %v9041_v48, %s6705_s16 }
 0x775   : > { %4958 = vst.msk [vmem:[#allocation2 + $0x38] sm:$0xff] %vm394_vm2, %v5356_v46  ;;  %v5384_v23 = vpop.permute.xlu1 %5383 }
 0x776   : > { %5431 = vst.msk [vmem:[#allocation2] sm:$0xff] %vm1005_vm7, %v5384_v23  ;;  %v5290_v53 = vpop.permute.xlu0 %5289 }
 0x777   : > { %5336 = vst.msk [vmem:[#allocation2 + $0x8] sm:$0xff] %vm881_vm6, %v5290_v53  ;;  %4371 = vrot.lane.b32.xlu1 %v4325_v49, %s6707_s19  ;;  %v9244_v53 = vld [vmem:[#allocation3 + $0xb1] sm:$0xff] }
 0x778   : > { %4276 = vrot.lane.b32.xlu0 %v9088_v36, %s6703_s14 }
 0x779   : > { %v4456_v22 = vpop.permute.xlu1 %4455 }
 0x77a   : > { %4495 = vst.msk [vmem:[#allocation2 + $0x40] sm:$0xff] %vm1126_vm8, %v4456_v22  ;;  %v4362_v25 = vpop.permute.xlu0 %4361 }
 0x77b   : > { %4400 = vst.msk [vmem:[#allocation2 + $0x48] sm:$0xff] %vm1005_vm7, %v4362_v25  ;;  %5301 = vrot.lane.b32.xlu1 %v9069_v58, %s6705_s16  ;;  %v5360_v58 = vld [vmem:[#allocation3 + $0x99] sm:$0xff] }
 0x77c   : > { %5015 = vrot.lane.b32.xlu0 %v9130_v42, %s6703_s14 }
 0x77d   : > { %v5100_v24 = vpop.permute.xlu1 %5099 }
 0x77e   : > { %5145 = vst.msk [vmem:[#allocation2 + $0x10] sm:$0xff] %vm639_vm4, %v5100_v24  ;;  %v5006_v30 = vpop.permute.xlu0 %5005 }
 0x77f   : > { %5050 = vst.msk [vmem:[#allocation2 + $0x18] sm:$0xff] %vm515_vm3, %v5006_v30  ;;  %4373 = vrot.lane.b32.xlu1 %v4326_v26, %s6707_s19 }
 0x780   : > { %5395 = vrot.lane.b32.xlu0 %v5357_v29, %s6708_s25 }
 0x781   : > { %v5480_v56 = vpop.permute.xlu1 %5479 }
 0x782   : > { %5527 = vst.msk [vmem:[#allocation2] sm:$0xff] %vm1126_vm8, %v5480_v56  ;;  %v5386_v59 = vpop.permute.xlu0 %5385 }
 0x783   : > { %5432 = vst.msk [vmem:[#allocation2 + $0x8] sm:$0xff] %vm1005_vm7, %v5386_v59  ;;  %5017 = vrot.lane.b32.xlu1 %v9142_v54, %s6703_s14 }
 0x784   : > { %4467 = vrot.lane.b32.xlu0 %v9144_v50, %s6709_s30 }
 0x785   : > { %v4552_v39 = vpop.permute.xlu1 %4551 }
 0x786   : > { %4591 = vst.msk [vmem:[#allocation2 + $0x40] sm:$0xff] %vm1247_vm9, %v4552_v39  ;;  %v4458_v63 = vpop.permute.xlu0 %4457 }
 0x787   : > { %4496 = vst.msk [vmem:[#allocation2 + $0x48] sm:$0xff] %vm1126_vm8, %v4458_v63  ;;  %5397 = vrot.lane.b32.xlu1 %v5358_v60, %s6708_s25 }
 0x788   : > { %5111 = vrot.lane.b32.xlu0 %v5357_v29, %s6704_s15 }
 0x789   : > { %v5196_v20 = vpop.permute.xlu1 %5195 }
 0x78a   : > { %5241 = vst.msk [vmem:[#allocation2 + $0x10] sm:$0xff] %vm760_vm5, %v5196_v20  ;;  %v5102_v41 = vpop.permute.xlu0 %5101  ;;  %v4982_v20 = vld [vmem:[#allocation3 + $0xca] sm:$0xff] }
 0x78b   : > { %5146 = vst.msk [vmem:[#allocation2 + $0x18] sm:$0xff] %vm639_vm4, %v5102_v41  ;;  %4469 = vrot.lane.b32.xlu1 %v9156_v1, %s6709_s30 }
 0x78c   : > { %5491 = vrot.lane.b32.xlu0 %v5357_v29, %s6708_s25 }
 0x78d   : > { %v5576_v52 = vpop.permute.xlu1 %5575  ;;  %v4607_v14 = vld [vmem:[#allocation2 + $0x40] sm:$0xff] }
 0x78e   : > { %5623 = vst.msk [vmem:[#allocation2] sm:$0xff] %vm1247_vm9, %v5576_v52  ;;  %v5482_v15 = vpop.permute.xlu0 %5481  ;;  %6516 = vmatprep.mubr.msk.f32.mxu0 %vm1300_vm10, %v4607_v14 }
 0x78f   : > { %4927 = vst.msk [vmem:[#allocation2 + $0x40] sm:$0xff] %vm273_vm0, %v5357_v29  ;;  %5113 = vrot.lane.b32.xlu1 %v5358_v60, %s6704_s15 }
 0x790   : > { %5528 = vst.msk [vmem:[#allocation2 + $0x8] sm:$0xff] %vm1126_vm8, %v5482_v15  ;;  %4563 = vrot.lane.b32.xlu0 %v9144_v50, %s6709_s30 }
 0x791   : > { %4959 = vst.msk [vmem:[#allocation2 + $0x40] sm:$0xff] %vm394_vm2, %v5357_v29  ;;  %v5198_v16 = vpop.permute.xlu1 %5197 }
 0x792   : > { %5242 = vst.msk [vmem:[#allocation2 + $0x18] sm:$0xff] %vm760_vm5, %v5198_v16  ;;  %v4554_v2 = vpop.permute.xlu0 %4553 }
 0x793   : > { %4592 = vst.msk [vmem:[#allocation2 + $0x48] sm:$0xff] %vm1247_vm9, %v4554_v2  ;;  %5493 = vrot.lane.b32.xlu1 %v5358_v60, %s6708_s25 }
 0x794   : > { %5207 = vrot.lane.b32.xlu0 %v5357_v29, %s6704_s15 }
 0x795   : > { %v5578_v18 = vpop.permute.xlu1 %5577  ;;  %v5639_v3 = vld [vmem:[#allocation2] sm:$0xff] }
 0x796   : > { %5624 = vst.msk [vmem:[#allocation2 + $0x8] sm:$0xff] %vm1247_vm9, %v5578_v18  ;;  %v5292_v48 = vpop.permute.xlu0 %5291  ;;  %6538 = vmatprep.mubr.msk.f32.mxu1 %vm1300_vm10, %v5639_v3 }
 0x797   : > { %5337 = vst.msk [vmem:[#allocation2 + $0x10] sm:$0xff] %vm881_vm6, %v5292_v48  ;;  %4565 = vrot.lane.b32.xlu1 %v9156_v1, %s6709_s30 }
 0x798   : > { %5587 = vrot.lane.b32.xlu0 %v9130_v42, %s6710_s11 }
 0x799   : > { %v5008_v57 = vpop.permute.xlu1 %5007 }
 0x79a   : > { %5051 = vst.msk [vmem:[#allocation2 + $0x20] sm:$0xff] %vm515_vm3, %v5008_v57  ;;  %v4364_v5 = vpop.permute.xlu0 %4363  ;;  %v4608_v4 = vld [vmem:[#allocation2 + $0x48] sm:$0xff] }
 0x79b   : > { %4401 = vst.msk [vmem:[#allocation2 + $0x50] sm:$0xff] %vm1005_vm7, %v4364_v5  ;;  %6517 = vmatmul.mubr.msk.f32.gmra.mrb[34].mxu0 %vm1300_vm10, %v4608_v4  ;;  %5303 = vrot.lane.b32.xlu1 %v9130_v42, %s6705_s16 }
 0x79c   : > { %4928 = vst.msk [vmem:[#allocation2 + $0x48] sm:$0xff] %vm273_vm0, %v5358_v60  ;;  %5209 = vrot.lane.b32.xlu0 %v5358_v60, %s6704_s15 }
 0x79d   : > { %4960 = vst.msk [vmem:[#allocation2 + $0x48] sm:$0xff] %vm394_vm2, %v5358_v60  ;;  %v5388_v17 = vpop.permute.xlu1 %5387  ;;  %v5640_v8 = vld [vmem:[#allocation2 + $0x8] sm:$0xff] }
 0x79e   : > { %5433 = vst.msk [vmem:[#allocation2 + $0x10] sm:$0xff] %vm1005_vm7, %v5388_v17  ;;  %v5294_v34 = vpop.permute.xlu0 %5293  ;;  %6539 = vmatmul.mubr.msk.f32.vlgmr.msra.gmra.mrb[26].mxu1 %vm1300_vm10, %v5640_v8 }
 0x79f   : > { %5338 = vst.msk [vmem:[#allocation2 + $0x18] sm:$0xff] %vm881_vm6, %v5294_v34  ;;  %5019 = vrot.lane.b32.xlu1 %v4977_v32, %s6703_s14 }
 0x7a0   : > { %5589 = vrot.lane.b32.xlu0 %v9142_v54, %s6710_s11 }
 0x7a1   : > { %v4460_v21 = vpop.permute.xlu1 %4459 }
 0x7a2   : > { %4497 = vst.msk [vmem:[#allocation2 + $0x50] sm:$0xff] %vm1126_vm8, %v4460_v21  ;;  %v4366_v10 = vpop.permute.xlu0 %4365  ;;  %v5558_v21 = vld [vmem:[#allocation3 + $0xe2] sm:$0xff] }
 0x7a3   : > { %4402 = vst.msk [vmem:[#allocation2 + $0x58] sm:$0xff] %vm1005_vm7, %v4366_v10  ;;  %5399 = vrot.lane.b32.xlu1 %v5359_v31, %s6708_s25 }
 0x7a4   : > { %5305 = vrot.lane.b32.xlu0 %v9142_v54, %s6705_s16  ;;  %v4981_v54 = vld [vmem:[#allocation3 + $0xc2] sm:$0xff] }
 0x7a5   : > { %v5104_v11 = vpop.permute.xlu1 %5103 }
 0x7a6   : > { %5147 = vst.msk [vmem:[#allocation2 + $0x20] sm:$0xff] %vm639_vm4, %v5104_v11  ;;  %v5010_v27 = vpop.permute.xlu0 %5009  ;;  %v5557_v11 = vld [vmem:[#allocation3 + $0xda] sm:$0xff] }
 0x7a7   : > { %5052 = vst.msk [vmem:[#allocation2 + $0x28] sm:$0xff] %vm515_vm3, %v5010_v27  ;;  %5115 = vrot.lane.b32.xlu1 %v5359_v31, %s6704_s15 }
 0x7a8   : > { %5021 = vrot.lane.b32.xlu0 %v4978_v55, %s6703_s14 }
 0x7a9   : > { %v5484_v19 = vpop.permute.xlu1 %5483 }
 0x7aa   : > { %5529 = vst.msk [vmem:[#allocation2 + $0x10] sm:$0xff] %vm1126_vm8, %v5484_v19  ;;  %v5390_v51 = vpop.permute.xlu0 %5389 }
 0x7ab   : > { %5434 = vst.msk [vmem:[#allocation2 + $0x18] sm:$0xff] %vm1005_vm7, %v5390_v51  ;;  %5495 = vrot.lane.b32.xlu1 %v5359_v31, %s6708_s25 }
 0x7ac   : > { %5401 = vrot.lane.b32.xlu0 %v5360_v58, %s6708_s25 }
 0x7ad   : > { %v4556_v12 = vpop.permute.xlu1 %4555 }
 0x7ae   : > { %4593 = vst.msk [vmem:[#allocation2 + $0x50] sm:$0xff] %vm1247_vm9, %v4556_v12  ;;  %v4462_v28 = vpop.permute.xlu0 %4461 }
 0x7af   : > { %4498 = vst.msk [vmem:[#allocation2 + $0x58] sm:$0xff] %vm1126_vm8, %v4462_v28  ;;  %5211 = vrot.lane.b32.xlu1 %v5359_v31, %s6704_s15 }
 0x7b0   : > { %5117 = vrot.lane.b32.xlu0 %v5360_v58, %s6704_s15 }
 0x7b1   : > { %v5200_v13 = vpop.permute.xlu1 %5199 }
 0x7b2   : > { %5243 = vst.msk [vmem:[#allocation2 + $0x20] sm:$0xff] %vm760_vm5, %v5200_v13  ;;  %v5106_v46 = vpop.permute.xlu0 %5105 }
 0x7b3   : > { %5148 = vst.msk [vmem:[#allocation2 + $0x28] sm:$0xff] %vm639_vm4, %v5106_v46  ;;  %5591 = vrot.lane.b32.xlu1 %v4977_v32, %s6710_s11 }
 0x7b4   : > { %5497 = vrot.lane.b32.xlu0 %v5360_v58, %s6708_s25 }
 0x7b5   : > { %v5580_v40 = vpop.permute.xlu1 %5579  ;;  %v4609_v6 = vld [vmem:[#allocation2 + $0x50] sm:$0xff] }
 0x7b6   : > { %5625 = vst.msk [vmem:[#allocation2 + $0x10] sm:$0xff] %vm1247_vm9, %v5580_v40  ;;  %v5486_v7 = vpop.permute.xlu0 %5485  ;;  %6519 = vmatprep.mubr.msk.f32.mxu0 %vm1300_vm10, %v4609_v6  ;;  %v4918_v40 = vld [vmem:[#allocation3 + $0xc9] sm:$0xff] }
 0x7b7   : > { %4929 = vst.msk [vmem:[#allocation2 + $0x50] sm:$0xff] %vm273_vm0, %v5359_v31  ;;  %5307 = vrot.lane.b32.xlu1 %v4977_v32, %s6705_s16 }
 0x7b8   : > { %5530 = vst.msk [vmem:[#allocation2 + $0x18] sm:$0xff] %vm1126_vm8, %v5486_v7  ;;  %5213 = vrot.lane.b32.xlu0 %v5360_v58, %s6704_s15 }
 0x7b9   : > { %4961 = vst.msk [vmem:[#allocation2 + $0x50] sm:$0xff] %vm394_vm2, %v5359_v31  ;;  %v5202_v38 = vpop.permute.xlu1 %5201 }
 0x7ba   : > { %5244 = vst.msk [vmem:[#allocation2 + $0x28] sm:$0xff] %vm760_vm5, %v5202_v38  ;;  %v4558_v62 = vpop.permute.xlu0 %4557 }
 0x7bb   : > { %4594 = vst.msk [vmem:[#allocation2 + $0x58] sm:$0xff] %vm1247_vm9, %v4558_v62  ;;  %5023 = vrot.lane.b32.xlu1 %v4979_v43, %s6703_s14 }
 0x7bc   : > { %5593 = vrot.lane.b32.xlu0 %v4978_v55, %s6710_s11 }
 0x7bd   : > { %v5582_v44 = vpop.permute.xlu1 %5581  ;;  %v5641_v45 = vld [vmem:[#allocation2 + $0x10] sm:$0xff] }
 0x7be   : > { %5626 = vst.msk [vmem:[#allocation2 + $0x18] sm:$0xff] %vm1247_vm9, %v5582_v44  ;;  %v5296_v61 = vpop.permute.xlu0 %5295  ;;  %6541 = vmatprep.mubr.msk.f32.mxu1 %vm1300_vm10, %v5641_v45  ;;  %v9359_v44 = vld [vmem:[%s9563_s4] ss:$0 sm:$0xff] }
 0x7bf   : > { %5339 = vst.msk [vmem:[#allocation2 + $0x20] sm:$0xff] %vm881_vm6, %v5296_v61  ;;  %5403 = vrot.lane.b32.xlu1 %v9228_v0, %s6708_s25 }
 0x7c0   : > { %5309 = vrot.lane.b32.xlu0 %v4978_v55, %s6705_s16 }
 0x7c1   : > { %v5012_v47 = vpop.permute.xlu1 %5011 }
 0x7c2   : > { %5053 = vst.msk [vmem:[#allocation2 + $0x30] sm:$0xff] %vm515_vm3, %v5012_v47  ;;  %v4368_v35 = vpop.permute.xlu0 %4367  ;;  %v4610_v37 = vld [vmem:[#allocation2 + $0x58] sm:$0xff] }
 0x7c3   : > { %4403 = vst.msk [vmem:[#allocation2 + $0x60] sm:$0xff] %vm1005_vm7, %v4368_v35  ;;  %6520 = vmatmul.mubr.msk.f32.gmra.mrb[36].mxu0 %vm1300_vm10, %v4610_v37  ;;  %5119 = vrot.lane.b32.xlu1 %v9228_v0, %s6704_s15 }
 0x7c4   : > { %4930 = vst.msk [vmem:[#allocation2 + $0x58] sm:$0xff] %vm273_vm0, %v5360_v58  ;;  %5025 = vrot.lane.b32.xlu0 %v4980_v33, %s6703_s14 }
 0x7c5   : > { %4962 = vst.msk [vmem:[#allocation2 + $0x58] sm:$0xff] %vm394_vm2, %v5360_v58  ;;  %v5392_v49 = vpop.permute.xlu1 %5391  ;;  %v5642_v23 = vld [vmem:[#allocation2 + $0x18] sm:$0xff]  ;;  %v4917_v58 = vld [vmem:[#allocation3 + $0xc1] sm:$0xff] }
 0x7c6   : > { %5435 = vst.msk [vmem:[#allocation2 + $0x20] sm:$0xff] %vm1005_vm7, %v5392_v49  ;;  %v5298_v22 = vpop.permute.xlu0 %5297  ;;  %6542 = vmatmul.mubr.msk.f32.gmra.mrb[28].mxu1 %vm1300_vm10, %v5642_v23 }
 0x7c7   : > { %5340 = vst.msk [vmem:[#allocation2 + $0x28] sm:$0xff] %vm881_vm6, %v5298_v22  ;;  %5499 = vrot.lane.b32.xlu1 %v9228_v0, %s6708_s25 }
 0x7c8   : > { %5405 = vrot.lane.b32.xlu0 %v9244_v53, %s6708_s25 }
 0x7c9   : > { %v4464_v42 = vpop.permute.xlu1 %4463 }
 0x7ca   : > { %4499 = vst.msk [vmem:[#allocation2 + $0x60] sm:$0xff] %vm1126_vm8, %v4464_v42  ;;  %v4370_v25 = vpop.permute.xlu0 %4369 }
 0x7cb   : > { %4404 = vst.msk [vmem:[#allocation2 + $0x68] sm:$0xff] %vm1005_vm7, %v4370_v25  ;;  %5215 = vrot.lane.b32.xlu1 %v9228_v0, %s6704_s15 }
 0x7cc   : > { %5121 = vrot.lane.b32.xlu0 %v9244_v53, %s6704_s15 }
 0x7cd   : > { %v5108_v26 = vpop.permute.xlu1 %5107 }
 0x7ce   : > { %5149 = vst.msk [vmem:[#allocation2 + $0x30] sm:$0xff] %vm639_vm4, %v5108_v26  ;;  %v5014_v24 = vpop.permute.xlu0 %5013 }
 0x7cf   : > { %5054 = vst.msk [vmem:[#allocation2 + $0x38] sm:$0xff] %vm515_vm3, %v5014_v24  ;;  %5595 = vrot.lane.b32.xlu1 %v4979_v43, %s6710_s11 }
 0x7d0   : > { %5501 = vrot.lane.b32.xlu0 %v9244_v53, %s6708_s25 }
 0x7d1   : > { %v5488_v29 = vpop.permute.xlu1 %5487 }
 0x7d2   : > { %5531 = vst.msk [vmem:[#allocation2 + $0x20] sm:$0xff] %vm1126_vm8, %v5488_v29  ;;  %v5394_v30 = vpop.permute.xlu0 %5393 }
 0x7d3   : > { %5436 = vst.msk [vmem:[#allocation2 + $0x28] sm:$0xff] %vm1005_vm7, %v5394_v30  ;;  %5311 = vrot.lane.b32.xlu1 %v4979_v43, %s6705_s16 }
 0x7d4   : > { %5217 = vrot.lane.b32.xlu0 %v9244_v53, %s6704_s15 }
 0x7d5   : > { %v4560_v56 = vpop.permute.xlu1 %4559 }
 0x7d6   : > { %4595 = vst.msk [vmem:[#allocation2 + $0x60] sm:$0xff] %vm1247_vm9, %v4560_v56  ;;  %v4466_v59 = vpop.permute.xlu0 %4465 }
 0x7d7   : > { %4500 = vst.msk [vmem:[#allocation2 + $0x68] sm:$0xff] %vm1126_vm8, %v4466_v59  ;;  %5027 = vrot.lane.b32.xlu1 %v4981_v54, %s6703_s14 }
 0x7d8   : > { %5597 = vrot.lane.b32.xlu0 %v4980_v33, %s6710_s11 }
 0x7d9   : > { %v5204_v60 = vpop.permute.xlu1 %5203 }
 0x7da   : > { %5245 = vst.msk [vmem:[#allocation2 + $0x30] sm:$0xff] %vm760_vm5, %v5204_v60  ;;  %v5110_v39 = vpop.permute.xlu0 %5109 }
 0x7db   : > { %5150 = vst.msk [vmem:[#allocation2 + $0x38] sm:$0xff] %vm639_vm4, %v5110_v39  ;;  %5407 = vrot.lane.b32.xlu1 %v9061_v9, %s6708_s25 }
 0x7dc   : > { %5313 = vrot.lane.b32.xlu0 %v4980_v33, %s6705_s16 }
 0x7dd   : > { %v5584_v63 = vpop.permute.xlu1 %5583  ;;  %v4611_v41 = vld [vmem:[#allocation2 + $0x60] sm:$0xff] }
 0x7de   : > { %5627 = vst.msk [vmem:[#allocation2 + $0x20] sm:$0xff] %vm1247_vm9, %v5584_v63  ;;  %v5490_v52 = vpop.permute.xlu0 %5489  ;;  %6522 = vmatprep.mubr.msk.f32.mxu0 %vm1300_vm10, %v4611_v41 }
 0x7df   : > { %4931 = vst.msk [vmem:[#allocation2 + $0x60] sm:$0xff] %vm273_vm0, %v9228_v0  ;;  %5123 = vrot.lane.b32.xlu1 %v9061_v9, %s6704_s15 }
 0x7e0   : > { %5532 = vst.msk [vmem:[#allocation2 + $0x28] sm:$0xff] %vm1126_vm8, %v5490_v52  ;;  %5029 = vrot.lane.b32.xlu0 %v4982_v20, %s6703_s14 }
 0x7e1   : > { %4963 = vst.msk [vmem:[#allocation2 + $0x60] sm:$0xff] %vm394_vm2, %v9228_v0  ;;  %v5206_v14 = vpop.permute.xlu1 %5205 }
 0x7e2   : > { %5246 = vst.msk [vmem:[#allocation2 + $0x38] sm:$0xff] %vm760_vm5, %v5206_v14  ;;  %v4562_v15 = vpop.permute.xlu0 %4561 }
 0x7e3   : > { %4596 = vst.msk [vmem:[#allocation2 + $0x68] sm:$0xff] %vm1247_vm9, %v4562_v15  ;;  %5503 = vrot.lane.b32.xlu1 %v9061_v9, %s6708_s25 }
 0x7e4   : > { %5409 = vrot.lane.b32.xlu0 %v9088_v36, %s6708_s25 }
 0x7e5   : > { %v5586_v16 = vpop.permute.xlu1 %5585  ;;  %v5643_v2 = vld [vmem:[#allocation2 + $0x20] sm:$0xff] }
 0x7e6   : > { %5628 = vst.msk [vmem:[#allocation2 + $0x28] sm:$0xff] %vm1247_vm9, %v5586_v16  ;;  %v5300_v18 = vpop.permute.xlu0 %5299  ;;  %6544 = vmatprep.mubr.msk.f32.mxu1 %vm1300_vm10, %v5643_v2 }
 0x7e7   : > { %5341 = vst.msk [vmem:[#allocation2 + $0x30] sm:$0xff] %vm881_vm6, %v5300_v18  ;;  %5219 = vrot.lane.b32.xlu1 %v9061_v9, %s6704_s15 }
 0x7e8   : > { %5125 = vrot.lane.b32.xlu0 %v9088_v36, %s6704_s15 }
 0x7e9   : > { %v4372_v3 = vpop.permute.xlu1 %4371 }
 0x7ea   : > { %4405 = vst.msk [vmem:[#allocation2 + $0x70] sm:$0xff] %vm1005_vm7, %v4372_v3  ;;  %v4277_v48 = vpop.permute.xlu0 %4276  ;;  %v4612_v57 = vld [vmem:[#allocation2 + $0x68] sm:$0xff] }
 0x7eb   : > { %4309 = vst.msk [vmem:[#allocation2 + $0x78] sm:$0xff] %vm881_vm6, %v4277_v48  ;;  %6523 = vmatmul.mubr.msk.f32.gmra.mrb[38].mxu0 %vm1300_vm10, %v4612_v57  ;;  %5599 = vrot.lane.b32.xlu1 %v4981_v54, %s6710_s11 }
 0x7ec   : > { %4932 = vst.msk [vmem:[#allocation2 + $0x68] sm:$0xff] %vm273_vm0, %v9244_v53  ;;  %5505 = vrot.lane.b32.xlu0 %v9088_v36, %s6708_s25 }
 0x7ed   : > { %4964 = vst.msk [vmem:[#allocation2 + $0x68] sm:$0xff] %vm394_vm2, %v9244_v53  ;;  %v5302_v9 = vpop.permute.xlu1 %5301  ;;  %v5644_v5 = vld [vmem:[#allocation2 + $0x28] sm:$0xff] }
 0x7ee   : > { %5342 = vst.msk [vmem:[#allocation2 + $0x38] sm:$0xff] %vm881_vm6, %v5302_v9  ;;  %v5016_v4 = vpop.permute.xlu0 %5015  ;;  %6545 = vmatmul.mubr.msk.f32.gmra.mrb[30].mxu1 %vm1300_vm10, %v5644_v5 }
 0x7ef   : > { %5315 = vrot.lane.b32.xlu1 %v4981_v54, %s6705_s16  ;;  %5055 = vst.msk [vmem:[#allocation2 + $0x40] sm:$0xff] %vm515_vm3, %v5016_v4 }
 0x7f0   : > { %5221 = vrot.lane.b32.xlu0 %v9088_v36, %s6704_s15 }
 0x7f1   : > { %v4374_v32 = vpop.permute.xlu1 %4373 }
 0x7f2   : > { %4406 = vst.msk [vmem:[#allocation2 + $0x78] sm:$0xff] %vm1005_vm7, %v4374_v32  ;;  %v5396_v17 = vpop.permute.xlu0 %5395 }
 0x7f3   : > { %5437 = vst.msk [vmem:[#allocation2 + $0x30] sm:$0xff] %vm1005_vm7, %v5396_v17  ;;  %5317 = vrot.lane.b32.xlu1 %v4982_v20, %s6705_s16 }
 0x7f4   : > { %5601 = vrot.lane.b32.xlu0 %v4982_v20, %s6710_s11 }
 0x7f5   : > { %v5018_v8 = vpop.permute.xlu1 %5017 }
 0x7f6   : > { %5056 = vst.msk [vmem:[#allocation2 + $0x48] sm:$0xff] %vm515_vm3, %v5018_v8  ;;  %v4468_v34 = vpop.permute.xlu0 %4467 }
 0x7f7   : > { %4501 = vst.msk [vmem:[#allocation2 + $0x70] sm:$0xff] %vm1126_vm8, %v4468_v34  ;;  %5413 = vrot.lane.b32.xlu1 %v9156_v1, %s6708_s25 }
 0x7f8   : > { %5411 = vrot.lane.b32.xlu0 %v9144_v50, %s6708_s25 }
 0x7f9   : > { %v5398_v36 = vpop.permute.xlu1 %5397 }
 0x7fa   : > { %5438 = vst.msk [vmem:[#allocation2 + $0x38] sm:$0xff] %vm1005_vm7, %v5398_v36  ;;  %v5112_v31 = vpop.permute.xlu0 %5111 }
 0x7fb   : > { %5151 = vst.msk [vmem:[#allocation2 + $0x40] sm:$0xff] %vm639_vm4, %v5112_v31  ;;  %5509 = vrot.lane.b32.xlu1 %v9156_v1, %s6708_s25 }
 0x7fc   : > { %5507 = vrot.lane.b32.xlu0 %v9144_v50, %s6708_s25 }
 0x7fd   : > { %v4470_v10 = vpop.permute.xlu1 %4469 }
 0x7fe   : > { %4502 = vst.msk [vmem:[#allocation2 + $0x78] sm:$0xff] %vm1126_vm8, %v4470_v10  ;;  %v5492_v55 = vpop.permute.xlu0 %5491 }
 0x7ff   : > { %5533 = vst.msk [vmem:[#allocation2 + $0x30] sm:$0xff] %vm1126_vm8, %v5492_v55  ;;  %5605 = vrot.lane.b32.xlu1 %v5558_v21, %s6710_s11 }
 0x800   : > { %5603 = vrot.lane.b32.xlu0 %v5557_v11, %s6710_s11 }
 0x801   : > { %v5114_v27 = vpop.permute.xlu1 %5113 }
 0x802   : > { %5152 = vst.msk [vmem:[#allocation2 + $0x48] sm:$0xff] %vm639_vm4, %v5114_v27  ;;  %v4564_v19 = vpop.permute.xlu0 %4563 }
 0x803   : > { %4597 = vst.msk [vmem:[#allocation2 + $0x70] sm:$0xff] %vm1247_vm9, %v4564_v19 }
 0x805   : > { %v5494_v1 = vpop.permute.xlu1 %5493 }
 0x806   : > { %5534 = vst.msk [vmem:[#allocation2 + $0x38] sm:$0xff] %vm1126_vm8, %v5494_v1  ;;  %v5208_v50 = vpop.permute.xlu0 %5207 }
 0x807   : > { %5247 = vst.msk [vmem:[#allocation2 + $0x40] sm:$0xff] %vm760_vm5, %v5208_v50 }
 0x809   : > { %v4566_v51 = vpop.permute.xlu1 %4565 }
 0x80a   : > { %4598 = vst.msk [vmem:[#allocation2 + $0x78] sm:$0xff] %vm1247_vm9, %v4566_v51  ;;  %v5588_v12 = vpop.permute.xlu0 %5587  ;;  %v4613_v28 = vld [vmem:[#allocation2 + $0x70] sm:$0xff] }
 0x80b   : > { %5629 = vst.msk [vmem:[#allocation2 + $0x30] sm:$0xff] %vm1247_vm9, %v5588_v12  ;;  %6525 = vmatprep.mubr.msk.f32.mxu0 %vm1300_vm10, %v4613_v28 }
 0x80c   : > { %4933 = vst.msk [vmem:[#allocation2 + $0x70] sm:$0xff] %vm273_vm0, %v4917_v58 }
 0x80d   : > { %4965 = vst.msk [vmem:[#allocation2 + $0x70] sm:$0xff] %vm394_vm2, %v4917_v58  ;;  %v5304_v13 = vpop.permute.xlu1 %5303 }
 0x80e   : > { %v5210_v46 = vpop.permute.xlu0 %5209  ;;  %5343 = vst.msk [vmem:[#allocation2 + $0x40] sm:$0xff] %vm881_vm6, %v5304_v13 }
 0x80f   : > { %5248 = vst.msk [vmem:[#allocation2 + $0x48] sm:$0xff] %vm760_vm5, %v5210_v46 }
 0x811   : > { %v4614_v6 = vld [vmem:[#allocation2 + $0x78] sm:$0xff]  ;;  %v5020_v7 = vpop.permute.xlu1 %5019 }
 0x812   : > { %6526 = vmatmul.mubr.msk.f32.gmra.mrb[40].mxu0 %vm1300_vm10, %v4614_v6  ;;  %v5590_v43 = vpop.permute.xlu0 %5589  ;;  %5057 = vst.msk [vmem:[#allocation2 + $0x50] sm:$0xff] %vm515_vm3, %v5020_v7  ;;  %v5645_v38 = vld [vmem:[#allocation2 + $0x30] sm:$0xff] }
 0x813   : > { %4934 = vst.msk [vmem:[#allocation2 + $0x78] sm:$0xff] %vm273_vm0, %v4918_v40  ;;  %6547 = vmatprep.mubr.msk.f32.mxu1 %vm1300_vm10, %v5645_v38 }
 0x814   : > { %5630 = vst.msk [vmem:[#allocation2 + $0x38] sm:$0xff] %vm1247_vm9, %v5590_v43 }
 0x815   : > { %4966 = vst.msk [vmem:[#allocation2 + $0x78] sm:$0xff] %vm394_vm2, %v4918_v40  ;;  %v5400_v62 = vpop.permute.xlu1 %5399 }
 0x816   : > { %v5306_v0 = vpop.permute.xlu0 %5305  ;;  %5439 = vst.msk [vmem:[#allocation2 + $0x40] sm:$0xff] %vm1005_vm7, %v5400_v62 }
 0x817   : > { %5344 = vst.msk [vmem:[#allocation2 + $0x48] sm:$0xff] %vm881_vm6, %v5306_v0 }
 0x819   : > { %v5116_v45 = vpop.permute.xlu1 %5115 }
 0x81a   : > { %v6506_v61 = vpop.f32.mrb[26].mxu0  ;;  %v5022_v47 = vpop.permute.xlu0 %5021  ;;  %5153 = vst.msk [vmem:[#allocation2 + $0x50] sm:$0xff] %vm639_vm4, %v5116_v45 }
 0x81b   : > { %v5646_v33 = vld [vmem:[#allocation2 + $0x38] sm:$0xff]  ;;  %v4750_v35 = vadd.f32 %v6506_v61, %v9359_v44  ;;  %5058 = vst.msk [vmem:[#allocation2 + $0x58] sm:$0xff] %vm515_vm3, %v5022_v47  ;;  %v4744_v37 = vpop.f32.mrb[27].mxu0 }
 0x81c   : > { %6548 = vmatmul.mubr.msk.f32.gmra.mrb[32].mxu1 %vm1300_vm10, %v5646_v33  ;;  %v4745_v49 = vadd.f32 %v9359_v44, %v4744_v37 }
 0x81d   : > { %4841 = vrot.lane.b32.xlu1 %v4750_v35, %s6703_s14  ;;  %v5496_v23 = vpop.permute.xlu1 %5495 }
 0x81e   : > { %4839 = vrot.lane.b32.xlu0 %v4745_v49, %s6703_s14  ;;  %v5402_v53 = vpop.permute.xlu0 %5401  ;;  %5535 = vst.msk [vmem:[#allocation2 + $0x40] sm:$0xff] %vm1126_vm8, %v5496_v23 }
 0x81f   : > { %5440 = vst.msk [vmem:[#allocation2 + $0x48] sm:$0xff] %vm1005_vm7, %v5402_v53 }
 0x821   : > { %v5212_v22 = vpop.permute.xlu1 %5211 }
 0x822   : > { %v5118_v42 = vpop.permute.xlu0 %5117  ;;  %5249 = vst.msk [vmem:[#allocation2 + $0x50] sm:$0xff] %vm760_vm5, %v5212_v22 }
 0x823   : > { %5154 = vst.msk [vmem:[#allocation2 + $0x58] sm:$0xff] %vm639_vm4, %v5118_v42 }
 0x825   : > { %v5592_v25 = vpop.permute.xlu1 %5591 }
 0x826   : > { %v6509_v26 = vpop.f32.mrb[28].mxu0  ;;  %v5498_v24 = vpop.permute.xlu0 %5497  ;;  %5631 = vst.msk [vmem:[#allocation2 + $0x40] sm:$0xff] %vm1247_vm9, %v5592_v25 }
 0x827   : > { %v4760_v29 = vadd.f32 %v6509_v26, %v9359_v44  ;;  %5536 = vst.msk [vmem:[#allocation2 + $0x48] sm:$0xff] %vm1126_vm8, %v5498_v24  ;;  %v4754_v30 = vpop.f32.mrb[29].mxu0 }
 0x828   : > { %v4755_v54 = vadd.f32 %v9359_v44, %v4754_v30 }
 0x829   : > { %4845 = vrot.lane.b32.xlu1 %v4760_v29, %s6703_s14  ;;  %v5308_v56 = vpop.permute.xlu1 %5307 }
 0x82a   : > { %4843 = vrot.lane.b32.xlu0 %v4755_v54, %s6703_s14  ;;  %v5214_v59 = vpop.permute.xlu0 %5213  ;;  %5345 = vst.msk [vmem:[#allocation2 + $0x50] sm:$0xff] %vm881_vm6, %v5308_v56 }
 0x82b   : > { %5250 = vst.msk [vmem:[#allocation2 + $0x58] sm:$0xff] %vm760_vm5, %v5214_v59 }
 0x82d   : > { %v5024_v60 = vpop.permute.xlu1 %5023  ;;  %v5647_v39 = vld [vmem:[#allocation2 + $0x40] sm:$0xff] }
 0x82e   : > { %v5594_v63 = vpop.permute.xlu0 %5593  ;;  %5059 = vst.msk [vmem:[#allocation2 + $0x60] sm:$0xff] %vm515_vm3, %v5024_v60  ;;  %6550 = vmatprep.mubr.msk.f32.mxu1 %vm1300_vm10, %v5647_v39 }
 0x82f   : > { %5632 = vst.msk [vmem:[#allocation2 + $0x48] sm:$0xff] %vm1247_vm9, %v5594_v63 }
 0x831   : > { %v5404_v20 = vpop.permute.xlu1 %5403 }
 0x832   : > { %v6512_v41 = vpop.f32.mrb[30].mxu0  ;;  %v5310_v52 = vpop.permute.xlu0 %5309  ;;  %5441 = vst.msk [vmem:[#allocation2 + $0x50] sm:$0xff] %vm1005_vm7, %v5404_v20 }
 0x833   : > { %v4770_v14 = vadd.f32 %v6512_v41, %v9359_v44  ;;  %5346 = vst.msk [vmem:[#allocation2 + $0x58] sm:$0xff] %vm881_vm6, %v5310_v52  ;;  %v4764_v15 = vpop.f32.mrb[31].mxu0 }
 0x834   : > { %v4765_v16 = vadd.f32 %v9359_v44, %v4764_v15 }
 0x835   : > { %4849 = vrot.lane.b32.xlu1 %v4770_v14, %s6703_s14  ;;  %v5120_v2 = vpop.permute.xlu1 %5119 }
 0x836   : > { %4847 = vrot.lane.b32.xlu0 %v4765_v16, %s6703_s14  ;;  %v5026_v18 = vpop.permute.xlu0 %5025  ;;  %5155 = vst.msk [vmem:[#allocation2 + $0x60] sm:$0xff] %vm639_vm4, %v5120_v2  ;;  %v5648_v3 = vld [vmem:[#allocation2 + $0x48] sm:$0xff] }
 0x837   : > { %5060 = vst.msk [vmem:[#allocation2 + $0x68] sm:$0xff] %vm515_vm3, %v5026_v18  ;;  %6551 = vmatmul.mubr.msk.f32.gmra.mrb[34].mxu1 %vm1300_vm10, %v5648_v3 }
 0x839   : > { %v5500_v48 = vpop.permute.xlu1 %5499 }
 0x83a   : > { %v5406_v57 = vpop.permute.xlu0 %5405  ;;  %5537 = vst.msk [vmem:[#allocation2 + $0x50] sm:$0xff] %vm1126_vm8, %v5500_v48 }
 0x83b   : > { %5442 = vst.msk [vmem:[#allocation2 + $0x58] sm:$0xff] %vm1005_vm7, %v5406_v57 }
 0x83d   : > { %v5216_v9 = vpop.permute.xlu1 %5215 }
 0x83e   : > { %v5122_v5 = vpop.permute.xlu0 %5121  ;;  %5251 = vst.msk [vmem:[#allocation2 + $0x60] sm:$0xff] %vm760_vm5, %v5216_v9 }
 0x83f   : > { %5156 = vst.msk [vmem:[#allocation2 + $0x68] sm:$0xff] %vm639_vm4, %v5122_v5 }
 0x841   : > { %v5596_v4 = vpop.permute.xlu1 %5595 }
 0x842   : > { %v5502_v32 = vpop.permute.xlu0 %5501  ;;  %5633 = vst.msk [vmem:[#allocation2 + $0x50] sm:$0xff] %vm1247_vm9, %v5596_v4 }
 0x843   : > { %5538 = vst.msk [vmem:[#allocation2 + $0x58] sm:$0xff] %vm1126_vm8, %v5502_v32 }
 0x845   : > { %v6515_v17 = vpop.f32.mrb[32].mxu0  ;;  %v5312_v8 = vpop.permute.xlu1 %5311 }
 0x846   : > { %v4780_v34 = vadd.f32 %v6515_v17, %v9359_v44  ;;  %v5218_v36 = vpop.permute.xlu0 %5217  ;;  %5347 = vst.msk [vmem:[#allocation2 + $0x60] sm:$0xff] %vm881_vm6, %v5312_v8  ;;  %v4774_v31 = vpop.f32.mrb[33].mxu0 }
 0x847   : > { %5252 = vst.msk [vmem:[#allocation2 + $0x68] sm:$0xff] %vm760_vm5, %v5218_v36  ;;  %v4775_v21 = vadd.f32 %v9359_v44, %v4774_v31 }
 0x848   : > { %4853 = vrot.lane.b32.xlu1 %v4780_v34, %s6703_s14 }
 0x849   : > { %4851 = vrot.lane.b32.xlu0 %v4775_v21, %s6703_s14  ;;  %v5028_v10 = vpop.permute.xlu1 %5027  ;;  %v5649_v11 = vld [vmem:[#allocation2 + $0x50] sm:$0xff] }
 0x84a   : > { %v5598_v55 = vpop.permute.xlu0 %5597  ;;  %5061 = vst.msk [vmem:[#allocation2 + $0x70] sm:$0xff] %vm515_vm3, %v5028_v10  ;;  %6553 = vmatprep.mubr.msk.f32.mxu1 %vm1300_vm10, %v5649_v11 }
 0x84b   : > { %5634 = vst.msk [vmem:[#allocation2 + $0x58] sm:$0xff] %vm1247_vm9, %v5598_v55 }
 0x84d   : > { %v5408_v27 = vpop.permute.xlu1 %5407 }
 0x84e   : > { %v5314_v19 = vpop.permute.xlu0 %5313  ;;  %5443 = vst.msk [vmem:[#allocation2 + $0x60] sm:$0xff] %vm1005_vm7, %v5408_v27 }
 0x84f   : > { %5348 = vst.msk [vmem:[#allocation2 + $0x68] sm:$0xff] %vm881_vm6, %v5314_v19 }
 0x851   : > { %v5124_v1 = vpop.permute.xlu1 %5123 }
 0x852   : > { %v5030_v50 = vpop.permute.xlu0 %5029  ;;  %5157 = vst.msk [vmem:[#allocation2 + $0x70] sm:$0xff] %vm639_vm4, %v5124_v1  ;;  %v5650_v58 = vld [vmem:[#allocation2 + $0x58] sm:$0xff] }
 0x853   : > { %5062 = vst.msk [vmem:[#allocation2 + $0x78] sm:$0xff] %vm515_vm3, %v5030_v50  ;;  %6554 = vmatmul.mubr.msk.f32.gmra.mrb[36].mxu1 %vm1300_vm10, %v5650_v58 }
 0x855   : > { %v5504_v51 = vpop.permute.xlu1 %5503 }
 0x856   : > { %v5410_v12 = vpop.permute.xlu0 %5409  ;;  %5539 = vst.msk [vmem:[#allocation2 + $0x60] sm:$0xff] %vm1126_vm8, %v5504_v51 }
 0x857   : > { %5444 = vst.msk [vmem:[#allocation2 + $0x68] sm:$0xff] %vm1005_vm7, %v5410_v12 }
 0x859   : > { %v5220_v28 = vpop.permute.xlu1 %5219 }
 0x85a   : > { %v5126_v13 = vpop.permute.xlu0 %5125  ;;  %5253 = vst.msk [vmem:[#allocation2 + $0x70] sm:$0xff] %vm760_vm5, %v5220_v28 }
 0x85b   : > { %5158 = vst.msk [vmem:[#allocation2 + $0x78] sm:$0xff] %vm639_vm4, %v5126_v13 }
 0x85d   : > { %v5600_v46 = vpop.permute.xlu1 %5599 }
 0x85e   : > { %v5506_v40 = vpop.permute.xlu0 %5505  ;;  %5635 = vst.msk [vmem:[#allocation2 + $0x60] sm:$0xff] %vm1247_vm9, %v5600_v46 }
 0x85f   : > { %5540 = vst.msk [vmem:[#allocation2 + $0x68] sm:$0xff] %vm1126_vm8, %v5506_v40 }
 0x861   : > { %v5316_v6 = vpop.permute.xlu1 %5315 }
 0x862   : > { %v5222_v7 = vpop.permute.xlu0 %5221  ;;  %5349 = vst.msk [vmem:[#allocation2 + $0x70] sm:$0xff] %vm881_vm6, %v5316_v6 }
 0x863   : > { %5254 = vst.msk [vmem:[#allocation2 + $0x78] sm:$0xff] %vm760_vm5, %v5222_v7 }
 0x865   : > { %v5318_v43 = vpop.permute.xlu1 %5317  ;;  %v5651_v38 = vld [vmem:[#allocation2 + $0x60] sm:$0xff] }
 0x866   : > { %v5602_v62 = vpop.permute.xlu0 %5601  ;;  %5350 = vst.msk [vmem:[#allocation2 + $0x78] sm:$0xff] %vm881_vm6, %v5318_v43  ;;  %6556 = vmatprep.mubr.msk.f32.mxu1 %vm1300_vm10, %v5651_v38 }
 0x867   : > { %5636 = vst.msk [vmem:[#allocation2 + $0x68] sm:$0xff] %vm1247_vm9, %v5602_v62 }
 0x869   : > { %v5414_v0 = vpop.permute.xlu1 %5413 }
 0x86a   : > { %v5412_v45 = vpop.permute.xlu0 %5411  ;;  %5446 = vst.msk [vmem:[#allocation2 + $0x78] sm:$0xff] %vm1005_vm7, %v5414_v0 }
 0x86b   : > { %5445 = vst.msk [vmem:[#allocation2 + $0x70] sm:$0xff] %vm1005_vm7, %v5412_v45 }
 0x86d   : > { %v5510_v61 = vpop.permute.xlu1 %5509 }
 0x86e   : > { %v6518_v47 = vpop.f32.mrb[34].mxu0  ;;  %v5508_v33 = vpop.permute.xlu0 %5507  ;;  %5542 = vst.msk [vmem:[#allocation2 + $0x78] sm:$0xff] %vm1126_vm8, %v5510_v61  ;;  %v5652_v35 = vld [vmem:[#allocation2 + $0x68] sm:$0xff] }
 0x86f   : > { %v4790_v37 = vadd.f32 %v6518_v47, %v9359_v44  ;;  %5541 = vst.msk [vmem:[#allocation2 + $0x70] sm:$0xff] %vm1126_vm8, %v5508_v33  ;;  %v4784_v49 = vpop.f32.mrb[35].mxu0  ;;  %6557 = vmatmul.mubr.msk.f32.gmra.mrb[38].mxu1 %vm1300_vm10, %v5652_v35 }
 0x870   : > { %v4785_v23 = vadd.f32 %v9359_v44, %v4784_v49 }
 0x871   : > { %4857 = vrot.lane.b32.xlu1 %v4790_v37, %s6703_s14  ;;  %v6540_v53 = vpop.f32.mrb[26].mxu1  ;;  %v5606_v22 = vpop.permute.xlu1 %5605 }
 0x872   : > { %4855 = vrot.lane.b32.xlu0 %v4785_v23, %s6703_s14  ;;  %v5604_v42 = vpop.permute.xlu0 %5603  ;;  %5638 = vst.msk [vmem:[#allocation2 + $0x78] sm:$0xff] %vm1247_vm9, %v5606_v22  ;;  %v5784_v25 = vpop.f32.mrb[27].mxu1  ;;  %v5790_v36 = vadd.f32 %v6540_v53, %v9359_v44 }
 0x873   : > { %5637 = vst.msk [vmem:[#allocation2 + $0x70] sm:$0xff] %vm1247_vm9, %v5604_v42  ;;  %v5785_v31 = vadd.f32 %v9359_v44, %v5784_v25 }
 0x879   : > { %v5654_v26 = vld [vmem:[#allocation2 + $0x78] sm:$0xff] }
 0x87a   : > { %v5653_v24 = vld [vmem:[#allocation2 + $0x70] sm:$0xff] }
 0x87b   : > { %6559 = vmatprep.mubr.msk.f32.mxu1 %vm1300_vm10, %v5653_v24 }
 0x87c   : > { %6560 = vmatmul.mubr.msk.f32.gmra.mrb[40].mxu1 %vm1300_vm10, %v5654_v26 }
 0x88f   : > { %v4842_v29 = vpop.permute.xlu1 %4841 }
 0x890   : > { %4888 = vst.msk [vmem:[%s6789_s13 + $0x8] sm:$0xff] %vm515_vm3, %v4842_v29  ;;  %v4840_v30 = vpop.permute.xlu0 %4839 }
 0x891   : > { %4887 = vst.msk [vmem:[%s6789_s13] sm:$0xff] %vm515_vm3, %v4840_v30 }
 0x896   : > { %v6521_v54 = vpop.f32.mrb[36].mxu0 }
 0x897   : > { %v4800_v56 = vadd.f32 %v6521_v54, %v9359_v44  ;;  %v4794_v59 = vpop.f32.mrb[37].mxu0 }
 0x898   : > { %v4795_v60 = vadd.f32 %v9359_v44, %v4794_v59 }
 0x899   : > { %4861 = vrot.lane.b32.xlu1 %v4800_v56, %s6703_s14  ;;  %v6543_v39 = vpop.f32.mrb[28].mxu1 }
 0x89a   : > { %4859 = vrot.lane.b32.xlu0 %v4795_v60, %s6703_s14  ;;  %v5794_v63 = vpop.f32.mrb[29].mxu1  ;;  %v5800_v21 = vadd.f32 %v6543_v39, %v9359_v44 }
 0x89b   : > { %v4846_v20 = vpop.permute.xlu1 %4845  ;;  %v5795_v11 = vadd.f32 %v9359_v44, %v5794_v63 }
 0x89c   : > { %4890 = vst.msk [vmem:[%s6789_s13 + $0x18] sm:$0xff] %vm515_vm3, %v4846_v20  ;;  %v4844_v41 = vpop.permute.xlu0 %4843 }
 0x89d   : > { %4889 = vst.msk [vmem:[%s6789_s13 + $0x10] sm:$0xff] %vm515_vm3, %v4844_v41 }
 0x8a7   : > { %v4850_v52 = vpop.permute.xlu1 %4849 }
 0x8a8   : > { %4892 = vst.msk [vmem:[%s6789_s13 + $0x28] sm:$0xff] %vm515_vm3, %v4850_v52  ;;  %v4848_v14 = vpop.permute.xlu0 %4847 }
 0x8a9   : > { %4891 = vst.msk [vmem:[%s6789_s13 + $0x20] sm:$0xff] %vm515_vm3, %v4848_v14 }
 0x8ba   : > { %v4854_v15 = vpop.permute.xlu1 %4853 }
 0x8bb   : > { %4894 = vst.msk [vmem:[%s6789_s13 + $0x38] sm:$0xff] %vm515_vm3, %v4854_v15  ;;  %v4852_v16 = vpop.permute.xlu0 %4851 }
 0x8bc   : > { %4893 = vst.msk [vmem:[%s6789_s13 + $0x30] sm:$0xff] %vm515_vm3, %v4852_v16 }
 0x8be   : > { %v6524_v2 = vpop.f32.mrb[38].mxu0 }
 0x8bf   : > { %v4810_v18 = vadd.f32 %v6524_v2, %v9359_v44  ;;  %v4804_v3 = vpop.f32.mrb[39].mxu0 }
 0x8c0   : > { %v4805_v48 = vadd.f32 %v9359_v44, %v4804_v3 }
 0x8c1   : > { %4865 = vrot.lane.b32.xlu1 %v4810_v18, %s6703_s14  ;;  %v6546_v57 = vpop.f32.mrb[30].mxu1 }
 0x8c2   : > { %4863 = vrot.lane.b32.xlu0 %v4805_v48, %s6703_s14  ;;  %v5804_v9 = vpop.f32.mrb[31].mxu1  ;;  %v5810_v27 = vadd.f32 %v6546_v57, %v9359_v44 }
 0x8c3   : > { %v5805_v19 = vadd.f32 %v9359_v44, %v5804_v9 }
 0x8e3   : > { %v4858_v5 = vpop.permute.xlu1 %4857 }
 0x8e4   : > { %4896 = vst.msk [vmem:[%s6789_s13 + $0x48] sm:$0xff] %vm515_vm3, %v4858_v5  ;;  %v4856_v4 = vpop.permute.xlu0 %4855 }
 0x8e5   : > { %4895 = vst.msk [vmem:[%s6789_s13 + $0x40] sm:$0xff] %vm515_vm3, %v4856_v4  ;;  %v6527_v32 = vpop.f32.mrb[40].mxu0 }
 0x8e6   : > { %v4820_v17 = vadd.f32 %v6527_v32, %v9359_v44  ;;  %v4814_v8 = vpop.f32.mrb[41].mxu0 }
 0x8e7   : > { %v4815_v34 = vadd.f32 %v9359_v44, %v4814_v8 }
 0x8e8   : > { %4869 = vrot.lane.b32.xlu1 %v4820_v17, %s6703_s14 }
 0x8e9   : > { %4867 = vrot.lane.b32.xlu0 %v4815_v34, %s6703_s14 }
 0x8ec   : > { %5881 = vrot.lane.b32.xlu1 %v5790_v36, %s6705_s16 }
 0x8ed   : > { %5879 = vrot.lane.b32.xlu0 %v5785_v31, %s6705_s16 }
 0x8ef   : > { %v6549_v10 = vpop.f32.mrb[32].mxu1 }
 0x8f0   : > { %v5814_v55 = vpop.f32.mrb[33].mxu1  ;;  %5885 = vrot.lane.b32.xlu1 %v5800_v21, %s6705_s16  ;;  %v5820_v1 = vadd.f32 %v6549_v10, %v9359_v44 }
 0x8f1   : > { %5883 = vrot.lane.b32.xlu0 %v5795_v11, %s6705_s16  ;;  %v5815_v50 = vadd.f32 %v9359_v44, %v5814_v55 }
 0x8f4   : > { %5889 = vrot.lane.b32.xlu1 %v5810_v27, %s6705_s16 }
 0x8f5   : > { %5887 = vrot.lane.b32.xlu0 %v5805_v19, %s6705_s16 }
 0x8f8   : > { %5893 = vrot.lane.b32.xlu1 %v5820_v1, %s6705_s16 }
 0x8f9   : > { %5891 = vrot.lane.b32.xlu0 %v5815_v50, %s6705_s16 }
 0x90a   : > { %v6552_v58 = vpop.f32.mrb[34].mxu1 }
 0x90b   : > { %v5830_v51 = vadd.f32 %v6552_v58, %v9359_v44  ;;  %v4862_v12 = vpop.permute.xlu1 %4861  ;;  %v5824_v28 = vpop.f32.mrb[35].mxu1 }
 0x90c   : > { %4898 = vst.msk [vmem:[%s6789_s13 + $0x58] sm:$0xff] %vm515_vm3, %v4862_v12  ;;  %v5825_v13 = vadd.f32 %v9359_v44, %v5824_v28  ;;  %v4860_v46 = vpop.permute.xlu0 %4859 }
 0x90d   : > { %4897 = vst.msk [vmem:[%s6789_s13 + $0x50] sm:$0xff] %vm515_vm3, %v4860_v46  ;;  %5897 = vrot.lane.b32.xlu1 %v5830_v51, %s6705_s16 }
 0x90e   : > { %5895 = vrot.lane.b32.xlu0 %v5825_v13, %s6705_s16 }
 0x926   : > { %v6555_v40 = vpop.f32.mrb[36].mxu1 }
 0x927   : > { %v5840_v6 = vadd.f32 %v6555_v40, %v9359_v44  ;;  %v5834_v7 = vpop.f32.mrb[37].mxu1 }
 0x928   : > { %v5835_v43 = vadd.f32 %v9359_v44, %v5834_v7 }
 0x929   : > { %5901 = vrot.lane.b32.xlu1 %v5840_v6, %s6705_s16 }
 0x92a   : > { %5899 = vrot.lane.b32.xlu0 %v5835_v43, %s6705_s16 }
 0x933   : > { %v4866_v38 = vpop.permute.xlu1 %4865 }
 0x934   : > { %4900 = vst.msk [vmem:[%s6789_s13 + $0x68] sm:$0xff] %vm515_vm3, %v4866_v38  ;;  %v4864_v62 = vpop.permute.xlu0 %4863 }
 0x935   : > { %4899 = vst.msk [vmem:[%s6789_s13 + $0x60] sm:$0xff] %vm515_vm3, %v4864_v62 }
 0x942   : > { %v6558_v0 = vpop.f32.mrb[38].mxu1 }
 0x943   : > { %v5850_v45 = vadd.f32 %v6558_v0, %v9359_v44  ;;  %v5844_v61 = vpop.f32.mrb[39].mxu1 }
 0x944   : > { %v5845_v47 = vadd.f32 %v9359_v44, %v5844_v61 }
 0x945   : > { %5905 = vrot.lane.b32.xlu1 %v5850_v45, %s6705_s16 }
 0x946   : > { %5903 = vrot.lane.b32.xlu0 %v5845_v47, %s6705_s16 }
 0x94f   : > { %v6561_v33 = vpop.f32.mrb[40].mxu1 }
 0x950   : > { %v5860_v35 = vadd.f32 %v6561_v33, %v9359_v44  ;;  %v5854_v37 = vpop.f32.mrb[41].mxu1 }
 0x951   : > { %v5855_v49 = vadd.f32 %v9359_v44, %v5854_v37 }
 0x952   : > { %5909 = vrot.lane.b32.xlu1 %v5860_v35, %s6705_s16 }
 0x953   : > { %5907 = vrot.lane.b32.xlu0 %v5855_v49, %s6705_s16 }
 0x95a   : > { %v4870_v23 = vpop.permute.xlu1 %4869 }
 0x95b   : > { %4902 = vst.msk [vmem:[%s6789_s13 + $0x78] sm:$0xff] %vm515_vm3, %v4870_v23  ;;  %v4868_v53 = vpop.permute.xlu0 %4867 }
 0x95c   : > { %4901 = vst.msk [vmem:[%s6789_s13 + $0x70] sm:$0xff] %vm515_vm3, %v4868_v53 }
 0x95e   : > { %v5882_v22 = vpop.permute.xlu1 %5881 }
 0x95f   : > { %5928 = vst.msk [vmem:[%s6789_s13 + $0x8] sm:$0xff] %vm639_vm4, %v5882_v22  ;;  %v5880_v42 = vpop.permute.xlu0 %5879 }
 0x960   : > { %5927 = vst.msk [vmem:[%s6789_s13] sm:$0xff] %vm639_vm4, %v5880_v42 }
 0x962   : > { %v5886_v44 = vpop.permute.xlu1 %5885 }
 0x963   : > { %5930 = vst.msk [vmem:[%s6789_s13 + $0x18] sm:$0xff] %vm639_vm4, %v5886_v44  ;;  %v5884_v25 = vpop.permute.xlu0 %5883 }
 0x964   : > { %5929 = vst.msk [vmem:[%s6789_s13 + $0x10] sm:$0xff] %vm639_vm4, %v5884_v25 }
 0x966   : > { %v5890_v26 = vpop.permute.xlu1 %5889 }
 0x967   : > { %5932 = vst.msk [vmem:[%s6789_s13 + $0x28] sm:$0xff] %vm639_vm4, %v5890_v26  ;;  %v5888_v24 = vpop.permute.xlu0 %5887 }
 0x968   : > { %5931 = vst.msk [vmem:[%s6789_s13 + $0x20] sm:$0xff] %vm639_vm4, %v5888_v24 }
 0x96a   : > { %v5894_v29 = vpop.permute.xlu1 %5893 }
 0x96b   : > { %5934 = vst.msk [vmem:[%s6789_s13 + $0x38] sm:$0xff] %vm639_vm4, %v5894_v29  ;;  %v5892_v30 = vpop.permute.xlu0 %5891 }
 0x96c   : > { %5933 = vst.msk [vmem:[%s6789_s13 + $0x30] sm:$0xff] %vm639_vm4, %v5892_v30 }
 0x97f   : > { %v5898_v54 = vpop.permute.xlu1 %5897 }
 0x980   : > { %5936 = vst.msk [vmem:[%s6789_s13 + $0x48] sm:$0xff] %vm639_vm4, %v5898_v54  ;;  %v5896_v56 = vpop.permute.xlu0 %5895 }
 0x981   : > { %5935 = vst.msk [vmem:[%s6789_s13 + $0x40] sm:$0xff] %vm639_vm4, %v5896_v56 }
 0x99b   : > { %v5902_v59 = vpop.permute.xlu1 %5901 }
 0x99c   : > { %5938 = vst.msk [vmem:[%s6789_s13 + $0x58] sm:$0xff] %vm639_vm4, %v5902_v59  ;;  %v5900_v60 = vpop.permute.xlu0 %5899 }
 0x99d   : > { %5937 = vst.msk [vmem:[%s6789_s13 + $0x50] sm:$0xff] %vm639_vm4, %v5900_v60 }
 0x9b7   : > { %v5906_v39 = vpop.permute.xlu1 %5905 }
 0x9b8   : > { %5940 = vst.msk [vmem:[%s6789_s13 + $0x68] sm:$0xff] %vm639_vm4, %v5906_v39  ;;  %v5904_v63 = vpop.permute.xlu0 %5903 }
 0x9b9   : > { %5939 = vst.msk [vmem:[%s6789_s13 + $0x60] sm:$0xff] %vm639_vm4, %v5904_v63 }
 0x9c4   : > { %v5910_v20 = vpop.permute.xlu1 %5909 }
 0x9c5   : > { %5942 = vst.msk [vmem:[%s6789_s13 + $0x78] sm:$0xff] %vm639_vm4, %v5910_v20  ;;  %v5908_v41 = vpop.permute.xlu0 %5907 }
 0x9c6   : > { %5941 = vst.msk [vmem:[%s6789_s13 + $0x70] sm:$0xff] %vm639_vm4, %v5908_v41 }
 0x9c7 PF: > { %s15_s22 = sadd.s32 1, %s6701_s22   ;;  %s9565_s18 = smov %s6693_s20 }
 0x9c8   : > { %p12_p9 = scmp.ge.s32.totalorder %s15_s22, 6   ;;  %s9566_s19 = smov %s6697_s21 }
 0x9c9   : > { %s9567_s20 = smov %s9570_s23  ;;  %s9568_s21 = smov %s9574_s24 }
 0x9ca   :  { %14 = sbr.rel (!%p12_p9) target bundleno = 3 (0x3), region = 84 }

</bundles_post_ra>
